<compile_context>
chip_gen: v5e
topology: v5e:2x2
jax: 0.10.0
libtpu: 0.0.40
codegen_flags: <defaults>
</compile_context>

<pallas_src>
import jax
import jax.numpy as jnp
from jax.experimental import pallas as pl
from jax.experimental.pallas import tpu as pltpu

_EPS = 1e-5                 # PyTorch BatchNorm2d default eps
_MM_DTYPE = jnp.bfloat16    # MXU operand dtype (f32 accumulation)


def _round_up(v, m):
    return ((v + m - 1) // m) * m


def _nbytes(shape, dtype):
    n = 1
    for d in shape:
        n *= int(d)
    return n * jnp.dtype(dtype).itemsize


def _vmem_limit(block_bytes, scratch_bytes):
    # double-buffered blocks + scratch, 2x margin, clamped to [32, 64] MiB.
    need = 2 * (2 * block_bytes + scratch_bytes)
    return int(min(64 * 1024 * 1024, max(32 * 1024 * 1024, need)))


# ----------------------------------------------------------------------------
# Stage 1 kernel: idt = Conv3x3(x) ; h1 = Conv3x3(ReLU(BN1(x))) ;
#                 per-sample (sum, sumsq) of h1 for BatchNorm #2.
# Grid: (N,), one sample per step.
# ----------------------------------------------------------------------------
def _zero_halo(pad_ref):
    Hp, Wp, C = pad_ref.shape
    pad_ref[0:1, :, :] = jnp.zeros((1, Wp, C), pad_ref.dtype)
    pad_ref[Hp - 1:Hp, :, :] = jnp.zeros((1, Wp, C), pad_ref.dtype)
    pad_ref[:, 0:1, :] = jnp.zeros((Hp, 1, C), pad_ref.dtype)
    pad_ref[:, Wp - 1:Wp, :] = jnp.zeros((Hp, 1, C), pad_ref.dtype)


def _stage1_kernel(x_ref, mask_ref, sc1_ref, sh1_ref, w1_ref, b1_ref,
                   wi_ref, bi_ref,
                   h1_ref, idt_ref, st_ref,
                   pad_ref, slab_ref):
    _, H, W, Cin = x_ref.shape
    HW = H * W

    # 1-pixel zero halo + interior <- raw x (bf16 input, f32 pad buffer).
    _zero_halo(pad_ref)
    pad_ref[1:H + 1, 1:W + 1, :] = x_ref[0].astype(pad_ref.dtype)

    # im2col slab built ONCE from raw x (shared by the idt conv and conv1).
    for kh in range(3):
        for kw in range(3):
            t = kh * 3 + kw
            win = pad_ref[kh:kh + H, kw:kw + W, :].reshape(HW, Cin)
            slab_ref[:, t * Cin:(t + 1) * Cin] = win.astype(slab_ref.dtype)
    slab = slab_ref[...]

    # identity path: plain 3x3 conv on raw x -> one MXU matmul.
    idt = jnp.dot(slab, wi_ref[...],
                  preferred_element_type=jnp.float32) + bi_ref[...]
    idt_ref[0] = idt.astype(idt_ref.dtype)

    # main path: BN1 affine + ReLU applied to the slab in place; halo taps are
    # re-masked to zero (conv zero-padding); then conv1 as one MXU matmul.
    a = (jnp.maximum(slab.astype(jnp.float32) * sc1_ref[...] + sh1_ref[...],
                     0.0) * mask_ref[...]).astype(_MM_DTYPE)
    h = jnp.dot(a, w1_ref[...],
                preferred_element_type=jnp.float32) + b1_ref[...]
    h1_ref[0] = h.astype(h1_ref.dtype)

    # per-sample partial sums for BatchNorm #2 (reduced in the wrapper).
    s = jnp.sum(h, axis=0, keepdims=True)
    ss = jnp.sum(h * h, axis=0, keepdims=True)
    st_ref[0] = jnp.concatenate([s, ss], axis=0)


# ----------------------------------------------------------------------------
# Stage 2 kernel: h2 = Conv3x3(ReLU(BN2(h1))) + idt ; out = sigmoid(h2 . wl + bl)
# Grid: (N,), one sample per step.  No im2col slab: 9 accumulated matmuls on
# row-shifted slices of a zero-padded flat (HW + 2*PAD, Cp) activation buffer.
# ----------------------------------------------------------------------------
def _stage2_kernel(h1_ref, idt_ref, sc2_ref, sh2_ref, w2_ref, b2_ref, head_ref,
                   out_ref, apad_ref):
    _, HW, Cp = h1_ref.shape
    _, H, W = out_ref.shape
    PAD = (apad_ref.shape[0] - HW) // 2

    # BN2 affine + ReLU on the bf16 h1 block (f32 math, bf16 MXU operand).
    a = jnp.maximum(h1_ref[0].astype(jnp.float32) * sc2_ref[...] + sh2_ref[...],
                    0.0).astype(_MM_DTYPE)

    # zero flat-halo rows, then write the activation into the interior.
    apad_ref[0:PAD, :] = jnp.zeros((PAD, Cp), apad_ref.dtype)
    apad_ref[PAD + HW:PAD + HW + PAD, :] = jnp.zeros((PAD, Cp), apad_ref.dtype)
    apad_ref[PAD:PAD + HW, :] = a

    col = jax.lax.broadcasted_iota(jnp.int32, (HW, 1), 0) % W
    acc = idt_ref[0].astype(jnp.float32) + b2_ref[...]   # residual + conv2 bias
    for kh in range(3):
        for kw in range(3):
            dh, dw = kh - 1, kw - 1
            s = dh * W + dw
            shifted = a if s == 0 else apad_ref[PAD + s:PAD + s + HW, :]
            if dw == 0:
                tapped = shifted          # row halo handled by the zero pads
            else:
                ok = (col + dw >= 0) & (col + dw < W)
                tapped = jnp.where(ok, shifted, jnp.zeros_like(shifted))
            acc = acc + jnp.dot(tapped, w2_ref[kh * 3 + kw],
                                preferred_element_type=jnp.float32)

    # 1x1 head: VPU multiply + cross-lane reduce (no fake 128-wide matmul);
    # sigmoid via EUP exp + approx reciprocal; true-size (H, W) store.
    wl = head_ref[0:1, :].reshape(1, 1, Cp)
    bl = head_ref[1:2, 0:1]
    z = jnp.sum(acc.reshape(H, W, Cp) * wl, axis=-1) + bl
    out_ref[0] = pl.reciprocal(1.0 + jnp.exp(-z), approx=True)


# ----------------------------------------------------------------------------
# Public wrapper: NCHW in, NCHW out (PyTorch layout).
# ----------------------------------------------------------------------------
def resunet_forward(x_nchw, params):
    x = jnp.transpose(x_nchw, (0, 2, 3, 1)).astype(jnp.float32)   # NHWC f32
    N, H, W, Cin = x.shape
    depth = params["w1"].shape[-1]
    Cp = _round_up(depth, 128)        # lane-dense padded channel count
    HW = H * W
    K1 = 9 * Cin
    cnt = float(N * HW)

    # --- BatchNorm #1: biased batch statistics over (N,H,W), two-pass f32 ---
    mean1 = jnp.mean(x, axis=(0, 1, 2))
    var1 = jnp.mean(jnp.square(x - mean1), axis=(0, 1, 2))
    inv1 = jax.lax.rsqrt(var1 + _EPS)
    scale1 = params["g1"] * inv1
    shift1 = params["be1"] - mean1 * scale1
    scale1_t = jnp.tile(scale1, 9).reshape(1, K1).astype(jnp.float32)
    shift1_t = jnp.tile(shift1, 9).reshape(1, K1).astype(jnp.float32)

    # halo mask for the (HW, 9*Cin) im2col slab (1 = tap inside the image).
    ii = jnp.arange(HW, dtype=jnp.int32) // W
    jj = jnp.arange(HW, dtype=jnp.int32) % W
    cols = []
    for kh in range(3):
        for kw in range(3):
            dh, dw = kh - 1, kw - 1
            ok = ((ii + dh >= 0) & (ii + dh < H) &
                  (jj + dw >= 0) & (jj + dw < W))
            cols.append(jnp.broadcast_to(ok[:, None], (HW, Cin)))
    mask = jnp.concatenate(cols, axis=1).astype(jnp.float32)       # (HW, 9*Cin)

    def pad_c(v):
        return jnp.pad(v.astype(jnp.float32), (0, Cp - depth))

    w1 = jnp.pad(params["w1"], ((0, 0), (0, 0), (0, 0), (0, Cp - depth))
                 ).reshape(K1, Cp).astype(_MM_DTYPE)
    wi = jnp.pad(params["wi"], ((0, 0), (0, 0), (0, 0), (0, Cp - depth))
                 ).reshape(K1, Cp).astype(_MM_DTYPE)
    w2t = jnp.pad(params["w2"], ((0, 0), (0, 0), (0, Cp - depth), (0, Cp - depth))
                  ).reshape(9, Cp, Cp).astype(_MM_DTYPE)
    b1 = pad_c(params["b1"]).reshape(1, Cp)
    bi = pad_c(params["bi"]).reshape(1, Cp)
    b2 = pad_c(params["b2"]).reshape(1, Cp)
    g2 = pad_c(params["g2"])
    be2 = pad_c(params["be2"])
    head = jnp.stack([pad_c(params["wl"]),
                      jnp.full((Cp,), params["bl"], jnp.float32)], axis=0)

    x_bf = x.astype(_MM_DTYPE)        # halves the activation input DMA

    # ---------------- stage 1: idt conv + BN1/ReLU/conv1 + BN2 partials -----
    blk_a = (_nbytes((1, H, W, Cin), _MM_DTYPE)
             + _nbytes((HW, K1), jnp.float32)
             + 2 * _nbytes((1, K1), jnp.float32)
             + 2 * _nbytes((K1, Cp), _MM_DTYPE)
             + 2 * _nbytes((1, Cp), jnp.float32)
             + 2 * _nbytes((1, HW, Cp), _MM_DTYPE)
             + _nbytes((1, 2, Cp), jnp.float32))
    scr_a = (_nbytes((H + 2, W + 2, Cin), jnp.float32)
             + _nbytes((HW, K1), _MM_DTYPE))
    h1, idt, stats = pl.pallas_call(
        _stage1_kernel,
        out_shape=(jax.ShapeDtypeStruct((N, HW, Cp), _MM_DTYPE),
                   jax.ShapeDtypeStruct((N, HW, Cp), _MM_DTYPE),
                   jax.ShapeDtypeStruct((N, 2, Cp), jnp.float32)),
        grid=(N,),
        in_specs=[
            pl.BlockSpec((1, H, W, Cin), lambda n: (n, 0, 0, 0)),   # x
            pl.BlockSpec((HW, K1), lambda n: (0, 0)),               # halo mask
            pl.BlockSpec((1, K1), lambda n: (0, 0)),                # scale1
            pl.BlockSpec((1, K1), lambda n: (0, 0)),                # shift1
            pl.BlockSpec((K1, Cp), lambda n: (0, 0)),               # w1
            pl.BlockSpec((1, Cp), lambda n: (0, 0)),                # b1
            pl.BlockSpec((K1, Cp), lambda n: (0, 0)),               # wi
            pl.BlockSpec((1, Cp), lambda n: (0, 0)),                # bi
        ],
        out_specs=(
            pl.BlockSpec((1, HW, Cp), lambda n: (n, 0, 0)),         # h1
            pl.BlockSpec((1, HW, Cp), lambda n: (n, 0, 0)),         # idt
            pl.BlockSpec((1, 2, Cp), lambda n: (n, 0, 0)),          # BN2 partials
        ),
        scratch_shapes=[
            pltpu.VMEM((H + 2, W + 2, Cin), jnp.float32),           # padded x
            pltpu.VMEM((HW, K1), _MM_DTYPE),                        # im2col slab
        ],
        compiler_params=pltpu.CompilerParams(
            dimension_semantics=("parallel",),
            vmem_limit_bytes=_vmem_limit(blk_a, scr_a)),
    )(x_bf, mask, scale1_t, shift1_t, w1, b1, wi, bi)

    # --- BatchNorm #2 scale/shift from the kernel's per-sample partials -----
    mean2 = jnp.sum(stats[:, 0, :], axis=0) / cnt
    var2 = jnp.maximum(jnp.sum(stats[:, 1, :], axis=0) / cnt - mean2 * mean2,
                       0.0)
    inv2 = jax.lax.rsqrt(var2 + _EPS)
    scale2 = (g2 * inv2).reshape(1, Cp)
    shift2 = (be2 - mean2 * g2 * inv2).reshape(1, Cp)

    # ---------------- stage 2: BN2/ReLU/conv2 + residual + 1x1 head ---------
    PAD = _round_up(W + 1, 8)
    blk_b = (2 * _nbytes((1, HW, Cp), _MM_DTYPE)
             + 4 * _nbytes((1, Cp), jnp.float32)
             + _nbytes((9, Cp, Cp), _MM_DTYPE)
             + _nbytes((2, Cp), jnp.float32)
             + _nbytes((1, H, W), jnp.float32))
    scr_b = _nbytes((HW + 2 * PAD, Cp), _MM_DTYPE)
    out = pl.pallas_call(
        _stage2_kernel,
        out_shape=jax.ShapeDtypeStruct((N, H, W), jnp.float32),
        grid=(N,),
        in_specs=[
            pl.BlockSpec((1, HW, Cp), lambda n: (n, 0, 0)),         # h1
            pl.BlockSpec((1, HW, Cp), lambda n: (n, 0, 0)),         # idt
            pl.BlockSpec((1, Cp), lambda n: (0, 0)),                # scale2
            pl.BlockSpec((1, Cp), lambda n: (0, 0)),                # shift2
            pl.BlockSpec((9, Cp, Cp), lambda n: (0, 0, 0)),         # w2 taps
            pl.BlockSpec((1, Cp), lambda n: (0, 0)),                # b2
            pl.BlockSpec((2, Cp), lambda n: (0, 0)),                # [wl; bl]
        ],
        out_specs=pl.BlockSpec((1, H, W), lambda n: (n, 0, 0)),
        scratch_shapes=[pltpu.VMEM((HW + 2 * PAD, Cp), _MM_DTYPE)],
        compiler_params=pltpu.CompilerParams(
            dimension_semantics=("parallel",),
            vmem_limit_bytes=_vmem_limit(blk_b, scr_b)),
    )(h1, idt, scale2, shift2, w2t, b2, head)

    return out[:, None, :, :]                                # (N, 1, H, W)


# ----------------------------------------------------------------------------
# Pure-JAX reference (f32, lax.conv) for correctness checking.
# ----------------------------------------------------------------------------
def reference_forward(x_nchw, params, eps=_EPS):
    x = jnp.transpose(x_nchw, (0, 2, 3, 1)).astype(jnp.float32)

    def bn_relu(h, g, b):
        m = jnp.mean(h, axis=(0, 1, 2))
        v = jnp.mean((h - m) ** 2, axis=(0, 1, 2))
        return jnp.maximum((h - m) / jnp.sqrt(v + eps) * g + b, 0.0)

    def conv3(h, w, b):
        return jax.lax.conv_general_dilated(
            h, w, window_strides=(1, 1), padding=((1, 1), (1, 1)),
            dimension_numbers=("NHWC", "HWIO", "NHWC")) + b

    h = conv3(bn_relu(x, params["g1"], params["be1"]), params["w1"], params["b1"])
    h = conv3(bn_relu(h, params["g2"], params["be2"]), params["w2"], params["b2"])
    y = h + conv3(x, params["wi"], params["bi"])
    z = jnp.einsum("nhwc,c->nhw", y, params["wl"]) + params["bl"]
    return jax.nn.sigmoid(z)[:, None, :, :]                   # (N, 1, H, W)


if __name__ == "__main__":
    key = jax.random.PRNGKey(0)
    N, Cin, H, W, depth = 2, 8, 16, 16, 16
    ks = jax.random.split(key, 13)

    x = jax.random.normal(ks[0], (N, Cin, H, W), jnp.float32)
    params = {
        "g1": 1.0 + 0.1 * jax.random.normal(ks[1], (Cin,), jnp.float32),
        "be1": 0.1 * jax.random.normal(ks[2], (Cin,), jnp.float32),
        "w1": 0.1 * jax.random.normal(ks[3], (3, 3, Cin, depth), jnp.float32),
        "b1": 0.05 * jax.random.normal(ks[4], (depth,), jnp.float32),
        "g2": 1.0 + 0.1 * jax.random.normal(ks[5], (depth,), jnp.float32),
        "be2": 0.1 * jax.random.normal(ks[6], (depth,), jnp.float32),
        "w2": 0.1 * jax.random.normal(ks[7], (3, 3, depth, depth), jnp.float32),
        "b2": 0.05 * jax.random.normal(ks[8], (depth,), jnp.float32),
        "wi": 0.1 * jax.random.normal(ks[9], (3, 3, Cin, depth), jnp.float32),
        "bi": 0.05 * jax.random.normal(ks[10], (depth,), jnp.float32),
        "wl": 0.1 * jax.random.normal(ks[11], (depth,), jnp.float32),
        "bl": 0.05 * jax.random.normal(ks[12], (), jnp.float32),
    }

    out = jax.block_until_ready(jax.jit(resunet_forward)(x, params))
    ref = jax.block_until_ready(jax.jit(reference_forward)(x, params))

    assert out.shape == (N, 1, H, W), out.shape
    assert bool(jnp.all(jnp.isfinite(out)))
    max_diff = float(jnp.max(jnp.abs(out - ref)))
    # bf16 MXU operands / bf16 inter-stage tensors vs the f32 reference.
    assert max_diff < 5e-2, f"mismatch vs reference: {max_diff}"

    print("KERNEL_OK")
</pallas_src>

<mosaic_0001>
module attributes {stable_mosaic.version = 11 : i64} {
  func.func @_stage1_kernel(%arg0: i32, %arg1: memref<1x16x16x8xbf16, #tpu.memory_space<vmem>>, %arg2: memref<256x72xf32, #tpu.memory_space<vmem>>, %arg3: memref<1x72xf32, #tpu.memory_space<vmem>>, %arg4: memref<1x72xf32, #tpu.memory_space<vmem>>, %arg5: memref<72x128xbf16, #tpu.memory_space<vmem>>, %arg6: memref<1x128xf32, #tpu.memory_space<vmem>>, %arg7: memref<72x128xbf16, #tpu.memory_space<vmem>>, %arg8: memref<1x128xf32, #tpu.memory_space<vmem>>, %arg9: memref<1x256x128xbf16, #tpu.memory_space<vmem>>, %arg10: memref<1x256x128xbf16, #tpu.memory_space<vmem>>, %arg11: memref<1x2x128xf32, #tpu.memory_space<vmem>>, %arg12: memref<18x18x8xf32, #tpu.memory_space<vmem>>, %arg13: memref<256x72xbf16, #tpu.memory_space<vmem>>) attributes {dimension_semantics = [#tpu.dimension_semantics<parallel>], iteration_bounds = array<i64: 2>, scalar_prefetch = 0 : i64, scratch_operands = 2 : i64, tpu.core_type = #tpu.core_type<tc>, window_params = [{transform_indices = @transform_0, window_bounds = array<i64: 1, 16, 16, 8>}, {pipeline_mode = #tpu.pipeline_mode<synchronous>, transform_indices = @transform_1, window_bounds = array<i64: 256, 72>}, {pipeline_mode = #tpu.pipeline_mode<synchronous>, transform_indices = @transform_2, window_bounds = array<i64: 1, 72>}, {pipeline_mode = #tpu.pipeline_mode<synchronous>, transform_indices = @transform_3, window_bounds = array<i64: 1, 72>}, {pipeline_mode = #tpu.pipeline_mode<synchronous>, transform_indices = @transform_4, window_bounds = array<i64: 72, 128>}, {pipeline_mode = #tpu.pipeline_mode<synchronous>, transform_indices = @transform_5, window_bounds = array<i64: 1, 128>}, {pipeline_mode = #tpu.pipeline_mode<synchronous>, transform_indices = @transform_6, window_bounds = array<i64: 72, 128>}, {pipeline_mode = #tpu.pipeline_mode<synchronous>, transform_indices = @transform_7, window_bounds = array<i64: 1, 128>}, {transform_indices = @transform_8, window_bounds = array<i64: 1, 256, 128>}, {transform_indices = @transform_9, window_bounds = array<i64: 1, 256, 128>}, {transform_indices = @transform_10, window_bounds = array<i64: 1, 2, 128>}]} {
    %cst = arith.constant 0.000000e+00 : f32
    %0 = vector.broadcast %cst : f32 to vector<1x18x8xf32>
    %c0 = arith.constant 0 : index
    %c0_0 = arith.constant 0 : index
    %c0_1 = arith.constant 0 : index
    %1 = vector.load %arg12[%c0, %c0_0, %c0_1] : memref<18x18x8xf32, #tpu.memory_space<vmem>>, vector<1x18x8xf32>
    tpu.vector_store %arg12[%c0, %c0_0, %c0_1], %0 {strides = array<i32>} : memref<18x18x8xf32, #tpu.memory_space<vmem>>, vector<1x18x8xf32>,
    %cst_2 = arith.constant 0.000000e+00 : f32
    %2 = vector.broadcast %cst_2 : f32 to vector<1x18x8xf32>
    %c17 = arith.constant 17 : index
    %c0_3 = arith.constant 0 : index
    %c0_4 = arith.constant 0 : index
    %3 = vector.load %arg12[%c17, %c0_3, %c0_4] : memref<18x18x8xf32, #tpu.memory_space<vmem>>, vector<1x18x8xf32>
    tpu.vector_store %arg12[%c17, %c0_3, %c0_4], %2 {strides = array<i32>} : memref<18x18x8xf32, #tpu.memory_space<vmem>>, vector<1x18x8xf32>,
    %cst_5 = arith.constant 0.000000e+00 : f32
    %4 = vector.broadcast %cst_5 : f32 to vector<18x1x8xf32>
    %c0_6 = arith.constant 0 : index
    %c0_7 = arith.constant 0 : index
    %c0_8 = arith.constant 0 : index
    %5 = vector.load %arg12[%c0_6, %c0_7, %c0_8] : memref<18x18x8xf32, #tpu.memory_space<vmem>>, vector<18x1x8xf32>
    tpu.vector_store %arg12[%c0_6, %c0_7, %c0_8], %4 {strides = array<i32>} : memref<18x18x8xf32, #tpu.memory_space<vmem>>, vector<18x1x8xf32>,
    %cst_9 = arith.constant 0.000000e+00 : f32
    %6 = vector.broadcast %cst_9 : f32 to vector<18x1x8xf32>
    %c0_10 = arith.constant 0 : index
    %c17_11 = arith.constant 17 : index
    %c0_12 = arith.constant 0 : index
    %7 = vector.load %arg12[%c0_10, %c17_11, %c0_12] : memref<18x18x8xf32, #tpu.memory_space<vmem>>, vector<18x1x8xf32>
    tpu.vector_store %arg12[%c0_10, %c17_11, %c0_12], %6 {strides = array<i32>} : memref<18x18x8xf32, #tpu.memory_space<vmem>>, vector<18x1x8xf32>,
    %c0_13 = arith.constant 0 : index
    %c0_14 = arith.constant 0 : index
    %c0_15 = arith.constant 0 : index
    %c0_16 = arith.constant 0 : index
    %8 = vector.load %arg1[%c0_13, %c0_14, %c0_15, %c0_16] : memref<1x16x16x8xbf16, #tpu.memory_space<vmem>>, vector<1x16x16x8xbf16>
    %9 = vector.shape_cast %8 : vector<1x16x16x8xbf16> to vector<16x16x8xbf16>
    %10 = arith.extf %9 : vector<16x16x8xbf16> to vector<16x16x8xf32>
    %c1 = arith.constant 1 : index
    %c1_17 = arith.constant 1 : index
    %c0_18 = arith.constant 0 : index
    %11 = vector.load %arg12[%c1, %c1_17, %c0_18] : memref<18x18x8xf32, #tpu.memory_space<vmem>>, vector<16x16x8xf32>
    tpu.vector_store %arg12[%c1, %c1_17, %c0_18], %10 {strides = array<i32>} : memref<18x18x8xf32, #tpu.memory_space<vmem>>, vector<16x16x8xf32>,
    %c0_19 = arith.constant 0 : index
    %c0_20 = arith.constant 0 : index
    %c0_21 = arith.constant 0 : index
    %12 = vector.load %arg12[%c0_19, %c0_20, %c0_21] : memref<18x18x8xf32, #tpu.memory_space<vmem>>, vector<16x16x8xf32>
    %13 = vector.shape_cast %12 : vector<16x16x8xf32> to vector<256x8xf32>
    %14 = arith.truncf %13 : vector<256x8xf32> to vector<256x8xbf16>
    %c0_22 = arith.constant 0 : index
    %c0_23 = arith.constant 0 : index
    %15 = vector.load %arg13[%c0_22, %c0_23] : memref<256x72xbf16, #tpu.memory_space<vmem>>, vector<256x8xbf16>
    tpu.vector_store %arg13[%c0_22, %c0_23], %14 {strides = array<i32>} : memref<256x72xbf16, #tpu.memory_space<vmem>>, vector<256x8xbf16>,
    %c0_24 = arith.constant 0 : index
    %c1_25 = arith.constant 1 : index
    %c0_26 = arith.constant 0 : index
    %16 = vector.load %arg12[%c0_24, %c1_25, %c0_26] : memref<18x18x8xf32, #tpu.memory_space<vmem>>, vector<16x16x8xf32>
    %17 = vector.shape_cast %16 : vector<16x16x8xf32> to vector<256x8xf32>
    %18 = arith.truncf %17 : vector<256x8xf32> to vector<256x8xbf16>
    %c0_27 = arith.constant 0 : index
    %c8 = arith.constant 8 : index
    %19 = vector.load %arg13[%c0_27, %c8] : memref<256x72xbf16, #tpu.memory_space<vmem>>, vector<256x8xbf16>
    tpu.vector_store %arg13[%c0_27, %c8], %18 {strides = array<i32>} : memref<256x72xbf16, #tpu.memory_space<vmem>>, vector<256x8xbf16>,
    %c0_28 = arith.constant 0 : index
    %c2 = arith.constant 2 : index
    %c0_29 = arith.constant 0 : index
    %20 = vector.load %arg12[%c0_28, %c2, %c0_29] : memref<18x18x8xf32, #tpu.memory_space<vmem>>, vector<16x16x8xf32>
    %21 = vector.shape_cast %20 : vector<16x16x8xf32> to vector<256x8xf32>
    %22 = arith.truncf %21 : vector<256x8xf32> to vector<256x8xbf16>
    %c0_30 = arith.constant 0 : index
    %c16 = arith.constant 16 : index
    %23 = vector.load %arg13[%c0_30, %c16] : memref<256x72xbf16, #tpu.memory_space<vmem>>, vector<256x8xbf16>
    tpu.vector_store %arg13[%c0_30, %c16], %22 {strides = array<i32>} : memref<256x72xbf16, #tpu.memory_space<vmem>>, vector<256x8xbf16>,
    %c1_31 = arith.constant 1 : index
    %c0_32 = arith.constant 0 : index
    %c0_33 = arith.constant 0 : index
    %24 = vector.load %arg12[%c1_31, %c0_32, %c0_33] : memref<18x18x8xf32, #tpu.memory_space<vmem>>, vector<16x16x8xf32>
    %25 = vector.shape_cast %24 : vector<16x16x8xf32> to vector<256x8xf32>
    %26 = arith.truncf %25 : vector<256x8xf32> to vector<256x8xbf16>
    %c0_34 = arith.constant 0 : index
    %c24 = arith.constant 24 : index
    %27 = vector.load %arg13[%c0_34, %c24] : memref<256x72xbf16, #tpu.memory_space<vmem>>, vector<256x8xbf16>
    tpu.vector_store %arg13[%c0_34, %c24], %26 {strides = array<i32>} : memref<256x72xbf16, #tpu.memory_space<vmem>>, vector<256x8xbf16>,
    %c1_35 = arith.constant 1 : index
    %c1_36 = arith.constant 1 : index
    %c0_37 = arith.constant 0 : index
    %28 = vector.load %arg12[%c1_35, %c1_36, %c0_37] : memref<18x18x8xf32, #tpu.memory_space<vmem>>, vector<16x16x8xf32>
    %29 = vector.shape_cast %28 : vector<16x16x8xf32> to vector<256x8xf32>
    %30 = arith.truncf %29 : vector<256x8xf32> to vector<256x8xbf16>
    %c0_38 = arith.constant 0 : index
    %c32 = arith.constant 32 : index
    %31 = vector.load %arg13[%c0_38, %c32] : memref<256x72xbf16, #tpu.memory_space<vmem>>, vector<256x8xbf16>
    tpu.vector_store %arg13[%c0_38, %c32], %30 {strides = array<i32>} : memref<256x72xbf16, #tpu.memory_space<vmem>>, vector<256x8xbf16>,
    %c1_39 = arith.constant 1 : index
    %c2_40 = arith.constant 2 : index
    %c0_41 = arith.constant 0 : index
    %32 = vector.load %arg12[%c1_39, %c2_40, %c0_41] : memref<18x18x8xf32, #tpu.memory_space<vmem>>, vector<16x16x8xf32>
    %33 = vector.shape_cast %32 : vector<16x16x8xf32> to vector<256x8xf32>
    %34 = arith.truncf %33 : vector<256x8xf32> to vector<256x8xbf16>
    %c0_42 = arith.constant 0 : index
    %c40 = arith.constant 40 : index
    %35 = vector.load %arg13[%c0_42, %c40] : memref<256x72xbf16, #tpu.memory_space<vmem>>, vector<256x8xbf16>
    tpu.vector_store %arg13[%c0_42, %c40], %34 {strides = array<i32>} : memref<256x72xbf16, #tpu.memory_space<vmem>>, vector<256x8xbf16>,
    %c2_43 = arith.constant 2 : index
    %c0_44 = arith.constant 0 : index
    %c0_45 = arith.constant 0 : index
    %36 = vector.load %arg12[%c2_43, %c0_44, %c0_45] : memref<18x18x8xf32, #tpu.memory_space<vmem>>, vector<16x16x8xf32>
    %37 = vector.shape_cast %36 : vector<16x16x8xf32> to vector<256x8xf32>
    %38 = arith.truncf %37 : vector<256x8xf32> to vector<256x8xbf16>
    %c0_46 = arith.constant 0 : index
    %c48 = arith.constant 48 : index
    %39 = vector.load %arg13[%c0_46, %c48] : memref<256x72xbf16, #tpu.memory_space<vmem>>, vector<256x8xbf16>
    tpu.vector_store %arg13[%c0_46, %c48], %38 {strides = array<i32>} : memref<256x72xbf16, #tpu.memory_space<vmem>>, vector<256x8xbf16>,
    %c2_47 = arith.constant 2 : index
    %c1_48 = arith.constant 1 : index
    %c0_49 = arith.constant 0 : index
    %40 = vector.load %arg12[%c2_47, %c1_48, %c0_49] : memref<18x18x8xf32, #tpu.memory_space<vmem>>, vector<16x16x8xf32>
    %41 = vector.shape_cast %40 : vector<16x16x8xf32> to vector<256x8xf32>
    %42 = arith.truncf %41 : vector<256x8xf32> to vector<256x8xbf16>
    %c0_50 = arith.constant 0 : index
    %c56 = arith.constant 56 : index
    %43 = vector.load %arg13[%c0_50, %c56] : memref<256x72xbf16, #tpu.memory_space<vmem>>, vector<256x8xbf16>
    tpu.vector_store %arg13[%c0_50, %c56], %42 {strides = array<i32>} : memref<256x72xbf16, #tpu.memory_space<vmem>>, vector<256x8xbf16>,
    %c2_51 = arith.constant 2 : index
    %c2_52 = arith.constant 2 : index
    %c0_53 = arith.constant 0 : index
    %44 = vector.load %arg12[%c2_51, %c2_52, %c0_53] : memref<18x18x8xf32, #tpu.memory_space<vmem>>, vector<16x16x8xf32>
    %45 = vector.shape_cast %44 : vector<16x16x8xf32> to vector<256x8xf32>
    %46 = arith.truncf %45 : vector<256x8xf32> to vector<256x8xbf16>
    %c0_54 = arith.constant 0 : index
    %c64 = arith.constant 64 : index
    %47 = vector.load %arg13[%c0_54, %c64] : memref<256x72xbf16, #tpu.memory_space<vmem>>, vector<256x8xbf16>
    tpu.vector_store %arg13[%c0_54, %c64], %46 {strides = array<i32>} : memref<256x72xbf16, #tpu.memory_space<vmem>>, vector<256x8xbf16>,
    %c0_55 = arith.constant 0 : index
    %c0_56 = arith.constant 0 : index
    %48 = vector.load %arg13[%c0_55, %c0_56] : memref<256x72xbf16, #tpu.memory_space<vmem>>, vector<256x72xbf16>
    %c0_57 = arith.constant 0 : index
    %c0_58 = arith.constant 0 : index
    %49 = vector.load %arg7[%c0_57, %c0_58] : memref<72x128xbf16, #tpu.memory_space<vmem>>, vector<72x128xbf16>
    %cst_59 = arith.constant dense<0.000000e+00> : vector<256x128xf32>
    %50 = tpu.matmul %48, %49, %cst_59 {dimension_numbers = #tpu.dot_dimension_numbers<[1], [0], [0], [1], [0, 0, 1, 1], [], []>} : vector<256x72xbf16>, vector<72x128xbf16>, vector<256x128xf32> -> vector<256x128xf32>
    %c0_60 = arith.constant 0 : index
    %c0_61 = arith.constant 0 : index
    %51 = vector.load %arg8[%c0_60, %c0_61] : memref<1x128xf32, #tpu.memory_space<vmem>>, vector<1x128xf32>
    %52 = vector.broadcast %51 : vector<1x128xf32> to vector<256x128xf32>
    %53 = arith.addf %50, %52 : vector<256x128xf32>
    %54 = arith.truncf %53 : vector<256x128xf32> to vector<256x128xbf16>
    %c0_62 = arith.constant 0 : index
    %c0_63 = arith.constant 0 : index
    %c0_64 = arith.constant 0 : index
    %55 = vector.load %arg10[%c0_62, %c0_63, %c0_64] : memref<1x256x128xbf16, #tpu.memory_space<vmem>>, vector<1x256x128xbf16>
    %56 = vector.shape_cast %55 : vector<1x256x128xbf16> to vector<256x128xbf16>
    %57 = vector.shape_cast %54 : vector<256x128xbf16> to vector<1x256x128xbf16>
    tpu.vector_store %arg10[%c0_62, %c0_63, %c0_64], %57 {strides = array<i32>} : memref<1x256x128xbf16, #tpu.memory_space<vmem>>, vector<1x256x128xbf16>,
    %58 = arith.extf %48 : vector<256x72xbf16> to vector<256x72xf32>
    %c0_65 = arith.constant 0 : index
    %c0_66 = arith.constant 0 : index
    %59 = vector.load %arg3[%c0_65, %c0_66] : memref<1x72xf32, #tpu.memory_space<vmem>>, vector<1x72xf32>
    %60 = vector.broadcast %59 : vector<1x72xf32> to vector<256x72xf32>
    %61 = arith.mulf %58, %60 : vector<256x72xf32>
    %c0_67 = arith.constant 0 : index
    %c0_68 = arith.constant 0 : index
    %62 = vector.load %arg4[%c0_67, %c0_68] : memref<1x72xf32, #tpu.memory_space<vmem>>, vector<1x72xf32>
    %63 = vector.broadcast %62 : vector<1x72xf32> to vector<256x72xf32>
    %64 = arith.addf %61, %63 : vector<256x72xf32>
    %cst_69 = arith.constant 0.000000e+00 : f32
    %65 = vector.broadcast %cst_69 : f32 to vector<256x72xf32>
    %66 = arith.maximumf %64, %65 : vector<256x72xf32>
    %c0_70 = arith.constant 0 : index
    %c0_71 = arith.constant 0 : index
    %67 = vector.load %arg2[%c0_70, %c0_71] : memref<256x72xf32, #tpu.memory_space<vmem>>, vector<256x72xf32>
    %68 = arith.mulf %66, %67 : vector<256x72xf32>
    %69 = arith.truncf %68 : vector<256x72xf32> to vector<256x72xbf16>
    %c0_72 = arith.constant 0 : index
    %c0_73 = arith.constant 0 : index
    %70 = vector.load %arg5[%c0_72, %c0_73] : memref<72x128xbf16, #tpu.memory_space<vmem>>, vector<72x128xbf16>
    %cst_74 = arith.constant dense<0.000000e+00> : vector<256x128xf32>
    %71 = tpu.matmul %69, %70, %cst_74 {dimension_numbers = #tpu.dot_dimension_numbers<[1], [0], [0], [1], [0, 0, 1, 1], [], []>} : vector<256x72xbf16>, vector<72x128xbf16>, vector<256x128xf32> -> vector<256x128xf32>
    %c0_75 = arith.constant 0 : index
    %c0_76 = arith.constant 0 : index
    %72 = vector.load %arg6[%c0_75, %c0_76] : memref<1x128xf32, #tpu.memory_space<vmem>>, vector<1x128xf32>
    %73 = vector.broadcast %72 : vector<1x128xf32> to vector<256x128xf32>
    %74 = arith.addf %71, %73 : vector<256x128xf32>
    %75 = arith.truncf %74 : vector<256x128xf32> to vector<256x128xbf16>
    %c0_77 = arith.constant 0 : index
    %c0_78 = arith.constant 0 : index
    %c0_79 = arith.constant 0 : index
    %76 = vector.load %arg9[%c0_77, %c0_78, %c0_79] : memref<1x256x128xbf16, #tpu.memory_space<vmem>>, vector<1x256x128xbf16>
    %77 = vector.shape_cast %76 : vector<1x256x128xbf16> to vector<256x128xbf16>
    %78 = vector.shape_cast %75 : vector<256x128xbf16> to vector<1x256x128xbf16>
    tpu.vector_store %arg9[%c0_77, %c0_78, %c0_79], %78 {strides = array<i32>} : memref<1x256x128xbf16, #tpu.memory_space<vmem>>, vector<1x256x128xbf16>,
    %cst_80 = arith.constant dense<0.000000e+00> : vector<128xf32>
    %79 = vector.multi_reduction <add>, %74, %cst_80 [0] : vector<256x128xf32> to vector<128xf32>
    %80 = vector.shape_cast %79 : vector<128xf32> to vector<1x128xf32>
    %81 = arith.mulf %74, %74 : vector<256x128xf32>
    %cst_81 = arith.constant dense<0.000000e+00> : vector<128xf32>
    %82 = vector.multi_reduction <add>, %81, %cst_81 [0] : vector<256x128xf32> to vector<128xf32>
    %83 = vector.shape_cast %82 : vector<128xf32> to vector<1x128xf32>
    %84 = tpu.concatenate %80, %83 in 0 : vector<1x128xf32>, vector<1x128xf32> -> vector<2x128xf32>
    %c0_82 = arith.constant 0 : index
    %c0_83 = arith.constant 0 : index
    %c0_84 = arith.constant 0 : index
    %85 = vector.load %arg11[%c0_82, %c0_83, %c0_84] : memref<1x2x128xf32, #tpu.memory_space<vmem>>, vector<1x2x128xf32>
    %86 = vector.shape_cast %85 : vector<1x2x128xf32> to vector<2x128xf32>
    %87 = vector.shape_cast %84 : vector<2x128xf32> to vector<1x2x128xf32>
    tpu.vector_store %arg11[%c0_82, %c0_83, %c0_84], %87 {strides = array<i32>} : memref<1x2x128xf32, #tpu.memory_space<vmem>>, vector<1x2x128xf32>,
    return
  }
  func.func @transform_0(%arg0: i32) -> (i32, i32, i32, i32) {
    %c0_i32 = arith.constant 0 : i32
    %c0_i32_0 = arith.constant 0 : i32
    %c0_i32_1 = arith.constant 0 : i32
    %c0_i32_2 = arith.constant 0 : i32
    return %arg0, %c0_i32, %c0_i32_0, %c0_i32_1 : i32, i32, i32, i32
  }
  func.func @transform_1(%arg0: i32) -> (i32, i32) {
    %c0_i32 = arith.constant 0 : i32
    %c0_i32_0 = arith.constant 0 : i32
    %c0_i32_1 = arith.constant 0 : i32
    return %c0_i32, %c0_i32_0 : i32, i32
  }
  func.func @transform_2(%arg0: i32) -> (i32, i32) {
    %c0_i32 = arith.constant 0 : i32
    %c0_i32_0 = arith.constant 0 : i32
    %c0_i32_1 = arith.constant 0 : i32
    return %c0_i32, %c0_i32_0 : i32, i32
  }
  func.func @transform_3(%arg0: i32) -> (i32, i32) {
    %c0_i32 = arith.constant 0 : i32
    %c0_i32_0 = arith.constant 0 : i32
    %c0_i32_1 = arith.constant 0 : i32
    return %c0_i32, %c0_i32_0 : i32, i32
  }
  func.func @transform_4(%arg0: i32) -> (i32, i32) {
    %c0_i32 = arith.constant 0 : i32
    %c0_i32_0 = arith.constant 0 : i32
    %c0_i32_1 = arith.constant 0 : i32
    return %c0_i32, %c0_i32_0 : i32, i32
  }
  func.func @transform_5(%arg0: i32) -> (i32, i32) {
    %c0_i32 = arith.constant 0 : i32
    %c0_i32_0 = arith.constant 0 : i32
    %c0_i32_1 = arith.constant 0 : i32
    return %c0_i32, %c0_i32_0 : i32, i32
  }
  func.func @transform_6(%arg0: i32) -> (i32, i32) {
    %c0_i32 = arith.constant 0 : i32
    %c0_i32_0 = arith.constant 0 : i32
    %c0_i32_1 = arith.constant 0 : i32
    return %c0_i32, %c0_i32_0 : i32, i32
  }
  func.func @transform_7(%arg0: i32) -> (i32, i32) {
    %c0_i32 = arith.constant 0 : i32
    %c0_i32_0 = arith.constant 0 : i32
    %c0_i32_1 = arith.constant 0 : i32
    return %c0_i32, %c0_i32_0 : i32, i32
  }
  func.func @transform_8(%arg0: i32) -> (i32, i32, i32) {
    %c0_i32 = arith.constant 0 : i32
    %c0_i32_0 = arith.constant 0 : i32
    %c0_i32_1 = arith.constant 0 : i32
    return %arg0, %c0_i32, %c0_i32_0 : i32, i32, i32
  }
  func.func @transform_9(%arg0: i32) -> (i32, i32, i32) {
    %c0_i32 = arith.constant 0 : i32
    %c0_i32_0 = arith.constant 0 : i32
    %c0_i32_1 = arith.constant 0 : i32
    return %arg0, %c0_i32, %c0_i32_0 : i32, i32, i32
  }
  func.func @transform_10(%arg0: i32) -> (i32, i32, i32) {
    %c0_i32 = arith.constant 0 : i32
    %c0_i32_0 = arith.constant 0 : i32
    %c0_i32_1 = arith.constant 0 : i32
    return %arg0, %c0_i32, %c0_i32_0 : i32, i32, i32
  }
}

module attributes {stable_mosaic.version = 11 : i64} {
  func.func @_stage2_kernel(%arg0: i32, %arg1: memref<1x256x128xbf16, #tpu.memory_space<vmem>>, %arg2: memref<1x256x128xbf16, #tpu.memory_space<vmem>>, %arg3: memref<1x128xf32, #tpu.memory_space<vmem>>, %arg4: memref<1x128xf32, #tpu.memory_space<vmem>>, %arg5: memref<9x128x128xbf16, #tpu.memory_space<vmem>>, %arg6: memref<1x128xf32, #tpu.memory_space<vmem>>, %arg7: memref<2x128xf32, #tpu.memory_space<vmem>>, %arg8: memref<1x16x16xf32, #tpu.memory_space<vmem>>, %arg9: memref<304x128xbf16, #tpu.memory_space<vmem>>) attributes {dimension_semantics = [#tpu.dimension_semantics<parallel>], iteration_bounds = array<i64: 2>, scalar_prefetch = 0 : i64, scratch_operands = 1 : i64, tpu.core_type = #tpu.core_type<tc>, window_params = [{transform_indices = @transform_0, window_bounds = array<i64: 1, 256, 128>}, {transform_indices = @transform_1, window_bounds = array<i64: 1, 256, 128>}, {pipeline_mode = #tpu.pipeline_mode<synchronous>, transform_indices = @transform_2, window_bounds = array<i64: 1, 128>}, {pipeline_mode = #tpu.pipeline_mode<synchronous>, transform_indices = @transform_3, window_bounds = array<i64: 1, 128>}, {pipeline_mode = #tpu.pipeline_mode<synchronous>, transform_indices = @transform_4, window_bounds = array<i64: 9, 128, 128>}, {pipeline_mode = #tpu.pipeline_mode<synchronous>, transform_indices = @transform_5, window_bounds = array<i64: 1, 128>}, {pipeline_mode = #tpu.pipeline_mode<synchronous>, transform_indices = @transform_6, window_bounds = array<i64: 2, 128>}, {transform_indices = @transform_7, window_bounds = array<i64: 1, 16, 16>}]} {
    %c0 = arith.constant 0 : index
    %c0_0 = arith.constant 0 : index
    %c0_1 = arith.constant 0 : index
    %0 = vector.load %arg1[%c0, %c0_0, %c0_1] : memref<1x256x128xbf16, #tpu.memory_space<vmem>>, vector<1x256x128xbf16>
    %1 = vector.shape_cast %0 : vector<1x256x128xbf16> to vector<256x128xbf16>
    %2 = arith.extf %1 : vector<256x128xbf16> to vector<256x128xf32>
    %c0_2 = arith.constant 0 : index
    %c0_3 = arith.constant 0 : index
    %3 = vector.load %arg3[%c0_2, %c0_3] : memref<1x128xf32, #tpu.memory_space<vmem>>, vector<1x128xf32>
    %4 = vector.broadcast %3 : vector<1x128xf32> to vector<256x128xf32>
    %5 = arith.mulf %2, %4 : vector<256x128xf32>
    %c0_4 = arith.constant 0 : index
    %c0_5 = arith.constant 0 : index
    %6 = vector.load %arg4[%c0_4, %c0_5] : memref<1x128xf32, #tpu.memory_space<vmem>>, vector<1x128xf32>
    %7 = vector.broadcast %6 : vector<1x128xf32> to vector<256x128xf32>
    %8 = arith.addf %5, %7 : vector<256x128xf32>
    %cst = arith.constant 0.000000e+00 : f32
    %9 = vector.broadcast %cst : f32 to vector<256x128xf32>
    %10 = arith.maximumf %8, %9 : vector<256x128xf32>
    %11 = arith.truncf %10 : vector<256x128xf32> to vector<256x128xbf16>
    %cst_6 = arith.constant 0.000000e+00 : bf16
    %12 = vector.broadcast %cst_6 : bf16 to vector<24x128xbf16>
    %c0_7 = arith.constant 0 : index
    %c0_8 = arith.constant 0 : index
    %13 = vector.load %arg9[%c0_7, %c0_8] : memref<304x128xbf16, #tpu.memory_space<vmem>>, vector<24x128xbf16>
    tpu.vector_store %arg9[%c0_7, %c0_8], %12 {strides = array<i32>} : memref<304x128xbf16, #tpu.memory_space<vmem>>, vector<24x128xbf16>,
    %cst_9 = arith.constant 0.000000e+00 : bf16
    %14 = vector.broadcast %cst_9 : bf16 to vector<24x128xbf16>
    %c280 = arith.constant 280 : index
    %c0_10 = arith.constant 0 : index
    %15 = vector.load %arg9[%c280, %c0_10] : memref<304x128xbf16, #tpu.memory_space<vmem>>, vector<24x128xbf16>
    tpu.vector_store %arg9[%c280, %c0_10], %14 {strides = array<i32>} : memref<304x128xbf16, #tpu.memory_space<vmem>>, vector<24x128xbf16>,
    %c24 = arith.constant 24 : index
    %c0_11 = arith.constant 0 : index
    %16 = vector.load %arg9[%c24, %c0_11] : memref<304x128xbf16, #tpu.memory_space<vmem>>, vector<256x128xbf16>
    tpu.vector_store %arg9[%c24, %c0_11], %11 {strides = array<i32>} : memref<304x128xbf16, #tpu.memory_space<vmem>>, vector<256x128xbf16>,
    %17 = tpu.iota {dimensions = array<i32: 0>} : vector<256x1xi32>
    %c16_i32 = arith.constant 16 : i32
    %c0_i32 = arith.constant 0 : i32
    %18 = arith.cmpi eq, %c16_i32, %c0_i32 : i32
    %c1_i32 = arith.constant 1 : i32
    %19 = arith.select %18, %c1_i32, %c16_i32 : i32
    %20 = vector.broadcast %19 : i32 to vector<256x1xi32>
    %21 = arith.remsi %17, %20 : vector<256x1xi32>
    %c0_i32_12 = arith.constant 0 : i32
    %22 = vector.broadcast %c0_i32_12 : i32 to vector<256x1xi32>
    %23 = arith.cmpi ne, %21, %22 : vector<256x1xi32>
    %c0_i32_13 = arith.constant 0 : i32
    %24 = vector.broadcast %c0_i32_13 : i32 to vector<256x1xi32>
    %25 = arith.cmpi slt, %21, %24 : vector<256x1xi32>
    %c0_i32_14 = arith.constant 0 : i32
    %26 = arith.cmpi slt, %19, %c0_i32_14 : i32
    %27 = vector.broadcast %26 : i1 to vector<256x1xi1>
    %28 = vector.broadcast %27 : vector<256x1xi1> to vector<256x1xi1>
    %29 = arith.xori %25, %28 : vector<256x1xi1>
    %30 = arith.andi %29, %23 : vector<256x1xi1>
    %31 = vector.broadcast %19 : i32 to vector<256x1xi32>
    %32 = arith.addi %21, %31 : vector<256x1xi32>
    %33 = arith.select %30, %32, %21 : vector<256x1xi1>, vector<256x1xi32>
    %c0_15 = arith.constant 0 : index
    %c0_16 = arith.constant 0 : index
    %c0_17 = arith.constant 0 : index
    %34 = vector.load %arg2[%c0_15, %c0_16, %c0_17] : memref<1x256x128xbf16, #tpu.memory_space<vmem>>, vector<1x256x128xbf16>
    %35 = vector.shape_cast %34 : vector<1x256x128xbf16> to vector<256x128xbf16>
    %36 = arith.extf %35 : vector<256x128xbf16> to vector<256x128xf32>
    %c0_18 = arith.constant 0 : index
    %c0_19 = arith.constant 0 : index
    %37 = vector.load %arg6[%c0_18, %c0_19] : memref<1x128xf32, #tpu.memory_space<vmem>>, vector<1x128xf32>
    %38 = vector.broadcast %37 : vector<1x128xf32> to vector<256x128xf32>
    %39 = arith.addf %36, %38 : vector<256x128xf32>
    %c7 = arith.constant 7 : index
    %c0_20 = arith.constant 0 : index
    %40 = vector.load %arg9[%c7, %c0_20] : memref<304x128xbf16, #tpu.memory_space<vmem>>, vector<256x128xbf16>
    %c-1_i32 = arith.constant -1 : i32
    %41 = vector.broadcast %c-1_i32 : i32 to vector<256x1xi32>
    %42 = arith.addi %33, %41 : vector<256x1xi32>
    %c0_i32_21 = arith.constant 0 : i32
    %43 = vector.broadcast %c0_i32_21 : i32 to vector<256x1xi32>
    %44 = arith.cmpi sge, %42, %43 : vector<256x1xi32>
    %c-1_i32_22 = arith.constant -1 : i32
    %45 = vector.broadcast %c-1_i32_22 : i32 to vector<256x1xi32>
    %46 = arith.addi %33, %45 : vector<256x1xi32>
    %c16_i32_23 = arith.constant 16 : i32
    %47 = vector.broadcast %c16_i32_23 : i32 to vector<256x1xi32>
    %48 = arith.cmpi slt, %46, %47 : vector<256x1xi32>
    %49 = arith.andi %44, %48 : vector<256x1xi1>
    %cst_24 = arith.constant 0.000000e+00 : bf16
    %50 = vector.broadcast %cst_24 : bf16 to vector<256x128xbf16>
    %51 = vector.shape_cast %49 : vector<256x1xi1> to vector<256x1xi1>
    %52 = vector.broadcast %51 : vector<256x1xi1> to vector<256x128xi1>
    %53 = arith.select %52, %40, %50 : vector<256x128xi1>, vector<256x128xbf16>
    %c0_25 = arith.constant 0 : index
    %c0_26 = arith.constant 0 : index
    %c0_27 = arith.constant 0 : index
    %54 = vector.load %arg5[%c0_25, %c0_26, %c0_27] : memref<9x128x128xbf16, #tpu.memory_space<vmem>>, vector<1x128x128xbf16>
    %55 = vector.shape_cast %54 : vector<1x128x128xbf16> to vector<128x128xbf16>
    %cst_28 = arith.constant dense<0.000000e+00> : vector<256x128xf32>
    %56 = tpu.matmul %53, %55, %cst_28 {dimension_numbers = #tpu.dot_dimension_numbers<[1], [0], [0], [1], [0, 0, 1, 1], [], []>} : vector<256x128xbf16>, vector<128x128xbf16>, vector<256x128xf32> -> vector<256x128xf32>
    %57 = arith.addf %39, %56 : vector<256x128xf32>
    %c8 = arith.constant 8 : index
    %c0_29 = arith.constant 0 : index
    %58 = vector.load %arg9[%c8, %c0_29] : memref<304x128xbf16, #tpu.memory_space<vmem>>, vector<256x128xbf16>
    %c1 = arith.constant 1 : index
    %c0_30 = arith.constant 0 : index
    %c0_31 = arith.constant 0 : index
    %59 = vector.load %arg5[%c1, %c0_30, %c0_31] : memref<9x128x128xbf16, #tpu.memory_space<vmem>>, vector<1x128x128xbf16>
    %60 = vector.shape_cast %59 : vector<1x128x128xbf16> to vector<128x128xbf16>
    %cst_32 = arith.constant dense<0.000000e+00> : vector<256x128xf32>
    %61 = tpu.matmul %58, %60, %cst_32 {dimension_numbers = #tpu.dot_dimension_numbers<[1], [0], [0], [1], [0, 0, 1, 1], [], []>} : vector<256x128xbf16>, vector<128x128xbf16>, vector<256x128xf32> -> vector<256x128xf32>
    %62 = arith.addf %57, %61 : vector<256x128xf32>
    %c9 = arith.constant 9 : index
    %c0_33 = arith.constant 0 : index
    %63 = vector.load %arg9[%c9, %c0_33] : memref<304x128xbf16, #tpu.memory_space<vmem>>, vector<256x128xbf16>
    %c1_i32_34 = arith.constant 1 : i32
    %64 = vector.broadcast %c1_i32_34 : i32 to vector<256x1xi32>
    %65 = arith.addi %33, %64 : vector<256x1xi32>
    %c0_i32_35 = arith.constant 0 : i32
    %66 = vector.broadcast %c0_i32_35 : i32 to vector<256x1xi32>
    %67 = arith.cmpi sge, %65, %66 : vector<256x1xi32>
    %c1_i32_36 = arith.constant 1 : i32
    %68 = vector.broadcast %c1_i32_36 : i32 to vector<256x1xi32>
    %69 = arith.addi %33, %68 : vector<256x1xi32>
    %c16_i32_37 = arith.constant 16 : i32
    %70 = vector.broadcast %c16_i32_37 : i32 to vector<256x1xi32>
    %71 = arith.cmpi slt, %69, %70 : vector<256x1xi32>
    %72 = arith.andi %67, %71 : vector<256x1xi1>
    %cst_38 = arith.constant 0.000000e+00 : bf16
    %73 = vector.broadcast %cst_38 : bf16 to vector<256x128xbf16>
    %74 = vector.shape_cast %72 : vector<256x1xi1> to vector<256x1xi1>
    %75 = vector.broadcast %74 : vector<256x1xi1> to vector<256x128xi1>
    %76 = arith.select %75, %63, %73 : vector<256x128xi1>, vector<256x128xbf16>
    %c2 = arith.constant 2 : index
    %c0_39 = arith.constant 0 : index
    %c0_40 = arith.constant 0 : index
    %77 = vector.load %arg5[%c2, %c0_39, %c0_40] : memref<9x128x128xbf16, #tpu.memory_space<vmem>>, vector<1x128x128xbf16>
    %78 = vector.shape_cast %77 : vector<1x128x128xbf16> to vector<128x128xbf16>
    %cst_41 = arith.constant dense<0.000000e+00> : vector<256x128xf32>
    %79 = tpu.matmul %76, %78, %cst_41 {dimension_numbers = #tpu.dot_dimension_numbers<[1], [0], [0], [1], [0, 0, 1, 1], [], []>} : vector<256x128xbf16>, vector<128x128xbf16>, vector<256x128xf32> -> vector<256x128xf32>
    %80 = arith.addf %62, %79 : vector<256x128xf32>
    %c23 = arith.constant 23 : index
    %c0_42 = arith.constant 0 : index
    %81 = vector.load %arg9[%c23, %c0_42] : memref<304x128xbf16, #tpu.memory_space<vmem>>, vector<256x128xbf16>
    %c-1_i32_43 = arith.constant -1 : i32
    %82 = vector.broadcast %c-1_i32_43 : i32 to vector<256x1xi32>
    %83 = arith.addi %33, %82 : vector<256x1xi32>
    %c0_i32_44 = arith.constant 0 : i32
    %84 = vector.broadcast %c0_i32_44 : i32 to vector<256x1xi32>
    %85 = arith.cmpi sge, %83, %84 : vector<256x1xi32>
    %c-1_i32_45 = arith.constant -1 : i32
    %86 = vector.broadcast %c-1_i32_45 : i32 to vector<256x1xi32>
    %87 = arith.addi %33, %86 : vector<256x1xi32>
    %c16_i32_46 = arith.constant 16 : i32
    %88 = vector.broadcast %c16_i32_46 : i32 to vector<256x1xi32>
    %89 = arith.cmpi slt, %87, %88 : vector<256x1xi32>
    %90 = arith.andi %85, %89 : vector<256x1xi1>
    %cst_47 = arith.constant 0.000000e+00 : bf16
    %91 = vector.broadcast %cst_47 : bf16 to vector<256x128xbf16>
    %92 = vector.shape_cast %90 : vector<256x1xi1> to vector<256x1xi1>
    %93 = vector.broadcast %92 : vector<256x1xi1> to vector<256x128xi1>
    %94 = arith.select %93, %81, %91 : vector<256x128xi1>, vector<256x128xbf16>
    %c3 = arith.constant 3 : index
    %c0_48 = arith.constant 0 : index
    %c0_49 = arith.constant 0 : index
    %95 = vector.load %arg5[%c3, %c0_48, %c0_49] : memref<9x128x128xbf16, #tpu.memory_space<vmem>>, vector<1x128x128xbf16>
    %96 = vector.shape_cast %95 : vector<1x128x128xbf16> to vector<128x128xbf16>
    %cst_50 = arith.constant dense<0.000000e+00> : vector<256x128xf32>
    %97 = tpu.matmul %94, %96, %cst_50 {dimension_numbers = #tpu.dot_dimension_numbers<[1], [0], [0], [1], [0, 0, 1, 1], [], []>} : vector<256x128xbf16>, vector<128x128xbf16>, vector<256x128xf32> -> vector<256x128xf32>
    %98 = arith.addf %80, %97 : vector<256x128xf32>
    %c4 = arith.constant 4 : index
    %c0_51 = arith.constant 0 : index
    %c0_52 = arith.constant 0 : index
    %99 = vector.load %arg5[%c4, %c0_51, %c0_52] : memref<9x128x128xbf16, #tpu.memory_space<vmem>>, vector<1x128x128xbf16>
    %100 = vector.shape_cast %99 : vector<1x128x128xbf16> to vector<128x128xbf16>
    %cst_53 = arith.constant dense<0.000000e+00> : vector<256x128xf32>
    %101 = tpu.matmul %11, %100, %cst_53 {dimension_numbers = #tpu.dot_dimension_numbers<[1], [0], [0], [1], [0, 0, 1, 1], [], []>} : vector<256x128xbf16>, vector<128x128xbf16>, vector<256x128xf32> -> vector<256x128xf32>
    %102 = arith.addf %98, %101 : vector<256x128xf32>
    %c25 = arith.constant 25 : index
    %c0_54 = arith.constant 0 : index
    %103 = vector.load %arg9[%c25, %c0_54] : memref<304x128xbf16, #tpu.memory_space<vmem>>, vector<256x128xbf16>
    %c1_i32_55 = arith.constant 1 : i32
    %104 = vector.broadcast %c1_i32_55 : i32 to vector<256x1xi32>
    %105 = arith.addi %33, %104 : vector<256x1xi32>
    %c0_i32_56 = arith.constant 0 : i32
    %106 = vector.broadcast %c0_i32_56 : i32 to vector<256x1xi32>
    %107 = arith.cmpi sge, %105, %106 : vector<256x1xi32>
    %c1_i32_57 = arith.constant 1 : i32
    %108 = vector.broadcast %c1_i32_57 : i32 to vector<256x1xi32>
    %109 = arith.addi %33, %108 : vector<256x1xi32>
    %c16_i32_58 = arith.constant 16 : i32
    %110 = vector.broadcast %c16_i32_58 : i32 to vector<256x1xi32>
    %111 = arith.cmpi slt, %109, %110 : vector<256x1xi32>
    %112 = arith.andi %107, %111 : vector<256x1xi1>
    %cst_59 = arith.constant 0.000000e+00 : bf16
    %113 = vector.broadcast %cst_59 : bf16 to vector<256x128xbf16>
    %114 = vector.shape_cast %112 : vector<256x1xi1> to vector<256x1xi1>
    %115 = vector.broadcast %114 : vector<256x1xi1> to vector<256x128xi1>
    %116 = arith.select %115, %103, %113 : vector<256x128xi1>, vector<256x128xbf16>
    %c5 = arith.constant 5 : index
    %c0_60 = arith.constant 0 : index
    %c0_61 = arith.constant 0 : index
    %117 = vector.load %arg5[%c5, %c0_60, %c0_61] : memref<9x128x128xbf16, #tpu.memory_space<vmem>>, vector<1x128x128xbf16>
    %118 = vector.shape_cast %117 : vector<1x128x128xbf16> to vector<128x128xbf16>
    %cst_62 = arith.constant dense<0.000000e+00> : vector<256x128xf32>
    %119 = tpu.matmul %116, %118, %cst_62 {dimension_numbers = #tpu.dot_dimension_numbers<[1], [0], [0], [1], [0, 0, 1, 1], [], []>} : vector<256x128xbf16>, vector<128x128xbf16>, vector<256x128xf32> -> vector<256x128xf32>
    %120 = arith.addf %102, %119 : vector<256x128xf32>
    %c39 = arith.constant 39 : index
    %c0_63 = arith.constant 0 : index
    %121 = vector.load %arg9[%c39, %c0_63] : memref<304x128xbf16, #tpu.memory_space<vmem>>, vector<256x128xbf16>
    %c-1_i32_64 = arith.constant -1 : i32
    %122 = vector.broadcast %c-1_i32_64 : i32 to vector<256x1xi32>
    %123 = arith.addi %33, %122 : vector<256x1xi32>
    %c0_i32_65 = arith.constant 0 : i32
    %124 = vector.broadcast %c0_i32_65 : i32 to vector<256x1xi32>
    %125 = arith.cmpi sge, %123, %124 : vector<256x1xi32>
    %c-1_i32_66 = arith.constant -1 : i32
    %126 = vector.broadcast %c-1_i32_66 : i32 to vector<256x1xi32>
    %127 = arith.addi %33, %126 : vector<256x1xi32>
    %c16_i32_67 = arith.constant 16 : i32
    %128 = vector.broadcast %c16_i32_67 : i32 to vector<256x1xi32>
    %129 = arith.cmpi slt, %127, %128 : vector<256x1xi32>
    %130 = arith.andi %125, %129 : vector<256x1xi1>
    %cst_68 = arith.constant 0.000000e+00 : bf16
    %131 = vector.broadcast %cst_68 : bf16 to vector<256x128xbf16>
    %132 = vector.shape_cast %130 : vector<256x1xi1> to vector<256x1xi1>
    %133 = vector.broadcast %132 : vector<256x1xi1> to vector<256x128xi1>
    %134 = arith.select %133, %121, %131 : vector<256x128xi1>, vector<256x128xbf16>
    %c6 = arith.constant 6 : index
    %c0_69 = arith.constant 0 : index
    %c0_70 = arith.constant 0 : index
    %135 = vector.load %arg5[%c6, %c0_69, %c0_70] : memref<9x128x128xbf16, #tpu.memory_space<vmem>>, vector<1x128x128xbf16>
    %136 = vector.shape_cast %135 : vector<1x128x128xbf16> to vector<128x128xbf16>
    %cst_71 = arith.constant dense<0.000000e+00> : vector<256x128xf32>
    %137 = tpu.matmul %134, %136, %cst_71 {dimension_numbers = #tpu.dot_dimension_numbers<[1], [0], [0], [1], [0, 0, 1, 1], [], []>} : vector<256x128xbf16>, vector<128x128xbf16>, vector<256x128xf32> -> vector<256x128xf32>
    %138 = arith.addf %120, %137 : vector<256x128xf32>
    %c40 = arith.constant 40 : index
    %c0_72 = arith.constant 0 : index
    %139 = vector.load %arg9[%c40, %c0_72] : memref<304x128xbf16, #tpu.memory_space<vmem>>, vector<256x128xbf16>
    %c7_73 = arith.constant 7 : index
    %c0_74 = arith.constant 0 : index
    %c0_75 = arith.constant 0 : index
    %140 = vector.load %arg5[%c7_73, %c0_74, %c0_75] : memref<9x128x128xbf16, #tpu.memory_space<vmem>>, vector<1x128x128xbf16>
    %141 = vector.shape_cast %140 : vector<1x128x128xbf16> to vector<128x128xbf16>
    %cst_76 = arith.constant dense<0.000000e+00> : vector<256x128xf32>
    %142 = tpu.matmul %139, %141, %cst_76 {dimension_numbers = #tpu.dot_dimension_numbers<[1], [0], [0], [1], [0, 0, 1, 1], [], []>} : vector<256x128xbf16>, vector<128x128xbf16>, vector<256x128xf32> -> vector<256x128xf32>
    %143 = arith.addf %138, %142 : vector<256x128xf32>
    %c41 = arith.constant 41 : index
    %c0_77 = arith.constant 0 : index
    %144 = vector.load %arg9[%c41, %c0_77] : memref<304x128xbf16, #tpu.memory_space<vmem>>, vector<256x128xbf16>
    %c1_i32_78 = arith.constant 1 : i32
    %145 = vector.broadcast %c1_i32_78 : i32 to vector<256x1xi32>
    %146 = arith.addi %33, %145 : vector<256x1xi32>
    %c0_i32_79 = arith.constant 0 : i32
    %147 = vector.broadcast %c0_i32_79 : i32 to vector<256x1xi32>
    %148 = arith.cmpi sge, %146, %147 : vector<256x1xi32>
    %c1_i32_80 = arith.constant 1 : i32
    %149 = vector.broadcast %c1_i32_80 : i32 to vector<256x1xi32>
    %150 = arith.addi %33, %149 : vector<256x1xi32>
    %c16_i32_81 = arith.constant 16 : i32
    %151 = vector.broadcast %c16_i32_81 : i32 to vector<256x1xi32>
    %152 = arith.cmpi slt, %150, %151 : vector<256x1xi32>
    %153 = arith.andi %148, %152 : vector<256x1xi1>
    %cst_82 = arith.constant 0.000000e+00 : bf16
    %154 = vector.broadcast %cst_82 : bf16 to vector<256x128xbf16>
    %155 = vector.shape_cast %153 : vector<256x1xi1> to vector<256x1xi1>
    %156 = vector.broadcast %155 : vector<256x1xi1> to vector<256x128xi1>
    %157 = arith.select %156, %144, %154 : vector<256x128xi1>, vector<256x128xbf16>
    %c8_83 = arith.constant 8 : index
    %c0_84 = arith.constant 0 : index
    %c0_85 = arith.constant 0 : index
    %158 = vector.load %arg5[%c8_83, %c0_84, %c0_85] : memref<9x128x128xbf16, #tpu.memory_space<vmem>>, vector<1x128x128xbf16>
    %159 = vector.shape_cast %158 : vector<1x128x128xbf16> to vector<128x128xbf16>
    %cst_86 = arith.constant dense<0.000000e+00> : vector<256x128xf32>
    %160 = tpu.matmul %157, %159, %cst_86 {dimension_numbers = #tpu.dot_dimension_numbers<[1], [0], [0], [1], [0, 0, 1, 1], [], []>} : vector<256x128xbf16>, vector<128x128xbf16>, vector<256x128xf32> -> vector<256x128xf32>
    %161 = arith.addf %143, %160 : vector<256x128xf32>
    %c0_87 = arith.constant 0 : index
    %c0_88 = arith.constant 0 : index
    %162 = vector.load %arg7[%c0_87, %c0_88] : memref<2x128xf32, #tpu.memory_space<vmem>>, vector<1x128xf32>
    %163 = vector.shape_cast %162 : vector<1x128xf32> to vector<1x1x128xf32>
    %c1_89 = arith.constant 1 : index
    %c0_90 = arith.constant 0 : index
    %164 = vector.load %arg7[%c1_89, %c0_90] : memref<2x128xf32, #tpu.memory_space<vmem>>, vector<1x1xf32>
    %165 = vector.shape_cast %161 : vector<256x128xf32> to vector<16x16x128xf32>
    %166 = vector.broadcast %163 : vector<1x1x128xf32> to vector<16x16x128xf32>
    %167 = arith.mulf %165, %166 : vector<16x16x128xf32>
    %cst_91 = arith.constant dense<0.000000e+00> : vector<16x16xf32>
    %168 = vector.multi_reduction <add>, %167, %cst_91 [2] : vector<16x16x128xf32> to vector<16x16xf32>
    %169 = vector.broadcast %164 : vector<1x1xf32> to vector<16x16xf32>
    %170 = arith.addf %168, %169 : vector<16x16xf32>
    %cst_92 = arith.constant 0.000000e+00 : f32
    %171 = vector.broadcast %cst_92 : f32 to vector<16x16xf32>
    %172 = arith.subf %171, %170 : vector<16x16xf32>
    %173 = math.exp %172 : vector<16x16xf32>
    %cst_93 = arith.constant 1.000000e+00 : f32
    %174 = vector.broadcast %cst_93 : f32 to vector<16x16xf32>
    %175 = arith.addf %174, %173 : vector<16x16xf32>
    %176 = tpu.reciprocal %175 {approx = true} : vector<16x16xf32> -> vector<16x16xf32>
    %c0_94 = arith.constant 0 : index
    %c0_95 = arith.constant 0 : index
    %c0_96 = arith.constant 0 : index
    %177 = vector.load %arg8[%c0_94, %c0_95, %c0_96] : memref<1x16x16xf32, #tpu.memory_space<vmem>>, vector<1x16x16xf32>
    %178 = vector.shape_cast %177 : vector<1x16x16xf32> to vector<16x16xf32>
    %179 = vector.shape_cast %176 : vector<16x16xf32> to vector<1x16x16xf32>
    tpu.vector_store %arg8[%c0_94, %c0_95, %c0_96], %179 {strides = array<i32>} : memref<1x16x16xf32, #tpu.memory_space<vmem>>, vector<1x16x16xf32>,
    return
  }
  func.func @transform_0(%arg0: i32) -> (i32, i32, i32) {
    %c0_i32 = arith.constant 0 : i32
    %c0_i32_0 = arith.constant 0 : i32
    %c0_i32_1 = arith.constant 0 : i32
    return %arg0, %c0_i32, %c0_i32_0 : i32, i32, i32
  }
  func.func @transform_1(%arg0: i32) -> (i32, i32, i32) {
    %c0_i32 = arith.constant 0 : i32
    %c0_i32_0 = arith.constant 0 : i32
    %c0_i32_1 = arith.constant 0 : i32
    return %arg0, %c0_i32, %c0_i32_0 : i32, i32, i32
  }
  func.func @transform_2(%arg0: i32) -> (i32, i32) {
    %c0_i32 = arith.constant 0 : i32
    %c0_i32_0 = arith.constant 0 : i32
    %c0_i32_1 = arith.constant 0 : i32
    return %c0_i32, %c0_i32_0 : i32, i32
  }
  func.func @transform_3(%arg0: i32) -> (i32, i32) {
    %c0_i32 = arith.constant 0 : i32
    %c0_i32_0 = arith.constant 0 : i32
    %c0_i32_1 = arith.constant 0 : i32
    return %c0_i32, %c0_i32_0 : i32, i32
  }
  func.func @transform_4(%arg0: i32) -> (i32, i32, i32) {
    %c0_i32 = arith.constant 0 : i32
    %c0_i32_0 = arith.constant 0 : i32
    %c0_i32_1 = arith.constant 0 : i32
    %c0_i32_2 = arith.constant 0 : i32
    return %c0_i32, %c0_i32_0, %c0_i32_1 : i32, i32, i32
  }
  func.func @transform_5(%arg0: i32) -> (i32, i32) {
    %c0_i32 = arith.constant 0 : i32
    %c0_i32_0 = arith.constant 0 : i32
    %c0_i32_1 = arith.constant 0 : i32
    return %c0_i32, %c0_i32_0 : i32, i32
  }
  func.func @transform_6(%arg0: i32) -> (i32, i32) {
    %c0_i32 = arith.constant 0 : i32
    %c0_i32_0 = arith.constant 0 : i32
    %c0_i32_1 = arith.constant 0 : i32
    return %c0_i32, %c0_i32_0 : i32, i32
  }
  func.func @transform_7(%arg0: i32) -> (i32, i32, i32) {
    %c0_i32 = arith.constant 0 : i32
    %c0_i32_0 = arith.constant 0 : i32
    %c0_i32_1 = arith.constant 0 : i32
    return %arg0, %c0_i32, %c0_i32_0 : i32, i32, i32
  }
}

</mosaic_0001>

<bundles_post_ra>
// kernel: tile.13
= control target key start
LH: loop header
LB: loop body
LE: loop exit
PB: predicated region body
PF: predicated region fallthrough
CT: control target
= control target key end

     0   :  { %s28_s0 = inlined_call_operand.vmem [shape: f32[8], index: 0, kind: input, shape index: {}]   ;;  %s29_s1 = inlined_call_operand.vmem [shape: f32[9,8], index: 1, kind: output, shape index: {}]  }
   0x1   :  { %v4_v0 = vld [vmem:[%s28_s0] ss:$0 sm:$0xff] }
   0x2   :  { %5 = vst [vmem:[%s29_s1] sm:$0xff] %v4_v0 }
   0x3   :  { %8 = vst [vmem:[%s29_s1 + $0x8] sm:$0xff] %v4_v0 }

// kernel: tile.14
= control target key start
LH: loop header
LB: loop body
LE: loop exit
PB: predicated region body
PF: predicated region fallthrough
CT: control target
= control target key end

     0   :  { %s75_s10 = smov 64   ;;  %s76_s11 = smov 48   ;;  %vm3_vm0 = vcmask 64512   ;;  %vm9_vm1 = vcmask 589312   ;;  %vm15_vm2 = vcmask 523712   ;;  %vm21_vm3 = vcmask 458112   ;;  %s123_s0 = inlined_call_operand.vmem [shape: f32[9,8], index: 0, kind: input, shape index: {}]   ;;  %s124_s1 = inlined_call_operand.vmem [shape: f32[1,72], index: 1, kind: output, shape index: {}]  }
   0x1   :  { %v59_v0 = vld [vmem:[%s123_s0 + $0x8] sm:$0x1]   ;;  %v61_v1 = vld [vmem:[%s123_s0 + $0x6] sm:$0x1]   ;;  %v63_v2 = vld [vmem:[%s123_s0 + $0x4] sm:$0x1]  }
   0x2   :  { %7 = vrot.lane.b32.xlu0 %v59_v0, %s75_s10  ;;  %19 = vrot.lane.b32.xlu1 %v61_v1, %s76_s11  ;;  %s77_s14 = smov 32   ;;  %v60_v3 = vld [vmem:[%s123_s0 + $0x7] sm:$0x1]   ;;  %v62_v4 = vld [vmem:[%s123_s0 + $0x5] sm:$0x1]   ;;  %s78_s19 = smov 56  }
   0x3   :  { %31 = vrot.lane.b32.xlu2 %v63_v2, %s77_s14  ;;  %s79_s20 = smov 40   ;;  %v64_v5 = vld [vmem:[%s123_s0 + $0x3] sm:$0x1]   ;;  %s80_s23 = smov 24   ;;  %v65_v6 = vld [vmem:[%s123_s0 + $0x2] sm:$0x1]  }
   0x4   :  { %v66_v7 = vld [vmem:[%s123_s0 + $0x1] sm:$0x1]   ;;  %s81_s28 = smov 16   ;;  %s82_s29 = smov 8   ;;  %v2_v8 = vld [vmem:[%s123_s0] sm:$0x1]  }
   0x5   :  { %4 = vst.msk [vmem:[#allocation0] sm:$0x1] %vm3_vm0, %v2_v8   ;;  %vm27_vm4 = vcmask 392512   ;;  %vm33_vm5 = vcmask 326912   ;;  %vm39_vm6 = vcmask 261312   ;;  %vm45_vm7 = vcmask 195712  }
   0x6   :  { %vm51_vm8 = vcmask 130112  }
   0xa   :  { %13 = vrot.lane.b32.xlu0 %v60_v3, %s78_s19  ;;  %25 = vrot.lane.b32.xlu1 %v62_v4, %s79_s20 }
   0xb   :  { %37 = vrot.lane.b32.xlu2 %v64_v5, %s80_s23 }
  0x12   :  { %43 = vrot.lane.b32.xlu0 %v65_v6, %s81_s28  ;;  %49 = vrot.lane.b32.xlu1 %v66_v7, %s82_s29 }
  0x5d   :  { %v32_v9 = vpop.permute.xlu2 %31  }
  0x65   :  { %v38_v10 = vpop.permute.xlu2 %37  }
  0x74   :  { %v8_v11 = vpop.permute.xlu0 %7   ;;  %v20_v12 = vpop.permute.xlu1 %19  }
  0x75   :  { %10 = vst.msk [vmem:[#allocation0] sm:$0x1] %vm9_vm1, %v8_v11  }
  0x7c   :  { %v14_v13 = vpop.permute.xlu0 %13   ;;  %v26_v14 = vpop.permute.xlu1 %25  }
  0x7d   :  { %16 = vst.msk [vmem:[#allocation0] sm:$0x1] %vm15_vm2, %v14_v13  }
  0x7e   :  { %22 = vst.msk [vmem:[#allocation0] sm:$0x1] %vm21_vm3, %v20_v12  }
  0x7f   :  { %28 = vst.msk [vmem:[#allocation0] sm:$0x1] %vm27_vm4, %v26_v14  }
  0x80   :  { %34 = vst.msk [vmem:[#allocation0] sm:$0x1] %vm33_vm5, %v32_v9  }
  0x81   :  { %40 = vst.msk [vmem:[#allocation0] sm:$0x1] %vm39_vm6, %v38_v10  }
  0x84   :  { %v44_v15 = vpop.permute.xlu0 %43   ;;  %v50_v16 = vpop.permute.xlu1 %49  }
  0x85   :  { %46 = vst.msk [vmem:[#allocation0] sm:$0x1] %vm45_vm7, %v44_v15  }
  0x86   :  { %52 = vst.msk [vmem:[#allocation0] sm:$0x1] %vm51_vm8, %v50_v16  }
  0x8d   :  { %v55_v17 = vld [vmem:[#allocation0] sm:$0x1] }
  0x8e   :  { %58 = vst [vmem:[%s124_s1] sm:$0x1] %v55_v17 }

// kernel: resunet_forward.2
= control target key start
LH: loop header
LB: loop body
LE: loop exit
PB: predicated region body
PF: predicated region fallthrough
CT: control target
= control target key end

     0   :  { %s4016_s13 = smov 0   ;;  %s5421_s0 = inlined_call_operand.vmem [shape: bf16[2,16,16,8], index: 0, kind: input, shape index: {}]   ;;  %s5422_s1 = inlined_call_operand.vmem [shape: f32[256,72], index: 1, kind: input, shape index: {}]   ;;  %s5423_s2 = inlined_call_operand.vmem [shape: f32[1,72], index: 2, kind: input, shape index: {}]   ;;  %s5424_s3 = inlined_call_operand.vmem [shape: f32[1,72], index: 3, kind: input, shape index: {}]   ;;  %s5425_s4 = inlined_call_operand.vmem [shape: bf16[72,128], index: 4, kind: input, shape index: {}]   ;;  %s5426_s5 = inlined_call_operand.vmem [shape: f32[1,128], index: 5, kind: input, shape index: {}]   ;;  %s5427_s6 = inlined_call_operand.vmem [shape: bf16[72,128], index: 6, kind: input, shape index: {}]   ;;  %s5428_s7 = inlined_call_operand.vmem [shape: f32[1,128], index: 7, kind: input, shape index: {}]   ;;  %s5429_s8 = inlined_call_operand.vmem [shape: bf16[2,256,128], index: 8, kind: output, shape index: {0}]   ;;  %s5430_s9 = inlined_call_operand.vmem [shape: bf16[2,256,128], index: 9, kind: output, shape index: {1}]   ;;  %s5431_s10 = inlined_call_operand.vmem [shape: f32[2,2,128], index: 10, kind: output, shape index: {2}]  }
   0x1 LB: > { %s3471_s14 = sadd.s32 4294967295, %s3950_s13   ;;  %p3475_p0 = scmp.ge.s32.totalorder %s3950_s13, 1  ;;  %s3950_s13 = sphi %s4016_s13, %s21_s13  }
   0x2   : > { %p317_p1 = scmp.lt.s32.totalorder %s3950_s13, 3 }
   0x4   : > { %p318_p2 = pnand %p3475_p0, %p317_p1 }
   0x5   : > { %s3953_s15 = smov (!%p318_p2), 8   ;;  %p364_p3 = scmp.lt.s32.totalorder (!%p318_p2), %s3471_s14, 1 }
   0x6   : > { %321 = sbr.rel (%p318_p2) target bundleno = 1030 (0x406), region = 52  ;;  %s3954_s20 = smov (!%p318_p2), 16  }
   0x7   : > { %s3955_s21 = smov (!%p318_p2), 24   ;;  %s3956_s22 = smov (!%p318_p2), 32  }
   0x8   : > { %s3957_s23 = smov (!%p318_p2), 40   ;;  %s3958_s24 = smov (!%p318_p2), 48  }
   0x9   : > { %s3959_s25 = smov (!%p318_p2), 56   ;;  %s3960_s26 = smov (!%p318_p2), 64  }
   0xb   : > { %vm384_vm0 = vcmask 64512   ;;  %v3952_v0 = vmov 0.0   ;;  %vm393_vm1 = vcmask 57344   ;;  %s5433_s14 = smov (!%p364_p3, %s3471_s14), 1  ;;  %vm387_vm2 = vcmask 58368  }
   0xc   : > { %385 = vst.msk [vmem:[#allocation2] sm:$0xff] %vm384_vm0, %v3952_v0  ;;  %s4082_s16 = sshll.u32 %s5433_s14, 7  ;;  %vm591_vm3 = vcmask 60416   ;;  %vm816_vm4 = vcmask 126016   ;;  %vm1041_vm5 = vcmask 191616   ;;  %vm1266_vm6 = vcmask 257216  }
   0xd   : > { %386 = vst.msk [vmem:[#allocation2 + $0x8] sm:$0xff] %vm384_vm0, %v3952_v0  ;;  %s4094_s19 = scalar_lea.vmem %s5421_s0, %s4082_s16  ;;  %vm1491_vm7 = vcmask 322816   ;;  %vm1716_vm8 = vcmask 388416   ;;  %vm2626_vm9 = vcmask 1043456   ;;  %vm1942_vm10 = vcmask 454016   ;;  %s5027_s18 = scalar_lea.vmem %s5430_s9, %s4082_s16 }
   0xe   : > { %394 = vst.msk [vmem:[#allocation2] sm:$0x1] %vm393_vm1, %v3952_v0  ;;  %v3641_v3 = vld [vmem:[%s4094_s19] sm:$0xff]   ;;  %v3865_v6 = vld [vmem:[%s4094_s19 + $0x10] sm:$0xff]   ;;  %v3866_v7 = vld [vmem:[%s4094_s19 + $0x18] sm:$0xff]   ;;  %vm2167_vm11 = vcmask 519616   ;;  %s5050_s27 = scalar_lea.vmem %s5429_s8, %s4082_s16 }
   0xf   : > { %390 = vst.msk [vmem:[#allocation2 + $0x198] sm:$0xff] %vm384_vm0, %v3952_v0  ;;  %v3642_v4 = vunpack.c.l.bf16 %v3641_v3  ;;  %v3643_v5 = vunpack.c.h.bf16 %v3641_v3  ;;  %v3650_v8 = vunpack.c.l.bf16 %v3865_v6  ;;  %v3864_v9 = vld [vmem:[%s4094_s19 + $0x8] sm:$0xff]   ;;  %v3651_v10 = vunpack.c.h.bf16 %v3865_v6  ;;  %v3867_v12 = vld [vmem:[%s4094_s19 + $0x20] sm:$0xff]   ;;  %v3869_v19 = vld [vmem:[%s4094_s19 + $0x30] sm:$0xff]  }
  0x10   : > { %391 = vst.msk [vmem:[#allocation2 + $0x1a0] sm:$0xff] %vm384_vm0, %v3952_v0  ;;  %v3655_v11 = vunpack.c.h.bf16 %v3866_v7  ;;  %v3646_v13 = vunpack.c.l.bf16 %v3864_v9  ;;  %v3868_v14 = vld [vmem:[%s4094_s19 + $0x28] sm:$0xff]   ;;  %v3647_v16 = vunpack.c.h.bf16 %v3864_v9  ;;  %v3658_v18 = vunpack.c.l.bf16 %v3867_v12  ;;  %v3870_v23 = vld [vmem:[%s4094_s19 + $0x38] sm:$0xff]   ;;  %v3871_v27 = vld [vmem:[%s4094_s19 + $0x40] sm:$0xff]  }
  0x11   : > { %395 = vst.msk [vmem:[#allocation2 + $0x18] sm:$0x1] %vm393_vm1, %v3952_v0  ;;  %v3662_v20 = vunpack.c.l.bf16 %v3868_v14  ;;  %v3663_v22 = vunpack.c.h.bf16 %v3868_v14  ;;  %v3667_v26 = vunpack.c.h.bf16 %v3869_v19  ;;  %v3654_v28 = vunpack.c.l.bf16 %v3866_v7  ;;  %v3872_v35 = vld [vmem:[%s4094_s19 + $0x48] sm:$0xff]   ;;  %v3873_v44 = vld [vmem:[%s4094_s19 + $0x50] sm:$0xff]   ;;  %v3874_v48 = vld [vmem:[%s4094_s19 + $0x58] sm:$0xff]  }
  0x12   : > { %396 = vst.msk [vmem:[#allocation2 + $0x30] sm:$0x1] %vm393_vm1, %v3952_v0  ;;  %v3670_v29 = vunpack.c.l.bf16 %v3870_v23  ;;  %v3674_v32 = vunpack.c.l.bf16 %v3871_v27  ;;  %v3659_v33 = vunpack.c.h.bf16 %v3867_v12  ;;  %v3675_v34 = vunpack.c.h.bf16 %v3871_v27  ;;  %v3875_v58 = vld [vmem:[%s4094_s19 + $0x60] sm:$0xff]  }
  0x13   : > { %397 = vst.msk [vmem:[#allocation2 + $0x48] sm:$0x1] %vm393_vm1, %v3952_v0  ;;  %v3679_v38 = vunpack.c.h.bf16 %v3872_v35  ;;  %v3666_v46 = vunpack.c.l.bf16 %v3869_v19  ;;  %v3682_v47 = vunpack.c.l.bf16 %v3873_v44  ;;  %v3686_v50 = vunpack.c.l.bf16 %v3874_v48 }
  0x14   : > { %v624_v1 = vld [vmem:[#allocation2 + $0x1] sm:$0xff]  ;;  %398 = vst.msk [vmem:[#allocation2 + $0x60] sm:$0x1] %vm393_vm1, %v3952_v0  ;;  %v3671_v56 = vunpack.c.h.bf16 %v3870_v23  ;;  %v3687_v57 = vunpack.c.h.bf16 %v3874_v48  ;;  %v3691_v60 = vunpack.c.h.bf16 %v3875_v58  ;;  %v3678_v3 = vunpack.c.l.bf16 %v3872_v35 }
  0x15   : > { %v656_v2 = vpack.c.bf16 %v624_v1, %v624_v1  ;;  %399 = vst.msk [vmem:[#allocation2 + $0x78] sm:$0x1] %vm393_vm1, %v3952_v0  ;;  %v3876_v1 = vld [vmem:[%s4094_s19 + $0x68] sm:$0xff]   ;;  %vm2392_vm12 = vcmask 585216   ;;  %vm2577_vm13 = vcmask 588800   ;;  %vm3349_vm14 = vcmask 1040384  }
  0x16   : > { %400 = vst.msk [vmem:[#allocation2 + $0x90] sm:$0x1] %vm393_vm1, %v3952_v0 }
  0x17   : > { %720 = vrot.lane.b32.xlu0 %v656_v2, %s3953_s15  ;;  %401 = vst.msk [vmem:[#allocation2 + $0xa8] sm:$0x1] %vm393_vm1, %v3952_v0 }
  0x18   : > { %402 = vst.msk [vmem:[#allocation2 + $0xc0] sm:$0x1] %vm393_vm1, %v3952_v0 }
  0x19   : > { %403 = vst.msk [vmem:[#allocation2 + $0xd8] sm:$0x1] %vm393_vm1, %v3952_v0 }
  0x1a   : > { %404 = vst.msk [vmem:[#allocation2 + $0xf0] sm:$0x1] %vm393_vm1, %v3952_v0 }
  0x1b   : > { %405 = vst.msk [vmem:[#allocation2 + $0x108] sm:$0x1] %vm393_vm1, %v3952_v0 }
  0x1c   : > { %406 = vst.msk [vmem:[#allocation2 + $0x120] sm:$0x1] %vm393_vm1, %v3952_v0 }
  0x1d   : > { %407 = vst.msk [vmem:[#allocation2 + $0x138] sm:$0x1] %vm393_vm1, %v3952_v0 }
  0x1e   : > { %408 = vst.msk [vmem:[#allocation2 + $0x150] sm:$0x1] %vm393_vm1, %v3952_v0 }
  0x1f   : > { %409 = vst.msk [vmem:[#allocation2 + $0x168] sm:$0x1] %vm393_vm1, %v3952_v0 }
  0x20   : > { %410 = vst.msk [vmem:[#allocation2 + $0x180] sm:$0x1] %vm393_vm1, %v3952_v0 }
  0x21   : > { %413 = vst.msk [vmem:[#allocation2 + $0x29] sm:$0x1] %vm393_vm1, %v3952_v0 }
  0x22   : > { %414 = vst.msk [vmem:[#allocation2 + $0x41] sm:$0x1] %vm393_vm1, %v3952_v0 }
  0x23   : > { %415 = vst.msk [vmem:[#allocation2 + $0x59] sm:$0x1] %vm393_vm1, %v3952_v0 }
  0x24   : > { %416 = vst.msk [vmem:[#allocation2 + $0x71] sm:$0x1] %vm393_vm1, %v3952_v0 }
  0x25   : > { %417 = vst.msk [vmem:[#allocation2 + $0x89] sm:$0x1] %vm393_vm1, %v3952_v0 }
  0x26   : > { %418 = vst.msk [vmem:[#allocation2 + $0xa1] sm:$0x1] %vm393_vm1, %v3952_v0 }
  0x27   : > { %419 = vst.msk [vmem:[#allocation2 + $0xb9] sm:$0x1] %vm393_vm1, %v3952_v0 }
  0x28   : > { %420 = vst.msk [vmem:[#allocation2 + $0xd1] sm:$0x1] %vm393_vm1, %v3952_v0 }
  0x29   : > { %421 = vst.msk [vmem:[#allocation2 + $0xe9] sm:$0x1] %vm393_vm1, %v3952_v0 }
  0x2a   : > { %422 = vst.msk [vmem:[#allocation2 + $0x101] sm:$0x1] %vm393_vm1, %v3952_v0 }
  0x2b   : > { %423 = vst.msk [vmem:[#allocation2 + $0x119] sm:$0x1] %vm393_vm1, %v3952_v0 }
  0x2c   : > { %424 = vst.msk [vmem:[#allocation2 + $0x131] sm:$0x1] %vm393_vm1, %v3952_v0 }
  0x2d   : > { %425 = vst.msk [vmem:[#allocation2 + $0x149] sm:$0x1] %vm393_vm1, %v3952_v0 }
  0x2e   : > { %426 = vst.msk [vmem:[#allocation2 + $0x161] sm:$0x1] %vm393_vm1, %v3952_v0 }
  0x2f   : > { %427 = vst.msk [vmem:[#allocation2 + $0x179] sm:$0x1] %vm393_vm1, %v3952_v0 }
  0x30   : > { %428 = vst.msk [vmem:[#allocation2 + $0x191] sm:$0x1] %vm393_vm1, %v3952_v0 }
  0x31   : > { %495 = vst.msk [vmem:[#allocation2 + $0x19] sm:$0xff] %vm384_vm0, %v3642_v4  ;;  %v3694_v4 = vunpack.c.l.bf16 %v3876_v1 }
  0x32   : > { %411 = vst.msk [vmem:[#allocation2 + $0x198] sm:$0x1] %vm393_vm1, %v3952_v0 }
  0x33   : > { %496 = vst.msk [vmem:[#allocation2 + $0x21] sm:$0xff] %vm384_vm0, %v3643_v5  ;;  %v3877_v5 = vld [vmem:[%s4094_s19 + $0x70] sm:$0xff]  }
  0x34   : > { %388 = vst.msk [vmem:[#allocation2 + $0x10] sm:$0x3] %vm387_vm2, %v3952_v0  ;;  %v3698_v7 = vunpack.c.l.bf16 %v3877_v5  ;;  %v3699_v14 = vunpack.c.h.bf16 %v3877_v5 }
  0x35   : > { %392 = vst.msk [vmem:[#allocation2 + $0x1a8] sm:$0x3] %vm387_vm2, %v3952_v0 }
  0x36   : > { %412 = vst.msk [vmem:[#allocation2 + $0x11] sm:$0x1] %vm393_vm1, %v3952_v0 }
  0x37   : > { %429 = vst.msk [vmem:[#allocation2 + $0x1a9] sm:$0x1] %vm393_vm1, %v3952_v0 }
  0x38   : > { %v626_v15 = vld [vmem:[#allocation2 + $0x19] sm:$0xff]  ;;  %499 = vst.msk [vmem:[#allocation2 + $0x49] sm:$0xff] %vm384_vm0, %v3650_v8 }
  0x39   : > { %v658_v17 = vpack.c.bf16 %v626_v15, %v626_v15  ;;  %500 = vst.msk [vmem:[#allocation2 + $0x51] sm:$0xff] %vm384_vm0, %v3651_v10 }
  0x3a   : > { %502 = vst.msk [vmem:[#allocation2 + $0x69] sm:$0xff] %vm384_vm0, %v3655_v11  ;;  %v627_v25 = vld [vmem:[#allocation2 + $0x21] sm:$0xff] }
  0x3b   : > { %724 = vrot.lane.b32.xlu1 %v658_v17, %s3953_s15  ;;  %v625_v21 = vld [vmem:[#allocation2 + $0x9] sm:$0xff]  ;;  %497 = vst.msk [vmem:[#allocation2 + $0x31] sm:$0xff] %vm384_vm0, %v3646_v13  ;;  %v659_v30 = vpack.c.bf16 %v627_v25, %v627_v25  ;;  %v3683_v13 = vunpack.c.h.bf16 %v3873_v44 }
  0x3c   : > { %v657_v24 = vpack.c.bf16 %v625_v21, %v625_v21  ;;  %498 = vst.msk [vmem:[#allocation2 + $0x39] sm:$0xff] %vm384_vm0, %v3647_v16  ;;  %v3690_v21 = vunpack.c.l.bf16 %v3875_v58 }
  0x3d   : > { %503 = vst.msk [vmem:[#allocation2 + $0x79] sm:$0xff] %vm384_vm0, %v3658_v18 }
  0x3e   : > { %722 = vrot.lane.b32.xlu0 %v657_v24, %s3953_s15  ;;  %505 = vst.msk [vmem:[#allocation2 + $0x91] sm:$0xff] %vm384_vm0, %v3662_v20 }
  0x3f   : > { %v630_v31 = vld [vmem:[#allocation2 + $0x49] sm:$0xff]  ;;  %506 = vst.msk [vmem:[#allocation2 + $0x99] sm:$0xff] %vm384_vm0, %v3663_v22 }
  0x40   : > { %508 = vst.msk [vmem:[#allocation2 + $0xb1] sm:$0xff] %vm384_vm0, %v3667_v26  ;;  %v662_v36 = vpack.c.bf16 %v630_v31, %v630_v31  ;;  %v631_v40 = vld [vmem:[#allocation2 + $0x51] sm:$0xff] }
  0x41   : > { %501 = vst.msk [vmem:[#allocation2 + $0x61] sm:$0xff] %vm384_vm0, %v3654_v28  ;;  %v663_v42 = vpack.c.bf16 %v631_v40, %v631_v40  ;;  %v633_v43 = vld [vmem:[#allocation2 + $0x69] sm:$0xff]  ;;  %v3695_v28 = vunpack.c.h.bf16 %v3876_v1 }
  0x42   : > { %v628_v37 = vld [vmem:[#allocation2 + $0x31] sm:$0xff]  ;;  %509 = vst.msk [vmem:[#allocation2 + $0xc1] sm:$0xff] %vm384_vm0, %v3670_v29  ;;  %v665_v49 = vpack.c.bf16 %v633_v43, %v633_v43  ;;  %v527_v43 = vld [vmem:[#allocation2] sm:$0xff] }
  0x43   : > { %726 = vrot.lane.b32.xlu1 %v659_v30, %s3953_s15  ;;  %v660_v39 = vpack.c.bf16 %v628_v37, %v628_v37  ;;  %511 = vst.msk [vmem:[#allocation2 + $0xd9] sm:$0xff] %vm384_vm0, %v3674_v32  ;;  %v629_v41 = vld [vmem:[#allocation2 + $0x39] sm:$0xff] }
  0x44   : > { %504 = vst.msk [vmem:[#allocation2 + $0x81] sm:$0xff] %vm384_vm0, %v3659_v33  ;;  %v661_v45 = vpack.c.bf16 %v629_v41, %v629_v41  ;;  %v634_v51 = vld [vmem:[#allocation2 + $0x79] sm:$0xff] }
  0x45   : > { %728 = vrot.lane.b32.xlu2 %v660_v39, %s3953_s15  ;;  %512 = vst.msk [vmem:[#allocation2 + $0xe1] sm:$0xff] %vm384_vm0, %v3675_v34  ;;  %v666_v53 = vpack.c.bf16 %v634_v51, %v634_v51  ;;  %v636_v54 = vld [vmem:[#allocation2 + $0x91] sm:$0xff]  ;;  %v851_v51 = vld [vmem:[#allocation2 + $0x1a] sm:$0xff] }
  0x46   : > { %732 = vrot.lane.b32.xlu0 %v662_v36, %s3953_s15  ;;  %514 = vst.msk [vmem:[#allocation2 + $0xf9] sm:$0xff] %vm384_vm0, %v3679_v38  ;;  %v668_v59 = vpack.c.bf16 %v636_v54, %v636_v54  ;;  %v637_v61 = vld [vmem:[#allocation2 + $0x99] sm:$0xff] }
  0x47   : > { %507 = vst.msk [vmem:[#allocation2 + $0xa9] sm:$0xff] %vm384_vm0, %v3666_v46  ;;  %v669_v63 = vpack.c.bf16 %v637_v61, %v637_v61  ;;  %v639_v0 = vld [vmem:[#allocation2 + $0xb1] sm:$0xff] }
  0x48   : > { %515 = vst.msk [vmem:[#allocation2 + $0x109] sm:$0xff] %vm384_vm0, %v3682_v47  ;;  %v632_v52 = vld [vmem:[#allocation2 + $0x61] sm:$0xff]  ;;  %v671_v6 = vpack.c.bf16 %v639_v0, %v639_v0  ;;  %v850_v47 = vld [vmem:[#allocation2 + $0xa] sm:$0xff]  ;;  %v532_v1 = vld [vmem:[#allocation2 + $0x38] sm:$0xff] }
  0x49   : > { %517 = vst.msk [vmem:[#allocation2 + $0x121] sm:$0xff] %vm384_vm0, %v3686_v50  ;;  %v664_v55 = vpack.c.bf16 %v632_v52, %v632_v52  ;;  %v640_v8 = vld [vmem:[#allocation2 + $0xc1] sm:$0xff]  ;;  %v882_v50 = vpack.c.bf16 %v850_v47, %v850_v47  ;;  %v529_v52 = vld [vmem:[#allocation2 + $0x18] sm:$0xff]  ;;  %v4215_v5 = vpack.c.bf16 %v532_v1, %v532_v1 }
  0x4a   : > { %510 = vst.msk [vmem:[#allocation2 + $0xc9] sm:$0xff] %vm384_vm0, %v3671_v56  ;;  %v672_v10 = vpack.c.bf16 %v640_v8, %v640_v8  ;;  %v642_v11 = vld [vmem:[#allocation2 + $0xd9] sm:$0xff]  ;;  %v4200_v54 = vpack.c.bf16 %v529_v52, %v529_v52  ;;  %v849_v56 = vld [vmem:[#allocation2 + $0x2] sm:$0xff] }
  0x4b   : > { %734 = vrot.lane.b32.xlu1 %v663_v42, %s3953_s15  ;;  %518 = vst.msk [vmem:[#allocation2 + $0x129] sm:$0xff] %vm384_vm0, %v3687_v57  ;;  %v635_v62 = vld [vmem:[#allocation2 + $0x81] sm:$0xff]  ;;  %v674_v15 = vpack.c.bf16 %v642_v11, %v642_v11  ;;  %v881_v61 = vpack.c.bf16 %v849_v56, %v849_v56  ;;  %v856_v8 = vld [vmem:[#allocation2 + $0x52] sm:$0xff] }
  0x4c   : > { %520 = vst.msk [vmem:[#allocation2 + $0x141] sm:$0xff] %vm384_vm0, %v3691_v60  ;;  %v667_v2 = vpack.c.bf16 %v635_v62, %v635_v62  ;;  %v643_v16 = vld [vmem:[#allocation2 + $0xe1] sm:$0xff]  ;;  %v853_v60 = vld [vmem:[#allocation2 + $0x32] sm:$0xff] }
  0x4d   : > { %730 = vrot.lane.b32.xlu2 %v661_v45, %s3953_s15  ;;  %513 = vst.msk [vmem:[#allocation2 + $0xf1] sm:$0xff] %vm384_vm0, %v3678_v3  ;;  %v675_v18 = vpack.c.bf16 %v643_v16, %v643_v16  ;;  %v645_v19 = vld [vmem:[#allocation2 + $0xf9] sm:$0xff]  ;;  %v559_v45 = vpack.c.bf16 %v527_v43, %v527_v43  ;;  %v885_v62 = vpack.c.bf16 %v853_v60, %v853_v60  ;;  %v533_v3 = vld [vmem:[#allocation2 + $0x48] sm:$0xff] }
  0x4e   : > { %738 = vrot.lane.b32.xlu0 %v665_v49, %s3953_s15  ;;  %521 = vst.msk [vmem:[#allocation2 + $0x151] sm:$0xff] %vm384_vm0, %v3694_v4  ;;  %v638_v9 = vld [vmem:[#allocation2 + $0xa9] sm:$0xff]  ;;  %v677_v22 = vpack.c.bf16 %v645_v19, %v645_v19  ;;  %v530_v0 = vld [vmem:[#allocation2 + $0x20] sm:$0xff]  ;;  %v861_v43 = vld [vmem:[#allocation2 + $0x92] sm:$0xff] }
  0x4f   : > { %523 = vst.msk [vmem:[#allocation2 + $0x169] sm:$0xff] %vm384_vm0, %v3698_v7  ;;  %v670_v12 = vpack.c.bf16 %v638_v9, %v638_v9  ;;  %v646_v23 = vld [vmem:[#allocation2 + $0x109] sm:$0xff]  ;;  %v864_v60 = vld [vmem:[#allocation2 + $0xb2] sm:$0xff] }
  0x50   : > { %516 = vst.msk [vmem:[#allocation2 + $0x111] sm:$0xff] %vm384_vm0, %v3683_v13  ;;  %v678_v25 = vpack.c.bf16 %v646_v23, %v646_v23  ;;  %v648_v26 = vld [vmem:[#allocation2 + $0x121] sm:$0xff]  ;;  %v855_v16 = vld [vmem:[#allocation2 + $0x4a] sm:$0xff] }
  0x51   : > { %524 = vst.msk [vmem:[#allocation2 + $0x171] sm:$0xff] %vm384_vm0, %v3699_v14  ;;  %v641_v17 = vld [vmem:[#allocation2 + $0xc9] sm:$0xff]  ;;  %v680_v29 = vpack.c.bf16 %v648_v26, %v648_v26  ;;  %v535_v13 = vld [vmem:[#allocation2 + $0x60] sm:$0xff] }
  0x52   : > { %v673_v20 = vpack.c.bf16 %v641_v17, %v641_v17  ;;  %519 = vst.msk [vmem:[#allocation2 + $0x139] sm:$0xff] %vm384_vm0, %v3690_v21  ;;  %v649_v30 = vld [vmem:[#allocation2 + $0x129] sm:$0xff]  ;;  %v4230_v17 = vpack.c.bf16 %v535_v13, %v535_v13  ;;  %v538_v26 = vld [vmem:[#allocation2 + $0x80] sm:$0xff] }
  0x53   : > { %740 = vrot.lane.b32.xlu1 %v666_v53, %s3953_s15  ;;  %522 = vst.msk [vmem:[#allocation2 + $0x159] sm:$0xff] %vm384_vm0, %v3695_v28  ;;  %v681_v32 = vpack.c.bf16 %v649_v30, %v649_v30  ;;  %v651_v33 = vld [vmem:[#allocation2 + $0x141] sm:$0xff]  ;;  %v531_v53 = vld [vmem:[#allocation2 + $0x30] sm:$0xff]  ;;  %v4246_v30 = vpack.c.bf16 %v538_v26, %v538_v26 }
  0x54   : > { %v644_v24 = vld [vmem:[#allocation2 + $0xf1] sm:$0xff]  ;;  %v683_v35 = vpack.c.bf16 %v651_v33, %v651_v33  ;;  %592 = vst.msk [vmem:[#allocation3] sm:$0xf] %vm591_vm3, %v559_v45  ;;  %v4203_v57 = vpack.c.bf16 %v531_v53, %v531_v53  ;;  %v852_v4 = vld [vmem:[#allocation2 + $0x22] sm:$0xff]  ;;  %v862_v33 = vld [vmem:[#allocation2 + $0x9a] sm:$0xff] }
  0x55   : > { %736 = vrot.lane.b32.xlu2 %v664_v55, %s3953_s15  ;;  %v676_v27 = vpack.c.bf16 %v644_v24, %v644_v24  ;;  %v652_v36 = vld [vmem:[#allocation2 + $0x151] sm:$0xff]  ;;  %v528_v55 = vld [vmem:[#allocation2 + $0x8] sm:$0xff]  ;;  %594 = vst.msk [vmem:[#allocation3 + $0x8] sm:$0xf] %vm591_vm3, %v4200_v54  ;;  %v884_v9 = vpack.c.bf16 %v852_v4, %v852_v4  ;;  %v543_v53 = vld [vmem:[#allocation2 + $0xc0] sm:$0xff]  ;;  %v896_v4 = vpack.c.bf16 %v864_v60, %v864_v60 }
  0x56   : > { %744 = vrot.lane.b32.xlu0 %v668_v59, %s3953_s15  ;;  %v684_v38 = vpack.c.bf16 %v652_v36, %v652_v36  ;;  %v654_v39 = vld [vmem:[#allocation2 + $0x169] sm:$0xff]  ;;  %v560_v58 = vpack.c.bf16 %v528_v55, %v528_v55  ;;  %v883_v59 = vpack.c.bf16 %v851_v51, %v851_v51  ;;  %596 = vst.msk [vmem:[#allocation3 + $0x10] sm:$0xf] %vm591_vm3, %v4203_v57  ;;  %v548_v13 = vld [vmem:[#allocation2 + $0xf8] sm:$0xff] }
  0x57   : > { %v647_v31 = vld [vmem:[#allocation2 + $0x111] sm:$0xff]  ;;  %v686_v41 = vpack.c.bf16 %v654_v39, %v654_v39  ;;  %597 = vst.msk [vmem:[#allocation3 + $0x14] sm:$0xf] %vm591_vm3, %v4215_v5  ;;  %v857_v11 = vld [vmem:[#allocation2 + $0x62] sm:$0xff]  ;;  %v894_v36 = vpack.c.bf16 %v862_v33, %v862_v33 }
  0x58   : > { %v679_v34 = vpack.c.bf16 %v647_v31, %v647_v31  ;;  %v655_v42 = vld [vmem:[#allocation2 + $0x171] sm:$0xff]  ;;  %593 = vst.msk [vmem:[#allocation3 + $0x4] sm:$0xf] %vm591_vm3, %v560_v58  ;;  %v889_v19 = vpack.c.bf16 %v857_v11, %v857_v11  ;;  %v860_v24 = vld [vmem:[#allocation2 + $0x82] sm:$0xff]  ;;  %v4280_v58 = vpack.c.bf16 %v543_v53, %v543_v53 }
  0x59   : > { %v650_v37 = vld [vmem:[#allocation2 + $0x139] sm:$0xff]  ;;  %v687_v46 = vpack.c.bf16 %v655_v42, %v655_v42  ;;  %600 = vst.msk [vmem:[#allocation3 + $0x20] sm:$0xf] %vm591_vm3, %v4230_v17  ;;  %v539_v28 = vld [vmem:[#allocation2 + $0x90] sm:$0xff]  ;;  %v544_v56 = vld [vmem:[#allocation2 + $0xc8] sm:$0xff] }
  0x5a   : > { %v682_v40 = vpack.c.bf16 %v650_v37, %v650_v37  ;;  %v653_v44 = vld [vmem:[#allocation2 + $0x159] sm:$0xff]  ;;  %v4248_v31 = vpack.c.bf16 %v539_v28, %v539_v28  ;;  %603 = vst.msk [vmem:[#allocation3 + $0x2c] sm:$0xf] %vm591_vm3, %v4246_v30  ;;  %v863_v37 = vld [vmem:[#allocation2 + $0xaa] sm:$0xff] }
  0x5b   : > { %746 = vrot.lane.b32.xlu1 %v669_v63, %s3953_s15  ;;  %v685_v48 = vpack.c.bf16 %v653_v44, %v653_v44  ;;  %v854_v63 = vld [vmem:[#allocation2 + $0x3a] sm:$0xff]  ;;  %v542_v42 = vld [vmem:[#allocation2 + $0xb0] sm:$0xff]  ;;  %v895_v45 = vpack.c.bf16 %v863_v37, %v863_v37  ;;  %608 = vst.msk [vmem:[#allocation3 + $0x40] sm:$0xf] %vm591_vm3, %v4280_v58  ;;  %v549_v28 = vld [vmem:[#allocation2 + $0x108] sm:$0xff] }
  0x5c   : > { %v886_v7 = vpack.c.bf16 %v854_v63, %v854_v63  ;;  %604 = vst.msk [vmem:[#allocation3 + $0x30] sm:$0xf] %vm591_vm3, %v4248_v31  ;;  %v866_v52 = vld [vmem:[#allocation2 + $0xca] sm:$0xff]  ;;  %v868_v63 = vld [vmem:[#allocation2 + $0xe2] sm:$0xff]  ;;  %v872_v26 = vld [vmem:[#allocation2 + $0x112] sm:$0xff]  ;;  %v4316_v33 = vpack.c.bf16 %v549_v28, %v549_v28 }
  0x5d   : > { %742 = vrot.lane.b32.xlu2 %v667_v2, %s3953_s15  ;;  %v4212_v2 = vpack.c.bf16 %v530_v0, %v530_v0  ;;  %v547_v11 = vld [vmem:[#allocation2 + $0xf0] sm:$0xff]  ;;  %v554_v53 = vld [vmem:[#allocation2 + $0x140] sm:$0xff] }
  0x5e   : > { %750 = vrot.lane.b32.xlu0 %v671_v6, %s3953_s15  ;;  %v4217_v6 = vpack.c.bf16 %v533_v3, %v533_v3  ;;  %614 = vst.msk [vmem:[#allocation3 + $0x58] sm:$0xf] %vm591_vm3, %v4316_v33  ;;  %v877_v60 = vld [vmem:[#allocation2 + $0x152] sm:$0xff] }
  0x5f   : > { %595 = vst.msk [vmem:[#allocation3 + $0xc] sm:$0xf] %vm591_vm3, %v4212_v2 }
  0x60   : > { %598 = vst.msk [vmem:[#allocation3 + $0x18] sm:$0xf] %vm591_vm3, %v4217_v6 }
  0x63   : > { %752 = vrot.lane.b32.xlu1 %v672_v10, %s3953_s15  ;;  %v888_v10 = vpack.c.bf16 %v856_v8, %v856_v8  ;;  %v869_v8 = vld [vmem:[#allocation2 + $0xf2] sm:$0xff] }
  0x65   : > { %748 = vrot.lane.b32.xlu2 %v670_v12, %s3953_s15  ;;  %v534_v12 = vld [vmem:[#allocation2 + $0x50] sm:$0xff] }
  0x66   : > { %756 = vrot.lane.b32.xlu0 %v674_v15, %s3953_s15  ;;  %v4227_v14 = vpack.c.bf16 %v534_v12, %v534_v12  ;;  %v536_v15 = vld [vmem:[#allocation2 + $0x68] sm:$0xff] }
  0x68   : > { %599 = vst.msk [vmem:[#allocation3 + $0x1c] sm:$0xf] %vm591_vm3, %v4227_v14 }
  0x6b   : > { %758 = vrot.lane.b32.xlu1 %v675_v18, %s3953_s15  ;;  %v4232_v18 = vpack.c.bf16 %v536_v15, %v536_v15  ;;  %v867_v15 = vld [vmem:[#allocation2 + $0xda] sm:$0xff] }
  0x6d   : > { %754 = vrot.lane.b32.xlu2 %v673_v20, %s3953_s15  ;;  %v859_v20 = vld [vmem:[#allocation2 + $0x7a] sm:$0xff]  ;;  %601 = vst.msk [vmem:[#allocation3 + $0x24] sm:$0xf] %vm591_vm3, %v4232_v18 }
  0x6e   : > { %762 = vrot.lane.b32.xlu0 %v677_v22, %s3953_s15  ;;  %v887_v22 = vpack.c.bf16 %v855_v16, %v855_v16  ;;  %v891_v23 = vpack.c.bf16 %v859_v20, %v859_v20  ;;  %v4302_v16 = vpack.c.bf16 %v547_v11, %v547_v11  ;;  %v871_v20 = vld [vmem:[#allocation2 + $0x10a] sm:$0xff] }
  0x70   : > { %612 = vst.msk [vmem:[#allocation3 + $0x50] sm:$0xf] %vm591_vm3, %v4302_v16 }
  0x73   : > { %764 = vrot.lane.b32.xlu1 %v678_v25, %s3953_s15  ;;  %v537_v25 = vld [vmem:[#allocation2 + $0x78] sm:$0xff] }
  0x75   : > { %760 = vrot.lane.b32.xlu2 %v676_v27, %s3953_s15  ;;  %v4243_v27 = vpack.c.bf16 %v537_v25, %v537_v25  ;;  %v903_v25 = vpack.c.bf16 %v871_v20, %v871_v20 }
  0x76   : > { %768 = vrot.lane.b32.xlu0 %v680_v29, %s3953_s15  ;;  %v858_v29 = vld [vmem:[#allocation2 + $0x6a] sm:$0xff] }
  0x77   : > { %602 = vst.msk [vmem:[#allocation3 + $0x28] sm:$0xf] %vm591_vm3, %v4243_v27 }
  0x7b   : > { %770 = vrot.lane.b32.xlu1 %v681_v32, %s3953_s15  ;;  %v892_v32 = vpack.c.bf16 %v860_v24, %v860_v24  ;;  %v899_v24 = vpack.c.bf16 %v867_v15, %v867_v15  ;;  %v876_v15 = vld [vmem:[#allocation2 + $0x142] sm:$0xff] }
  0x7d   : > { %766 = vrot.lane.b32.xlu2 %v679_v34, %s3953_s15 }
  0x7e   : > { %774 = vrot.lane.b32.xlu0 %v683_v35, %s3953_s15  ;;  %v4253_v35 = vpack.c.bf16 %v858_v29, %v858_v29 }
  0x83   : > { %776 = vrot.lane.b32.xlu1 %v684_v38, %s3953_s15  ;;  %v540_v38 = vld [vmem:[#allocation2 + $0x98] sm:$0xff] }
  0x85   : > { %772 = vrot.lane.b32.xlu2 %v682_v40, %s3953_s15  ;;  %v541_v40 = vld [vmem:[#allocation2 + $0xa8] sm:$0xff] }
  0x86   : > { %780 = vrot.lane.b32.xlu0 %v686_v41, %s3953_s15  ;;  %v4262_v41 = vpack.c.bf16 %v540_v38, %v540_v38  ;;  %v4266_v44 = vpack.c.bf16 %v541_v40, %v541_v40  ;;  %v904_v38 = vpack.c.bf16 %v872_v26, %v872_v26  ;;  %v908_v26 = vpack.c.bf16 %v876_v15, %v876_v15  ;;  %v1303_v15 = vld [vmem:[#allocation2 + $0x49] sm:$0xff] }
  0x88   : > { %605 = vst.msk [vmem:[#allocation3 + $0x34] sm:$0xf] %vm591_vm3, %v4262_v41 }
  0x89   : > { %v721_v49 = vpop.permute.xlu0 %720  ;;  %606 = vst.msk [vmem:[#allocation3 + $0x38] sm:$0xf] %vm591_vm3, %v4266_v44 }
  0x8a   : > { %817 = vst.msk [vmem:[#allocation3] sm:$0xf] %vm816_vm4, %v721_v49 }
  0x8b   : > { %782 = vrot.lane.b32.xlu1 %v687_v46, %s3953_s15  ;;  %v865_v46 = vld [vmem:[#allocation2 + $0xc2] sm:$0xff] }
  0x8c   : > { %v897_v51 = vpack.c.bf16 %v865_v46, %v865_v46 }
  0x8d   : > { %778 = vrot.lane.b32.xlu2 %v685_v48, %s3953_s15  ;;  %v4270_v48 = vpack.c.bf16 %v542_v42, %v542_v42 }
  0x8e   : > { %947 = vrot.lane.b32.xlu0 %v882_v50, %s3954_s20  ;;  %v893_v50 = vpack.c.bf16 %v861_v43, %v861_v43 }
  0x8f   : > { %607 = vst.msk [vmem:[#allocation3 + $0x3c] sm:$0xf] %vm591_vm3, %v4270_v48 }
  0x93   : > { %949 = vrot.lane.b32.xlu1 %v883_v59, %s3954_s20  ;;  %v545_v59 = vld [vmem:[#allocation2 + $0xd8] sm:$0xff] }
  0x94   : > { %v4288_v1 = vpack.c.bf16 %v545_v59, %v545_v59 }
  0x95   : > { %945 = vrot.lane.b32.xlu2 %v881_v61, %s3954_s20  ;;  %v4284_v61 = vpack.c.bf16 %v544_v56, %v544_v56 }
  0x96   : > { %953 = vrot.lane.b32.xlu0 %v885_v62, %s3954_s20  ;;  %v898_v62 = vpack.c.bf16 %v866_v52, %v866_v52  ;;  %610 = vst.msk [vmem:[#allocation3 + $0x48] sm:$0xf] %vm591_vm3, %v4288_v1 }
  0x97   : > { %609 = vst.msk [vmem:[#allocation3 + $0x44] sm:$0xf] %vm591_vm3, %v4284_v61 }
  0x9b   : > { %955 = vrot.lane.b32.xlu1 %v886_v7, %s3954_s20  ;;  %v900_v7 = vpack.c.bf16 %v868_v63, %v868_v63  ;;  %v4342_v63 = vpack.c.bf16 %v554_v53, %v554_v53 }
  0x9d   : > { %951 = vrot.lane.b32.xlu2 %v884_v9, %s3954_s20  ;;  %v546_v9 = vld [vmem:[#allocation2 + $0xe0] sm:$0xff]  ;;  %619 = vst.msk [vmem:[#allocation3 + $0x6c] sm:$0xf] %vm591_vm3, %v4342_v63 }
  0x9e   : > { %959 = vrot.lane.b32.xlu0 %v888_v10, %s3954_s20  ;;  %v4298_v12 = vpack.c.bf16 %v546_v9, %v546_v9 }
  0x9f   : > { %v729_v21 = vpop.permute.xlu2 %728 }
  0xa0   : > { %821 = vst.msk [vmem:[#allocation3 + $0x10] sm:$0xf] %vm816_vm4, %v729_v21 }
  0xa1   : > { %611 = vst.msk [vmem:[#allocation3 + $0x4c] sm:$0xf] %vm591_vm3, %v4298_v12 }
  0xa3   : > { %961 = vrot.lane.b32.xlu1 %v889_v19, %s3954_s20  ;;  %v901_v19 = vpack.c.bf16 %v869_v8, %v869_v8  ;;  %v555_v8 = vld [vmem:[#allocation2 + $0x150] sm:$0xff] }
  0xa4   : > { %v4352_v11 = vpack.c.bf16 %v555_v8, %v555_v8  ;;  %v1302_v8 = vld [vmem:[#allocation2 + $0x39] sm:$0xff] }
  0xa5   : > { %957 = vrot.lane.b32.xlu2 %v887_v22, %s3954_s20  ;;  %v4306_v22 = vpack.c.bf16 %v548_v13, %v548_v13  ;;  %v557_v13 = vld [vmem:[#allocation2 + $0x168] sm:$0xff] }
  0xa6   : > { %965 = vrot.lane.b32.xlu0 %v891_v23, %s3954_s20  ;;  %620 = vst.msk [vmem:[#allocation3 + $0x70] sm:$0xf] %vm591_vm3, %v4352_v11 }
  0xa7   : > { %v731_v34 = vpop.permute.xlu2 %730  ;;  %613 = vst.msk [vmem:[#allocation3 + $0x54] sm:$0xf] %vm591_vm3, %v4306_v22 }
  0xa8   : > { %822 = vst.msk [vmem:[#allocation3 + $0x14] sm:$0xf] %vm816_vm4, %v731_v34  ;;  %v551_v34 = vld [vmem:[#allocation2 + $0x120] sm:$0xff] }
  0xa9   : > { %v4324_v42 = vpack.c.bf16 %v551_v34, %v551_v34 }
  0xab   : > { %967 = vrot.lane.b32.xlu1 %v892_v32, %s3954_s20  ;;  %v550_v32 = vld [vmem:[#allocation2 + $0x110] sm:$0xff]  ;;  %616 = vst.msk [vmem:[#allocation3 + $0x60] sm:$0xf] %vm591_vm3, %v4324_v42 }
  0xac   : > { %v4320_v37 = vpack.c.bf16 %v550_v32, %v550_v32 }
  0xad   : > { %v725_v39 = vpop.permute.xlu1 %724  ;;  %963 = vrot.lane.b32.xlu2 %v4253_v35, %s3954_s20 }
  0xae   : > { %971 = vrot.lane.b32.xlu0 %v894_v36, %s3954_s20  ;;  %819 = vst.msk [vmem:[#allocation3 + $0x8] sm:$0xf] %vm816_vm4, %v725_v39  ;;  %v870_v36 = vld [vmem:[#allocation2 + $0xfa] sm:$0xff]  ;;  %v874_v39 = vld [vmem:[#allocation2 + $0x12a] sm:$0xff] }
  0xaf   : > { %v737_v47 = vpop.permute.xlu2 %736  ;;  %v906_v46 = vpack.c.bf16 %v874_v39, %v874_v39  ;;  %615 = vst.msk [vmem:[#allocation3 + $0x5c] sm:$0xf] %vm591_vm3, %v4320_v37 }
  0xb0   : > { %v723_v49 = vpop.permute.xlu0 %722  ;;  %825 = vst.msk [vmem:[#allocation3 + $0x20] sm:$0xf] %vm816_vm4, %v737_v47  ;;  %v875_v47 = vld [vmem:[#allocation2 + $0x13a] sm:$0xff] }
  0xb1   : > { %818 = vst.msk [vmem:[#allocation3 + $0x4] sm:$0xf] %vm816_vm4, %v723_v49  ;;  %v552_v49 = vld [vmem:[#allocation2 + $0x128] sm:$0xff]  ;;  %v907_v59 = vpack.c.bf16 %v875_v47, %v875_v47 }
  0xb2   : > { %v4334_v52 = vpack.c.bf16 %v552_v49, %v552_v49 }
  0xb3   : > { %973 = vrot.lane.b32.xlu1 %v895_v45, %s3954_s20  ;;  %v902_v45 = vpack.c.bf16 %v870_v36, %v870_v36  ;;  %v879_v36 = vld [vmem:[#allocation2 + $0x16a] sm:$0xff] }
  0xb4   : > { %617 = vst.msk [vmem:[#allocation3 + $0x64] sm:$0xf] %vm591_vm3, %v4334_v52 }
  0xb5   : > { %v727_v55 = vpop.permute.xlu1 %726  ;;  %969 = vrot.lane.b32.xlu2 %v893_v50, %s3954_s20 }
  0xb6   : > { %977 = vrot.lane.b32.xlu0 %v897_v51, %s3954_s20  ;;  %820 = vst.msk [vmem:[#allocation3 + $0xc] sm:$0xf] %vm816_vm4, %v727_v55  ;;  %v553_v51 = vld [vmem:[#allocation2 + $0x138] sm:$0xff]  ;;  %v873_v55 = vld [vmem:[#allocation2 + $0x122] sm:$0xff] }
  0xb7   : > { %v743_v0 = vpop.permute.xlu2 %742  ;;  %v4338_v56 = vpack.c.bf16 %v553_v51, %v553_v51 }
  0xb8   : > { %v733_v3 = vpop.permute.xlu0 %732  ;;  %828 = vst.msk [vmem:[#allocation3 + $0x2c] sm:$0xf] %vm816_vm4, %v743_v0 }
  0xb9   : > { %823 = vst.msk [vmem:[#allocation3 + $0x18] sm:$0xf] %vm816_vm4, %v733_v3  ;;  %v905_v3 = vpack.c.bf16 %v873_v55, %v873_v55 }
  0xba   : > { %618 = vst.msk [vmem:[#allocation3 + $0x68] sm:$0xf] %vm591_vm3, %v4338_v56 }
  0xbb   : > { %979 = vrot.lane.b32.xlu1 %v898_v62, %s3954_s20 }
  0xbd   : > { %v735_v10 = vpop.permute.xlu1 %734  ;;  %975 = vrot.lane.b32.xlu2 %v896_v4, %s3954_s20  ;;  %v909_v4 = vpack.c.bf16 %v877_v60, %v877_v60 }
  0xbe   : > { %983 = vrot.lane.b32.xlu0 %v900_v7, %s3954_s20  ;;  %824 = vst.msk [vmem:[#allocation3 + $0x1c] sm:$0xf] %vm816_vm4, %v735_v10  ;;  %v878_v7 = vld [vmem:[#allocation2 + $0x15a] sm:$0xff] }
  0xbf   : > { %v749_v21 = vpop.permute.xlu2 %748  ;;  %v556_v10 = vld [vmem:[#allocation2 + $0x158] sm:$0xff]  ;;  %v910_v20 = vpack.c.bf16 %v878_v7, %v878_v7 }
  0xc0   : > { %v739_v23 = vpop.permute.xlu0 %738  ;;  %831 = vst.msk [vmem:[#allocation3 + $0x38] sm:$0xf] %vm816_vm4, %v749_v21  ;;  %v880_v21 = vld [vmem:[#allocation2 + $0x172] sm:$0xff] }
  0xc1   : > { %826 = vst.msk [vmem:[#allocation3 + $0x24] sm:$0xf] %vm816_vm4, %v739_v23  ;;  %v912_v28 = vpack.c.bf16 %v880_v21, %v880_v21  ;;  %v4484_v21 = vpack.c.bf16 %v1303_v15, %v1303_v15 }
  0xc3   : > { %985 = vrot.lane.b32.xlu1 %v901_v19, %s3954_s20  ;;  %v4356_v19 = vpack.c.bf16 %v556_v10, %v556_v10 }
  0xc5   : > { %v741_v29 = vpop.permute.xlu1 %740  ;;  %981 = vrot.lane.b32.xlu2 %v899_v24, %s3954_s20  ;;  %v4360_v24 = vpack.c.bf16 %v557_v13, %v557_v13  ;;  %621 = vst.msk [vmem:[#allocation3 + $0x74] sm:$0xf] %vm591_vm3, %v4356_v19  ;;  %v4477_v13 = vpack.c.bf16 %v1302_v8, %v1302_v8 }
  0xc6   : > { %989 = vrot.lane.b32.xlu0 %v903_v25, %s3954_s20  ;;  %827 = vst.msk [vmem:[#allocation3 + $0x28] sm:$0xf] %vm816_vm4, %v741_v29  ;;  %v558_v29 = vld [vmem:[#allocation2 + $0x170] sm:$0xff] }
  0xc7   : > { %v755_v40 = vpop.permute.xlu2 %754  ;;  %622 = vst.msk [vmem:[#allocation3 + $0x78] sm:$0xf] %vm591_vm3, %v4360_v24  ;;  %v4370_v34 = vpack.c.bf16 %v558_v29, %v558_v29  ;;  %v1306_v29 = vld [vmem:[#allocation2 + $0x69] sm:$0xff] }
  0xc8   : > { %v745_v43 = vpop.permute.xlu0 %744  ;;  %834 = vst.msk [vmem:[#allocation3 + $0x44] sm:$0xf] %vm816_vm4, %v755_v40  ;;  %v911_v40 = vpack.c.bf16 %v879_v36, %v879_v36  ;;  %v4499_v36 = vpack.c.bf16 %v1306_v29, %v1306_v29  ;;  %v1326_v29 = vld [vmem:[#allocation2 + $0x159] sm:$0xff] }
  0xc9   : > { %829 = vst.msk [vmem:[#allocation3 + $0x30] sm:$0xf] %vm816_vm4, %v745_v43 }
  0xca   : > { %623 = vst.msk [vmem:[#allocation3 + $0x7c] sm:$0xf] %vm591_vm3, %v4370_v34 }
  0xcb   : > { %991 = vrot.lane.b32.xlu1 %v904_v38, %s3954_s20 }
  0xcd   : > { %v747_v50 = vpop.permute.xlu1 %746  ;;  %987 = vrot.lane.b32.xlu2 %v902_v45, %s3954_s20 }
  0xce   : > { %995 = vrot.lane.b32.xlu0 %v906_v46, %s3954_s20  ;;  %830 = vst.msk [vmem:[#allocation3 + $0x34] sm:$0xf] %vm816_vm4, %v747_v50 }
  0xcf   : > { %v761_v62 = vpop.permute.xlu2 %760 }
  0xd0   : > { %v751_v0 = vpop.permute.xlu0 %750  ;;  %837 = vst.msk [vmem:[#allocation3 + $0x50] sm:$0xf] %vm816_vm4, %v761_v62 }
  0xd1   : > { %832 = vst.msk [vmem:[#allocation3 + $0x3c] sm:$0xf] %vm816_vm4, %v751_v0 }
  0xd3   : > { %997 = vrot.lane.b32.xlu1 %v907_v59, %s3954_s20  ;;  %v1299_v59 = vld [vmem:[#allocation2 + $0x19] sm:$0xff] }
  0xd4   : > { %v1331_v0 = vpack.c.bf16 %v1299_v59, %v1299_v59  ;;  %v1320_v59 = vld [vmem:[#allocation2 + $0x111] sm:$0xff] }
  0xd5   : > { %v753_v9 = vpop.permute.xlu1 %752  ;;  %993 = vrot.lane.b32.xlu2 %v905_v3, %s3954_s20  ;;  %v1300_v3 = vld [vmem:[#allocation2 + $0x21] sm:$0xff] }
  0xd6   : > { %1001 = vrot.lane.b32.xlu0 %v909_v4, %s3954_s20  ;;  %833 = vst.msk [vmem:[#allocation3 + $0x40] sm:$0xf] %vm816_vm4, %v753_v9  ;;  %v1332_v7 = vpack.c.bf16 %v1300_v3, %v1300_v3  ;;  %v4545_v3 = vpack.c.bf16 %v1320_v59, %v1320_v59 }
  0xd7   : > { %v767_v23 = vpop.permute.xlu2 %766 }
  0xd8   : > { %v757_v25 = vpop.permute.xlu0 %756  ;;  %840 = vst.msk [vmem:[#allocation3 + $0x5c] sm:$0xf] %vm816_vm4, %v767_v23  ;;  %v1305_v23 = vld [vmem:[#allocation2 + $0x61] sm:$0xff] }
  0xd9   : > { %835 = vst.msk [vmem:[#allocation3 + $0x48] sm:$0xf] %vm816_vm4, %v757_v25 }
  0xdb   : > { %1003 = vrot.lane.b32.xlu1 %v910_v20, %s3954_s20  ;;  %v1301_v20 = vld [vmem:[#allocation2 + $0x31] sm:$0xff] }
  0xdd   : > { %v759_v32 = vpop.permute.xlu1 %758  ;;  %999 = vrot.lane.b32.xlu2 %v908_v26, %s3954_s20  ;;  %v4488_v26 = vpack.c.bf16 %v1301_v20, %v1301_v20  ;;  %v1324_v20 = vld [vmem:[#allocation2 + $0x141] sm:$0xff] }
  0xde   : > { %1007 = vrot.lane.b32.xlu0 %v912_v28, %s3954_s20  ;;  %836 = vst.msk [vmem:[#allocation3 + $0x4c] sm:$0xf] %vm816_vm4, %v759_v32  ;;  %v4490_v28 = vpack.c.bf16 %v1305_v23, %v1305_v23 }
  0xdf   : > { %v773_v38 = vpop.permute.xlu2 %772 }
  0xe0   : > { %v763_v39 = vpop.permute.xlu0 %762  ;;  %843 = vst.msk [vmem:[#allocation3 + $0x68] sm:$0xf] %vm816_vm4, %v773_v38  ;;  %v1308_v38 = vld [vmem:[#allocation2 + $0x81] sm:$0xff] }
  0xe1   : > { %838 = vst.msk [vmem:[#allocation3 + $0x54] sm:$0xf] %vm816_vm4, %v763_v39 }
  0xe3   : > { %1170 = vrot.lane.b32.xlu1 %v4200_v54, %s3955_s21 }
  0xe5   : > { %v765_v43 = vpop.permute.xlu1 %764  ;;  %1005 = vrot.lane.b32.xlu2 %v911_v40, %s3954_s20 }
  0xe6   : > { %1174 = vrot.lane.b32.xlu0 %v4203_v57, %s3955_s21  ;;  %839 = vst.msk [vmem:[#allocation3 + $0x58] sm:$0xf] %vm816_vm4, %v765_v43 }
  0xe7   : > { %v779_v45 = vpop.permute.xlu2 %778 }
  0xe8   : > { %v769_v46 = vpop.permute.xlu0 %768  ;;  %846 = vst.msk [vmem:[#allocation3 + $0x74] sm:$0xf] %vm816_vm4, %v779_v45  ;;  %v4505_v45 = vpack.c.bf16 %v1308_v38, %v1308_v38 }
  0xe9   : > { %841 = vst.msk [vmem:[#allocation3 + $0x60] sm:$0xf] %vm816_vm4, %v769_v46  ;;  %v1309_v46 = vld [vmem:[#allocation2 + $0x91] sm:$0xff] }
  0xeb   : > { %1176 = vrot.lane.b32.xlu1 %v4215_v5, %s3955_s21 }
  0xed   : > { %v771_v47 = vpop.permute.xlu1 %770  ;;  %1172 = vrot.lane.b32.xlu2 %v4212_v2, %s3955_s21 }
  0xee   : > { %1180 = vrot.lane.b32.xlu0 %v4227_v14, %s3955_s21  ;;  %842 = vst.msk [vmem:[#allocation3 + $0x64] sm:$0xf] %vm816_vm4, %v771_v47 }
  0xef   : > { %v946_v54 = vpop.permute.xlu2 %945 }
  0xf0   : > { %v775_v57 = vpop.permute.xlu0 %774  ;;  %1042 = vst.msk [vmem:[#allocation3] sm:$0xf] %vm1041_vm5, %v946_v54  ;;  %v1307_v54 = vld [vmem:[#allocation2 + $0x79] sm:$0xff] }
  0xf1   : > { %844 = vst.msk [vmem:[#allocation3 + $0x6c] sm:$0xf] %vm816_vm4, %v775_v57  ;;  %v1341_v57 = vpack.c.bf16 %v1309_v46, %v1309_v46 }
  0xf3   : > { %1182 = vrot.lane.b32.xlu1 %v4230_v17, %s3955_s21 }
  0xf5   : > { %v777_v5 = vpop.permute.xlu1 %776  ;;  %1178 = vrot.lane.b32.xlu2 %v4217_v6, %s3955_s21 }
  0xf6   : > { %1186 = vrot.lane.b32.xlu0 %v4243_v27, %s3955_s21  ;;  %845 = vst.msk [vmem:[#allocation3 + $0x70] sm:$0xf] %vm816_vm4, %v777_v5  ;;  %v1311_v5 = vld [vmem:[#allocation2 + $0xa9] sm:$0xff] }
  0xf7   : > { %v952_v2 = vpop.permute.xlu2 %951 }
  0xf8   : > { %v781_v14 = vpop.permute.xlu0 %780  ;;  %1045 = vst.msk [vmem:[#allocation3 + $0xc] sm:$0xf] %vm1041_vm5, %v952_v2 }
  0xf9   : > { %847 = vst.msk [vmem:[#allocation3 + $0x78] sm:$0xf] %vm816_vm4, %v781_v14 }
  0xfb   : > { %1188 = vrot.lane.b32.xlu1 %v4246_v30, %s3955_s21 }
  0xfd   : > { %v783_v49 = vpop.permute.xlu1 %782  ;;  %1184 = vrot.lane.b32.xlu2 %v4232_v18, %s3955_s21 }
  0xfe   : > { %1192 = vrot.lane.b32.xlu0 %v4262_v41, %s3955_s21  ;;  %848 = vst.msk [vmem:[#allocation3 + $0x7c] sm:$0xf] %vm816_vm4, %v783_v49  ;;  %v3878_v41 = vld [vmem:[%s4094_s19 + $0x78] sm:$0xff]   ;;  %v4516_v49 = vpack.c.bf16 %v1307_v54, %v1307_v54 }
  0xff   : > { %v958_v6 = vpop.permute.xlu2 %957  ;;  %v3702_v50 = vunpack.c.l.bf16 %v3878_v41  ;;  %v3703_v53 = vunpack.c.h.bf16 %v3878_v41  ;;  %v1314_v41 = vld [vmem:[#allocation2 + $0xc9] sm:$0xff] }
 0x100   : > { %v948_v17 = vpop.permute.xlu0 %947  ;;  %1048 = vst.msk [vmem:[#allocation3 + $0x18] sm:$0xf] %vm1041_vm5, %v958_v6  ;;  %v1343_v6 = vpack.c.bf16 %v1311_v5, %v1311_v5 }
 0x101   : > { %1043 = vst.msk [vmem:[#allocation3 + $0x4] sm:$0xf] %vm1041_vm5, %v948_v17  ;;  %v1312_v17 = vld [vmem:[#allocation2 + $0xb1] sm:$0xff] }
 0x102   : > { %525 = vst.msk [vmem:[#allocation2 + $0x181] sm:$0xff] %vm384_vm0, %v3702_v50 }
 0x103   : > { %1194 = vrot.lane.b32.xlu1 %v4266_v44, %s3955_s21  ;;  %526 = vst.msk [vmem:[#allocation2 + $0x189] sm:$0xff] %vm384_vm0, %v3703_v53 }
 0x105   : > { %v950_v27 = vpop.permute.xlu1 %949  ;;  %1190 = vrot.lane.b32.xlu2 %v4248_v31, %s3955_s21 }
 0x106   : > { %1198 = vrot.lane.b32.xlu0 %v4280_v58, %s3955_s21  ;;  %1044 = vst.msk [vmem:[#allocation3 + $0x8] sm:$0xf] %vm1041_vm5, %v950_v27 }
 0x107   : > { %v964_v18 = vpop.permute.xlu2 %963 }
 0x108   : > { %v954_v30 = vpop.permute.xlu0 %953  ;;  %1051 = vst.msk [vmem:[#allocation3 + $0x24] sm:$0xf] %vm1041_vm5, %v964_v18  ;;  %v1310_v18 = vld [vmem:[#allocation2 + $0x99] sm:$0xff] }
 0x109   : > { %1046 = vst.msk [vmem:[#allocation3 + $0x10] sm:$0xf] %vm1041_vm5, %v954_v30  ;;  %v1104_v55 = vld [vmem:[#allocation2 + $0x180] sm:$0xff]  ;;  %v1344_v30 = vpack.c.bf16 %v1312_v17, %v1312_v17 }
 0x10a   : > { %v1330_v17 = vld [vmem:[#allocation2 + $0x189] sm:$0xff] }
 0x10b   : > { %1200 = vrot.lane.b32.xlu1 %v4284_v61, %s3955_s21 }
 0x10d   : > { %v956_v44 = vpop.permute.xlu1 %955  ;;  %1196 = vrot.lane.b32.xlu2 %v4270_v48, %s3955_s21 }
 0x10e   : > { %1204 = vrot.lane.b32.xlu0 %v4298_v12, %s3955_s21  ;;  %1047 = vst.msk [vmem:[#allocation3 + $0x14] sm:$0xf] %vm1041_vm5, %v956_v44 }
 0x10f   : > { %v970_v31 = vpop.permute.xlu2 %969 }
 0x110   : > { %v960_v58 = vpop.permute.xlu0 %959  ;;  %1054 = vst.msk [vmem:[#allocation3 + $0x30] sm:$0xf] %vm1041_vm5, %v970_v31  ;;  %v4525_v31 = vpack.c.bf16 %v1310_v18, %v1310_v18  ;;  %v1328_v18 = vld [vmem:[#allocation2 + $0x171] sm:$0xff] }
 0x111   : > { %1049 = vst.msk [vmem:[#allocation3 + $0x1c] sm:$0xf] %vm1041_vm5, %v960_v58  ;;  %v1346_v58 = vpack.c.bf16 %v1314_v41, %v1314_v41  ;;  %v1525_v41 = vld [vmem:[#allocation2 + $0x22] sm:$0xff] }
 0x113   : > { %1206 = vrot.lane.b32.xlu1 %v4302_v16, %s3955_s21 }
 0x115   : > { %v962_v61 = vpop.permute.xlu1 %961  ;;  %1202 = vrot.lane.b32.xlu2 %v4288_v1, %s3955_s21 }
 0x116   : > { %1210 = vrot.lane.b32.xlu0 %v4316_v33, %s3955_s21  ;;  %1050 = vst.msk [vmem:[#allocation3 + $0x20] sm:$0xf] %vm1041_vm5, %v962_v61  ;;  %v1315_v61 = vld [vmem:[#allocation2 + $0xd9] sm:$0xff] }
 0x117   : > { %v976_v48 = vpop.permute.xlu2 %975 }
 0x118   : > { %v966_v12 = vpop.permute.xlu0 %965  ;;  %1057 = vst.msk [vmem:[#allocation3 + $0x3c] sm:$0xf] %vm1041_vm5, %v976_v48 }
 0x119   : > { %1052 = vst.msk [vmem:[#allocation3 + $0x28] sm:$0xf] %vm1041_vm5, %v966_v12  ;;  %v1313_v12 = vld [vmem:[#allocation2 + $0xc1] sm:$0xff] }
 0x11b   : > { %1212 = vrot.lane.b32.xlu1 %v4320_v37, %s3955_s21 }
 0x11d   : > { %v968_v51 = vpop.permute.xlu1 %967  ;;  %1208 = vrot.lane.b32.xlu2 %v4306_v22, %s3955_s21 }
 0x11e   : > { %1216 = vrot.lane.b32.xlu0 %v4334_v52, %s3955_s21  ;;  %1053 = vst.msk [vmem:[#allocation3 + $0x2c] sm:$0xf] %vm1041_vm5, %v968_v51  ;;  %v1347_v51 = vpack.c.bf16 %v1315_v61, %v1315_v61  ;;  %v1557_v61 = vpack.c.bf16 %v1525_v41, %v1525_v41 }
 0x11f   : > { %v982_v1 = vpop.permute.xlu2 %981 }
 0x120   : > { %v972_v33 = vpop.permute.xlu0 %971  ;;  %1060 = vst.msk [vmem:[#allocation3 + $0x48] sm:$0xf] %vm1041_vm5, %v982_v1  ;;  %v1317_v1 = vld [vmem:[#allocation2 + $0xf1] sm:$0xff] }
 0x121   : > { %1055 = vst.msk [vmem:[#allocation3 + $0x34] sm:$0xf] %vm1041_vm5, %v972_v33 }
 0x123   : > { %1218 = vrot.lane.b32.xlu1 %v4338_v56, %s3955_s21 }
 0x125   : > { %v974_v37 = vpop.permute.xlu1 %973  ;;  %1214 = vrot.lane.b32.xlu2 %v4324_v42, %s3955_s21  ;;  %v1136_v42 = vpack.c.bf16 %v1104_v55, %v1104_v55 }
 0x126   : > { %1222 = vrot.lane.b32.xlu0 %v4352_v11, %s3955_s21  ;;  %1056 = vst.msk [vmem:[#allocation3 + $0x38] sm:$0xf] %vm1041_vm5, %v974_v37  ;;  %v1345_v37 = vpack.c.bf16 %v1313_v12, %v1313_v12 }
 0x127   : > { %v988_v22 = vpop.permute.xlu2 %987 }
 0x128   : > { %v978_v52 = vpop.permute.xlu0 %977  ;;  %1063 = vst.msk [vmem:[#allocation3 + $0x54] sm:$0xf] %vm1041_vm5, %v988_v22  ;;  %v4534_v22 = vpack.c.bf16 %v1317_v1, %v1317_v1 }
 0x129   : > { %1058 = vst.msk [vmem:[#allocation3 + $0x40] sm:$0xf] %vm1041_vm5, %v978_v52  ;;  %v1318_v52 = vld [vmem:[#allocation2 + $0xf9] sm:$0xff] }
 0x12b   : > { %1224 = vrot.lane.b32.xlu1 %v4356_v19, %s3955_s21 }
 0x12d   : > { %v980_v56 = vpop.permute.xlu1 %979  ;;  %1220 = vrot.lane.b32.xlu2 %v4342_v63, %s3955_s21  ;;  %v1105_v63 = vld [vmem:[#allocation2 + $0x188] sm:$0xff] }
 0x12e   : > { %1228 = vrot.lane.b32.xlu0 %v4370_v34, %s3955_s21  ;;  %1059 = vst.msk [vmem:[#allocation3 + $0x44] sm:$0xf] %vm1041_vm5, %v980_v56  ;;  %v1137_v11 = vpack.c.bf16 %v1105_v63, %v1105_v63  ;;  %v1304_v34 = vld [vmem:[#allocation2 + $0x51] sm:$0xff]  ;;  %v1316_v56 = vld [vmem:[#allocation2 + $0xe1] sm:$0xff] }
 0x12f   : > { %v994_v60 = vpop.permute.xlu2 %993  ;;  %v4503_v43 = vpack.c.bf16 %v1304_v34, %v1304_v34 }
 0x130   : > { %v984_v62 = vpop.permute.xlu0 %983  ;;  %1066 = vst.msk [vmem:[#allocation3 + $0x60] sm:$0xf] %vm1041_vm5, %v994_v60 }
 0x131   : > { %1061 = vst.msk [vmem:[#allocation3 + $0x4c] sm:$0xf] %vm1041_vm5, %v984_v62 }
 0x133   : > { %1230 = vrot.lane.b32.xlu1 %v1136_v42, %s3955_s21  ;;  %v4541_v42 = vpack.c.bf16 %v1318_v52, %v1318_v52 }
 0x135   : > { %v986_v4 = vpop.permute.xlu1 %985  ;;  %1226 = vrot.lane.b32.xlu2 %v4360_v24, %s3955_s21 }
 0x136   : > { %1395 = vrot.lane.b32.xlu0 %v1331_v0, %s3956_s22  ;;  %1062 = vst.msk [vmem:[#allocation3 + $0x50] sm:$0xf] %vm1041_vm5, %v986_v4  ;;  %v1348_v0 = vpack.c.bf16 %v1316_v56, %v1316_v56  ;;  %v1321_v4 = vld [vmem:[#allocation2 + $0x121] sm:$0xff]  ;;  %v1529_v56 = vld [vmem:[#allocation2 + $0x52] sm:$0xff] }
 0x137   : > { %v1000_v9 = vpop.permute.xlu2 %999  ;;  %v4553_v8 = vpack.c.bf16 %v1321_v4, %v1321_v4 }
 0x138   : > { %v990_v10 = vpop.permute.xlu0 %989  ;;  %1069 = vst.msk [vmem:[#allocation3 + $0x6c] sm:$0xf] %vm1041_vm5, %v1000_v9  ;;  %v1323_v9 = vld [vmem:[#allocation2 + $0x139] sm:$0xff] }
 0x139   : > { %1064 = vst.msk [vmem:[#allocation3 + $0x58] sm:$0xf] %vm1041_vm5, %v990_v10 }
 0x13b   : > { %1397 = vrot.lane.b32.xlu1 %v1332_v7, %s3956_s22  ;;  %v1319_v7 = vld [vmem:[#allocation2 + $0x109] sm:$0xff] }
 0x13c   : > { %v4557_v15 = vpack.c.bf16 %v1319_v7, %v1319_v7  ;;  %v1532_v7 = vld [vmem:[#allocation2 + $0x7a] sm:$0xff] }
 0x13d   : > { %v992_v19 = vpop.permute.xlu1 %991  ;;  %1232 = vrot.lane.b32.xlu2 %v1137_v11, %s3955_s21 }
 0x13e   : > { %1401 = vrot.lane.b32.xlu0 %v4477_v13, %s3956_s22  ;;  %1065 = vst.msk [vmem:[#allocation3 + $0x5c] sm:$0xf] %vm1041_vm5, %v992_v19  ;;  %v4559_v19 = vpack.c.bf16 %v1323_v9, %v1323_v9 }
 0x13f   : > { %v1006_v24 = vpop.permute.xlu2 %1005 }
 0x140   : > { %v996_v25 = vpop.permute.xlu0 %995  ;;  %1072 = vst.msk [vmem:[#allocation3 + $0x78] sm:$0xf] %vm1041_vm5, %v1006_v24  ;;  %v1322_v24 = vld [vmem:[#allocation2 + $0x129] sm:$0xff] }
 0x141   : > { %1067 = vst.msk [vmem:[#allocation3 + $0x64] sm:$0xf] %vm1041_vm5, %v996_v25  ;;  %v1356_v25 = vpack.c.bf16 %v1324_v20, %v1324_v20  ;;  %v4570_v38 = vpack.c.bf16 %v1322_v24, %v1322_v24  ;;  %v1751_v20 = vld [vmem:[#allocation2 + $0x38] sm:$0xff] }
 0x143   : > { %1403 = vrot.lane.b32.xlu1 %v4484_v21, %s3956_s22 }
 0x145   : > { %v998_v32 = vpop.permute.xlu1 %997  ;;  %1399 = vrot.lane.b32.xlu2 %v4488_v26, %s3956_s22 }
 0x146   : > { %1407 = vrot.lane.b32.xlu0 %v4490_v28, %s3956_s22  ;;  %1068 = vst.msk [vmem:[#allocation3 + $0x68] sm:$0xf] %vm1041_vm5, %v998_v32 }
 0x147   : > { %v1173_v39 = vpop.permute.xlu2 %1172 }
 0x148   : > { %v1002_v40 = vpop.permute.xlu0 %1001  ;;  %1268 = vst.msk [vmem:[#allocation3 + $0x4] sm:$0xf] %vm1266_vm6, %v1173_v39  ;;  %v1358_v39 = vpack.c.bf16 %v1326_v29, %v1326_v29  ;;  %v1783_v29 = vpack.c.bf16 %v1751_v20, %v1751_v20 }
 0x149   : > { %1070 = vst.msk [vmem:[#allocation3 + $0x70] sm:$0xf] %vm1041_vm5, %v1002_v40  ;;  %v1327_v40 = vld [vmem:[#allocation2 + $0x169] sm:$0xff] }
 0x14a   : > { %v1359_v54 = vpack.c.bf16 %v1327_v40, %v1327_v40 }
 0x14b   : > { %1409 = vrot.lane.b32.xlu1 %v4499_v36, %s3956_s22 }
 0x14d   : > { %v1004_v47 = vpop.permute.xlu1 %1003  ;;  %1405 = vrot.lane.b32.xlu2 %v4503_v43, %s3956_s22 }
 0x14e   : > { %1413 = vrot.lane.b32.xlu0 %v4505_v45, %s3956_s22  ;;  %1071 = vst.msk [vmem:[#allocation3 + $0x74] sm:$0xf] %vm1041_vm5, %v1004_v47  ;;  %v1325_v47 = vld [vmem:[#allocation2 + $0x151] sm:$0xff] }
 0x14f   : > { %v1179_v2 = vpop.permute.xlu2 %1178 }
 0x150   : > { %v1008_v14 = vpop.permute.xlu0 %1007  ;;  %1271 = vst.msk [vmem:[#allocation3 + $0x10] sm:$0xf] %vm1266_vm6, %v1179_v2 }
 0x151   : > { %1073 = vst.msk [vmem:[#allocation3 + $0x7c] sm:$0xf] %vm1041_vm5, %v1008_v14  ;;  %v1357_v14 = vpack.c.bf16 %v1325_v47, %v1325_v47  ;;  %v1753_v47 = vld [vmem:[#allocation2 + $0x50] sm:$0xff] }
 0x153   : > { %1415 = vrot.lane.b32.xlu1 %v1341_v57, %s3956_s22  ;;  %v1329_v57 = vld [vmem:[#allocation2 + $0x181] sm:$0xff] }
 0x155   : > { %v1171_v27 = vpop.permute.xlu1 %1170  ;;  %1411 = vrot.lane.b32.xlu2 %v4516_v49, %s3956_s22 }
 0x156   : > { %1419 = vrot.lane.b32.xlu0 %v1343_v6, %s3956_s22  ;;  %1267 = vst.msk [vmem:[#allocation3] sm:$0xf] %vm1266_vm6, %v1171_v27  ;;  %v1361_v6 = vpack.c.bf16 %v1329_v57, %v1329_v57 }
 0x157   : > { %v1185_v50 = vpop.permute.xlu2 %1184 }
 0x158   : > { %v1175_v44 = vpop.permute.xlu0 %1174  ;;  %1274 = vst.msk [vmem:[#allocation3 + $0x1c] sm:$0xf] %vm1266_vm6, %v1185_v50 }
 0x159   : > { %1269 = vst.msk [vmem:[#allocation3 + $0x8] sm:$0xf] %vm1266_vm6, %v1175_v44 }
 0x15b   : > { %1421 = vrot.lane.b32.xlu1 %v1344_v30, %s3956_s22  ;;  %v1362_v30 = vpack.c.bf16 %v1330_v17, %v1330_v17 }
 0x15d   : > { %v1177_v48 = vpop.permute.xlu1 %1176  ;;  %1417 = vrot.lane.b32.xlu2 %v4525_v31, %s3956_s22 }
 0x15e   : > { %1425 = vrot.lane.b32.xlu0 %v1346_v58, %s3956_s22  ;;  %1270 = vst.msk [vmem:[#allocation3 + $0xc] sm:$0xf] %vm1266_vm6, %v1177_v48  ;;  %v1360_v58 = vpack.c.bf16 %v1328_v18, %v1328_v18  ;;  %v1526_v48 = vld [vmem:[#allocation2 + $0x32] sm:$0xff] }
 0x15f   : > { %v1191_v33 = vpop.permute.xlu2 %1190  ;;  %v1558_v1 = vpack.c.bf16 %v1526_v48, %v1526_v48 }
 0x160   : > { %v1181_v53 = vpop.permute.xlu0 %1180  ;;  %1277 = vst.msk [vmem:[#allocation3 + $0x28] sm:$0xf] %vm1266_vm6, %v1191_v33  ;;  %v1528_v33 = vld [vmem:[#allocation2 + $0x4a] sm:$0xff] }
 0x161   : > { %1272 = vst.msk [vmem:[#allocation3 + $0x14] sm:$0xf] %vm1266_vm6, %v1181_v53 }
 0x163   : > { %1427 = vrot.lane.b32.xlu1 %v1347_v51, %s3956_s22  ;;  %v1524_v51 = vld [vmem:[#allocation2 + $0x1a] sm:$0xff] }
 0x164   : > { %v1556_v52 = vpack.c.bf16 %v1524_v51, %v1524_v51 }
 0x165   : > { %v1183_v55 = vpop.permute.xlu1 %1182  ;;  %1423 = vrot.lane.b32.xlu2 %v1345_v37, %s3956_s22 }
 0x166   : > { %1431 = vrot.lane.b32.xlu0 %v4534_v22, %s3956_s22  ;;  %1273 = vst.msk [vmem:[#allocation3 + $0x18] sm:$0xf] %vm1266_vm6, %v1183_v55  ;;  %v4591_v55 = vpack.c.bf16 %v1528_v33, %v1528_v33 }
 0x167   : > { %v1197_v60 = vpop.permute.xlu2 %1196 }
 0x168   : > { %v1187_v62 = vpop.permute.xlu0 %1186  ;;  %1280 = vst.msk [vmem:[#allocation3 + $0x34] sm:$0xf] %vm1266_vm6, %v1197_v60  ;;  %v1527_v60 = vld [vmem:[#allocation2 + $0x3a] sm:$0xff] }
 0x169   : > { %1275 = vst.msk [vmem:[#allocation3 + $0x20] sm:$0xf] %vm1266_vm6, %v1187_v62  ;;  %v4598_v62 = vpack.c.bf16 %v1529_v56, %v1529_v56 }
 0x16b   : > { %1433 = vrot.lane.b32.xlu1 %v4541_v42, %s3956_s22 }
 0x16d   : > { %v1189_v63 = vpop.permute.xlu1 %1188  ;;  %1429 = vrot.lane.b32.xlu2 %v1348_v0, %s3956_s22 }
 0x16e   : > { %1437 = vrot.lane.b32.xlu0 %v4545_v3, %s3956_s22  ;;  %1276 = vst.msk [vmem:[#allocation3 + $0x24] sm:$0xf] %vm1266_vm6, %v1189_v63  ;;  %v1559_v63 = vpack.c.bf16 %v1527_v60, %v1527_v60  ;;  %v1755_v60 = vld [vmem:[#allocation2 + $0x68] sm:$0xff] }
 0x16f   : > { %v1203_v10 = vpop.permute.xlu2 %1202 }
 0x170   : > { %v1193_v11 = vpop.permute.xlu0 %1192  ;;  %1283 = vst.msk [vmem:[#allocation3 + $0x40] sm:$0xf] %vm1266_vm6, %v1203_v10  ;;  %v1530_v10 = vld [vmem:[#allocation2 + $0x62] sm:$0xff] }
 0x171   : > { %1278 = vst.msk [vmem:[#allocation3 + $0x2c] sm:$0xf] %vm1266_vm6, %v1193_v11  ;;  %v4608_v11 = vpack.c.bf16 %v1532_v7, %v1532_v7 }
 0x173   : > { %1439 = vrot.lane.b32.xlu1 %v4553_v8, %s3956_s22 }
 0x175   : > { %v1195_v23 = vpop.permute.xlu1 %1194  ;;  %1435 = vrot.lane.b32.xlu2 %v4557_v15, %s3956_s22 }
 0x176   : > { %1443 = vrot.lane.b32.xlu0 %v4559_v19, %s3956_s22  ;;  %1279 = vst.msk [vmem:[#allocation3 + $0x30] sm:$0xf] %vm1266_vm6, %v1195_v23 }
 0x177   : > { %v1209_v32 = vpop.permute.xlu2 %1208 }
 0x178   : > { %v1199_v34 = vpop.permute.xlu0 %1198  ;;  %1286 = vst.msk [vmem:[#allocation3 + $0x4c] sm:$0xf] %vm1266_vm6, %v1209_v32  ;;  %v1750_v32 = vld [vmem:[#allocation2 + $0x30] sm:$0xff] }
 0x179   : > { %1281 = vst.msk [vmem:[#allocation3 + $0x38] sm:$0xf] %vm1266_vm6, %v1199_v34  ;;  %v1782_v40 = vpack.c.bf16 %v1750_v32, %v1750_v32 }
 0x17b   : > { %1445 = vrot.lane.b32.xlu1 %v1356_v25, %s3956_s22  ;;  %v4612_v25 = vpack.c.bf16 %v1530_v10, %v1530_v10 }
 0x17d   : > { %v1201_v46 = vpop.permute.xlu1 %1200  ;;  %1441 = vrot.lane.b32.xlu2 %v4570_v38, %s3956_s22 }
 0x17e   : > { %1449 = vrot.lane.b32.xlu0 %v1358_v39, %s3956_s22  ;;  %1282 = vst.msk [vmem:[#allocation3 + $0x3c] sm:$0xf] %vm1266_vm6, %v1201_v46 }
 0x17f   : > { %v1215_v5 = vpop.permute.xlu2 %1214 }
 0x180   : > { %v1205_v2 = vpop.permute.xlu0 %1204  ;;  %1289 = vst.msk [vmem:[#allocation3 + $0x58] sm:$0xf] %vm1266_vm6, %v1215_v5  ;;  %v1785_v5 = vpack.c.bf16 %v1753_v47, %v1753_v47 }
 0x181   : > { %1284 = vst.msk [vmem:[#allocation3 + $0x44] sm:$0xf] %vm1266_vm6, %v1205_v2 }
 0x183   : > { %1451 = vrot.lane.b32.xlu1 %v1359_v54, %s3956_s22 }
 0x185   : > { %v1207_v27 = vpop.permute.xlu1 %1206  ;;  %1447 = vrot.lane.b32.xlu2 %v1357_v14, %s3956_s22 }
 0x186   : > { %1455 = vrot.lane.b32.xlu0 %v1361_v6, %s3956_s22  ;;  %1285 = vst.msk [vmem:[#allocation3 + $0x48] sm:$0xf] %vm1266_vm6, %v1207_v27 }
 0x187   : > { %v1221_v50 = vpop.permute.xlu2 %1220 }
 0x188   : > { %v1211_v44 = vpop.permute.xlu0 %1210  ;;  %1292 = vst.msk [vmem:[#allocation3 + $0x64] sm:$0xf] %vm1266_vm6, %v1221_v50  ;;  %v1540_v50 = vld [vmem:[#allocation2 + $0xda] sm:$0xff] }
 0x189   : > { %1287 = vst.msk [vmem:[#allocation3 + $0x50] sm:$0xf] %vm1266_vm6, %v1211_v44 }
 0x18b   : > { %1457 = vrot.lane.b32.xlu1 %v1362_v30, %s3956_s22 }
 0x18d   : > { %v1213_v12 = vpop.permute.xlu1 %1212  ;;  %1453 = vrot.lane.b32.xlu2 %v1360_v58, %s3956_s22 }
 0x18e   : > { %1622 = vrot.lane.b32.xlu0 %v1557_v61, %s3957_s23  ;;  %1288 = vst.msk [vmem:[#allocation3 + $0x54] sm:$0xf] %vm1266_vm6, %v1213_v12  ;;  %v1572_v61 = vpack.c.bf16 %v1540_v50, %v1540_v50  ;;  %v2217_v12 = vld [vmem:[#allocation2 + $0xfa] sm:$0xff] }
 0x18f   : > { %v1227_v53 = vpop.permute.xlu2 %1226 }
 0x190   : > { %v1217_v37 = vpop.permute.xlu0 %1216  ;;  %1295 = vst.msk [vmem:[#allocation3 + $0x70] sm:$0xf] %vm1266_vm6, %v1227_v53  ;;  %v2249_v53 = vpack.c.bf16 %v2217_v12, %v2217_v12  ;;  %v3632_v12 = vld [vmem:[%s5427_s6] sm:$0xff] }
 0x191   : > { %1290 = vst.msk [vmem:[#allocation3 + $0x5c] sm:$0xf] %vm1266_vm6, %v1217_v37 }
 0x193   : > { %1624 = vrot.lane.b32.xlu1 %v1558_v1, %s3957_s23 }
 0x195   : > { %v1219_v59 = vpop.permute.xlu1 %1218  ;;  %1620 = vrot.lane.b32.xlu2 %v1556_v52, %s3957_s23 }
 0x196   : > { %1628 = vrot.lane.b32.xlu0 %v4591_v55, %s3957_s23  ;;  %1291 = vst.msk [vmem:[#allocation3 + $0x60] sm:$0xf] %vm1266_vm6, %v1219_v59 }
 0x197   : > { %v1233_v0 = vpop.permute.xlu2 %1232 }
 0x198   : > { %v1223_v4 = vpop.permute.xlu0 %1222  ;;  %1298 = vst.msk [vmem:[#allocation3 + $0x7c] sm:$0xf] %vm1266_vm6, %v1233_v0 }
 0x199   : > { %1293 = vst.msk [vmem:[#allocation3 + $0x68] sm:$0xf] %vm1266_vm6, %v1223_v4 }
 0x19b   : > { %1630 = vrot.lane.b32.xlu1 %v4598_v62, %s3957_s23 }
 0x19d   : > { %v1225_v9 = vpop.permute.xlu1 %1224  ;;  %1626 = vrot.lane.b32.xlu2 %v1559_v63, %s3957_s23 }
 0x19e   : > { %1634 = vrot.lane.b32.xlu0 %v4253_v35, %s3957_s23  ;;  %1294 = vst.msk [vmem:[#allocation3 + $0x6c] sm:$0xf] %vm1266_vm6, %v1225_v9 }
 0x19f   : > { %v1400_v23 = vpop.permute.xlu2 %1399 }
 0x1a0   : > { %v1229_v24 = vpop.permute.xlu0 %1228  ;;  %1494 = vst.msk [vmem:[#allocation3 + $0x8] sm:$0xf] %vm1491_vm7, %v1400_v23 }
 0x1a1   : > { %1296 = vst.msk [vmem:[#allocation3 + $0x74] sm:$0xf] %vm1266_vm6, %v1229_v24  ;;  %v1769_v24 = vld [vmem:[#allocation2 + $0x110] sm:$0xff] }
 0x1a3   : > { %1636 = vrot.lane.b32.xlu1 %v4608_v11, %s3957_s23 }
 0x1a5   : > { %v1231_v35 = vpop.permute.xlu1 %1230  ;;  %1632 = vrot.lane.b32.xlu2 %v4612_v25, %s3957_s23 }
 0x1a6   : > { %1848 = vrot.lane.b32.xlu0 %v1783_v29, %s3958_s24  ;;  %1297 = vst.msk [vmem:[#allocation3 + $0x78] sm:$0xf] %vm1266_vm6, %v1231_v35 }
 0x1a7   : > { %v1406_v34 = vpop.permute.xlu2 %1405 }
 0x1a8   : > { %v1396_v39 = vpop.permute.xlu0 %1395  ;;  %1497 = vst.msk [vmem:[#allocation3 + $0x14] sm:$0xf] %vm1491_vm7, %v1406_v34  ;;  %v2218_v34 = vld [vmem:[#allocation2 + $0x10a] sm:$0xff] }
 0x1a9   : > { %1492 = vst.msk [vmem:[#allocation3] sm:$0xf] %vm1491_vm7, %v1396_v39 }
 0x1ab   : > { %2071 = vrot.lane.b32.xlu1 %v4488_v26, %s3959_s25  ;;  %v1752_v26 = vld [vmem:[#allocation2 + $0x48] sm:$0xff] }
 0x1ac   : > { %v1784_v17 = vpack.c.bf16 %v1752_v26, %v1752_v26 }
 0x1ad   : > { %v1398_v46 = vpop.permute.xlu1 %1397  ;;  %1846 = vrot.lane.b32.xlu2 %v1782_v40, %s3958_s24  ;;  %v1756_v40 = vld [vmem:[#allocation2 + $0x78] sm:$0xff] }
 0x1ae   : > { %2296 = vrot.lane.b32.xlu0 %v1558_v1, %s3960_s26  ;;  %1493 = vst.msk [vmem:[#allocation3 + $0x4] sm:$0xf] %vm1491_vm7, %v1398_v46 }
 0x1af   : > { %v1412_v54 = vpop.permute.xlu2 %1411 }
 0x1b0   : > { %v1402_v57 = vpop.permute.xlu0 %1401  ;;  %1500 = vst.msk [vmem:[#allocation3 + $0x20] sm:$0xf] %vm1491_vm7, %v1412_v54  ;;  %v2465_v54 = vld [vmem:[%s5427_s6 + $0x20] sm:$0xf] }
 0x1b1   : > { %1495 = vst.msk [vmem:[#allocation3 + $0xc] sm:$0xf] %vm1491_vm7, %v1402_v57  ;;  %v2567_v57 = vunpack.c.l.b16 %v2465_v54 }
 0x1b3   : > { %2298 = vrot.lane.b32.xlu1 %v1559_v63, %s3960_s26  ;;  %v1787_v63 = vpack.c.bf16 %v1755_v60, %v1755_v60 }
 0x1b5   : > { %v1404_v2 = vpop.permute.xlu1 %1403  ;;  %2073 = vrot.lane.b32.xlu2 %v4477_v13, %s3959_s25  ;;  %v1541_v13 = vld [vmem:[#allocation2 + $0xe2] sm:$0xff] }
 0x1b6   : > { %1852 = vrot.lane.b32.xlu0 %v1785_v5, %s3958_s24  ;;  %1496 = vst.msk [vmem:[#allocation3 + $0x10] sm:$0xf] %vm1491_vm7, %v1404_v2  ;;  %v1573_v41 = vpack.c.bf16 %v1541_v13, %v1541_v13  ;;  %v1788_v5 = vpack.c.bf16 %v1756_v40, %v1756_v40  ;;  %v2572_v2 = vpack.c.b16 %v2567_v57, %v2567_v57 }
 0x1b7   : > { %v1418_v14 = vpop.permute.xlu2 %1417 }
 0x1b8   : > { %v1408_v6 = vpop.permute.xlu0 %1407  ;;  %1503 = vst.msk [vmem:[#allocation3 + $0x2c] sm:$0xf] %vm1491_vm7, %v1418_v14  ;;  %v2628_v14 = vsel %vm2626_vm9, %v2572_v2, 0 }
 0x1b9   : > { %1498 = vst.msk [vmem:[#allocation3 + $0x18] sm:$0xf] %vm1491_vm7, %v1408_v6  ;;  %v2219_v6 = vld [vmem:[#allocation2 + $0x112] sm:$0xff]  ;;  %2633 = vmatpush.bf16.msra.mxu0 %v2628_v14  ;;  %3909 = vmatpush.bf16.msra.mxu2 %v2628_v14 }
 0x1bb   : > { %2075 = vrot.lane.b32.xlu1 %v4484_v21, %s3959_s25 }
 0x1bd   : > { %v1410_v27 = vpop.permute.xlu1 %1409  ;;  %1850 = vrot.lane.b32.xlu2 %v1784_v17, %s3958_s24 }
 0x1be   : > { %2300 = vrot.lane.b32.xlu0 %v4591_v55, %s3960_s26  ;;  %1499 = vst.msk [vmem:[#allocation3 + $0x1c] sm:$0xf] %vm1491_vm7, %v1410_v27 }
 0x1bf   : > { %v1424_v18 = vpop.permute.xlu2 %1423 }
 0x1c0   : > { %v1414_v30 = vpop.permute.xlu0 %1413  ;;  %1506 = vst.msk [vmem:[#allocation3 + $0x38] sm:$0xf] %vm1491_vm7, %v1424_v18  ;;  %v3635_v18 = vld [vmem:[%s5427_s6 + $0x18] sm:$0xff] }
 0x1c1   : > { %1501 = vst.msk [vmem:[#allocation3 + $0x24] sm:$0xf] %vm1491_vm7, %v1414_v30  ;;  %2634 = vmatpush.bf16.msra.mxu0 %v3635_v18  ;;  %v3007_v30 = vld [vmem:[%s5425_s4 + $0x20] sm:$0xf]  ;;  %3910 = vmatpush.bf16.msra.mxu2 %v3635_v18 }
 0x1c3   : > { %2302 = vrot.lane.b32.xlu1 %v4598_v62, %s3960_s26  ;;  %v2205_v62 = vld [vmem:[#allocation2 + $0x6a] sm:$0xff] }
 0x1c4   : > { %v2237_v7 = vpack.c.bf16 %v2205_v62, %v2205_v62 }
 0x1c5   : > { %v1416_v21 = vpop.permute.xlu1 %1415  ;;  %2077 = vrot.lane.b32.xlu2 %v4503_v43, %s3959_s25  ;;  %v1767_v43 = vld [vmem:[#allocation2 + $0xf8] sm:$0xff] }
 0x1c6   : > { %1654 = vrot.lane.b32.xlu0 %v1573_v41, %s3957_s23  ;;  %1502 = vst.msk [vmem:[#allocation3 + $0x28] sm:$0xf] %vm1491_vm7, %v1416_v21  ;;  %v1799_v33 = vpack.c.bf16 %v1767_v43, %v1767_v43  ;;  %v3634_v41 = vld [vmem:[%s5427_s6 + $0x10] sm:$0xff]  ;;  %v3029_v21 = vunpack.c.l.b16 %v3007_v30  ;;  %v3633_v43 = vld [vmem:[%s5427_s6 + $0x8] sm:$0xff] }
 0x1c7   : > { %v1430_v44 = vpop.permute.xlu2 %1429  ;;  %2635 = vmatpush.bf16.msra.mxu0 %v3634_v41  ;;  %3911 = vmatpush.bf16.msra.mxu2 %v3634_v41  ;;  %v2209_v41 = vld [vmem:[#allocation2 + $0x9a] sm:$0xff] }
 0x1c8   : > { %v1420_v58 = vpop.permute.xlu0 %1419  ;;  %1509 = vst.msk [vmem:[#allocation3 + $0x44] sm:$0xf] %vm1491_vm7, %v1430_v44  ;;  %v3034_v44 = vpack.c.b16 %v3029_v21, %v3029_v21  ;;  %v1773_v21 = vld [vmem:[#allocation2 + $0x140] sm:$0xff] }
 0x1c9   : > { %1504 = vst.msk [vmem:[#allocation3 + $0x30] sm:$0xf] %vm1491_vm7, %v1420_v58 }
 0x1cb   : > { %1878 = vrot.lane.b32.xlu1 %v4302_v16, %s3958_s24  ;;  %v1754_v16 = vld [vmem:[#allocation2 + $0x60] sm:$0xff]  ;;  %2636 = vmatpush.bf16.msra.mxu0 %v3633_v43 }
 0x1cc   : > { %v1786_v52 = vpack.c.bf16 %v1754_v16, %v1754_v16  ;;  %3912 = vmatpush.bf16.msra.mxu2 %v3633_v43 }
 0x1cd   : > { %v1422_v48 = vpop.permute.xlu1 %1421  ;;  %1652 = vrot.lane.b32.xlu2 %v1572_v61, %s3957_s23 }
 0x1ce   : > { %2103 = vrot.lane.b32.xlu0 %v4534_v22, %s3959_s25  ;;  %1505 = vst.msk [vmem:[#allocation3 + $0x34] sm:$0xf] %vm1491_vm7, %v1422_v48  ;;  %v2216_v22 = vld [vmem:[#allocation2 + $0xf2] sm:$0xff]  ;;  %v3088_v48 = vsel %vm2626_vm9, %v3034_v44, 0 }
 0x1cf   : > { %v1436_v51 = vpop.permute.xlu2 %1435  ;;  %v2248_v59 = vpack.c.bf16 %v2216_v22, %v2216_v22  ;;  %3093 = vmatpush.bf16.msra.mxu1 %v3088_v48  ;;  %3914 = vmatpush.bf16.msra.mxu3 %v3088_v48  ;;  %v1805_v48 = vpack.c.bf16 %v1773_v21, %v1773_v21 }
 0x1d0   : > { %v1426_v1 = vpop.permute.xlu0 %1425  ;;  %1512 = vst.msk [vmem:[#allocation3 + $0x50] sm:$0xf] %vm1491_vm7, %v1436_v51  ;;  %2637 = vmatpush.bf16.msra.mxu0 %v3632_v12  ;;  %3913 = vmatpush.bf16.msra.mxu2 %v3632_v12 }
 0x1d1   : > { %1507 = vst.msk [vmem:[#allocation3 + $0x3c] sm:$0xf] %vm1491_vm7, %v1426_v1  ;;  %v2207_v1 = vld [vmem:[#allocation2 + $0x82] sm:$0xff] }
 0x1d3   : > { %2105 = vrot.lane.b32.xlu1 %v4541_v42, %s3959_s25 }
 0x1d5   : > { %v1428_v37 = vpop.permute.xlu1 %1427  ;;  %1880 = vrot.lane.b32.xlu2 %v1799_v33, %s3958_s24  ;;  %v1771_v33 = vld [vmem:[#allocation2 + $0x128] sm:$0xff] }
 0x1d6   : > { %2330 = vrot.lane.b32.xlu0 %v2249_v53, %s3960_s26  ;;  %1508 = vst.msk [vmem:[#allocation3 + $0x40] sm:$0xf] %vm1491_vm7, %v1428_v37  ;;  %v2239_v37 = vpack.c.bf16 %v2207_v1, %v2207_v1  ;;  %v1803_v22 = vpack.c.bf16 %v1771_v33, %v1771_v33  ;;  %v1772_v33 = vld [vmem:[#allocation2 + $0x138] sm:$0xff] }
 0x1d7   : > { %v1442_v55 = vpop.permute.xlu2 %1441 }
 0x1d8   : > { %v1432_v56 = vpop.permute.xlu0 %1431  ;;  %1515 = vst.msk [vmem:[#allocation3 + $0x5c] sm:$0xf] %vm1491_vm7, %v1442_v55  ;;  %v1770_v55 = vld [vmem:[#allocation2 + $0x120] sm:$0xff] }
 0x1d9   : > { %1510 = vst.msk [vmem:[#allocation3 + $0x48] sm:$0xf] %vm1491_vm7, %v1432_v56  ;;  %v2220_v56 = vld [vmem:[#allocation2 + $0x122] sm:$0xff]  ;;  %v1802_v62 = vpack.c.bf16 %v1770_v55, %v1770_v55 }
 0x1db   : > { %1854 = vrot.lane.b32.xlu1 %v1786_v52, %s3958_s24 }
 0x1dd   : > { %v1434_v42 = vpop.permute.xlu1 %1433  ;;  %2328 = vrot.lane.b32.xlu2 %v2248_v59, %s3960_s26 }
 0x1de   : > { %2079 = vrot.lane.b32.xlu0 %v4490_v28, %s3959_s25  ;;  %1511 = vst.msk [vmem:[#allocation3 + $0x4c] sm:$0xf] %vm1491_vm7, %v1434_v42  ;;  %v1768_v28 = vld [vmem:[#allocation2 + $0x108] sm:$0xff]  ;;  %v3636_v42 = vld [vmem:[%s5425_s4] sm:$0xff] }
 0x1df   : > { %v1448_v0 = vpop.permute.xlu2 %1447  ;;  %v1800_v23 = vpack.c.bf16 %v1768_v28, %v1768_v28 }
 0x1e0   : > { %v1438_v4 = vpop.permute.xlu0 %1437  ;;  %1518 = vst.msk [vmem:[#allocation3 + $0x68] sm:$0xf] %vm1491_vm7, %v1448_v0  ;;  %v2252_v0 = vpack.c.bf16 %v2220_v56, %v2220_v56 }
 0x1e1   : > { %1513 = vst.msk [vmem:[#allocation3 + $0x54] sm:$0xf] %vm1491_vm7, %v1438_v4  ;;  %v2221_v4 = vld [vmem:[#allocation2 + $0x12a] sm:$0xff] }
 0x1e3   : > { %2081 = vrot.lane.b32.xlu1 %v4499_v36, %s3959_s25  ;;  %v1801_v36 = vpack.c.bf16 %v1769_v24, %v1769_v24 }
 0x1e5   : > { %v1440_v9 = vpop.permute.xlu1 %1439  ;;  %1856 = vrot.lane.b32.xlu2 %v1787_v63, %s3958_s24 }
 0x1e6   : > { %2306 = vrot.lane.b32.xlu0 %v2237_v7, %s3960_s26  ;;  %1514 = vst.msk [vmem:[#allocation3 + $0x58] sm:$0xf] %vm1491_vm7, %v1440_v9  ;;  %v4760_v7 = vpack.c.bf16 %v2221_v4, %v2221_v4  ;;  %v1758_v9 = vld [vmem:[#allocation2 + $0x90] sm:$0xff] }
 0x1e7   : > { %v1454_v10 = vpop.permute.xlu2 %1453 }
 0x1e8   : > { %v1444_v20 = vpop.permute.xlu0 %1443  ;;  %1521 = vst.msk [vmem:[#allocation3 + $0x74] sm:$0xf] %vm1491_vm7, %v1454_v10 }
 0x1e9   : > { %1516 = vst.msk [vmem:[#allocation3 + $0x60] sm:$0xf] %vm1491_vm7, %v1444_v20  ;;  %v1790_v20 = vpack.c.bf16 %v1758_v9, %v1758_v9 }
 0x1eb   : > { %1656 = vrot.lane.b32.xlu1 %v2248_v59, %s3957_s23 }
 0x1ed   : > { %v1446_v29 = vpop.permute.xlu1 %1445  ;;  %2304 = vrot.lane.b32.xlu2 %v4612_v25, %s3960_s26  ;;  %v2250_v25 = vpack.c.bf16 %v2218_v34, %v2218_v34 }
 0x1ee   : > { %1882 = vrot.lane.b32.xlu0 %v1800_v23, %s3958_s24  ;;  %1517 = vst.msk [vmem:[#allocation3 + $0x64] sm:$0xf] %vm1491_vm7, %v1446_v29 }
 0x1ef   : > { %v1621_v35 = vpop.permute.xlu2 %1620 }
 0x1f0   : > { %v1450_v32 = vpop.permute.xlu0 %1449  ;;  %1717 = vst.msk [vmem:[#allocation3] sm:$0xf] %vm1716_vm8, %v1621_v35  ;;  %v2208_v35 = vld [vmem:[#allocation2 + $0x92] sm:$0xff] }
 0x1f1   : > { %1519 = vst.msk [vmem:[#allocation3 + $0x6c] sm:$0xf] %vm1491_vm7, %v1450_v32  ;;  %v4788_v54 = vpack.c.bf16 %v2208_v35, %v2208_v35 }
 0x1f3   : > { %1884 = vrot.lane.b32.xlu1 %v1801_v36, %s3958_s24 }
 0x1f5   : > { %v1452_v39 = vpop.permute.xlu1 %1451  ;;  %1658 = vrot.lane.b32.xlu2 %v2249_v53, %s3957_s23 }
 0x1f6   : > { %2109 = vrot.lane.b32.xlu0 %v4545_v3, %s3959_s25  ;;  %1520 = vst.msk [vmem:[#allocation3 + $0x70] sm:$0xf] %vm1491_vm7, %v1452_v39  ;;  %v1757_v3 = vld [vmem:[#allocation2 + $0x80] sm:$0xff] }
 0x1f7   : > { %v1627_v46 = vpop.permute.xlu2 %1626  ;;  %v1789_v17 = vpack.c.bf16 %v1757_v3, %v1757_v3 }
 0x1f8   : > { %v1456_v47 = vpop.permute.xlu0 %1455  ;;  %1720 = vst.msk [vmem:[#allocation3 + $0xc] sm:$0xf] %vm1716_vm8, %v1627_v46  ;;  %v4785_v46 = vld [vmem:[%s5424_s3] ss:$0 sm:$0xff] }
 0x1f9   : > { %1522 = vst.msk [vmem:[#allocation3 + $0x78] sm:$0xf] %vm1491_vm7, %v1456_v47  ;;  %v1983_v47 = vld [vmem:[#allocation2 + $0x91] sm:$0xff] }
 0x1fa   : > { %v2015_v3 = vpack.c.bf16 %v1983_v47, %v1983_v47 }
 0x1fb   : > { %2332 = vrot.lane.b32.xlu1 %v2250_v25, %s3960_s26 }
 0x1fd   : > { %v1458_v26 = vpop.permute.xlu1 %1457  ;;  %2107 = vrot.lane.b32.xlu2 %v4557_v15, %s3959_s25  ;;  %v2251_v15 = vpack.c.bf16 %v2219_v6, %v2219_v6  ;;  %v2919_v6 = vld [vmem:[%s5422_s1] sm:$0xff] }
 0x1fe   : > { %1858 = vrot.lane.b32.xlu0 %v1788_v5, %s3958_s24  ;;  %1523 = vst.msk [vmem:[#allocation3 + $0x7c] sm:$0xf] %vm1491_vm7, %v1458_v26 }
 0x1ff   : > { %v1633_v27 = vpop.permute.xlu2 %1632 }
 0x200   : > { %v1623_v13 = vpop.permute.xlu0 %1622  ;;  %1723 = vst.msk [vmem:[#allocation3 + $0x18] sm:$0xf] %vm1716_vm8, %v1633_v27 }
 0x201   : > { %1718 = vst.msk [vmem:[#allocation3 + $0x4] sm:$0xf] %vm1716_vm8, %v1623_v13 }
 0x203   : > { %1860 = vrot.lane.b32.xlu1 %v1789_v17, %s3958_s24  ;;  %v2920_v17 = vld [vmem:[%s5422_s1 + $0x8] sm:$0xff] }
 0x205   : > { %v1625_v50 = vpop.permute.xlu1 %1624  ;;  %2334 = vrot.lane.b32.xlu2 %v2251_v15, %s3960_s26 }
 0x206   : > { %2085 = vrot.lane.b32.xlu0 %v4505_v45, %s3959_s25  ;;  %1719 = vst.msk [vmem:[#allocation3 + $0x8] sm:$0xf] %vm1716_vm8, %v1625_v50  ;;  %v3639_v45 = vld [vmem:[%s5425_s4 + $0x18] sm:$0xff] }
 0x207   : > { %v1847_v58 = vpop.permute.xlu2 %1846  ;;  %3094 = vmatpush.bf16.msra.mxu1 %v3639_v45  ;;  %3915 = vmatpush.bf16.msra.mxu3 %v3639_v45 }
 0x208   : > { %v1629_v61 = vpop.permute.xlu0 %1628  ;;  %1943 = vst.msk [vmem:[#allocation3] sm:$0xf] %vm1942_vm10, %v1847_v58 }
 0x209   : > { %1721 = vst.msk [vmem:[#allocation3 + $0x10] sm:$0xf] %vm1716_vm8, %v1629_v61  ;;  %v2241_v61 = vpack.c.bf16 %v2209_v41, %v2209_v41 }
 0x20b   : > { %2308 = vrot.lane.b32.xlu1 %v4608_v11, %s3960_s26  ;;  %v3638_v11 = vld [vmem:[%s5425_s4 + $0x10] sm:$0xff] }
 0x20c   : > { %3095 = vmatpush.bf16.msra.mxu1 %v3638_v11  ;;  %3916 = vmatpush.bf16.msra.mxu3 %v3638_v11 }
 0x20d   : > { %v1631_v51 = vpop.permute.xlu1 %1630  ;;  %2083 = vrot.lane.b32.xlu2 %v4516_v49, %s3959_s25  ;;  %v3637_v49 = vld [vmem:[%s5425_s4 + $0x8] sm:$0xff] }
 0x20e   : > { %1660 = vrot.lane.b32.xlu0 %v2250_v25, %s3957_s23  ;;  %1722 = vst.msk [vmem:[#allocation3 + $0x14] sm:$0xf] %vm1716_vm8, %v1631_v51 }
 0x20f   : > { %v2074_v53 = vpop.permute.xlu2 %2073 }
 0x210   : > { %v1635_v16 = vpop.permute.xlu0 %1634  ;;  %3096 = vmatpush.bf16.msra.mxu1 %v3637_v49  ;;  %3917 = vmatpush.bf16.msra.mxu3 %v3637_v49 }
 0x211   : > { %1724 = vst.msk [vmem:[#allocation3 + $0x1c] sm:$0xf] %vm1716_vm8, %v1635_v16 }
 0x213   : > { %1662 = vrot.lane.b32.xlu1 %v2251_v15, %s3957_s23 }
 0x214   : > { %3097 = vmatpush.bf16.msra.mxu1 %v3636_v42  ;;  %3918 = vmatpush.bf16.msra.mxu3 %v3636_v42  ;;  %v2922_v42 = vld [vmem:[%s5422_s1 + $0x18] sm:$0xff] }
 0x215   : > { %v1637_v52 = vpop.permute.xlu1 %1636  ;;  %2310 = vrot.lane.b32.xlu2 %v2239_v37, %s3960_s26 }
 0x216   : > { %1888 = vrot.lane.b32.xlu0 %v1803_v22, %s3958_s24  ;;  %1725 = vst.msk [vmem:[#allocation3 + $0x20] sm:$0xf] %vm1716_vm8, %v1637_v52  ;;  %v1804_v22 = vpack.c.bf16 %v1772_v33, %v1772_v33 }
 0x217   : > { %v1851_v59 = vpop.permute.xlu2 %1850 }
 0x218   : > { %v1849_v60 = vpop.permute.xlu0 %1848  ;;  %1945 = vst.msk [vmem:[#allocation3 + $0x8] sm:$0xf] %vm1942_vm10, %v1851_v59  ;;  %v2921_v59 = vld [vmem:[%s5422_s1 + $0x10] sm:$0xff] }
 0x219   : > { %1944 = vst.msk [vmem:[#allocation3 + $0x4] sm:$0xf] %vm1942_vm10, %v1849_v60 }
 0x21a   : > { %2169 = vst.msk [vmem:[#allocation3 + $0x4] sm:$0xf] %vm2167_vm11, %v2074_v53  ;;  %v2222_v53 = vld [vmem:[#allocation2 + $0x13a] sm:$0xff] }
 0x21b   : > { %2111 = vrot.lane.b32.xlu1 %v4553_v8, %s3959_s25  ;;  %v1759_v8 = vld [vmem:[#allocation2 + $0x98] sm:$0xff]  ;;  %v4819_v52 = vpack.c.bf16 %v2222_v53, %v2222_v53 }
 0x21c   : > { %v1791_v24 = vpack.c.bf16 %v1759_v8, %v1759_v8 }
 0x21d   : > { %v2072_v63 = vpop.permute.xlu1 %2071  ;;  %1886 = vrot.lane.b32.xlu2 %v1802_v62, %s3958_s24 }
 0x21e   : > { %2336 = vrot.lane.b32.xlu0 %v2252_v0, %s3960_s26  ;;  %2168 = vst.msk [vmem:[#allocation3] sm:$0xf] %vm2167_vm11, %v2072_v63 }
 0x21f   : > { %v2078_v28 = vpop.permute.xlu2 %2077 }
 0x220   : > { %v2297_v10 = vpop.permute.xlu0 %2296 }
 0x221   : > { %2393 = vst.msk [vmem:[#allocation3] sm:$0xf] %vm2392_vm12, %v2297_v10 }
 0x223   : > { %2338 = vrot.lane.b32.xlu1 %v4760_v7, %s3960_s26 }
 0x225   : > { %v2299_v23 = vpop.permute.xlu1 %2298  ;;  %2113 = vrot.lane.b32.xlu2 %v4570_v38, %s3959_s25  ;;  %v4776_v38 = vld [vmem:[%s5423_s2] ss:$0 sm:$0xff] }
 0x226   : > { %1862 = vrot.lane.b32.xlu0 %v1790_v20, %s3958_s24  ;;  %2394 = vst.msk [vmem:[#allocation3 + $0x4] sm:$0xf] %vm2392_vm12, %v2299_v23  ;;  %v1760_v23 = vld [vmem:[#allocation2 + $0xa8] sm:$0xff] }
 0x227   : > { %v1653_v29 = vpop.permute.xlu2 %1652 }
 0x228   : > { %v1853_v36 = vpop.permute.xlu0 %1852  ;;  %1733 = vst.msk [vmem:[#allocation3 + $0x40] sm:$0xf] %vm1716_vm8, %v1653_v29  ;;  %v1792_v29 = vpack.c.bf16 %v1760_v23, %v1760_v23 }
 0x229   : > { %1946 = vst.msk [vmem:[#allocation3 + $0xc] sm:$0xf] %vm1942_vm10, %v1853_v36  ;;  %v1985_v36 = vld [vmem:[#allocation2 + $0xa9] sm:$0xff] }
 0x22a   : > { %2171 = vst.msk [vmem:[#allocation3 + $0xc] sm:$0xf] %vm2167_vm11, %v2078_v28  ;;  %v2017_v47 = vpack.c.bf16 %v1985_v36, %v1985_v36 }
 0x22b   : > { %1864 = vrot.lane.b32.xlu1 %v1791_v24, %s3958_s24 }
 0x22d   : > { %v2076_v32 = vpop.permute.xlu1 %2075  ;;  %v3616_v34 = vld [vmem:[#allocation3] sm:$0xff]  ;;  %1638 = vrot.lane.b32.xlu2 %v2239_v37, %s3957_s23 }
 0x22e   : > { %v2425_v39 = vld [vmem:[#allocation3] sm:$0xff]   ;;  %2089 = vrot.lane.b32.xlu0 %v4525_v31, %s3959_s25  ;;  %2170 = vst.msk [vmem:[#allocation3 + $0x8] sm:$0xf] %vm2167_vm11, %v2076_v32  ;;  %3563 = vmatmul.msk.bf16.vlgmr.msra.gmra.mxu0 %vm2577_vm13, %v3616_v34 }
 0x22f   : > { %v2783_v25 = vunpack.c.l.bf16 %v2425_v39  ;;  %v2784_v40 = vunpack.c.h.bf16 %v2425_v39  ;;  %v1881_v57 = vpop.permute.xlu2 %1880 }
 0x230   : > { %v2301_v5 = vpop.permute.xlu0 %2300 }
 0x231   : > { %v2819_v2 = vmul.f32 %v4776_v38, %v2783_v25  ;;  %v2820_v31 = vmul.f32 %v4776_v38, %v2784_v40  ;;  %2395 = vst.msk [vmem:[#allocation3 + $0x8] sm:$0xf] %vm2392_vm12, %v2301_v5 }
 0x233   : > { %v2855_v26 = vadd.f32 %v4785_v46, %v2819_v2  ;;  %v2856_v14 = vadd.f32 %v4785_v46, %v2820_v31  ;;  %2312 = vrot.lane.b32.xlu1 %v4788_v54, %s3960_s26  ;;  %v1986_v2 = vld [vmem:[#allocation2 + $0xb1] sm:$0xff] }
 0x235   : > { %v2887_v27 = vmax.f32 %v2855_v26, 0.0  ;;  %v2888_v13 = vmax.f32 %v2856_v14, 0.0  ;;  %v2303_v18 = vpop.permute.xlu1 %2302  ;;  %2087 = vrot.lane.b32.xlu2 %v2015_v3, %s3959_s25  ;;  %v2935_v14 = vld [vmem:[%s5422_s1 + $0x80] sm:$0xff] }
 0x236   : > { %1664 = vrot.lane.b32.xlu0 %v2252_v0, %s3957_s23  ;;  %2396 = vst.msk [vmem:[#allocation3 + $0xc] sm:$0xf] %vm2392_vm12, %v2303_v18  ;;  %v2223_v0 = vld [vmem:[#allocation2 + $0x142] sm:$0xff] }
 0x237   : > { %v2951_v15 = vmul.f32 %v2919_v6, %v2887_v27  ;;  %v2952_v30 = vmul.f32 %v2920_v17, %v2888_v13  ;;  %v2329_v50 = vpop.permute.xlu2 %2328  ;;  %v4836_v9 = vpack.c.bf16 %v2223_v0, %v2223_v0  ;;  %v2936_v6 = vld [vmem:[%s5422_s1 + $0x88] sm:$0xff]  ;;  %v1761_v17 = vld [vmem:[#allocation2 + $0xb0] sm:$0xff]  ;;  %v2018_v27 = vpack.c.bf16 %v1986_v2, %v1986_v2 }
 0x238   : > { %v1655_v44 = vpop.permute.xlu0 %1654 }
 0x239   : > { %v2983_v58 = vpack.c.bf16 %v2952_v30, %v2951_v15  ;;  %1734 = vst.msk [vmem:[#allocation3 + $0x44] sm:$0xf] %vm1716_vm8, %v1655_v44  ;;  %v2211_v15 = vld [vmem:[#allocation2 + $0xb2] sm:$0xff] }
 0x23a   : > { %1960 = vst.msk [vmem:[#allocation3 + $0x44] sm:$0xf] %vm1942_vm10, %v1881_v57  ;;  %v4865_v44 = vpack.c.bf16 %v2211_v15, %v2211_v15 }
 0x23b   : > { %3595 = vmatmul.msk.bf16.vlgmr.msra.gmra.mxu1 %vm2577_vm13, %v2983_v58  ;;  %1666 = vrot.lane.b32.xlu1 %v4760_v7, %s3957_s23  ;;  %v1998_v7 = vld [vmem:[#allocation2 + $0x141] sm:$0xff] }
 0x23c   : > { %v2030_v8 = vpack.c.bf16 %v1998_v7, %v1998_v7 }
 0x23d   : > { %v1879_v43 = vpop.permute.xlu1 %1878  ;;  %v3617_v45 = vld [vmem:[#allocation3 + $0x8] sm:$0xff]  ;;  %2314 = vrot.lane.b32.xlu2 %v2241_v61, %s3960_s26 }
 0x23e   : > { %v2427_v12 = vld [vmem:[#allocation3 + $0x8] sm:$0xff]   ;;  %1892 = vrot.lane.b32.xlu0 %v1805_v48, %s3958_s24  ;;  %1959 = vst.msk [vmem:[#allocation3 + $0x40] sm:$0xf] %vm1942_vm10, %v1879_v43  ;;  %3564 = vmatmul.msk.bf16.gmra.mxu0 %vm2577_vm13, %v3617_v45  ;;  %v2210_v48 = vld [vmem:[#allocation2 + $0xaa] sm:$0xff] }
 0x23f   : > { %v2785_v51 = vunpack.c.l.bf16 %v2427_v12  ;;  %v2786_v1 = vunpack.c.h.bf16 %v2427_v12  ;;  %v1857_v11 = vpop.permute.xlu2 %1856  ;;  %v1774_v43 = vld [vmem:[#allocation2 + $0x150] sm:$0xff] }
 0x240   : > { %v2104_v16 = vpop.permute.xlu0 %2103  ;;  %1948 = vst.msk [vmem:[#allocation3 + $0x14] sm:$0xf] %vm1942_vm10, %v1857_v11  ;;  %v2242_v11 = vpack.c.bf16 %v2210_v48, %v2210_v48 }
 0x241   : > { %v2821_v37 = vmul.f32 %v4776_v38, %v2785_v51  ;;  %v2822_v49 = vmul.f32 %v4776_v38, %v2786_v1  ;;  %2184 = vst.msk [vmem:[#allocation3 + $0x40] sm:$0xf] %vm2167_vm11, %v2104_v16  ;;  %v1806_v16 = vpack.c.bf16 %v1774_v43, %v1774_v43 }
 0x242   : > { %2409 = vst.msk [vmem:[#allocation3 + $0x40] sm:$0xf] %vm2392_vm12, %v2329_v50  ;;  %v1793_v50 = vpack.c.bf16 %v1761_v17, %v1761_v17 }
 0x243   : > { %v2857_v55 = vadd.f32 %v4785_v46, %v2821_v37  ;;  %v2858_v56 = vadd.f32 %v4785_v46, %v2822_v49  ;;  %2115 = vrot.lane.b32.xlu1 %v4559_v19, %s3959_s25 }
 0x245   : > { %v2889_v60 = vmax.f32 %v2857_v55, 0.0  ;;  %v2890_v62 = vmax.f32 %v2858_v56, 0.0  ;;  %v2106_v4 = vpop.permute.xlu1 %2105  ;;  %1890 = vrot.lane.b32.xlu2 %v1804_v22, %s3958_s24  ;;  %v1775_v22 = vld [vmem:[#allocation2 + $0x158] sm:$0xff] }
 0x246   : > { %2340 = vrot.lane.b32.xlu0 %v4819_v52, %s3960_s26  ;;  %2185 = vst.msk [vmem:[#allocation3 + $0x44] sm:$0xf] %vm2167_vm11, %v2106_v4  ;;  %v2000_v4 = vld [vmem:[#allocation2 + $0x159] sm:$0xff] }
 0x247   : > { %v2953_v19 = vmul.f32 %v2921_v59, %v2889_v60  ;;  %v2954_v63 = vmul.f32 %v2922_v42, %v2890_v62  ;;  %v2305_v28 = vpop.permute.xlu2 %2304  ;;  %v2924_v42 = vld [vmem:[%s5422_s1 + $0x28] sm:$0xff]  ;;  %v1807_v60 = vpack.c.bf16 %v1775_v22, %v1775_v22 }
 0x248   : > { %v2331_v10 = vpop.permute.xlu0 %2330 }
 0x249   : > { %v2984_v20 = vpack.c.bf16 %v2954_v63, %v2953_v19  ;;  %2410 = vst.msk [vmem:[#allocation3 + $0x44] sm:$0xf] %vm2392_vm12, %v2331_v10  ;;  %v2032_v10 = vpack.c.bf16 %v2000_v4, %v2000_v4 }
 0x24b   : > { %3596 = vmatmul.msk.bf16.gmra.mxu1 %vm2577_vm13, %v2984_v20  ;;  %2342 = vrot.lane.b32.xlu1 %v4836_v9, %s3960_s26 }
 0x24d   : > { %v1855_v24 = vpop.permute.xlu1 %1854  ;;  %2117 = vrot.lane.b32.xlu2 %v2030_v8, %s3959_s25  ;;  %v2224_v8 = vld [vmem:[#allocation2 + $0x152] sm:$0xff] }
 0x24e   : > { %1642 = vrot.lane.b32.xlu0 %v2241_v61, %s3957_s23  ;;  %1947 = vst.msk [vmem:[#allocation3 + $0x10] sm:$0xf] %vm1942_vm10, %v1855_v24  ;;  %v1999_v24 = vld [vmem:[#allocation2 + $0x151] sm:$0xff] }
 0x24f   : > { %v1659_v35 = vpop.permute.xlu2 %1658 }
 0x250   : > { %v2080_v32 = vpop.permute.xlu0 %2079  ;;  %v3624_v34 = vld [vmem:[#allocation3 + $0x40] sm:$0xff]  ;;  %1736 = vst.msk [vmem:[#allocation3 + $0x4c] sm:$0xf] %vm1716_vm8, %v1659_v35 }
 0x251   : > { %v2441_v39 = vld [vmem:[#allocation3 + $0x40] sm:$0xff]   ;;  %2172 = vst.msk [vmem:[#allocation3 + $0x10] sm:$0xf] %vm2167_vm11, %v2080_v32  ;;  %3571 = vmatmul.msk.bf16.vlgmr.msra.gmra.mxu2 %vm2577_vm13, %v3624_v34  ;;  %v2031_v32 = vpack.c.bf16 %v1999_v24, %v1999_v24 }
 0x252   : > { %v2799_v25 = vunpack.c.l.bf16 %v2441_v39  ;;  %v2800_v40 = vunpack.c.h.bf16 %v2441_v39  ;;  %2397 = vst.msk [vmem:[#allocation3 + $0x10] sm:$0xf] %vm2392_vm12, %v2305_v28 }
 0x253   : > { %1866 = vrot.lane.b32.xlu1 %v1792_v29, %s3958_s24  ;;  %v4899_v29 = vpack.c.bf16 %v2224_v8, %v2224_v8  ;;  %v2001_v8 = vld [vmem:[#allocation2 + $0x169] sm:$0xff] }
 0x254   : > { %v2835_v57 = vmul.f32 %v4776_v38, %v2799_v25  ;;  %v2836_v5 = vmul.f32 %v4776_v38, %v2800_v40 }
 0x255   : > { %v2082_v31 = vpop.permute.xlu1 %2081  ;;  %1640 = vrot.lane.b32.xlu2 %v4788_v54, %s3957_s23 }
 0x256   : > { %v2871_v3 = vadd.f32 %v4785_v46, %v2835_v57  ;;  %v2872_v26 = vadd.f32 %v4785_v46, %v2836_v5  ;;  %2091 = vrot.lane.b32.xlu0 %v2017_v47, %s3959_s25  ;;  %2173 = vst.msk [vmem:[#allocation3 + $0x14] sm:$0xf] %vm2167_vm11, %v2082_v31  ;;  %v2225_v47 = vld [vmem:[#allocation2 + $0x15a] sm:$0xff]  ;;  %v1763_v57 = vld [vmem:[#allocation2 + $0xc8] sm:$0xff] }
 0x257   : > { %v2108_v30 = vpop.permute.xlu2 %2107 }
 0x258   : > { %v2903_v13 = vmax.f32 %v2871_v3, 0.0  ;;  %v2904_v18 = vmax.f32 %v2872_v26, 0.0  ;;  %v2307_v41 = vpop.permute.xlu0 %2306  ;;  %v2257_v26 = vpack.c.bf16 %v2225_v47, %v2225_v47 }
 0x259   : > { %2398 = vst.msk [vmem:[#allocation3 + $0x14] sm:$0xf] %vm2392_vm12, %v2307_v41 }
 0x25a   : > { %v2967_v54 = vmul.f32 %v2935_v14, %v2903_v13  ;;  %v2968_v21 = vmul.f32 %v2936_v6, %v2904_v18  ;;  %v1795_v14 = vpack.c.bf16 %v1763_v57, %v1763_v57  ;;  %v2938_v13 = vld [vmem:[%s5422_s1 + $0x98] sm:$0xff] }
 0x25b   : > { %2093 = vrot.lane.b32.xlu1 %v2018_v27, %s3959_s25  ;;  %v2937_v27 = vld [vmem:[%s5422_s1 + $0x90] sm:$0xff] }
 0x25c   : > { %v2991_v58 = vpack.c.bf16 %v2968_v21, %v2967_v54 }
 0x25d   : > { %v1657_v61 = vpop.permute.xlu1 %1656  ;;  %1868 = vrot.lane.b32.xlu2 %v1793_v50, %s3958_s24  ;;  %v1762_v50 = vld [vmem:[#allocation2 + $0xc0] sm:$0xff] }
 0x25e   : > { %3603 = vmatmul.msk.bf16.vlgmr.msra.gmra.mxu3 %vm2577_vm13, %v2991_v58  ;;  %2318 = vrot.lane.b32.xlu0 %v4865_v44, %s3960_s26  ;;  %1735 = vst.msk [vmem:[#allocation3 + $0x48] sm:$0xf] %vm1716_vm8, %v1657_v61  ;;  %v2212_v58 = vld [vmem:[#allocation2 + $0xc2] sm:$0xff] }
 0x25f   : > { %v2335_v45 = vpop.permute.xlu2 %2334 }
 0x260   : > { %v1883_v12 = vpop.permute.xlu0 %1882  ;;  %v3618_v51 = vld [vmem:[#allocation3 + $0x10] sm:$0xff] }
 0x261   : > { %v2429_v1 = vld [vmem:[#allocation3 + $0x10] sm:$0xff]   ;;  %1961 = vst.msk [vmem:[#allocation3 + $0x48] sm:$0xf] %vm1942_vm10, %v1883_v12  ;;  %3565 = vmatmul.msk.bf16.gmra.mxu0 %vm2577_vm13, %v3618_v51  ;;  %v4928_v12 = vpack.c.bf16 %v2212_v58, %v2212_v58  ;;  %v2213_v51 = vld [vmem:[#allocation2 + $0xca] sm:$0xff] }
 0x262   : > { %v2787_v33 = vunpack.c.l.bf16 %v2429_v1  ;;  %v2788_v53 = vunpack.c.h.bf16 %v2429_v1  ;;  %2186 = vst.msk [vmem:[#allocation3 + $0x48] sm:$0xf] %vm2167_vm11, %v2108_v30  ;;  %v1987_v30 = vld [vmem:[#allocation2 + $0xc1] sm:$0xff] }
 0x263   : > { %1668 = vrot.lane.b32.xlu1 %v4819_v52, %s3957_s23  ;;  %v2923_v52 = vld [vmem:[%s5422_s1 + $0x20] sm:$0xff] }
 0x264   : > { %v2823_v37 = vmul.f32 %v4776_v38, %v2787_v33  ;;  %v2824_v49 = vmul.f32 %v4776_v38, %v2788_v53 }
 0x265   : > { %v1885_v55 = vpop.permute.xlu1 %1884  ;;  %2316 = vrot.lane.b32.xlu2 %v2242_v11, %s3960_s26 }
 0x266   : > { %v2859_v56 = vadd.f32 %v4785_v46, %v2823_v37  ;;  %v2860_v59 = vadd.f32 %v4785_v46, %v2824_v49  ;;  %1894 = vrot.lane.b32.xlu0 %v1806_v16, %s3958_s24  ;;  %1962 = vst.msk [vmem:[#allocation3 + $0x4c] sm:$0xf] %vm1942_vm10, %v1885_v55  ;;  %v1988_v37 = vld [vmem:[#allocation2 + $0xc9] sm:$0xff]  ;;  %v4937_v49 = vpack.c.bf16 %v2213_v51, %v2213_v51  ;;  %v1990_v51 = vld [vmem:[#allocation2 + $0xe1] sm:$0xff] }
 0x267   : > { %v2084_v19 = vpop.permute.xlu2 %2083 }
 0x268   : > { %v2891_v62 = vmax.f32 %v2859_v56, 0.0  ;;  %v2892_v0 = vmax.f32 %v2860_v59, 0.0  ;;  %v2110_v63 = vpop.permute.xlu0 %2109 }
 0x269   : > { %2187 = vst.msk [vmem:[#allocation3 + $0x4c] sm:$0xf] %vm2167_vm11, %v2110_v63  ;;  %v1776_v63 = vld [vmem:[#allocation2 + $0x168] sm:$0xff] }
 0x26a   : > { %v2955_v7 = vmul.f32 %v2923_v52, %v2891_v62  ;;  %v2956_v28 = vmul.f32 %v2924_v42, %v2892_v0  ;;  %2412 = vst.msk [vmem:[#allocation3 + $0x4c] sm:$0xf] %vm2392_vm12, %v2335_v45  ;;  %v1794_v45 = vpack.c.bf16 %v1762_v50, %v1762_v50  ;;  %v2020_v52 = vpack.c.bf16 %v1988_v37, %v1988_v37  ;;  %v2925_v62 = vld [vmem:[%s5422_s1 + $0x30] sm:$0xff]  ;;  %v2926_v0 = vld [vmem:[%s5422_s1 + $0x38] sm:$0xff]  ;;  %v2940_v50 = vld [vmem:[%s5422_s1 + $0xa8] sm:$0xff] }
 0x26b   : > { %1896 = vrot.lane.b32.xlu1 %v1807_v60, %s3958_s24  ;;  %v2214_v37 = vld [vmem:[#allocation2 + $0xda] sm:$0xff] }
 0x26c   : > { %v2985_v20 = vpack.c.bf16 %v2956_v28, %v2955_v7 }
 0x26d   : > { %v2333_v23 = vpop.permute.xlu1 %2332  ;;  %1670 = vrot.lane.b32.xlu2 %v4836_v9, %s3957_s23 }
 0x26e   : > { %3597 = vmatmul.msk.bf16.gmra.mxu1 %vm2577_vm13, %v2985_v20  ;;  %2121 = vrot.lane.b32.xlu0 %v2032_v10, %s3959_s25  ;;  %2411 = vst.msk [vmem:[#allocation3 + $0x48] sm:$0xf] %vm2392_vm12, %v2333_v23  ;;  %v1808_v20 = vpack.c.bf16 %v1776_v63, %v1776_v63 }
 0x26f   : > { %v2311_v36 = vpop.permute.xlu2 %2310 }
 0x270   : > { %v1859_v35 = vpop.permute.xlu0 %1858 }
 0x271   : > { %1949 = vst.msk [vmem:[#allocation3 + $0x18] sm:$0xf] %vm1942_vm10, %v1859_v35  ;;  %v2033_v35 = vpack.c.bf16 %v2001_v8, %v2001_v8 }
 0x272   : > { %2174 = vst.msk [vmem:[#allocation3 + $0x18] sm:$0xf] %vm2167_vm11, %v2084_v19 }
 0x273   : > { %2344 = vrot.lane.b32.xlu1 %v4899_v29, %s3960_s26 }
 0x275   : > { %v1861_v34 = vpop.permute.xlu1 %1860  ;;  %v3625_v39 = vld [vmem:[#allocation3 + $0x48] sm:$0xff]  ;;  %2119 = vrot.lane.b32.xlu2 %v2031_v32, %s3959_s25 }
 0x276   : > { %v2443_v9 = vld [vmem:[#allocation3 + $0x48] sm:$0xff]   ;;  %1644 = vrot.lane.b32.xlu0 %v2242_v11, %s3957_s23  ;;  %1950 = vst.msk [vmem:[#allocation3 + $0x1c] sm:$0xf] %vm1942_vm10, %v1861_v34  ;;  %3572 = vmatmul.msk.bf16.gmra.mxu2 %vm2577_vm13, %v3625_v39  ;;  %v1777_v39 = vld [vmem:[#allocation2 + $0x170] sm:$0xff] }
 0x277   : > { %v2801_v25 = vunpack.c.l.bf16 %v2443_v9  ;;  %v2802_v40 = vunpack.c.h.bf16 %v2443_v9  ;;  %v1887_v5 = vpop.permute.xlu2 %1886  ;;  %v2002_v32 = vld [vmem:[#allocation2 + $0x171] sm:$0xff]  ;;  %v1809_v57 = vpack.c.bf16 %v1777_v39, %v1777_v39 }
 0x278   : > { %v2086_v2 = vpop.permute.xlu0 %2085  ;;  %v2034_v9 = vpack.c.bf16 %v2002_v32, %v2002_v32 }
 0x279   : > { %v2837_v31 = vmul.f32 %v4776_v38, %v2801_v25  ;;  %v2838_v3 = vmul.f32 %v4776_v38, %v2802_v40  ;;  %2175 = vst.msk [vmem:[#allocation3 + $0x1c] sm:$0xf] %vm2167_vm11, %v2086_v2  ;;  %v2227_v25 = vld [vmem:[#allocation2 + $0x172] sm:$0xff] }
 0x27a   : > { %2400 = vst.msk [vmem:[#allocation3 + $0x1c] sm:$0xf] %vm2392_vm12, %v2311_v36 }
 0x27b   : > { %v2873_v6 = vadd.f32 %v4785_v46, %v2837_v31  ;;  %v2874_v17 = vadd.f32 %v4785_v46, %v2838_v3  ;;  %1646 = vrot.lane.b32.xlu1 %v4865_v44, %s3957_s23  ;;  %v2019_v44 = vpack.c.bf16 %v1987_v30, %v1987_v30 }
 0x27d   : > { %v2905_v18 = vmax.f32 %v2873_v6, 0.0  ;;  %v2906_v15 = vmax.f32 %v2874_v17, 0.0  ;;  %v2309_v41 = vpop.permute.xlu1 %2308  ;;  %2346 = vrot.lane.b32.xlu2 %v2257_v26, %s3960_s26  ;;  %v1764_v6 = vld [vmem:[#allocation2 + $0xd8] sm:$0xff] }
 0x27e   : > { %1872 = vrot.lane.b32.xlu0 %v1795_v14, %s3958_s24  ;;  %2399 = vst.msk [vmem:[#allocation3 + $0x18] sm:$0xf] %vm2392_vm12, %v2309_v41  ;;  %v2226_v14 = vld [vmem:[#allocation2 + $0x16a] sm:$0xff]  ;;  %v1796_v30 = vpack.c.bf16 %v1764_v6, %v1764_v6  ;;  %v2003_v6 = vld [vmem:[#allocation2 + $0x181] sm:$0xff] }
 0x27f   : > { %v2969_v54 = vmul.f32 %v2937_v27, %v2905_v18  ;;  %v2970_v21 = vmul.f32 %v2938_v13, %v2906_v15  ;;  %v2114_v61 = vpop.permute.xlu2 %2113  ;;  %v2258_v15 = vpack.c.bf16 %v2226_v14, %v2226_v14 }
 0x280   : > { %v1661_v48 = vpop.permute.xlu0 %1660 }
 0x281   : > { %v2992_v43 = vpack.c.bf16 %v2970_v21, %v2969_v54  ;;  %1737 = vst.msk [vmem:[#allocation3 + $0x50] sm:$0xf] %vm1716_vm8, %v1661_v48  ;;  %v2939_v21 = vld [vmem:[%s5422_s1 + $0xa0] sm:$0xff] }
 0x282   : > { %1963 = vst.msk [vmem:[#allocation3 + $0x50] sm:$0xf] %vm1942_vm10, %v1887_v5  ;;  %v4965_v5 = vpack.c.bf16 %v2227_v25, %v2227_v25 }
 0x283   : > { %3604 = vmatmul.msk.bf16.gmra.mxu3 %vm2577_vm13, %v2992_v43  ;;  %2095 = vrot.lane.b32.xlu1 %v2019_v44, %s3959_s25 }
 0x285   : > { %v1663_v1 = vpop.permute.xlu1 %1662  ;;  %v3619_v33 = vld [vmem:[#allocation3 + $0x18] sm:$0xff]  ;;  %1870 = vrot.lane.b32.xlu2 %v1794_v45, %s3958_s24 }
 0x286   : > { %v2431_v53 = vld [vmem:[#allocation3 + $0x18] sm:$0xff]   ;;  %2320 = vrot.lane.b32.xlu0 %v4928_v12, %s3960_s26  ;;  %1738 = vst.msk [vmem:[#allocation3 + $0x54] sm:$0xf] %vm1716_vm8, %v1663_v1  ;;  %3566 = vmatmul.msk.bf16.gmra.mxu0 %vm2577_vm13, %v3619_v33 }
 0x287   : > { %v2789_v11 = vunpack.c.l.bf16 %v2431_v53  ;;  %v2790_v16 = vunpack.c.h.bf16 %v2431_v53  ;;  %v1639_v22 = vpop.permute.xlu2 %1638 }
 0x288   : > { %v1889_v55 = vpop.permute.xlu0 %1888  ;;  %1726 = vst.msk [vmem:[#allocation3 + $0x24] sm:$0xf] %vm1716_vm8, %v1639_v22 }
 0x289   : > { %v2825_v56 = vmul.f32 %v4776_v38, %v2789_v11  ;;  %v2826_v59 = vmul.f32 %v4776_v38, %v2790_v16  ;;  %1964 = vst.msk [vmem:[#allocation3 + $0x54] sm:$0xf] %vm1942_vm10, %v1889_v55  ;;  %v2022_v11 = vpack.c.bf16 %v1990_v51, %v1990_v51 }
 0x28a   : > { %2189 = vst.msk [vmem:[#allocation3 + $0x54] sm:$0xf] %vm2167_vm11, %v2114_v61  ;;  %v1765_v61 = vld [vmem:[#allocation2 + $0xe0] sm:$0xff] }
 0x28b   : > { %v2861_v42 = vadd.f32 %v4785_v46, %v2825_v56  ;;  %v2862_v60 = vadd.f32 %v4785_v46, %v2826_v59  ;;  %2322 = vrot.lane.b32.xlu1 %v4937_v49, %s3960_s26 }
 0x28d   : > { %v2893_v4 = vmax.f32 %v2861_v42, 0.0  ;;  %v2894_v19 = vmax.f32 %v2862_v60, 0.0  ;;  %v2112_v7 = vpop.permute.xlu1 %2111  ;;  %2097 = vrot.lane.b32.xlu2 %v2020_v52, %s3959_s25  ;;  %v1989_v42 = vld [vmem:[#allocation2 + $0xd9] sm:$0xff]  ;;  %v2246_v60 = vpack.c.bf16 %v2214_v37, %v2214_v37 }
 0x28e   : > { %1674 = vrot.lane.b32.xlu0 %v2257_v26, %s3957_s23  ;;  %2188 = vst.msk [vmem:[#allocation3 + $0x50] sm:$0xf] %vm2167_vm11, %v2112_v7  ;;  %v2021_v63 = vpack.c.bf16 %v1989_v42, %v1989_v42 }
 0x28f   : > { %v2957_v28 = vmul.f32 %v2925_v62, %v2893_v4  ;;  %v2958_v10 = vmul.f32 %v2926_v0, %v2894_v19  ;;  %v2088_v23 = vpop.permute.xlu2 %2087 }
 0x290   : > { %v2337_v24 = vpop.permute.xlu0 %2336 }
 0x291   : > { %v2986_v36 = vpack.c.bf16 %v2958_v10, %v2957_v28  ;;  %2413 = vst.msk [vmem:[#allocation3 + $0x50] sm:$0xf] %vm2392_vm12, %v2337_v24  ;;  %v2927_v10 = vld [vmem:[%s5422_s1 + $0x40] sm:$0xff] }
 0x293   : > { %3598 = vmatmul.msk.bf16.gmra.mxu1 %vm2577_vm13, %v2986_v36  ;;  %1898 = vrot.lane.b32.xlu1 %v1808_v20, %s3958_s24  ;;  %v2928_v20 = vld [vmem:[%s5422_s1 + $0x48] sm:$0xff] }
 0x295   : > { %v2339_v34 = vpop.permute.xlu1 %2338  ;;  %1672 = vrot.lane.b32.xlu2 %v4899_v29, %s3957_s23 }
 0x296   : > { %2123 = vrot.lane.b32.xlu0 %v2033_v35, %s3959_s25  ;;  %2414 = vst.msk [vmem:[#allocation3 + $0x54] sm:$0xf] %vm2392_vm12, %v2339_v34 }
 0x297   : > { %v2315_v40 = vpop.permute.xlu2 %2314 }
 0x298   : > { %v1863_v47 = vpop.permute.xlu0 %1862 }
 0x299   : > { %1951 = vst.msk [vmem:[#allocation3 + $0x20] sm:$0xf] %vm1942_vm10, %v1863_v47  ;;  %v1779_v47 = vld [vmem:[#allocation2 + $0x188] sm:$0xff] }
 0x29a   : > { %2176 = vst.msk [vmem:[#allocation3 + $0x20] sm:$0xf] %vm2167_vm11, %v2088_v23 }
 0x29b   : > { %2125 = vrot.lane.b32.xlu1 %v2034_v9, %s3959_s25  ;;  %v2215_v9 = vld [vmem:[#allocation2 + $0xe2] sm:$0xff] }
 0x29d   : > { %v1865_v2 = vpop.permute.xlu1 %1864  ;;  %v3626_v29 = vld [vmem:[#allocation3 + $0x50] sm:$0xff]  ;;  %1900 = vrot.lane.b32.xlu2 %v1809_v57, %s3958_s24 }
 0x29e   : > { %v2445_v31 = vld [vmem:[#allocation3 + $0x50] sm:$0xff]   ;;  %2350 = vrot.lane.b32.xlu0 %v4965_v5, %s3960_s26  ;;  %1952 = vst.msk [vmem:[#allocation3 + $0x24] sm:$0xf] %vm1942_vm10, %v1865_v2  ;;  %3573 = vmatmul.msk.bf16.gmra.mxu2 %vm2577_vm13, %v3626_v29 }
 0x29f   : > { %v2803_v3 = vunpack.c.l.bf16 %v2445_v31  ;;  %v2804_v26 = vunpack.c.h.bf16 %v2445_v31  ;;  %v1891_v17 = vpop.permute.xlu2 %1890  ;;  %v2247_v31 = vpack.c.bf16 %v2215_v9, %v2215_v9 }
 0x2a0   : > { %v2090_v27 = vpop.permute.xlu0 %2089 }
 0x2a1   : > { %v2839_v13 = vmul.f32 %v4776_v38, %v2803_v3  ;;  %v2840_v18 = vmul.f32 %v4776_v38, %v2804_v26  ;;  %2177 = vst.msk [vmem:[#allocation3 + $0x24] sm:$0xf] %vm2167_vm11, %v2090_v27  ;;  %v5035_v3 = vld [vmem:[%s5426_s5] ss:$0 sm:$0xff]  ;;  %v1811_v26 = vpack.c.bf16 %v1779_v47, %v1779_v47 }
 0x2a2   : > { %2402 = vst.msk [vmem:[#allocation3 + $0x24] sm:$0xf] %vm2392_vm12, %v2315_v40 }
 0x2a3   : > { %v2875_v41 = vadd.f32 %v4785_v46, %v2839_v13  ;;  %v2876_v54 = vadd.f32 %v4785_v46, %v2840_v18  ;;  %1648 = vrot.lane.b32.xlu1 %v4928_v12, %s3957_s23  ;;  %v1797_v12 = vpack.c.bf16 %v1765_v61, %v1765_v61  ;;  %v2228_v13 = vld [vmem:[#allocation2 + $0x182] sm:$0xff] }
 0x2a4   : > { %v1778_v18 = vld [vmem:[#allocation2 + $0x180] sm:$0xff] }
 0x2a5   : > { %v2907_v44 = vmax.f32 %v2875_v41, 0.0  ;;  %v2908_v58 = vmax.f32 %v2876_v54, 0.0  ;;  %v2313_v48 = vpop.permute.xlu1 %2312  ;;  %2348 = vrot.lane.b32.xlu2 %v2258_v15, %s3960_s26 }
 0x2a6   : > { %1874 = vrot.lane.b32.xlu0 %v1796_v30, %s3958_s24  ;;  %2401 = vst.msk [vmem:[#allocation3 + $0x20] sm:$0xf] %vm2392_vm12, %v2313_v48  ;;  %v2035_v30 = vpack.c.bf16 %v2003_v6, %v2003_v6 }
 0x2a7   : > { %v2971_v43 = vmul.f32 %v2939_v21, %v2907_v44  ;;  %v2972_v45 = vmul.f32 %v2940_v50, %v2908_v58  ;;  %v2118_v1 = vpop.permute.xlu2 %2117  ;;  %v5052_v21 = vpack.c.bf16 %v2228_v13, %v2228_v13  ;;  %v1810_v50 = vpack.c.bf16 %v1778_v18, %v1778_v18  ;;  %v1781_v18 = vld [vmem:[#allocation2 + $0x1a0] sm:$0xff] }
 0x2a8   : > { %v1665_v33 = vpop.permute.xlu0 %1664 }
 0x2a9   : > { %v2993_v53 = vpack.c.bf16 %v2972_v45, %v2971_v43  ;;  %1739 = vst.msk [vmem:[#allocation3 + $0x58] sm:$0xf] %vm1716_vm8, %v1665_v33 }
 0x2aa   : > { %1965 = vst.msk [vmem:[#allocation3 + $0x58] sm:$0xf] %vm1942_vm10, %v1891_v17 }
 0x2ab   : > { %3605 = vmatmul.msk.bf16.gmra.mxu3 %vm2577_vm13, %v2993_v53  ;;  %1876 = vrot.lane.b32.xlu1 %v1797_v12, %s3958_s24  ;;  %v2639_v16 = vpop.f32.mrf.mxu0  ;;  %v2229_v12 = vld [vmem:[#allocation2 + $0x18a] sm:$0xff] }
 0x2ad   : > { %v1667_v22 = vpop.permute.xlu1 %1666  ;;  %v3620_v55 = vld [vmem:[#allocation3 + $0x20] sm:$0xff]  ;;  %1650 = vrot.lane.b32.xlu2 %v4937_v49, %s3957_s23  ;;  %v5006_v49 = vld [vmem:[%s5428_s7] ss:$0 sm:$0xff] }
 0x2ae   : > { %v2433_v56 = vld [vmem:[#allocation3 + $0x20] sm:$0xff]   ;;  %2101 = vrot.lane.b32.xlu0 %v2022_v11, %s3959_s25  ;;  %1740 = vst.msk [vmem:[#allocation3 + $0x5c] sm:$0xf] %vm1716_vm8, %v1667_v22  ;;  %3567 = vmatmul.msk.bf16.gmra.mxu0 %vm2577_vm13, %v3620_v55  ;;  %v2640_v36 = vadd.f32 %v5006_v49, %v2639_v16 }
 0x2af   : > { %v2791_v59 = vunpack.c.l.bf16 %v2433_v56  ;;  %v2792_v52 = vunpack.c.h.bf16 %v2433_v56  ;;  %v1641_v62 = vpop.permute.xlu2 %1640  ;;  %v2004_v22 = vld [vmem:[#allocation2 + $0x189] sm:$0xff] }
 0x2b0   : > { %v1893_v0 = vpop.permute.xlu0 %1892  ;;  %1727 = vst.msk [vmem:[#allocation3 + $0x28] sm:$0xf] %vm1716_vm8, %v1641_v62 }
 0x2b1   : > { %v2827_v4 = vmul.f32 %v4776_v38, %v2791_v59  ;;  %v2828_v19 = vmul.f32 %v4776_v38, %v2792_v52  ;;  %1966 = vst.msk [vmem:[#allocation3 + $0x5c] sm:$0xf] %vm1942_vm10, %v1893_v0  ;;  %v2261_v59 = vpack.c.bf16 %v2229_v12, %v2229_v12 }
 0x2b2   : > { %2191 = vst.msk [vmem:[#allocation3 + $0x5c] sm:$0xf] %vm2167_vm11, %v2118_v1 }
 0x2b3   : > { %v2863_v7 = vadd.f32 %v4785_v46, %v2827_v4  ;;  %v2864_v28 = vadd.f32 %v4785_v46, %v2828_v19  ;;  %2324 = vrot.lane.b32.xlu1 %v2246_v60, %s3960_s26  ;;  %v2641_v8 = vpop.f32.mrf.mxu0  ;;  %v2036_v4 = vpack.c.bf16 %v2004_v22, %v2004_v22 }
 0x2b4   : > { %v2642_v35 = vadd.f32 %v5006_v49, %v2641_v8 }
 0x2b5   : > { %v2895_v23 = vmax.f32 %v2863_v7, 0.0  ;;  %v2896_v24 = vmax.f32 %v2864_v28, 0.0  ;;  %v2116_v32 = vpop.permute.xlu1 %2115  ;;  %2099 = vrot.lane.b32.xlu2 %v2021_v63, %s3959_s25 }
 0x2b6   : > { %1676 = vrot.lane.b32.xlu0 %v2258_v15, %s3957_s23  ;;  %2190 = vst.msk [vmem:[#allocation3 + $0x58] sm:$0xf] %vm2167_vm11, %v2116_v32  ;;  %v3707_v25 = vpack.c.bf16 %v2642_v35, %v2640_v36  ;;  %v1780_v36 = vld [vmem:[#allocation2 + $0x198] sm:$0xff] }
 0x2b7   : > { %v2959_v34 = vmul.f32 %v2927_v10, %v2895_v23  ;;  %v2960_v39 = vmul.f32 %v2928_v20, %v2896_v24  ;;  %v1869_v57 = vpop.permute.xlu2 %1868  ;;  %v2941_v10 = vld [vmem:[%s5422_s1 + $0xb0] sm:$0xff]  ;;  %v2942_v20 = vld [vmem:[%s5422_s1 + $0xb8] sm:$0xff]  ;;  %v1812_v9 = vpack.c.bf16 %v1780_v36, %v1780_v36 }
 0x2b8   : > { %v3099_v40 = vpop.f32.mrf.mxu1  ;;  %v2341_v2 = vpop.permute.xlu0 %2340  ;;  %3708 = vst [vmem:[%s5027_s18] sm:$0xff] %v3707_v25   ;;  %v2005_v25 = vld [vmem:[#allocation2 + $0x199] sm:$0xff] }
 0x2b9   : > { %v2987_v29 = vpack.c.bf16 %v2960_v39, %v2959_v34  ;;  %2415 = vst.msk [vmem:[#allocation3 + $0x58] sm:$0xf] %vm2392_vm12, %v2341_v2  ;;  %v3100_v27 = vadd.f32 %v5035_v3, %v3099_v40 }
 0x2bb   : > { %3599 = vmatmul.msk.bf16.gmra.mxu1 %vm2577_vm13, %v2987_v29  ;;  %1678 = vrot.lane.b32.xlu1 %v4965_v5, %s3957_s23  ;;  %v2644_v14 = vpop.f32.mrf.mxu0  ;;  %v3280_v44 = vmul.f32 %v3100_v27, %v3100_v27 }
 0x2bc   : > { %v2645_v51 = vadd.f32 %v5006_v49, %v2644_v14  ;;  %v2037_v14 = vpack.c.bf16 %v2005_v25, %v2005_v25 }
 0x2bd   : > { %v2343_v17 = vpop.permute.xlu1 %2342  ;;  %2326 = vrot.lane.b32.xlu2 %v2247_v31, %s3960_s26 }
 0x2be   : > { %1904 = vrot.lane.b32.xlu0 %v1811_v26, %s3958_s24  ;;  %2416 = vst.msk [vmem:[#allocation3 + $0x5c] sm:$0xf] %vm2392_vm12, %v2343_v17  ;;  %v2006_v17 = vld [vmem:[#allocation2 + $0x1a1] sm:$0xff] }
 0x2bf   : > { %v2317_v41 = vpop.permute.xlu2 %2316 }
 0x2c0   : > { %v3101_v15 = vpop.f32.mrf.mxu1  ;;  %v1643_v54 = vpop.permute.xlu0 %1642 }
 0x2c1   : > { %v3102_v5 = vadd.f32 %v5035_v3, %v3101_v15  ;;  %1728 = vst.msk [vmem:[#allocation3 + $0x2c] sm:$0xf] %vm1716_vm8, %v1643_v54  ;;  %v2038_v15 = vpack.c.bf16 %v2006_v17, %v2006_v17 }
 0x2c2   : > { %1954 = vst.msk [vmem:[#allocation3 + $0x2c] sm:$0xf] %vm1942_vm10, %v1869_v57 }
 0x2c3   : > { %v3787_v58 = vpack.c.bf16 %v3102_v5, %v3100_v27  ;;  %v3243_v61 = vadd.f32 %v3102_v5, %v3100_v27  ;;  %v3281_v48 = vmul.f32 %v3102_v5, %v3102_v5  ;;  %2127 = vrot.lane.b32.xlu1 %v2035_v30, %s3959_s25  ;;  %v2646_v45 = vpop.f32.mrf.mxu0  ;;  %v2231_v30 = vld [vmem:[#allocation2 + $0x1a2] sm:$0xff] }
 0x2c4   : > { %v2647_v33 = vadd.f32 %v5006_v49, %v2646_v45 }
 0x2c5   : > { %3788 = vst [vmem:[%s5050_s27] sm:$0xff] %v3787_v58   ;;  %v3312_v43 = vadd.f32 %v3281_v48, %v3280_v44  ;;  %v1867_v1 = vpop.permute.xlu1 %1866  ;;  %v3627_v53 = vld [vmem:[#allocation3 + $0x58] sm:$0xff]  ;;  %1902 = vrot.lane.b32.xlu2 %v1810_v50, %s3958_s24  ;;  %v2263_v48 = vpack.c.bf16 %v2231_v30, %v2231_v30  ;;  %v2943_v30 = vld [vmem:[%s5422_s1 + $0xc0] sm:$0xff] }
 0x2c6   : > { %v2447_v11 = vld [vmem:[#allocation3 + $0x58] sm:$0xff]   ;;  %2352 = vrot.lane.b32.xlu0 %v5052_v21, %s3960_s26  ;;  %1953 = vst.msk [vmem:[#allocation3 + $0x28] sm:$0xf] %vm1942_vm10, %v1867_v1  ;;  %v3712_v55 = vpack.c.bf16 %v2647_v33, %v2645_v51  ;;  %3574 = vmatmul.msk.bf16.gmra.mxu2 %vm2577_vm13, %v3627_v53 }
 0x2c7   : > { %v2805_v16 = vunpack.c.l.bf16 %v2447_v11  ;;  %v2806_v37 = vunpack.c.h.bf16 %v2447_v11  ;;  %v1671_v52 = vpop.permute.xlu2 %1670  ;;  %v2930_v11 = vld [vmem:[%s5422_s1 + $0x58] sm:$0xff] }
 0x2c8   : > { %v3104_v56 = vpop.f32.mrf.mxu1  ;;  %v2092_v42 = vpop.permute.xlu0 %2091  ;;  %1742 = vst.msk [vmem:[#allocation3 + $0x64] sm:$0xf] %vm1716_vm8, %v1671_v52 }
 0x2c9   : > { %v3105_v60 = vadd.f32 %v5035_v3, %v3104_v56  ;;  %v2841_v62 = vmul.f32 %v4776_v38, %v2805_v16  ;;  %v2842_v0 = vmul.f32 %v4776_v38, %v2806_v37  ;;  %3879 = vst [vmem:[%s5027_s18 + $0x8] sm:$0xff] %v3712_v55  }
 0x2ca   : > { %2178 = vst.msk [vmem:[#allocation3 + $0x28] sm:$0xf] %vm2167_vm11, %v2092_v42 }
 0x2cb   : > { %v3244_v19 = vadd.f32 %v3243_v61, %v3105_v60  ;;  %v3282_v63 = vmul.f32 %v3105_v60, %v3105_v60  ;;  %v2877_v7 = vadd.f32 %v4785_v46, %v2841_v62  ;;  %v2878_v28 = vadd.f32 %v4785_v46, %v2842_v0  ;;  %2354 = vrot.lane.b32.xlu1 %v2261_v59, %s3960_s26 }
 0x2cc   : > { %2403 = vst.msk [vmem:[#allocation3 + $0x28] sm:$0xf] %vm2392_vm12, %v2317_v41  ;;  %v1813_v61 = vpack.c.bf16 %v1781_v18, %v1781_v18 }
 0x2cd   : > { %v3313_v8 = vadd.f32 %v3312_v43, %v3282_v63  ;;  %v2909_v23 = vmax.f32 %v2877_v7, 0.0  ;;  %v2910_v24 = vmax.f32 %v2878_v28, 0.0  ;;  %v2094_v35 = vpop.permute.xlu1 %2093  ;;  %2129 = vrot.lane.b32.xlu2 %v2036_v4, %s3959_s25 }
 0x2ce   : > { %1682 = vrot.lane.b32.xlu0 %v2261_v59, %s3957_s23  ;;  %2179 = vst.msk [vmem:[#allocation3 + $0x2c] sm:$0xf] %vm2167_vm11, %v2094_v35 }
 0x2cf   : > { %v2973_v32 = vmul.f32 %v2941_v10, %v2909_v23  ;;  %v2974_v34 = vmul.f32 %v2942_v20, %v2910_v24  ;;  %v2120_v40 = vpop.permute.xlu2 %2119 }
 0x2d0   : > { %v3106_v39 = vpop.f32.mrf.mxu1  ;;  %v2319_v47 = vpop.permute.xlu0 %2318 }
 0x2d1   : > { %v3107_v57 = vadd.f32 %v5035_v3, %v3106_v39  ;;  %v2994_v2 = vpack.c.bf16 %v2974_v34, %v2973_v32  ;;  %2404 = vst.msk [vmem:[#allocation3 + $0x2c] sm:$0xf] %vm2392_vm12, %v2319_v47 }
 0x2d3   : > { %v3792_v29 = vpack.c.bf16 %v3107_v57, %v3105_v60  ;;  %v5085_v31 = vadd.f32 %v3244_v19, %v3107_v57  ;;  %v3283_v26 = vmul.f32 %v3107_v57, %v3107_v57  ;;  %3606 = vmatmul.msk.bf16.gmra.mxu3 %vm2577_vm13, %v2994_v2  ;;  %1906 = vrot.lane.b32.xlu1 %v1812_v9, %s3958_s24 }
 0x2d4   : > { %v2679_v27 = vpop.f32.mrf.mxu2 }
 0x2d5   : > { %3894 = vst [vmem:[%s5050_s27 + $0x8] sm:$0xff] %v3792_v29   ;;  %v5090_v6 = vadd.f32 %v3313_v8, %v3283_v26  ;;  %v1669_v13 = vpop.permute.xlu1 %1668  ;;  %1680 = vrot.lane.b32.xlu2 %v5052_v21, %s3957_s23  ;;  %v2680_v33 = vadd.f32 %v5006_v49, %v2679_v27 }
 0x2d6   : > { %2131 = vrot.lane.b32.xlu0 %v2037_v14, %s3959_s25  ;;  %1741 = vst.msk [vmem:[#allocation3 + $0x60] sm:$0xf] %vm1716_vm8, %v1669_v13  ;;  %v5143_v14 = vld [vmem:[%s5423_s2] ss:$0 sm:$0xff] }
 0x2d7   : > { %v2347_v41 = vpop.permute.xlu2 %2346 }
 0x2d8   : > { %v1895_v54 = vpop.permute.xlu0 %1894  ;;  %v3621_v5 = vld [vmem:[#allocation3 + $0x28] sm:$0xff] }
 0x2d9   : > { %v2435_v50 = vld [vmem:[#allocation3 + $0x28] sm:$0xff]   ;;  %1967 = vst.msk [vmem:[#allocation3 + $0x60] sm:$0xf] %vm1942_vm10, %v1895_v54  ;;  %3568 = vmatmul.msk.bf16.gmra.mxu0 %vm2577_vm13, %v3621_v5 }
 0x2da   : > { %v2793_v44 = vunpack.c.l.bf16 %v2435_v50  ;;  %v2794_v58 = vunpack.c.h.bf16 %v2435_v50  ;;  %2192 = vst.msk [vmem:[#allocation3 + $0x60] sm:$0xf] %vm2167_vm11, %v2120_v40 }
 0x2db   : > { %2133 = vrot.lane.b32.xlu1 %v2038_v15, %s3959_s25 }
 0x2dc   : > { %v2829_v21 = vmul.f32 %v4776_v38, %v2793_v44  ;;  %v2830_v43 = vmul.f32 %v4776_v38, %v2794_v58  ;;  %v2681_v45 = vpop.f32.mrf.mxu2  ;;  %v2929_v38 = vld [vmem:[%s5422_s1 + $0x50] sm:$0xff] }
 0x2dd   : > { %v1897_v12 = vpop.permute.xlu1 %1896  ;;  %1908 = vrot.lane.b32.xlu2 %v1813_v61, %s3958_s24  ;;  %v2682_v53 = vadd.f32 %v5006_v49, %v2681_v45 }
 0x2de   : > { %v2865_v51 = vadd.f32 %v4785_v46, %v2829_v21  ;;  %v2866_v1 = vadd.f32 %v4785_v46, %v2830_v43  ;;  %2358 = vrot.lane.b32.xlu0 %v2263_v48, %s3960_s26  ;;  %1968 = vst.msk [vmem:[#allocation3 + $0x64] sm:$0xf] %vm1942_vm10, %v1897_v12  ;;  %v2230_v46 = vld [vmem:[#allocation2 + $0x19a] sm:$0xff]  ;;  %v2649_v16 = vpop.f32.mrf.mxu0 }
 0x2df   : > { %v1871_v55 = vpop.permute.xlu2 %1870  ;;  %v3747_v56 = vpack.c.bf16 %v2682_v53, %v2680_v33  ;;  %v2262_v62 = vpack.c.bf16 %v2230_v46, %v2230_v46  ;;  %v2650_v7 = vadd.f32 %v5006_v49, %v2649_v16 }
 0x2e0   : > { %v2897_v37 = vmax.f32 %v2865_v51, 0.0  ;;  %v2898_v22 = vmax.f32 %v2866_v1, 0.0  ;;  %v2122_v59 = vpop.permute.xlu0 %2121 }
 0x2e1   : > { %v3139_v52 = vpop.f32.mrf.mxu3  ;;  %2193 = vst.msk [vmem:[#allocation3 + $0x64] sm:$0xf] %vm2167_vm11, %v2122_v59 }
 0x2e2   : > { %v2961_v42 = vmul.f32 %v2929_v38, %v2897_v37  ;;  %v2962_v60 = vmul.f32 %v2930_v11, %v2898_v22  ;;  %3886 = vst [vmem:[%s5027_s18 + $0x40] sm:$0xff] %v3747_v56   ;;  %v5124_v8 = vadd.f32 %v5035_v3, %v3139_v52 }
 0x2e3   : > { %2418 = vst.msk [vmem:[#allocation3 + $0x64] sm:$0xf] %vm2392_vm12, %v2347_v41  ;;  %v2944_v41 = vld [vmem:[%s5422_s1 + $0xc8] sm:$0xff] }
 0x2e4   : > { %v2988_v0 = vpack.c.bf16 %v2962_v60, %v2961_v42 }
 0x2e5   : > { %v2345_v4 = vpop.permute.xlu1 %2344  ;;  %2356 = vrot.lane.b32.xlu2 %v2262_v62, %s3960_s26 }
 0x2e6   : > { %3600 = vmatmul.msk.bf16.gmra.mxu1 %vm2577_vm13, %v2988_v0  ;;  %2417 = vst.msk [vmem:[#allocation3 + $0x60] sm:$0xf] %vm2392_vm12, %v2345_v4  ;;  %v2651_v19 = vpop.f32.mrf.mxu0 }
 0x2e7   : > { %v2098_v63 = vpop.permute.xlu2 %2097  ;;  %v2652_v10 = vadd.f32 %v5006_v49, %v2651_v19 }
 0x2e8   : > { %v1645_v28 = vpop.permute.xlu0 %1644 }
 0x2e9   : > { %v3141_v20 = vpop.f32.mrf.mxu3  ;;  %1729 = vst.msk [vmem:[#allocation3 + $0x30] sm:$0xf] %vm1716_vm8, %v1645_v28  ;;  %v3717_v24 = vpack.c.bf16 %v2652_v10, %v2650_v7  ;;  %v2931_v28 = vld [vmem:[%s5422_s1 + $0x60] sm:$0xff]  ;;  %v2932_v10 = vld [vmem:[%s5422_s1 + $0x68] sm:$0xff] }
 0x2ea   : > { %v5128_v23 = vadd.f32 %v5035_v3, %v3141_v20  ;;  %1955 = vst.msk [vmem:[#allocation3 + $0x30] sm:$0xf] %vm1942_vm10, %v1871_v55 }
 0x2eb   : > { %v3109_v36 = vpop.f32.mrf.mxu1  ;;  %3880 = vst [vmem:[%s5027_s18 + $0x10] sm:$0xff] %v3717_v24  }
 0x2ec   : > { %v3827_v35 = vpack.c.bf16 %v5128_v23, %v5124_v8  ;;  %v3110_v32 = vadd.f32 %v5035_v3, %v3109_v36 }
 0x2ed   : > { %v1647_v9 = vpop.permute.xlu1 %1646  ;;  %v3628_v25 = vld [vmem:[#allocation3 + $0x60] sm:$0xff] }
 0x2ee   : > { %3901 = vst [vmem:[%s5050_s27 + $0x40] sm:$0xff] %v3827_v35   ;;  %v3246_v34 = vadd.f32 %v5085_v31, %v3110_v32  ;;  %v3284_v39 = vmul.f32 %v3110_v32, %v3110_v32  ;;  %v2449_v40 = vld [vmem:[#allocation3 + $0x60] sm:$0xff]   ;;  %3575 = vmatmul.msk.bf16.gmra.mxu2 %vm2577_vm13, %v3628_v25 }
 0x2ef   : > { %1730 = vst.msk [vmem:[#allocation3 + $0x34] sm:$0xf] %vm1716_vm8, %v1647_v9  ;;  %v2807_v47 = vunpack.c.l.bf16 %v2449_v40  ;;  %v2808_v57 = vunpack.c.h.bf16 %v2449_v40  ;;  %v1673_v29 = vpop.permute.xlu2 %1672 }
 0x2f0   : > { %v3315_v2 = vadd.f32 %v5090_v6, %v3284_v39  ;;  %v1873_v26 = vpop.permute.xlu0 %1872  ;;  %1743 = vst.msk [vmem:[#allocation3 + $0x68] sm:$0xf] %vm1716_vm8, %v1673_v29  ;;  %v5153_v6 = vld [vmem:[%s5424_s3] ss:$0 sm:$0xff] }
 0x2f1   : > { %v2843_v31 = vmul.f32 %v5143_v14, %v2807_v47  ;;  %v2844_v17 = vmul.f32 %v5143_v14, %v2808_v57  ;;  %1956 = vst.msk [vmem:[#allocation3 + $0x34] sm:$0xf] %vm1942_vm10, %v1873_v26 }
 0x2f2   : > { %2181 = vst.msk [vmem:[#allocation3 + $0x34] sm:$0xf] %vm2167_vm11, %v2098_v63 }
 0x2f3   : > { %v3111_v27 = vpop.f32.mrf.mxu1  ;;  %v2879_v13 = vadd.f32 %v5153_v6, %v2843_v31  ;;  %v2880_v18 = vadd.f32 %v5153_v6, %v2844_v17 }
 0x2f4   : > { %v3112_v15 = vadd.f32 %v5035_v3, %v3111_v27 }
 0x2f5   : > { %v2911_v54 = vmax.f32 %v2879_v13, 0.0  ;;  %v2912_v5 = vmax.f32 %v2880_v18, 0.0  ;;  %v2096_v61 = vpop.permute.xlu1 %2095 }
 0x2f6   : > { %v3797_v50 = vpack.c.bf16 %v3112_v15, %v3110_v32  ;;  %v5164_v44 = vadd.f32 %v3246_v34, %v3112_v15  ;;  %v3285_v58 = vmul.f32 %v3112_v15, %v3112_v15  ;;  %2180 = vst.msk [vmem:[#allocation3 + $0x30] sm:$0xf] %vm2167_vm11, %v2096_v61 }
 0x2f7   : > { %v2975_v48 = vmul.f32 %v2943_v30, %v2911_v54  ;;  %v2976_v21 = vmul.f32 %v2944_v41, %v2912_v5  ;;  %v1901_v45 = vpop.permute.xlu2 %1900 }
 0x2f8   : > { %3895 = vst [vmem:[%s5050_s27 + $0x10] sm:$0xff] %v3797_v50   ;;  %v5168_v43 = vadd.f32 %v3315_v2, %v3285_v58  ;;  %v2321_v12 = vpop.permute.xlu0 %2320 }
 0x2f9   : > { %v2995_v51 = vpack.c.bf16 %v2976_v21, %v2975_v48  ;;  %2405 = vst.msk [vmem:[#allocation3 + $0x30] sm:$0xf] %vm2392_vm12, %v2321_v12  ;;  %v2684_v1 = vpop.f32.mrf.mxu2 }
 0x2fa   : > { %v2685_v46 = vadd.f32 %v5006_v49, %v2684_v1 }
 0x2fb   : > { %3607 = vmatmul.msk.bf16.gmra.mxu3 %vm2577_vm13, %v2995_v51 }
 0x2fd   : > { %v2323_v33 = vpop.permute.xlu1 %2322 }
 0x2fe   : > { %2406 = vst.msk [vmem:[#allocation3 + $0x34] sm:$0xf] %vm2392_vm12, %v2323_v33 }
 0x2ff   : > { %v2349_v53 = vpop.permute.xlu2 %2348 }
 0x300   : > { %v1675_v38 = vpop.permute.xlu0 %1674 }
 0x301   : > { %1744 = vst.msk [vmem:[#allocation3 + $0x6c] sm:$0xf] %vm1716_vm8, %v1675_v38  ;;  %v2686_v11 = vpop.f32.mrf.mxu2 }
 0x302   : > { %1970 = vst.msk [vmem:[#allocation3 + $0x6c] sm:$0xf] %vm1942_vm10, %v1901_v45  ;;  %v2687_v16 = vadd.f32 %v5006_v49, %v2686_v11 }
 0x303   : > { %v2654_v37 = vpop.f32.mrf.mxu0 }
 0x304   : > { %v3752_v22 = vpack.c.bf16 %v2687_v16, %v2685_v46  ;;  %v2655_v35 = vadd.f32 %v5006_v49, %v2654_v37  ;;  %v2945_v16 = vld [vmem:[%s5422_s1 + $0xd0] sm:$0xff]  ;;  %v2946_v37 = vld [vmem:[%s5422_s1 + $0xd8] sm:$0xff] }
 0x305   : > { %v1899_v56 = vpop.permute.xlu1 %1898  ;;  %v3622_v59 = vld [vmem:[#allocation3 + $0x30] sm:$0xff] }
 0x306   : > { %v3144_v55 = vpop.f32.mrf.mxu3  ;;  %v2437_v52 = vld [vmem:[#allocation3 + $0x30] sm:$0xff]   ;;  %1969 = vst.msk [vmem:[#allocation3 + $0x68] sm:$0xf] %vm1942_vm10, %v1899_v56  ;;  %3569 = vmatmul.msk.bf16.gmra.mxu0 %vm2577_vm13, %v3622_v59 }
 0x307   : > { %v2795_v42 = vunpack.c.l.bf16 %v2437_v52  ;;  %v2796_v60 = vunpack.c.h.bf16 %v2437_v52  ;;  %3887 = vst [vmem:[%s5027_s18 + $0x48] sm:$0xff] %v3752_v22   ;;  %v1651_v62 = vpop.permute.xlu2 %1650  ;;  %v5196_v9 = vadd.f32 %v5035_v3, %v3144_v55 }
 0x308   : > { %v2124_v0 = vpop.permute.xlu0 %2123  ;;  %1732 = vst.msk [vmem:[#allocation3 + $0x3c] sm:$0xf] %vm1716_vm8, %v1651_v62 }
 0x309   : > { %v2831_v4 = vmul.f32 %v5143_v14, %v2795_v42  ;;  %v2832_v19 = vmul.f32 %v5143_v14, %v2796_v60  ;;  %2194 = vst.msk [vmem:[#allocation3 + $0x68] sm:$0xf] %vm2167_vm11, %v2124_v0 }
 0x30a   : > { %2419 = vst.msk [vmem:[#allocation3 + $0x68] sm:$0xf] %vm2392_vm12, %v2349_v53 }
 0x30b   : > { %v2867_v63 = vadd.f32 %v5153_v6, %v2831_v4  ;;  %v2868_v7 = vadd.f32 %v5153_v6, %v2832_v19  ;;  %v2656_v20 = vpop.f32.mrf.mxu0 }
 0x30c   : > { %v2657_v39 = vadd.f32 %v5006_v49, %v2656_v20 }
 0x30d   : > { %v2899_v24 = vmax.f32 %v2867_v63, 0.0  ;;  %v2900_v36 = vmax.f32 %v2868_v7, 0.0  ;;  %v2126_v34 = vpop.permute.xlu1 %2125 }
 0x30e   : > { %v3146_v32 = vpop.f32.mrf.mxu3  ;;  %2195 = vst.msk [vmem:[#allocation3 + $0x6c] sm:$0xf] %vm2167_vm11, %v2126_v34  ;;  %v3722_v57 = vpack.c.bf16 %v2657_v39, %v2655_v35 }
 0x30f   : > { %v5199_v25 = vadd.f32 %v5035_v3, %v3146_v32  ;;  %v2963_v40 = vmul.f32 %v2931_v28, %v2899_v24  ;;  %v2964_v47 = vmul.f32 %v2932_v10, %v2900_v36  ;;  %v2100_v29 = vpop.permute.xlu2 %2099 }
 0x310   : > { %v3114_v2 = vpop.f32.mrf.mxu1  ;;  %v2351_v31 = vpop.permute.xlu0 %2350  ;;  %3881 = vst [vmem:[%s5027_s18 + $0x18] sm:$0xff] %v3722_v57  }
 0x311   : > { %v3832_v26 = vpack.c.bf16 %v5199_v25, %v5196_v9  ;;  %v3115_v17 = vadd.f32 %v5035_v3, %v3114_v2  ;;  %v2989_v27 = vpack.c.bf16 %v2964_v47, %v2963_v40  ;;  %2420 = vst.msk [vmem:[#allocation3 + $0x6c] sm:$0xf] %vm2392_vm12, %v2351_v31 }
 0x313   : > { %3902 = vst [vmem:[%s5050_s27 + $0x48] sm:$0xff] %v3832_v26   ;;  %v3248_v13 = vadd.f32 %v5164_v44, %v3115_v17  ;;  %v3286_v18 = vmul.f32 %v3115_v17, %v3115_v17  ;;  %3601 = vmatmul.msk.bf16.gmra.mxu1 %vm2577_vm13, %v2989_v27  ;;  %v2934_v26 = vld [vmem:[%s5422_s1 + $0x78] sm:$0xff] }
 0x315   : > { %v3317_v15 = vadd.f32 %v5168_v43, %v3286_v18  ;;  %v1649_v30 = vpop.permute.xlu1 %1648 }
 0x316   : > { %1731 = vst.msk [vmem:[#allocation3 + $0x38] sm:$0xf] %vm1716_vm8, %v1649_v30 }
 0x317   : > { %v2327_v54 = vpop.permute.xlu2 %2326 }
 0x318   : > { %v3116_v41 = vpop.f32.mrf.mxu1  ;;  %v1875_v5 = vpop.permute.xlu0 %1874  ;;  %v3629_v48 = vld [vmem:[#allocation3 + $0x68] sm:$0xff] }
 0x319   : > { %v3117_v50 = vadd.f32 %v5035_v3, %v3116_v41  ;;  %1957 = vst.msk [vmem:[#allocation3 + $0x38] sm:$0xf] %vm1942_vm10, %v1875_v5  ;;  %v2451_v21 = vld [vmem:[#allocation3 + $0x68] sm:$0xff]   ;;  %3576 = vmatmul.msk.bf16.gmra.mxu2 %vm2577_vm13, %v3629_v48 }
 0x31a   : > { %2182 = vst.msk [vmem:[#allocation3 + $0x38] sm:$0xf] %vm2167_vm11, %v2100_v29  ;;  %v2809_v43 = vunpack.c.l.bf16 %v2451_v21  ;;  %v2810_v45 = vunpack.c.h.bf16 %v2451_v21  ;;  %v2933_v29 = vld [vmem:[%s5422_s1 + $0x70] sm:$0xff] }
 0x31b   : > { %v3802_v58 = vpack.c.bf16 %v3117_v50, %v3115_v17  ;;  %v5214_v44 = vadd.f32 %v3248_v13, %v3117_v50  ;;  %v3287_v61 = vmul.f32 %v3117_v50, %v3117_v50 }
 0x31c   : > { %v2845_v1 = vmul.f32 %v5143_v14, %v2809_v43  ;;  %v2846_v33 = vmul.f32 %v5143_v14, %v2810_v45 }
 0x31d   : > { %3896 = vst [vmem:[%s5050_s27 + $0x18] sm:$0xff] %v3802_v58   ;;  %v5218_v12 = vadd.f32 %v3317_v15, %v3287_v61  ;;  %v1877_v51 = vpop.permute.xlu1 %1876 }
 0x31e   : > { %1958 = vst.msk [vmem:[#allocation3 + $0x3c] sm:$0xf] %vm1942_vm10, %v1877_v51  ;;  %v2881_v53 = vadd.f32 %v5153_v6, %v2845_v1  ;;  %v2882_v38 = vadd.f32 %v5153_v6, %v2846_v33 }
 0x31f   : > { %v1903_v11 = vpop.permute.xlu2 %1902 }
 0x320   : > { %v2102_v46 = vpop.permute.xlu0 %2101  ;;  %v2913_v22 = vmax.f32 %v2881_v53, 0.0  ;;  %v2914_v55 = vmax.f32 %v2882_v38, 0.0 }
 0x321   : > { %2183 = vst.msk [vmem:[#allocation3 + $0x3c] sm:$0xf] %vm2167_vm11, %v2102_v46  ;;  %v2689_v56 = vpop.f32.mrf.mxu2 }
 0x322   : > { %2408 = vst.msk [vmem:[#allocation3 + $0x3c] sm:$0xf] %vm2392_vm12, %v2327_v54  ;;  %v2977_v59 = vmul.f32 %v2945_v16, %v2913_v22  ;;  %v2978_v52 = vmul.f32 %v2946_v37, %v2914_v55  ;;  %v2690_v19 = vadd.f32 %v5006_v49, %v2689_v56 }
 0x324   : > { %v2996_v42 = vpack.c.bf16 %v2978_v52, %v2977_v59 }
 0x325   : > { %v2325_v60 = vpop.permute.xlu1 %2324 }
 0x326   : > { %2407 = vst.msk [vmem:[#allocation3 + $0x38] sm:$0xf] %vm2392_vm12, %v2325_v60  ;;  %3608 = vmatmul.msk.bf16.gmra.mxu3 %vm2577_vm13, %v2996_v42 }
 0x327   : > { %v2130_v62 = vpop.permute.xlu2 %2129 }
 0x328   : > { %v1677_v0 = vpop.permute.xlu0 %1676 }
 0x329   : > { %1745 = vst.msk [vmem:[#allocation3 + $0x70] sm:$0xf] %vm1716_vm8, %v1677_v0  ;;  %v2691_v4 = vpop.f32.mrf.mxu2 }
 0x32a   : > { %1971 = vst.msk [vmem:[#allocation3 + $0x70] sm:$0xf] %vm1942_vm10, %v1903_v11  ;;  %v2692_v63 = vadd.f32 %v5006_v49, %v2691_v4 }
 0x32b   : > { %v2659_v7 = vpop.f32.mrf.mxu0 }
 0x32c   : > { %v3757_v28 = vpack.c.bf16 %v2692_v63, %v2690_v19  ;;  %v2660_v13 = vadd.f32 %v5006_v49, %v2659_v7 }
 0x32d   : > { %v1679_v20 = vpop.permute.xlu1 %1678  ;;  %v3623_v24 = vld [vmem:[#allocation3 + $0x38] sm:$0xff] }
 0x32e   : > { %v3149_v10 = vpop.f32.mrf.mxu3  ;;  %v2439_v36 = vld [vmem:[#allocation3 + $0x38] sm:$0xff]   ;;  %1746 = vst.msk [vmem:[#allocation3 + $0x74] sm:$0xf] %vm1716_vm8, %v1679_v20  ;;  %3570 = vmatmul.msk.bf16.gmra.mxu0 %vm2577_vm13, %v3623_v24 }
 0x32f   : > { %v2797_v35 = vunpack.c.l.bf16 %v2439_v36  ;;  %v2798_v32 = vunpack.c.h.bf16 %v2439_v36  ;;  %3888 = vst [vmem:[%s5027_s18 + $0x50] sm:$0xff] %v3757_v28   ;;  %v1681_v34 = vpop.permute.xlu2 %1680  ;;  %v5259_v41 = vadd.f32 %v5035_v3, %v3149_v10  ;;  %v2947_v28 = vld [vmem:[%s5422_s1 + $0xe0] sm:$0xff]  ;;  %v2948_v10 = vld [vmem:[%s5422_s1 + $0xe8] sm:$0xff] }
 0x330   : > { %v1905_v39 = vpop.permute.xlu0 %1904  ;;  %1747 = vst.msk [vmem:[#allocation3 + $0x78] sm:$0xf] %vm1716_vm8, %v1681_v34 }
 0x331   : > { %v2833_v40 = vmul.f32 %v5143_v14, %v2797_v35  ;;  %v2834_v47 = vmul.f32 %v5143_v14, %v2798_v32  ;;  %1972 = vst.msk [vmem:[#allocation3 + $0x74] sm:$0xf] %vm1942_vm10, %v1905_v39 }
 0x332   : > { %2197 = vst.msk [vmem:[#allocation3 + $0x74] sm:$0xf] %vm2167_vm11, %v2130_v62 }
 0x333   : > { %v2869_v57 = vadd.f32 %v5153_v6, %v2833_v40  ;;  %v2870_v2 = vadd.f32 %v5153_v6, %v2834_v47  ;;  %v2661_v31 = vpop.f32.mrf.mxu0 }
 0x334   : > { %v2662_v30 = vadd.f32 %v5006_v49, %v2661_v31 }
 0x335   : > { %v2901_v17 = vmax.f32 %v2869_v57, 0.0  ;;  %v2902_v27 = vmax.f32 %v2870_v2, 0.0  ;;  %v2128_v15 = vpop.permute.xlu1 %2127 }
 0x336   : > { %v3151_v18 = vpop.f32.mrf.mxu3  ;;  %2196 = vst.msk [vmem:[#allocation3 + $0x70] sm:$0xf] %vm2167_vm11, %v2128_v15  ;;  %v3727_v58 = vpack.c.bf16 %v2662_v30, %v2660_v13 }
 0x337   : > { %v5262_v54 = vadd.f32 %v5035_v3, %v3151_v18  ;;  %v2965_v5 = vmul.f32 %v2933_v29, %v2901_v17  ;;  %v2966_v50 = vmul.f32 %v2934_v26, %v2902_v27  ;;  %v1909_v38 = vpop.permute.xlu2 %1908 }
 0x338   : > { %v3119_v61 = vpop.f32.mrf.mxu1  ;;  %v2353_v21 = vpop.permute.xlu0 %2352  ;;  %3882 = vst [vmem:[%s5027_s18 + $0x20] sm:$0xff] %v3727_v58  }
 0x339   : > { %v3837_v48 = vpack.c.bf16 %v5262_v54, %v5259_v41  ;;  %v3120_v43 = vadd.f32 %v5035_v3, %v3119_v61  ;;  %v2990_v45 = vpack.c.bf16 %v2966_v50, %v2965_v5  ;;  %2421 = vst.msk [vmem:[#allocation3 + $0x70] sm:$0xf] %vm2392_vm12, %v2353_v21 }
 0x33b   : > { %3903 = vst [vmem:[%s5050_s27 + $0x50] sm:$0xff] %v3837_v48   ;;  %v3250_v51 = vadd.f32 %v5214_v44, %v3120_v43  ;;  %v3288_v1 = vmul.f32 %v3120_v43, %v3120_v43  ;;  %3602 = vmatmul.msk.bf16.gmra.mxu1 %vm2577_vm13, %v2990_v45  ;;  %v2949_v48 = vld [vmem:[%s5422_s1 + $0xf0] sm:$0xff] }
 0x33d   : > { %v3319_v33 = vadd.f32 %v5218_v12, %v3288_v1  ;;  %v2355_v53 = vpop.permute.xlu1 %2354 }
 0x33e   : > { %2422 = vst.msk [vmem:[#allocation3 + $0x74] sm:$0xf] %vm2392_vm12, %v2355_v53 }
 0x33f   : > { %v2357_v60 = vpop.permute.xlu2 %2356 }
 0x340   : > { %v3121_v11 = vpop.f32.mrf.mxu1  ;;  %v1683_v46 = vpop.permute.xlu0 %1682 }
 0x341   : > { %v3122_v16 = vadd.f32 %v5035_v3, %v3121_v11  ;;  %1748 = vst.msk [vmem:[#allocation3 + $0x7c] sm:$0xf] %vm1716_vm8, %v1683_v46 }
 0x342   : > { %1974 = vst.msk [vmem:[#allocation3 + $0x7c] sm:$0xf] %vm1942_vm10, %v1909_v38 }
 0x343   : > { %v3807_v37 = vpack.c.bf16 %v3122_v16, %v3120_v43  ;;  %v5277_v44 = vadd.f32 %v3250_v51, %v3122_v16  ;;  %v3289_v22 = vmul.f32 %v3122_v16, %v3122_v16 }
 0x345   : > { %3897 = vst [vmem:[%s5050_s27 + $0x20] sm:$0xff] %v3807_v37   ;;  %v5281_v55 = vadd.f32 %v3319_v33, %v3289_v22  ;;  %v1907_v12 = vpop.permute.xlu1 %1906  ;;  %v3630_v56 = vld [vmem:[#allocation3 + $0x70] sm:$0xff] }
 0x346   : > { %v2453_v59 = vld [vmem:[#allocation3 + $0x70] sm:$0xff]   ;;  %1973 = vst.msk [vmem:[#allocation3 + $0x78] sm:$0xf] %vm1942_vm10, %v1907_v12  ;;  %3577 = vmatmul.msk.bf16.gmra.mxu2 %vm2577_vm13, %v3630_v56 }
 0x347   : > { %v2811_v52 = vunpack.c.l.bf16 %v2453_v59  ;;  %v2812_v42 = vunpack.c.h.bf16 %v2453_v59 }
 0x348   : > { %v2132_v62 = vpop.permute.xlu0 %2131 }
 0x349   : > { %v2847_v0 = vmul.f32 %v5143_v14, %v2811_v52  ;;  %v2848_v4 = vmul.f32 %v5143_v14, %v2812_v42  ;;  %2198 = vst.msk [vmem:[#allocation3 + $0x78] sm:$0xf] %vm2167_vm11, %v2132_v62  ;;  %v2694_v19 = vpop.f32.mrf.mxu2 }
 0x34a   : > { %2423 = vst.msk [vmem:[#allocation3 + $0x78] sm:$0xf] %vm2392_vm12, %v2357_v60  ;;  %v2695_v47 = vadd.f32 %v5006_v49, %v2694_v19 }
 0x34b   : > { %v2883_v63 = vadd.f32 %v5153_v6, %v2847_v0  ;;  %v2884_v7 = vadd.f32 %v5153_v6, %v2848_v4 }
 0x34d   : > { %v2915_v20 = vmax.f32 %v2883_v63, 0.0  ;;  %v2916_v24 = vmax.f32 %v2884_v7, 0.0  ;;  %v2134_v36 = vpop.permute.xlu1 %2133 }
 0x34e   : > { %2199 = vst.msk [vmem:[#allocation3 + $0x7c] sm:$0xf] %vm2167_vm11, %v2134_v36 }
 0x34f   : > { %v2979_v35 = vmul.f32 %v2947_v28, %v2915_v20  ;;  %v2980_v32 = vmul.f32 %v2948_v10, %v2916_v24 }
 0x350   : > { %v2359_v34 = vpop.permute.xlu0 %2358 }
 0x351   : > { %v2997_v39 = vpack.c.bf16 %v2980_v32, %v2979_v35  ;;  %2424 = vst.msk [vmem:[#allocation3 + $0x7c] sm:$0xf] %vm2392_vm12, %v2359_v34  ;;  %v2696_v40 = vpop.f32.mrf.mxu2 }
 0x352   : > { %v2697_v57 = vadd.f32 %v5006_v49, %v2696_v40 }
 0x353   : > { %3609 = vmatmul.msk.bf16.gmra.mxu3 %vm2577_vm13, %v2997_v39 }
 0x354   : > { %v3762_v2 = vpack.c.bf16 %v2697_v57, %v2695_v47 }
 0x356   : > { %v3154_v29 = vpop.f32.mrf.mxu3  ;;  %3889 = vst [vmem:[%s5027_s18 + $0x58] sm:$0xff] %v3762_v2   ;;  %v2664_v26 = vpop.f32.mrf.mxu0 }
 0x357   : > { %v5309_v58 = vadd.f32 %v5035_v3, %v3154_v29 }
 0x358   : > { %v3631_v31 = vld [vmem:[#allocation3 + $0x78] sm:$0xff] }
 0x359   : > { %v2455_v17 = vld [vmem:[#allocation3 + $0x78] sm:$0xff]   ;;  %3578 = vmatmul.msk.bf16.gmra.mxu2 %vm2577_vm13, %v3631_v31 }
 0x35a   : > { %v2813_v27 = vunpack.c.l.bf16 %v2455_v17  ;;  %v2814_v13 = vunpack.c.h.bf16 %v2455_v17 }
 0x35c   : > { %v2849_v18 = vmul.f32 %v5143_v14, %v2813_v27  ;;  %v2850_v15 = vmul.f32 %v5143_v14, %v2814_v13  ;;  %v2950_v14 = vld [vmem:[%s5422_s1 + $0xf8] sm:$0xff] }
 0x35e   : > { %v3156_v30 = vpop.f32.mrf.mxu3  ;;  %v2885_v5 = vadd.f32 %v5153_v6, %v2849_v18  ;;  %v2886_v50 = vadd.f32 %v5153_v6, %v2850_v15  ;;  %v2666_v21 = vpop.f32.mrf.mxu0  ;;  %v2665_v6 = vadd.f32 %v5006_v49, %v2664_v26 }
 0x35f   : > { %v5312_v61 = vadd.f32 %v5035_v3, %v3156_v30  ;;  %v2667_v1 = vadd.f32 %v5006_v49, %v2666_v21 }
 0x360   : > { %v2917_v43 = vmax.f32 %v2885_v5, 0.0  ;;  %v2918_v45 = vmax.f32 %v2886_v50, 0.0 }
 0x361   : > { %v3842_v51 = vpack.c.bf16 %v5312_v61, %v5309_v58  ;;  %v3732_v38 = vpack.c.bf16 %v2667_v1, %v2665_v6 }
 0x362   : > { %v2981_v33 = vmul.f32 %v2949_v48, %v2917_v43  ;;  %v2982_v53 = vmul.f32 %v2950_v14, %v2918_v45 }
 0x363   : > { %3904 = vst [vmem:[%s5050_s27 + $0x58] sm:$0xff] %v3842_v51   ;;  %v3124_v11 = vpop.f32.mrf.mxu1 }
 0x364   : > { %v3125_v46 = vadd.f32 %v5035_v3, %v3124_v11  ;;  %v2998_v16 = vpack.c.bf16 %v2982_v53, %v2981_v33  ;;  %3883 = vst [vmem:[%s5027_s18 + $0x28] sm:$0xff] %v3732_v38  }
 0x366   : > { %v3252_v37 = vadd.f32 %v5277_v44, %v3125_v46  ;;  %v3290_v22 = vmul.f32 %v3125_v46, %v3125_v46  ;;  %3610 = vmatmul.msk.bf16.gmra.mxu3 %vm2577_vm13, %v2998_v16 }
 0x368   : > { %v3321_v12 = vadd.f32 %v5281_v55, %v3290_v22 }
 0x36b   : > { %v3126_v56 = vpop.f32.mrf.mxu1 }
 0x36c   : > { %v3127_v59 = vadd.f32 %v5035_v3, %v3126_v56 }
 0x36e   : > { %v3812_v52 = vpack.c.bf16 %v3127_v59, %v3125_v46  ;;  %v3253_v42 = vadd.f32 %v3252_v37, %v3127_v59  ;;  %v3291_v60 = vmul.f32 %v3127_v59, %v3127_v59 }
 0x370   : > { %3898 = vst [vmem:[%s5050_s27 + $0x28] sm:$0xff] %v3812_v52   ;;  %v3322_v62 = vadd.f32 %v3321_v12, %v3291_v60  ;;  %v3296_v52 = vmul.f32 %v5124_v8, %v5124_v8 }
 0x371   : > { %v2699_v0 = vpop.f32.mrf.mxu2 }
 0x372   : > { %v2700_v19 = vadd.f32 %v5006_v49, %v2699_v0 }
 0x379   : > { %v2701_v4 = vpop.f32.mrf.mxu2 }
 0x37a   : > { %v2702_v44 = vadd.f32 %v5006_v49, %v2701_v4 }
 0x37c   : > { %v3767_v63 = vpack.c.bf16 %v2702_v44, %v2700_v19 }
 0x37e   : > { %v3159_v7 = vpop.f32.mrf.mxu3  ;;  %3890 = vst [vmem:[%s5027_s18 + $0x60] sm:$0xff] %v3767_v63   ;;  %v3299_v63 = vmul.f32 %v5199_v25, %v5199_v25 }
 0x37f   : > { %v5336_v10 = vadd.f32 %v5035_v3, %v3159_v7 }
 0x383   : > { %v2669_v55 = vpop.f32.mrf.mxu0 }
 0x384   : > { %v2670_v35 = vadd.f32 %v5006_v49, %v2669_v55 }
 0x386   : > { %v3161_v28 = vpop.f32.mrf.mxu3 }
 0x387   : > { %v5339_v20 = vadd.f32 %v5035_v3, %v3161_v28 }
 0x389   : > { %v3847_v24 = vpack.c.bf16 %v5339_v20, %v5336_v10 }
 0x38b   : > { %3905 = vst [vmem:[%s5050_s27 + $0x60] sm:$0xff] %v3847_v24   ;;  %v2671_v36 = vpop.f32.mrf.mxu0  ;;  %v3300_v24 = vmul.f32 %v5259_v41, %v5259_v41 }
 0x38c   : > { %v2672_v32 = vadd.f32 %v5006_v49, %v2671_v36 }
 0x38e   : > { %v3737_v34 = vpack.c.bf16 %v2672_v32, %v2670_v35  ;;  %v3301_v35 = vmul.f32 %v5262_v54, %v5262_v54 }
 0x390   : > { %v3129_v39 = vpop.f32.mrf.mxu1  ;;  %3884 = vst [vmem:[%s5027_s18 + $0x30] sm:$0xff] %v3737_v34  }
 0x391   : > { %v3130_v47 = vadd.f32 %v5035_v3, %v3129_v39 }
 0x393   : > { %v3292_v6 = vmul.f32 %v3130_v47, %v3130_v47  ;;  %v3254_v1 = vadd.f32 %v3253_v42, %v3130_v47 }
 0x395   : > { %v3323_v53 = vadd.f32 %v3322_v62, %v3292_v6  ;;  %v3297_v62 = vmul.f32 %v5128_v23, %v5128_v23 }
 0x398   : > { %v3131_v40 = vpop.f32.mrf.mxu1 }
 0x399   : > { %v3132_v57 = vadd.f32 %v5035_v3, %v3131_v40 }
 0x39b   : > { %v3817_v2 = vpack.c.bf16 %v3132_v57, %v3130_v47  ;;  %v3293_v33 = vmul.f32 %v3132_v57, %v3132_v57  ;;  %v3255_v38 = vadd.f32 %v3254_v1, %v3132_v57  ;;  %v3302_v47 = vmul.f32 %v5309_v58, %v5309_v58 }
 0x39c   : > { %v2704_v29 = vpop.f32.mrf.mxu2 }
 0x39d   : > { %3899 = vst [vmem:[%s5050_s27 + $0x30] sm:$0xff] %v3817_v2   ;;  %v2705_v31 = vadd.f32 %v5006_v49, %v2704_v29  ;;  %v3324_v16 = vadd.f32 %v3323_v53, %v3293_v33 }
 0x3a4   : > { %v2706_v26 = vpop.f32.mrf.mxu2 }
 0x3a5   : > { %v2707_v17 = vadd.f32 %v5006_v49, %v2706_v26 }
 0x3a7   : > { %v3772_v27 = vpack.c.bf16 %v2707_v17, %v2705_v31  ;;  %v3304_v17 = vmul.f32 %v5336_v10, %v5336_v10 }
 0x3a9   : > { %v3164_v13 = vpop.f32.mrf.mxu3  ;;  %3891 = vst [vmem:[%s5027_s18 + $0x68] sm:$0xff] %v3772_v27  }
 0x3aa   : > { %v5354_v30 = vadd.f32 %v5035_v3, %v3164_v13 }
 0x3ab   : > { %v2674_v18 = vpop.f32.mrf.mxu0 }
 0x3ac   : > { %v2675_v48 = vadd.f32 %v5006_v49, %v2674_v18 }
 0x3b1   : > { %v3166_v15 = vpop.f32.mrf.mxu3 }
 0x3b2   : > { %v5357_v5 = vadd.f32 %v5035_v3, %v3166_v15 }
 0x3b3   : > { %v2676_v50 = vpop.f32.mrf.mxu0 }
 0x3b4   : > { %v3852_v14 = vpack.c.bf16 %v5357_v5, %v5354_v30  ;;  %v2677_v21 = vadd.f32 %v5006_v49, %v2676_v50 }
 0x3b6   : > { %3906 = vst [vmem:[%s5050_s27 + $0x68] sm:$0xff] %v3852_v14   ;;  %v3742_v43 = vpack.c.bf16 %v2677_v21, %v2675_v48 }
 0x3b8   : > { %v3134_v45 = vpop.f32.mrf.mxu1  ;;  %3885 = vst [vmem:[%s5027_s18 + $0x38] sm:$0xff] %v3742_v43  }
 0x3b9   : > { %v3135_v51 = vadd.f32 %v5035_v3, %v3134_v45 }
 0x3bb   : > { %v3294_v11 = vmul.f32 %v3135_v51, %v3135_v51  ;;  %v3256_v37 = vadd.f32 %v3255_v38, %v3135_v51 }
 0x3bd   : > { %v3325_v12 = vadd.f32 %v3324_v16, %v3294_v11  ;;  %v3307_v11 = vmul.f32 %v5357_v5, %v5357_v5 }
 0x3c0   : > { %v3136_v46 = vpop.f32.mrf.mxu1 }
 0x3c1   : > { %v3137_v22 = vadd.f32 %v5035_v3, %v3136_v46  ;;  %v3298_v3 = vmul.f32 %v5196_v9, %v5196_v9 }
 0x3c3   : > { %v3822_v49 = vpack.c.bf16 %v3137_v22, %v3135_v51  ;;  %v3257_v56 = vadd.f32 %v3256_v37, %v3137_v22  ;;  %v3295_v59 = vmul.f32 %v3137_v22, %v3137_v22 }
 0x3c5   : > { %3900 = vst [vmem:[%s5050_s27 + $0x38] sm:$0xff] %v3822_v49   ;;  %v3258_v60 = vadd.f32 %v3257_v56, %v5124_v8  ;;  %v3326_v42 = vadd.f32 %v3325_v12, %v3295_v59 }
 0x3c7   : > { %v3259_v0 = vadd.f32 %v3258_v60, %v5128_v23  ;;  %v3327_v4 = vadd.f32 %v3326_v42, %v3296_v52 }
 0x3c9   : > { %v3260_v19 = vadd.f32 %v3259_v0, %v5196_v9  ;;  %v3328_v44 = vadd.f32 %v3327_v4, %v3297_v62  ;;  %v2709_v8 = vpop.f32.mrf.mxu2 }
 0x3cb   : > { %v3261_v7 = vadd.f32 %v3260_v19, %v5199_v25  ;;  %v3329_v55 = vadd.f32 %v3328_v44, %v3298_v3  ;;  %v3942_v25 = vld [vmem:[%s5428_s7] ss:$0 sm:$0xff] }
 0x3cc   : > { %v2710_v39 = vadd.f32 %v3942_v25, %v2709_v8 }
 0x3cd   : > { %v3330_v28 = vadd.f32 %v3329_v55, %v3299_v63  ;;  %v3262_v23 = vadd.f32 %v3261_v7, %v5259_v41 }
 0x3cf   : > { %v3331_v36 = vadd.f32 %v3330_v28, %v3300_v24  ;;  %v3263_v9 = vadd.f32 %v3262_v23, %v5262_v54  ;;  %v3303_v54 = vmul.f32 %v5312_v61, %v5312_v61 }
 0x3d1   : > { %v2711_v32 = vpop.f32.mrf.mxu2  ;;  %v3332_v34 = vadd.f32 %v3331_v36, %v3301_v35  ;;  %v3264_v41 = vadd.f32 %v3263_v9, %v5309_v58  ;;  %v3943_v58 = vld [vmem:[%s5426_s5] ss:$0 sm:$0xff] }
 0x3d2   : > { %v2712_v40 = vadd.f32 %v3942_v25, %v2711_v32 }
 0x3d3   : > { %v3333_v29 = vadd.f32 %v3332_v34, %v3302_v47  ;;  %v3265_v26 = vadd.f32 %v3264_v41, %v5312_v61  ;;  %v3305_v61 = vmul.f32 %v5339_v20, %v5339_v20 }
 0x3d4   : > { %v3777_v57 = vpack.c.bf16 %v2712_v40, %v2710_v39 }
 0x3d5   : > { %v3334_v31 = vadd.f32 %v3333_v29, %v3303_v54  ;;  %v3266_v27 = vadd.f32 %v3265_v26, %v5336_v10  ;;  %v3306_v10 = vmul.f32 %v5354_v30, %v5354_v30 }
 0x3d6   : > { %v3169_v2 = vpop.f32.mrf.mxu3  ;;  %3892 = vst [vmem:[%s5027_s18 + $0x70] sm:$0xff] %v3777_v57  }
 0x3d7   : > { %v3170_v15 = vadd.f32 %v3943_v58, %v3169_v2  ;;  %v3335_v48 = vadd.f32 %v3334_v31, %v3304_v17  ;;  %v3267_v21 = vadd.f32 %v3266_v27, %v5339_v20 }
 0x3d9   : > { %v3336_v43 = vadd.f32 %v3335_v48, %v3305_v61  ;;  %v3268_v45 = vadd.f32 %v3267_v21, %v5354_v30  ;;  %v3308_v22 = vmul.f32 %v3170_v15, %v3170_v15 }
 0x3db   : > { %v3337_v33 = vadd.f32 %v3336_v43, %v3306_v10  ;;  %v3269_v46 = vadd.f32 %v3268_v45, %v5357_v5 }
 0x3dc   : > { %v2714_v13 = vpop.f32.mrf.mxu2 }
 0x3dd   : > { %v2715_v51 = vadd.f32 %v3942_v25, %v2714_v13  ;;  %v3338_v20 = vadd.f32 %v3337_v33, %v3307_v11  ;;  %v3270_v37 = vadd.f32 %v3269_v46, %v3170_v15 }
 0x3de   : > { %v3171_v18 = vpop.f32.mrf.mxu3 }
 0x3df   : > { %v3172_v50 = vadd.f32 %v3943_v58, %v3171_v18  ;;  %v3339_v49 = vadd.f32 %v3338_v20, %v3308_v22 }
 0x3e1   : > { %v3857_v14 = vpack.c.bf16 %v3172_v50, %v3170_v15  ;;  %v3309_v12 = vmul.f32 %v3172_v50, %v3172_v50  ;;  %v3271_v30 = vadd.f32 %v3270_v37, %v3172_v50 }
 0x3e3   : > { %3907 = vst [vmem:[%s5050_s27 + $0x70] sm:$0xff] %v3857_v14   ;;  %v3340_v52 = vadd.f32 %v3339_v49, %v3309_v12 }
 0x3e4   : > { %v2716_v6 = vpop.f32.mrf.mxu2 }
 0x3e5   : > { %v2717_v1 = vadd.f32 %v3942_v25, %v2716_v6 }
 0x3e7   : > { %v3782_v53 = vpack.c.bf16 %v2717_v1, %v2715_v51 }
 0x3e9   : > { %v3174_v38 = vpop.f32.mrf.mxu3  ;;  %3893 = vst [vmem:[%s5027_s18 + $0x78] sm:$0xff] %v3782_v53   ;;  %s3482_s18 = sshll.u32 %s5433_s14, 1 }
 0x3ea   : > { %v3175_v16 = vadd.f32 %v3943_v58, %v3174_v38  ;;  %s382_s15 = scalar_lea.vmem %s5431_s10, %s3482_s18 }
 0x3ec   : > { %v3310_v56 = vmul.f32 %v3175_v16, %v3175_v16  ;;  %v3272_v60 = vadd.f32 %v3271_v30, %v3175_v16 }
 0x3ee   : > { %v3341_v62 = vadd.f32 %v3340_v52, %v3310_v56 }
 0x3f1   : > { %v3176_v59 = vpop.f32.mrf.mxu3 }
 0x3f2   : > { %v3177_v42 = vadd.f32 %v3943_v58, %v3176_v59 }
 0x3f4   : > { %v3862_v0 = vpack.c.bf16 %v3177_v42, %v3175_v16  ;;  %v3273_v4 = vadd.f32 %v3272_v60, %v3177_v42  ;;  %v3311_v3 = vmul.f32 %v3177_v42, %v3177_v42 }
 0x3f6   : > { %3908 = vst [vmem:[%s5050_s27 + $0x78] sm:$0xff] %v3862_v0   ;;  %v3274_v5 = vrot.slane %v3273_v4, 4  ;;  %v3342_v19 = vadd.f32 %v3341_v62, %v3311_v3 }
 0x3f8   : > { %v3275_v44 = vadd.f32 %v3274_v5, %v3273_v4  ;;  %v3343_v63 = vrot.slane %v3342_v19, 4 }
 0x3fa   : > { %v3276_v7 = vrot.slane %v3275_v44, 2  ;;  %v3344_v55 = vadd.f32 %v3343_v63, %v3342_v19 }
 0x3fc   : > { %v3277_v8 = vadd.f32 %v3276_v7, %v3275_v44  ;;  %v3345_v28 = vrot.slane %v3344_v55, 2 }
 0x3fe   : > { %v3278_v24 = vrot.slane %v3277_v8, 1  ;;  %v3346_v23 = vadd.f32 %v3345_v28, %v3344_v55 }
 0x400   : > { %v3347_v36 = vrot.slane %v3346_v23, 1  ;;  %v3279_v35 = vadd.f32 %v3278_v24, %v3277_v8 }
 0x402   : > { %v3348_v9 = vadd.f32 %v3347_v36, %v3346_v23 }
 0x404   : > { %v3350_v32 = vsel %vm3349_vm14, %v3279_v35, %v3348_v9 }
 0x405   : > { %3351 = vst [vmem:[%s382_s15] sm:$0x3] %v3350_v32 }
 0x406 PF: > { %s21_s13 = sadd.s32 1, %s3950_s13  }
 0x407   : > { %p18_p4 = scmp.ge.s32.totalorder %s21_s13, 4  }
 0x409   :  { %20 = sbr.rel (!%p18_p4) target bundleno = 1 (0x1), region = 109 }

// kernel: resunet_forward.3
= control target key start
LH: loop header
LB: loop body
LE: loop exit
PB: predicated region body
PF: predicated region fallthrough
CT: control target
= control target key end

     0   :  { %12 = vsyncpa [#allocation4], 0  ;;  %s11287_s0 = inlined_call_operand.vmem [shape: bf16[2,256,128], index: 0, kind: input, shape index: {}]   ;;  %s11288_s1 = inlined_call_operand.vmem [shape: bf16[2,256,128], index: 1, kind: input, shape index: {}]   ;;  %s11289_s2 = inlined_call_operand.vmem [shape: f32[1,128], index: 2, kind: input, shape index: {}]   ;;  %s11290_s3 = inlined_call_operand.vmem [shape: f32[1,128], index: 3, kind: input, shape index: {}]   ;;  %s11291_s4 = inlined_call_operand.vmem [shape: bf16[9,128,128], index: 4, kind: input, shape index: {}]   ;;  %s11292_s5 = inlined_call_operand.vmem [shape: f32[1,128], index: 5, kind: input, shape index: {}]   ;;  %s11293_s6 = inlined_call_operand.vmem [shape: f32[2,128], index: 6, kind: input, shape index: {}]   ;;  %s11294_s7 = inlined_call_operand.hbm [shape: f32[2,16,16], index: 7, kind: output, shape index: {}]  }
   0x1   :  { %14 = vsyncpa [#allocation4 + $0x1], 0  ;;  %s8179_s24 = smov 0   ;;  %s8181_s25 = smov 0  }
   0x2   :  { %s8183_s26 = smov 0   ;;  %s8185_s27 = smov 0  }
   0x3 LB: > { %s8200_s28 = sadd.s32 4294967295, %s8133_s27   ;;  %s6941_s29 = sadd.s32 4294967294, %s8133_s27   ;;  %s8133_s27 = sphi %s8185_s27, %s12100_s27   ;;  %s8129_s26 = sphi %s8183_s26, %s12099_s26   ;;  %s8125_s25 = sphi %s8181_s25, %s12098_s25   ;;  %s8121_s24 = sphi %s8179_s24, %s12097_s24  }
   0x4   : > { %s8204_s30 = sadd.s32 1, %s8133_s27   ;;  %s184_s8 = sadd.s32 1, %s8129_s26 }
   0x5   : > { %s181_s9 = ssub.s32 %s8133_s27, %s8204_s30  ;;  %p194_p0 = scmp.ne.s32.totalorder %s8129_s26, %s8125_s25 }
   0x6   : > { %p182_p1 = scmp.eq.s32.totalorder %s181_s9, 0  ;;  %p195_p2 = scmp.eq.s32.totalorder %s8200_s28, 1 }
   0x7   : > { %p200_p3 = scmp.ne.s32.totalorder %s8125_s25, %s8121_s24  ;;  %p201_p4 = scmp.eq.s32.totalorder %s6941_s29, 1 }
   0x8   : > { %s8215_s10 = scalar_select %p182_p1, %s8129_s26, %s184_s8  }
   0x9   : > { %p8217_p5 = por %p195_p2, %p194_p0  ;;  %p8221_p6 = por %p201_p4, %p200_p3 }
   0xa   : > { %p6944_p7 = scmp.ge.s32.totalorder %s8133_s27, 1  ;;  %p250_p8 = scmp.lt.s32.totalorder %s8133_s27, 3 }
   0xc   : > { %p251_p9 = pnand %p6944_p7, %p250_p8 }
   0xe   : > { %254 = sbr.rel (%p251_p9) target bundleno = 1033 (0x409), region = 48 }
  0x13   : > { %v7524_v0 = vld [vmem:[%s11291_s4 + $0x38] sm:$0xff]  ;;  %p287_p10 = scmp.lt.s32.totalorder %s8200_s28, 1  ;;  %v11295_v1 = vlaneseq  ;;  %v7523_v2 = vld [vmem:[%s11291_s4 + $0x30] sm:$0xff]  ;;  %v8243_v4 = vld [vmem:[%s11289_s2] ss:$0 sm:$0xff]  ;;  %vm8135_vm0 = vmmov 1  }
  0x14   : > { %7854 = vmatpush.bf16.msra.mxu1 %v7524_v0  ;;  %7855 = vmatpush.bf16.msra.mxu2 %v7524_v0  ;;  %vm1281_vm1 = vmpackc.low %vm8135_vm0, %vm8135_vm0  ;;  %vm1344_vm2 = vsmask.f32 3328  ;;  %vm1345_vm3 = vsmask.f32 7440  ;;  %v7522_v7 = vld [vmem:[%s11291_s4 + $0x28] sm:$0xff]  ;;  %v11313_v8 = vmov 0  }
  0x15   : > { %s8235_s17 = scalar_select %p287_p10, %s8200_s28, 1  ;;  %v8238_v3 = vshrl.u32 %v11295_v1, 7  ;;  %7856 = vmatpush.bf16.msra.mxu3 %v7524_v0  ;;  %2246 = vmatpush.bf16.msra.mxu0 %v7524_v0  ;;  %v8259_v9 = vsel %vm1281_vm1, 65537, %v11313_v8  ;;  %v8262_v10 = vunpack.c.l.b16 %v11313_v8  ;;  %500 = vst [vmem:[#allocation2] sm:$0xf] %v11313_v8  ;;  %v8280_v19 = vunpack.c.h.b16 %v11313_v8  ;;  %v7521_v35 = vld [vmem:[%s11291_s4 + $0x20] sm:$0xff]  ;;  %vm8337_vm8 = vmor %vm1344_vm2, %vm1345_vm3 }
  0x16   : > { %v11296_v18 = vshll.u32 %v8259_v9, 16  ;;  %v8287_v24 = vld [vmem:[%s11290_s3] ss:$0 sm:$0xff]  ;;  %501 = vst [vmem:[#allocation2 + $0x4] sm:$0xf] %v11313_v8  ;;  %v11302_v29 = vshrl.u32 %v8259_v9, 16 }
  0x17   : > { %s7499_s20 = sshll.u32 %s8235_s17, 7  ;;  %v547_v5 = vadd.s32 64, %v8238_v3  ;;  %v549_v6 = vadd.s32 80, %v8238_v3  ;;  %v8266_v11 = vadd.s32 128, %v8238_v3  ;;  %v8269_v12 = vadd.s32 144, %v8238_v3  ;;  %v7520_v50 = vld [vmem:[%s11291_s4 + $0x18] sm:$0xff] }
  0x18   : > { %s8256_s8 = scalar_lea.vmem %s11287_s0, %s7499_s20  ;;  %7857 = vmatpush.bf16.msra.mxu1 %v7523_v2  ;;  %7858 = vmatpush.bf16.msra.mxu2 %v7523_v2  ;;  %v8293_v28 = vrot.slane %v11296_v18, 5  ;;  %502 = vst [vmem:[#allocation2 + $0x8] sm:$0xf] %v11313_v8  ;;  %v1363_v36 = vrot.slane %v11302_v29, 4  ;;  %v542_v56 = vadd.s32 24, %v8238_v3  ;;  %s9328_s29 = scalar_lea.vmem %s11288_s1, %s7499_s20 }
  0x19   : > { %v8272_v13 = vld [vmem:[%s8256_s8 + $0x10] sm:$0xff]   ;;  %v7811_v14 = vld [vmem:[%s8256_s8 + $0x18] sm:$0xff]   ;;  %v8276_v15 = vld [vmem:[%s8256_s8 + $0x20] sm:$0xff]   ;;  %v631_v16 = vand.u32 15, %v547_v5  ;;  %v645_v17 = vand.u32 15, %v549_v6  ;;  %7859 = vmatpush.bf16.msra.mxu3 %v7523_v2  ;;  %2247 = vmatpush.bf16.msra.mxu0 %v7523_v2  ;;  %s284_s9 = sand.u32 1, %s8125_s25  }
  0x1a   : > { %v7617_v20 = vunpack.c.h.bf16 %v8272_v13  ;;  %v7620_v21 = vunpack.c.l.bf16 %v7811_v14  ;;  %v7621_v22 = vunpack.c.h.bf16 %v7811_v14  ;;  %v7624_v23 = vunpack.c.l.bf16 %v8276_v15  ;;  %v7814_v25 = vld [vmem:[%s8256_s8 + $0x30] sm:$0xff]   ;;  %503 = vst [vmem:[#allocation2 + $0x8c] sm:$0xf] %v11313_v8  ;;  %v7815_v34 = vld [vmem:[%s8256_s8 + $0x38] sm:$0xff]   ;;  %v8324_v49 = vld [vmem:[%s8256_s8 + $0x40] sm:$0xff]   ;;  %s6945_s13 = sshll.u32 %s284_s9, 4 }
  0x1b   : > { %v1096_v26 = vadd.s32 4294967295, %v631_v16  ;;  %v1098_v27 = vadd.s32 4294967295, %v645_v17  ;;  %504 = vst [vmem:[#allocation2 + $0x90] sm:$0xf] %v11313_v8  ;;  %v7633_v37 = vunpack.c.h.bf16 %v7814_v25  ;;  %v1364_v43 = vor.u32 %v1363_v36, %v8293_v28  ;;  %s11212_s14 = scalar_lea.vmem [#allocation3], %s6945_s13  ;;  %s7605_s15 = sshll.u32 %s8200_s28, 4 }
  0x1c   : > { %v373_v30 = vmul.f32 %v8243_v4, %v7617_v20  ;;  %v374_v31 = vmul.f32 %v8243_v4, %v7620_v21  ;;  %v375_v32 = vmul.f32 %v8243_v4, %v7621_v22  ;;  %v376_v33 = vmul.f32 %v8243_v4, %v7624_v23  ;;  %7860 = vmatpush.bf16.msra.mxu1 %v7522_v7  ;;  %s6863_s18 = scalar_lea.hbm %s11294_s7, %s7605_s15  ;;  %s6852_s19 = scalar_lea.sflag [#allocation4], %s284_s9 }
  0x1d   : > { %7861 = vmatpush.bf16.msra.mxu2 %v7522_v7  ;;  %vm1128_vm4 = vcmp.ge.s32.totalorder %v1096_v26, 0  ;;  %vm1130_vm5 = vcmp.ge.s32.totalorder %v1098_v27, 0  ;;  %7862 = vmatpush.bf16.msra.mxu3 %v7522_v7  ;;  %505 = vst [vmem:[#allocation2 + $0x94] sm:$0xf] %v11313_v8  ;;  %v7636_v44 = vunpack.c.l.bf16 %v7815_v34  ;;  %v8331_v52 = vrot.slane %v1364_v43, 4 }
  0x1e   : > { %2248 = vmatpush.bf16.msra.mxu0 %v7522_v7  ;;  %v409_v38 = vadd.f32 %v8287_v24, %v373_v30  ;;  %v410_v39 = vadd.f32 %v8287_v24, %v374_v31  ;;  %v411_v40 = vadd.f32 %v8287_v24, %v375_v32  ;;  %vm1288_vm6 = vmpackc.low %vm1128_vm4, %vm1128_vm4  ;;  %v412_v41 = vadd.f32 %v8287_v24, %v376_v33  ;;  %v7519_v7 = vld [vmem:[%s11291_s4 + $0x10] sm:$0xff]  ;;  %v7518_v33 = vld [vmem:[%s11291_s4 + $0x8] sm:$0xff] }
  0x1f   : > { %vm1290_vm7 = vmpackc.low %vm1130_vm5, %vm1130_vm5  ;;  %v1320_v42 = vsel %vm1288_vm6, 65537, %v11313_v8  ;;  %v7637_v59 = vunpack.c.h.bf16 %v7815_v34  ;;  %v7640_v63 = vunpack.c.l.bf16 %v8324_v49  ;;  %v381_v5 = vmul.f32 %v8243_v4, %v7633_v37 }
  0x20   : > { %v8316_v45 = vmax.f32 %v409_v38, 0.0  ;;  %v8318_v46 = vmax.f32 %v410_v39, 0.0  ;;  %v8320_v47 = vmax.f32 %v411_v40, 0.0  ;;  %v1322_v48 = vsel %vm1290_vm7, 65537, %v11313_v8  ;;  %7863 = vmatpush.bf16.msra.mxu1 %v7521_v35 }
  0x21   : > { %7864 = vmatpush.bf16.msra.mxu2 %v7521_v35  ;;  %v8329_v51 = vmax.f32 %v412_v41, 0.0  ;;  %v1427_v53 = vshll.u32 %v1320_v42, 16  ;;  %v1431_v54 = vshrl.u32 %v1320_v42, 16  ;;  %7865 = vmatpush.bf16.msra.mxu3 %v7521_v35  ;;  %v1447_v57 = vshll.u32 %v1322_v48, 16 }
  0x22   : > { %2249 = vmatpush.bf16.msra.mxu0 %v7521_v35  ;;  %v7683_v55 = vpack.c.bf16 %v8318_v46, %v8316_v45  ;;  %v1451_v58 = vshrl.u32 %v1322_v48, 16  ;;  %v382_v6 = vmul.f32 %v8243_v4, %v7636_v44  ;;  %v383_v17 = vmul.f32 %v8243_v4, %v7637_v59 }
  0x23   : > { %v7688_v60 = vpack.c.bf16 %v8329_v51, %v8320_v47  ;;  %v1429_v61 = vrot.slane %v1427_v53, 5  ;;  %v1433_v62 = vrot.slane %v1431_v54, 4  ;;  %v1449_v0 = vrot.slane %v1447_v57, 5 }
  0x24   : > { %7826 = vst [vmem:[#allocation2 + $0x20] sm:$0xff] %v7683_v55   ;;  %v1453_v2 = vrot.slane %v1451_v58, 4  ;;  %7866 = vmatpush.bf16.msra.mxu1 %v7520_v50  ;;  %v384_v30 = vmul.f32 %v8243_v4, %v7640_v63  ;;  %v417_v32 = vadd.f32 %v8287_v24, %v381_v5  ;;  %v11513_v35 = vmov 0  ;;  %v7517_v58 = vld [vmem:[%s11291_s4] sm:$0xff] }
  0x25   : > { %7867 = vmatpush.bf16.msra.mxu2 %v7520_v50  ;;  %7827 = vst [vmem:[#allocation2 + $0x28] sm:$0xff] %v7688_v60   ;;  %v1430_v14 = vsel %vm8337_vm8, %v8331_v52, %v1429_v61  ;;  %v1434_v16 = vor.u32 %v1433_v62, %v1429_v61  ;;  %7868 = vmatpush.bf16.msra.mxu3 %v7520_v50  ;;  %v687_v36 = vand.u32 15, %v8266_v11  ;;  %v11516_v40 = vmov 0  ;;  %v7818_v62 = vld [vmem:[%s8256_s8 + $0x50] sm:$0xff]  }
  0x26   : > { %2250 = vmatpush.bf16.msra.mxu0 %v7520_v50  ;;  %v1450_v20 = vsel %vm8337_vm8, %v8331_v52, %v1449_v0  ;;  %v1454_v21 = vor.u32 %v1453_v2, %v1449_v0  ;;  %v1722_v22 = vunpack.c.l.b16 %v1430_v14  ;;  %v1723_v23 = vunpack.c.h.b16 %v1430_v14 }
  0x27   : > { %v1435_v25 = vrot.slane %v1434_v16, 4  ;;  %v1736_v26 = vunpack.c.l.b16 %v1450_v20  ;;  %v1737_v27 = vunpack.c.h.b16 %v1450_v20  ;;  %v418_v41 = vadd.f32 %v8287_v24, %v382_v6 }
  0x28   : > { %v1455_v31 = vrot.slane %v1454_v21, 4  ;;  %vm1726_vm9 = vcmp.ne.s32.totalorder %v1722_v22, %v8262_v10  ;;  %vm1727_vm10 = vcmp.ne.s32.totalorder %v1723_v23, %v8280_v19  ;;  %7869 = vmatpush.bf16.msra.mxu1 %v7519_v7  ;;  %v419_v11 = vadd.f32 %v8287_v24, %v383_v17  ;;  %v8418_v21 = vld [vmem:[%s8256_s8 + $0x60] sm:$0xff]  }
  0x29   : > { %7870 = vmatpush.bf16.msra.mxu2 %v7519_v7  ;;  %v1440_v34 = vsel %vm8337_vm8, %v1435_v25, %v8293_v28  ;;  %vm8366_vm11 = vmpackc.low %vm1727_vm10, %vm1726_vm9  ;;  %vm1740_vm12 = vcmp.ne.s32.totalorder %v1736_v26, %v8262_v10  ;;  %vm1741_vm13 = vcmp.ne.s32.totalorder %v1737_v27, %v8280_v19  ;;  %7871 = vmatpush.bf16.msra.mxu3 %v7519_v7  ;;  %v8387_v57 = vmax.f32 %v417_v32, 0.0 }
  0x2a   : > { %v11514_v35 = vsel %vm8366_vm11, 4294967295, %v11513_v35  ;;  %2251 = vmatpush.bf16.msra.mxu0 %v7519_v7  ;;  %v1460_v37 = vsel %vm8337_vm8, %v1455_v31, %v8293_v28  ;;  %v1729_v38 = vunpack.c.l.b16 %v1440_v34  ;;  %v1730_v39 = vunpack.c.h.b16 %v1440_v34  ;;  %vm8376_vm14 = vmpackc.low %vm1741_vm13, %vm1740_vm12  ;;  %v7819_v7 = vld [vmem:[%s8256_s8 + $0x58] sm:$0xff]  }
  0x2b   : > { %11515 = vst [vmem:[#allocation6_spill] sm:$0xff] %v11514_v35  ;;  %v11517_v40 = vsel %vm8376_vm14, 4294967295, %v11516_v40  ;;  %v1063_v42 = vld [vmem:[#allocation2 + $0x20] sm:$0xf]  ;;  %v1064_v43 = vld [vmem:[#allocation2 + $0x24] sm:$0xf]  ;;  %v1743_v44 = vunpack.c.l.b16 %v1460_v37  ;;  %v1744_v48 = vunpack.c.h.b16 %v1460_v37  ;;  %v420_v50 = vadd.f32 %v8287_v24, %v384_v30 }
  0x2c   : > { %11518 = vst [vmem:[#allocation7_spill] sm:$0xff] %v11517_v40  ;;  %v1065_v53 = vld [vmem:[#allocation2 + $0x28] sm:$0xf]  ;;  %v1066_v54 = vld [vmem:[#allocation2 + $0x2c] sm:$0xf]  ;;  %vm1733_vm15 = vcmp.ne.s32.totalorder %v1729_v38, %v8262_v10  ;;  %vm1734_vm0 = vcmp.ne.s32.totalorder %v1730_v39, %v8280_v19  ;;  %v1905_v55 = vsel %vm8366_vm11, %v1063_v42, 0  ;;  %7872 = vmatpush.bf16.msra.mxu1 %v7518_v33  ;;  %v7649_v26 = vunpack.c.h.bf16 %v7818_v62 }
  0x2d   : > { %11519 = vst [vmem:[#allocation8_spill] sm:$0xff] %v8387_v57  ;;  %7873 = vmatpush.bf16.msra.mxu2 %v7518_v33  ;;  %vm8392_vm1 = vmpackc.low %vm1734_vm0, %vm1733_vm15  ;;  %v11520_v59 = vmov 0  ;;  %vm1747_vm2 = vcmp.ne.s32.totalorder %v1743_v44, %v8262_v10  ;;  %vm1748_vm3 = vcmp.ne.s32.totalorder %v1744_v48, %v8280_v19  ;;  %v1907_v60 = vsel %vm8376_vm14, %v1065_v53, 0  ;;  %7874 = vmatpush.bf16.msra.mxu3 %v7518_v33 }
  0x2e   : > { %v11521_v59 = vsel %vm8392_vm1, 4294967295, %v11520_v59  ;;  %v1987_v61 = vunpack.c.l.b16 %v1905_v55  ;;  %2252 = vmatpush.bf16.msra.mxu0 %v7518_v33  ;;  %vm8401_vm4 = vmpackc.low %vm1748_vm3, %vm1747_vm2  ;;  %v11523_v63 = vmov 0  ;;  %v1906_v0 = vsel %vm8392_vm1, %v1064_v43, 0 }
  0x2f   : > { %11522 = vst [vmem:[#allocation9_spill] sm:$0xff] %v11521_v59  ;;  %v11524_v63 = vsel %vm8401_vm4, 4294967295, %v11523_v63  ;;  %v1989_v2 = vunpack.c.l.b16 %v1907_v60  ;;  %v8407_v5 = vmax.f32 %v418_v41, 0.0  ;;  %v8409_v6 = vmax.f32 %v419_v11, 0.0 }
  0x30   : > { %11525 = vst [vmem:[#allocation10_spill] sm:$0xff] %v11524_v63  ;;  %v1908_v14 = vsel %vm8401_vm4, %v1066_v54, 0  ;;  %v1988_v16 = vunpack.c.l.b16 %v1906_v0  ;;  %vm11297_vm5 = vsmask.f32 4352  ;;  %v8414_v17 = vmax.f32 %v420_v50, 0.0  ;;  %7875 = vmatpush.bf16.msra.mxu1 %v7517_v58 }
  0x31   : > { %11526 = vst [vmem:[#allocation11_spill] sm:$0xff] %v8407_v5  ;;  %v701_v20 = vand.u32 15, %v8269_v12  ;;  %v1990_v22 = vunpack.c.l.b16 %v1908_v14  ;;  %v7703_v23 = vpack.c.bf16 %v8407_v5, %v8387_v57  ;;  %v1104_v25 = vadd.s32 4294967295, %v687_v36  ;;  %7876 = vmatpush.bf16.msra.mxu2 %v7517_v58  ;;  %7877 = vmatpush.bf16.msra.mxu3 %v7517_v58 }
  0x32   : > { %11527 = vst [vmem:[#allocation12_spill] sm:$0xff] %v8409_v6  ;;  %v2016_v27 = vpack.c.b16 %v1988_v16, %v1987_v61  ;;  %v7708_v30 = vpack.c.bf16 %v8414_v17, %v8409_v6  ;;  %v7652_v32 = vunpack.c.l.bf16 %v7819_v7  ;;  %2253 = vmatpush.bf16.msra.mxu0 %v7517_v58  ;;  %v7653_v12 = vunpack.c.h.bf16 %v7819_v7 }
  0x33   : > { %11528 = vst [vmem:[#allocation13_spill] sm:$0xff] %v8414_v17  ;;  %v1106_v31 = vadd.s32 4294967295, %v701_v20  ;;  %v2017_v33 = vpack.c.b16 %v1990_v22, %v1989_v2  ;;  %vm1136_vm6 = vcmp.ge.s32.totalorder %v1104_v25, 0  ;;  %v7656_v34 = vunpack.c.l.bf16 %v8418_v21 }
  0x34   : > { %7830 = vst [vmem:[#allocation2 + $0x40] sm:$0xff] %v7703_v23   ;;  %v2066_v37 = vshrl.u32 %v2016_v27, 16  ;;  %v2069_v38 = vshll.u32 %v2016_v27, 16  ;;  %vm1296_vm9 = vmpackc.low %vm1136_vm6, %vm1136_vm6  ;;  %v389_v36 = vmul.f32 %v8243_v4, %v7649_v26  ;;  %v390_v43 = vmul.f32 %v8243_v4, %v7652_v32 }
  0x35   : > { %7831 = vst [vmem:[#allocation2 + $0x48] sm:$0xff] %v7708_v30   ;;  %vm1138_vm7 = vcmp.ge.s32.totalorder %v1106_v31, 0  ;;  %v2075_v39 = vshrl.u32 %v2017_v33, 16  ;;  %v2078_v41 = vshll.u32 %v2017_v33, 16  ;;  %v1328_v42 = vsel %vm1296_vm9, 65537, %v11313_v8 }
  0x36   : > { %vm1298_vm10 = vmpackc.low %vm1138_vm7, %vm1138_vm7  ;;  %v2068_v44 = vrot.slane %v2066_v37, 3  ;;  %v2071_v48 = vrot.slane %v2069_v38, 4  ;;  %v1507_v50 = vshll.u32 %v1328_v42, 16  ;;  %v1511_v55 = vshrl.u32 %v1328_v42, 16 }
  0x37   : > { %v1330_v11 = vsel %vm1298_vm10, 65537, %v11313_v8  ;;  %v2077_v53 = vrot.slane %v2075_v39, 3  ;;  %v2080_v54 = vrot.slane %v2078_v41, 4  ;;  %v391_v0 = vmul.f32 %v8243_v4, %v7653_v12 }
  0x38   : > { %v1527_v58 = vshll.u32 %v1330_v11, 16  ;;  %v8429_v60 = vor.u32 %v2071_v48, %v2068_v44  ;;  %v1509_v61 = vrot.slane %v1507_v50, 5  ;;  %v1531_v62 = vshrl.u32 %v1330_v11, 16 }
  0x39   : > { %v8432_v2 = vor.u32 %v2080_v54, %v2077_v53  ;;  %v1513_v7 = vrot.slane %v1511_v55, 4  ;;  %v392_v16 = vmul.f32 %v8243_v4, %v7656_v34  ;;  %v425_v23 = vadd.f32 %v8287_v24, %v389_v36 }
  0x3a   : > { %v1529_v14 = vrot.slane %v1527_v58, 5  ;;  %v1510_v20 = vsel %vm8337_vm8, %v8331_v52, %v1509_v61  ;;  %v1533_v22 = vrot.slane %v1531_v62, 4  ;;  %v426_v25 = vadd.f32 %v8287_v24, %v390_v43 }
  0x3b   : > { %v2082_v26 = vsel %vm11297_vm5, %v8429_v60, %v8432_v2  ;;  %v1514_v27 = vor.u32 %v1513_v7, %v1509_v61  ;;  %v1778_v31 = vunpack.c.l.b16 %v1510_v20  ;;  %v1779_v33 = vunpack.c.h.b16 %v1510_v20  ;;  %v1071_v37 = vld [vmem:[#allocation2 + $0x40] sm:$0xf]  ;;  %v1072_v62 = vld [vmem:[#allocation2 + $0x44] sm:$0xf] }
  0x3c   : > { %v1530_v30 = vsel %vm8337_vm8, %v8331_v52, %v1529_v14  ;;  %2274 = vmatmul.bf16.vlgmr.msra.gmra.mxu1 %v2082_v26  ;;  %v1534_v32 = vor.u32 %v1533_v22, %v1529_v14  ;;  %v427_v36 = vadd.f32 %v8287_v24, %v391_v0  ;;  %v428_v39 = vadd.f32 %v8287_v24, %v392_v16  ;;  %v1073_v41 = vld [vmem:[#allocation2 + $0x48] sm:$0xf]  ;;  %v7607_v20 = vld [vmem:[%s8256_s8] sm:$0xff]   ;;  %v1074_v22 = vld [vmem:[#allocation2 + $0x4c] sm:$0xf] }
  0x3d   : > { %v1792_v12 = vunpack.c.l.b16 %v1530_v30  ;;  %v1793_v34 = vunpack.c.h.b16 %v1530_v30  ;;  %v1515_v38 = vrot.slane %v1514_v27, 4  ;;  %vm1782_vm12 = vcmp.ne.s32.totalorder %v1778_v31, %v8262_v10  ;;  %v7809_v31 = vld [vmem:[%s8256_s8 + $0x8] sm:$0xff]  }
  0x3e   : > { %v1535_v42 = vrot.slane %v1534_v32, 4  ;;  %vm1783_vm13 = vcmp.ne.s32.totalorder %v1779_v33, %v8280_v19  ;;  %v11529_v44 = vmov 0  ;;  %v8459_v48 = vmax.f32 %v425_v23, 0.0 }
  0x3f   : > { %vm1796_vm15 = vcmp.ne.s32.totalorder %v1792_v12, %v8262_v10  ;;  %vm1797_vm0 = vcmp.ne.s32.totalorder %v1793_v34, %v8280_v19  ;;  %v1520_v43 = vsel %vm8337_vm8, %v1515_v38, %v8293_v28  ;;  %vm8455_vm2 = vmpackc.low %vm1783_vm13, %vm1782_vm12  ;;  %v8461_v11 = vmax.f32 %v426_v25, 0.0 }
  0x40   : > { %v11530_v44 = vsel %vm8455_vm2, 4294967295, %v11529_v44  ;;  %11532 = vst [vmem:[#allocation15_spill] sm:$0xff] %v8459_v48  ;;  %v8463_v50 = vmax.f32 %v427_v36, 0.0  ;;  %v1540_v53 = vsel %vm8337_vm8, %v1535_v42, %v8293_v28  ;;  %v1785_v54 = vunpack.c.l.b16 %v1520_v43  ;;  %vm8468_vm3 = vmpackc.low %vm1797_vm0, %vm1796_vm15 }
  0x41   : > { %11531 = vst [vmem:[#allocation14_spill] sm:$0xff] %v11530_v44  ;;  %v1786_v55 = vunpack.c.h.b16 %v1520_v43  ;;  %v11535_v58 = vmov 0  ;;  %v1913_v61 = vsel %vm8455_vm2, %v1071_v37, 0  ;;  %v1799_v0 = vunpack.c.l.b16 %v1540_v53 }
  0x42   : > { %11533 = vst [vmem:[#allocation16_spill] sm:$0xff] %v8461_v11  ;;  %v11536_v58 = vsel %vm8468_vm3, 4294967295, %v11535_v58  ;;  %v1800_v7 = vunpack.c.h.b16 %v1540_v53  ;;  %v1915_v14 = vsel %vm8468_vm3, %v1073_v41, 0  ;;  %v1995_v16 = vunpack.c.l.b16 %v1913_v61 }
  0x43   : > { %11534 = vst [vmem:[#allocation17_spill] sm:$0xff] %v8463_v50  ;;  %vm1789_vm6 = vcmp.ne.s32.totalorder %v1785_v54, %v8262_v10  ;;  %vm1790_vm7 = vcmp.ne.s32.totalorder %v1786_v55, %v8280_v19  ;;  %v1997_v23 = vunpack.c.l.b16 %v1915_v14  ;;  %v8479_v25 = vmax.f32 %v428_v39, 0.0 }
  0x44   : > { %11537 = vst [vmem:[#allocation18_spill] sm:$0xff] %v11536_v58  ;;  %vm8481_vm9 = vmpackc.low %vm1790_vm7, %vm1789_vm6  ;;  %v11539_v26 = vmov 0  ;;  %vm1803_vm10 = vcmp.ne.s32.totalorder %v1799_v0, %v8262_v10  ;;  %vm1804_vm12 = vcmp.ne.s32.totalorder %v1800_v7, %v8280_v19  ;;  %v7723_v27 = vpack.c.bf16 %v8461_v11, %v8459_v48 }
  0x45   : > { %11538 = vst [vmem:[#allocation19_spill] sm:$0xff] %v8479_v25  ;;  %v11540_v26 = vsel %vm8481_vm9, 4294967295, %v11539_v26  ;;  %v563_v30 = vadd.s32 192, %v8238_v3  ;;  %vm8491_vm13 = vmpackc.low %vm1804_vm12, %vm1803_vm10  ;;  %v11542_v32 = vmov 0  ;;  %v1914_v33 = vsel %vm8481_vm9, %v1072_v62, 0 }
  0x46   : > { %11541 = vst [vmem:[#allocation20_spill] sm:$0xff] %v11540_v26  ;;  %v11543_v32 = vsel %vm8491_vm13, 4294967295, %v11542_v32  ;;  %v7728_v12 = vpack.c.bf16 %v8479_v25, %v8463_v50  ;;  %v565_v34 = vadd.s32 208, %v8238_v3  ;;  %v7608_v37 = vunpack.c.l.bf16 %v7607_v20 }
  0x47   : > { %11544 = vst [vmem:[#allocation21_spill] sm:$0xff] %v11543_v32  ;;  %v1916_v38 = vsel %vm8491_vm13, %v1074_v22, 0  ;;  %v1996_v36 = vunpack.c.l.b16 %v1914_v33  ;;  %v743_v39 = vand.u32 15, %v563_v30  ;;  %v7609_v41 = vunpack.c.h.bf16 %v7607_v20  ;;  %v7540_v22 = vld [vmem:[%s11291_s4 + $0xb8] sm:$0xff] }
  0x48   : > { %7834 = vst [vmem:[#allocation2 + $0x60] sm:$0xff] %v7723_v27   ;;  %v1998_v42 = vunpack.c.l.b16 %v1916_v38  ;;  %v757_v43 = vand.u32 15, %v565_v34  ;;  %v7612_v53 = vunpack.c.l.bf16 %v7809_v31  ;;  %v368_v54 = vmul.f32 %v8243_v4, %v7608_v37  ;;  %3789 = vmatpush.bf16.msrb.mxu2 %v7540_v22 }
  0x49   : > { %7835 = vst [vmem:[#allocation2 + $0x68] sm:$0xff] %v7728_v12   ;;  %v2020_v55 = vpack.c.b16 %v1996_v36, %v1995_v16  ;;  %v1112_v61 = vadd.s32 4294967295, %v743_v39  ;;  %v369_v62 = vmul.f32 %v8243_v4, %v7609_v41  ;;  %v8505_v0 = vadd.s32 16, %v8238_v3 }
  0x4a   : > { %v2021_v7 = vpack.c.b16 %v1998_v42, %v1997_v23  ;;  %v1114_v14 = vadd.s32 4294967295, %v757_v43  ;;  %v7613_v20 = vunpack.c.h.bf16 %v7809_v31  ;;  %v7616_v27 = vunpack.c.l.bf16 %v8272_v13 }
  0x4b   : > { %v2102_v30 = vshrl.u32 %v2020_v55, 16  ;;  %v2105_v33 = vshll.u32 %v2020_v55, 16  ;;  %vm1144_vm15 = vcmp.ge.s32.totalorder %v1112_v61, 0  ;;  %v370_v16 = vmul.f32 %v8243_v4, %v7612_v53 }
  0x4c   : > { %v2111_v12 = vshrl.u32 %v2021_v7, 16  ;;  %v2114_v34 = vshll.u32 %v2021_v7, 16  ;;  %vm1146_vm0 = vcmp.ge.s32.totalorder %v1114_v14, 0  ;;  %vm1304_vm6 = vmpackc.low %vm1144_vm15, %vm1144_vm15  ;;  %v371_v23 = vmul.f32 %v8243_v4, %v7613_v20 }
  0x4d   : > { %v2104_v37 = vrot.slane %v2102_v30, 3  ;;  %v2107_v38 = vrot.slane %v2105_v33, 4  ;;  %vm1306_vm7 = vmpackc.low %vm1146_vm0, %vm1146_vm0  ;;  %v1336_v36 = vsel %vm1304_vm6, 65537, %v11313_v8  ;;  %v372_v31 = vmul.f32 %v8243_v4, %v7616_v27 }
  0x4e   : > { %v2113_v13 = vrot.slane %v2111_v12, 3  ;;  %v2116_v39 = vrot.slane %v2114_v34, 4  ;;  %v404_v41 = vadd.f32 %v8287_v24, %v368_v54  ;;  %v405_v42 = vadd.f32 %v8287_v24, %v369_v62 }
  0x4f   : > { %v8517_v43 = vor.u32 %v2107_v38, %v2104_v37  ;;  %v1338_v53 = vsel %vm1306_vm7, 65537, %v11313_v8  ;;  %v1587_v55 = vshll.u32 %v1336_v36, 16  ;;  %v406_v61 = vadd.f32 %v8287_v24, %v370_v16 }
  0x50   : > { %v8521_v7 = vor.u32 %v2116_v39, %v2113_v13  ;;  %v1591_v14 = vshrl.u32 %v1336_v36, 16  ;;  %v1607_v22 = vshll.u32 %v1338_v53, 16  ;;  %v1611_v20 = vshrl.u32 %v1338_v53, 16  ;;  %v1082_v18 = vld [vmem:[#allocation2 + $0x6c] sm:$0xf] }
  0x51   : > { %v1589_v30 = vrot.slane %v1587_v55, 5  ;;  %v407_v27 = vadd.f32 %v8287_v24, %v371_v23  ;;  %v408_v33 = vadd.f32 %v8287_v24, %v372_v31  ;;  %v436_v54 = vmax.f32 %v404_v41, 0.0 }
  0x52   : > { %v2118_v62 = vsel %vm11297_vm5, %v8517_v43, %v8521_v7  ;;  %v1593_v12 = vrot.slane %v1591_v14, 4  ;;  %v1609_v34 = vrot.slane %v1607_v22, 5  ;;  %v1613_v37 = vrot.slane %v1611_v20, 4 }
  0x53   : > { %2294 = vmatmul.bf16.vlgmr.msra.gmra.mxu2 %v2118_v62  ;;  %v1590_v16 = vsel %vm8337_vm8, %v8331_v52, %v1589_v30  ;;  %v8531_v38 = vmax.f32 %v405_v42, 0.0  ;;  %v8533_v36 = vmax.f32 %v406_v61, 0.0  ;;  %v8535_v23 = vmax.f32 %v407_v27, 0.0  ;;  %v1079_v61 = vld [vmem:[#allocation2 + $0x60] sm:$0xf] }
  0x54   : > { %v1594_v31 = vor.u32 %v1593_v12, %v1589_v30  ;;  %v1610_v13 = vsel %vm8337_vm8, %v8331_v52, %v1609_v34  ;;  %v1614_v39 = vor.u32 %v1613_v37, %v1609_v34  ;;  %v1834_v41 = vunpack.c.l.b16 %v1590_v16  ;;  %v1081_v27 = vld [vmem:[#allocation2 + $0x68] sm:$0xf] }
  0x55   : > { %v1835_v53 = vunpack.c.h.b16 %v1590_v16  ;;  %v1848_v55 = vunpack.c.l.b16 %v1610_v13  ;;  %v1849_v14 = vunpack.c.h.b16 %v1610_v13  ;;  %v8540_v22 = vmax.f32 %v408_v33, 0.0  ;;  %v1080_v16 = vld [vmem:[#allocation2 + $0x64] sm:$0xf] }
  0x56   : > { %v1595_v20 = vrot.slane %v1594_v31, 4  ;;  %v1615_v62 = vrot.slane %v1614_v39, 4  ;;  %vm1838_vm10 = vcmp.ne.s32.totalorder %v1834_v41, %v8262_v10  ;;  %v8543_v42 = vpack.c.bf16 %v436_v54, %v436_v54 }
  0x57   : > { %vm1839_vm12 = vcmp.ne.s32.totalorder %v1835_v53, %v8280_v19  ;;  %vm1852_vm15 = vcmp.ne.s32.totalorder %v1848_v55, %v8262_v10  ;;  %vm1853_vm0 = vcmp.ne.s32.totalorder %v1849_v14, %v8280_v19  ;;  %v7673_v30 = vpack.c.bf16 %v8533_v36, %v8531_v38  ;;  %v8569_v55 = vld [vmem:[%s8256_s8 + $0x28] sm:$0xff]  }
  0x58   : > { %v1600_v33 = vsel %vm8337_vm8, %v1595_v20, %v8293_v28  ;;  %v1620_v54 = vsel %vm8337_vm8, %v1615_v62, %v8293_v28  ;;  %vm8556_vm6 = vmpackc.low %vm1839_vm12, %vm1838_vm10  ;;  %v11545_v12 = vmov 0  ;;  %506 = vst [vmem:[#allocation2 + $0xc] sm:$0xf] %v8543_v42  ;;  %v7678_v34 = vpack.c.bf16 %v8540_v22, %v8535_v23 }
  0x59   : > { %v11546_v12 = vsel %vm8556_vm6, 4294967295, %v11545_v12  ;;  %v575_v37 = vand.u32 15, %v8238_v3  ;;  %v1841_v31 = vunpack.c.l.b16 %v1600_v33  ;;  %v1842_v13 = vunpack.c.h.b16 %v1600_v33  ;;  %vm8564_vm7 = vmpackc.low %vm1853_vm0, %vm1852_vm15  ;;  %7824 = vst [vmem:[#allocation2 + $0x10] sm:$0xff] %v7673_v30   ;;  %v7548_v33 = vld [vmem:[%s11291_s4 + $0xf8] sm:$0xff] }
  0x5a   : > { %11547 = vst [vmem:[#allocation22_spill] sm:$0xff] %v11546_v12  ;;  %v11548_v39 = vmov 0  ;;  %v1855_v41 = vunpack.c.l.b16 %v1620_v54  ;;  %v1856_v53 = vunpack.c.h.b16 %v1620_v54  ;;  %v1921_v14 = vsel %vm8556_vm6, %v1079_v61, 0  ;;  %v7532_v61 = vld [vmem:[%s11291_s4 + $0x78] sm:$0xff]  ;;  %4292 = vmatpush.bf16.msrb.mxu3 %v7548_v33 }
  0x5b   : > { %v11549_v39 = vsel %vm8564_vm7, 4294967295, %v11548_v39  ;;  %v1923_v20 = vsel %vm8564_vm7, %v1081_v27, 0  ;;  %7825 = vst [vmem:[#allocation2 + $0x18] sm:$0xff] %v7678_v34   ;;  %v589_v62 = vand.u32 15, %v8505_v0  ;;  %v1088_v1 = vadd.s32 4294967295, %v575_v37  ;;  %v7539_v0 = vld [vmem:[%s11291_s4 + $0xb0] sm:$0xff]  ;;  %2528 = vmatpush.bf16.msrb.mxu1 %v7532_v61 }
  0x5c   : > { %11550 = vst [vmem:[#allocation23_spill] sm:$0xff] %v11549_v39  ;;  %vm1845_vm10 = vcmp.ne.s32.totalorder %v1841_v31, %v8262_v10  ;;  %vm1846_vm12 = vcmp.ne.s32.totalorder %v1842_v13, %v8280_v19  ;;  %vm1859_vm15 = vcmp.ne.s32.totalorder %v1855_v41, %v8262_v10  ;;  %vm1860_vm0 = vcmp.ne.s32.totalorder %v1856_v53, %v8280_v19  ;;  %v7547_v34 = vld [vmem:[%s11291_s4 + $0xf0] sm:$0xff]  ;;  %v7556_v37 = vld [vmem:[%s11291_s4 + $0x138] sm:$0xff] }
  0x5d   : > { %vm8589_vm5 = vmpackc.low %vm1846_vm12, %vm1845_vm10  ;;  %v11551_v27 = vmov 0  ;;  %v2003_v30 = vunpack.c.l.b16 %v1921_v14  ;;  %v1090_v54 = vadd.s32 4294967295, %v589_v62  ;;  %vm1120_vm7 = vcmp.ge.s32.totalorder %v1088_v1, 0  ;;  %3790 = vmatpush.bf16.msrb.mxu2 %v7539_v0  ;;  %v7531_v1 = vld [vmem:[%s11291_s4 + $0x70] sm:$0xff]  ;;  %4574 = vmatpush.bf16.msrb.mxu0 %v7556_v37 }
  0x5e   : > { %v11552_v27 = vsel %vm8589_vm5, 4294967295, %v11551_v27  ;;  %vm8599_vm6 = vmpackc.low %vm1860_vm0, %vm1859_vm15  ;;  %v11554_v31 = vmov 0  ;;  %v1922_v13 = vsel %vm8589_vm5, %v1080_v16, 0  ;;  %v2005_v41 = vunpack.c.l.b16 %v1923_v20  ;;  %4293 = vmatpush.bf16.msrb.mxu3 %v7547_v34 }
  0x5f   : > { %11553 = vst [vmem:[#allocation24_spill] sm:$0xff] %v11552_v27  ;;  %v11555_v31 = vsel %vm8599_vm6, 4294967295, %v11554_v31  ;;  %v7625_v53 = vunpack.c.h.bf16 %v8276_v15  ;;  %v7628_v14 = vunpack.c.l.bf16 %v8569_v55  ;;  %v1924_v62 = vsel %vm8599_vm6, %v1082_v18, 0  ;;  %vm1280_vm12 = vmpackc.low %vm1120_vm7, %vm1120_vm7  ;;  %2529 = vmatpush.bf16.msrb.mxu1 %v7531_v1 }
  0x60   : > { %11556 = vst [vmem:[#allocation25_spill] sm:$0xff] %v11555_v31  ;;  %v2004_v33 = vunpack.c.l.b16 %v1922_v13  ;;  %vm1122_vm10 = vcmp.ge.s32.totalorder %v1090_v54, 0  ;;  %v2006_v29 = vunpack.c.l.b16 %v1924_v62  ;;  %v1312_v16 = vsel %vm1280_vm12, 65537, %v11313_v8 }
  0x61   : > { %vm1282_vm15 = vmpackc.low %vm1122_vm10, %vm1122_vm10  ;;  %v377_v20 = vmul.f32 %v8243_v4, %v7625_v53  ;;  %v1348_v25 = vshll.u32 %v1312_v16, 16  ;;  %v1351_v15 = vshrl.u32 %v1312_v16, 16  ;;  %v378_v18 = vmul.f32 %v8243_v4, %v7628_v14 }
  0x62   : > { %v2024_v61 = vpack.c.b16 %v2004_v33, %v2003_v30  ;;  %v1314_v0 = vsel %vm1282_vm15, 65537, %v11313_v8  ;;  %v2025_v50 = vpack.c.b16 %v2006_v29, %v2005_v41  ;;  %vm11557_vm10 = vsmask.f32 4352 }
  0x63   : > { %v1367_v11 = vshll.u32 %v1314_v0, 16  ;;  %v1371_v31 = vshrl.u32 %v1314_v0, 16  ;;  %v1350_v13 = vrot.slane %v1348_v25, 5  ;;  %v1353_v62 = vrot.slane %v1351_v15, 4  ;;  %v1055_v0 = vld [vmem:[#allocation2] sm:$0x8] }
  0x64   : > { %v2138_v54 = vshrl.u32 %v2024_v61, 16  ;;  %v2141_v37 = vshll.u32 %v2024_v61, 16  ;;  %v2147_v39 = vshrl.u32 %v2025_v50, 16  ;;  %v2150_v48 = vshll.u32 %v2025_v50, 16 }
  0x65   : > { %v1369_v27 = vrot.slane %v1367_v11, 5  ;;  %v1373_v53 = vrot.slane %v1371_v31, 4  ;;  %v1354_v8 = vor.u32 %v1353_v62, %v1350_v13  ;;  %v1666_v12 = vunpack.c.l.b16 %v1350_v13  ;;  %v1056_v62 = vld [vmem:[#allocation2 + $0x4] sm:$0xf] }
  0x66   : > { %v2140_v30 = vrot.slane %v2138_v54, 3  ;;  %v2143_v33 = vrot.slane %v2141_v37, 4  ;;  %v2149_v16 = vrot.slane %v2147_v39, 3  ;;  %v2152_v34 = vrot.slane %v2150_v48, 4 }
  0x67   : > { %v1370_v29 = vsel %vm8337_vm8, %v8331_v52, %v1369_v27  ;;  %v1374_v41 = vor.u32 %v1373_v53, %v1369_v27  ;;  %v1355_v14 = vrot.slane %v1354_v8, 4  ;;  %v1667_v25 = vunpack.c.h.b16 %v1350_v13 }
  0x68   : > { %v8619_v1 = vor.u32 %v2143_v33, %v2140_v30  ;;  %vm1670_vm7 = vcmp.ne.s32.totalorder %v1666_v12, %v8262_v10  ;;  %v8622_v50 = vor.u32 %v2152_v34, %v2149_v16  ;;  %v1680_v31 = vunpack.c.l.b16 %v1370_v29  ;;  %v1057_v12 = vld [vmem:[#allocation2 + $0x8] sm:$0xf]  ;;  %v1058_v30 = vld [vmem:[#allocation2 + $0xc] sm:$0xf] }
  0x69   : > { %v1375_v11 = vrot.slane %v1374_v41, 4  ;;  %v1681_v61 = vunpack.c.h.b16 %v1370_v29  ;;  %v1360_v48 = vsel %vm8337_vm8, %v1355_v14, %v8293_v28  ;;  %vm1671_vm0 = vcmp.ne.s32.totalorder %v1667_v25, %v8280_v19 }
  0x6a   : > { %v413_v39 = vadd.f32 %v8287_v24, %v377_v20  ;;  %v551_v27 = vadd.s32 96, %v8238_v3  ;;  %v2154_v8 = vsel %vm11557_vm10, %v8619_v1, %v8622_v50  ;;  %vm8636_vm12 = vmpackc.low %vm1671_vm0, %vm1670_vm7  ;;  %v11558_v54 = vmov 0 }
  0x6b   : > { %v1380_v15 = vsel %vm8337_vm8, %v1375_v11, %v8293_v28  ;;  %v11559_v54 = vsel %vm8636_vm12, 4294967295, %v11558_v54  ;;  %v1673_v37 = vunpack.c.l.b16 %v1360_v48  ;;  %v1674_v13 = vunpack.c.h.b16 %v1360_v48  ;;  %2314 = vmatmul.bf16.vlgmr.msra.gmra.mxu3 %v2154_v8 }
  0x6c   : > { %11560 = vst [vmem:[#allocation26_spill] sm:$0xff] %v11559_v54  ;;  %vm1684_vm15 = vcmp.ne.s32.totalorder %v1680_v31, %v8262_v10  ;;  %vm1685_vm6 = vcmp.ne.s32.totalorder %v1681_v61, %v8280_v19  ;;  %v1687_v20 = vunpack.c.l.b16 %v1380_v15  ;;  %v1688_v53 = vunpack.c.h.b16 %v1380_v15  ;;  %v8667_v61 = vld [vmem:[%s8256_s8 + $0x48] sm:$0xff]   ;;  %v9877_v54 = vld [vmem:[%s9328_s29 + $0x10] sm:$0xff]  }
  0x6d   : > { %vm1677_vm10 = vcmp.ne.s32.totalorder %v1673_v37, %v8262_v10  ;;  %vm1678_vm5 = vcmp.ne.s32.totalorder %v1674_v13, %v8280_v19  ;;  %vm8644_vm7 = vmpackc.low %vm1685_vm6, %vm1684_vm15  ;;  %v11561_v33 = vmov 0  ;;  %v1897_v16 = vsel %vm8636_vm12, %v1055_v0, 0 }
  0x6e   : > { %v11562_v33 = vsel %vm8644_vm7, 4294967295, %v11561_v33  ;;  %v414_v34 = vadd.f32 %v8287_v24, %v378_v18  ;;  %vm8651_vm0 = vmpackc.low %vm1678_vm5, %vm1677_vm10  ;;  %v11564_v29 = vmov 0  ;;  %vm1691_vm13 = vcmp.ne.s32.totalorder %v1687_v20, %v8262_v10 }
  0x6f   : > { %11563 = vst [vmem:[#allocation27_spill] sm:$0xff] %v11562_v33  ;;  %v11565_v29 = vsel %vm8651_vm0, 4294967295, %v11564_v29  ;;  %vm1692_vm3 = vcmp.ne.s32.totalorder %v1688_v53, %v8280_v19  ;;  %v1899_v41 = vsel %vm8644_vm7, %v1057_v12, 0  ;;  %v1979_v14 = vunpack.c.l.b16 %v1897_v16  ;;  %v2651_v33 = vld [vmem:[#allocation2 + $0xc] sm:$0xf] }
  0x70   : > { %11566 = vst [vmem:[#allocation28_spill] sm:$0xff] %v11565_v29  ;;  %vm8659_vm6 = vmpackc.low %vm1692_vm3, %vm1691_vm13  ;;  %v11567_v25 = vmov 0  ;;  %v1898_v11 = vsel %vm8651_vm0, %v1056_v62, 0  ;;  %v1981_v18 = vunpack.c.l.b16 %v1899_v41  ;;  %v7641_v31 = vunpack.c.h.bf16 %v8324_v49 }
  0x71   : > { %v11568_v25 = vsel %vm8659_vm6, 4294967295, %v11567_v25  ;;  %v1900_v0 = vsel %vm8659_vm6, %v1058_v30, 0  ;;  %v1980_v48 = vunpack.c.l.b16 %v1898_v11  ;;  %v8671_v8 = vmax.f32 %v413_v39, 0.0 }
  0x72   : > { %11569 = vst [vmem:[#allocation29_spill] sm:$0xff] %v11568_v25  ;;  %v1982_v12 = vunpack.c.l.b16 %v1900_v0  ;;  %v8673_v37 = vmax.f32 %v414_v34, 0.0  ;;  %v659_v13 = vand.u32 15, %v551_v27  ;;  %v7644_v20 = vunpack.c.l.bf16 %v8667_v61 }
  0x73   : > { %v2012_v15 = vpack.c.b16 %v1980_v48, %v1979_v14  ;;  %v385_v53 = vmul.f32 %v8243_v4, %v7641_v31  ;;  %v559_v49 = vadd.s32 160, %v8238_v3  ;;  %v7657_v16 = vunpack.c.h.bf16 %v8418_v21  ;;  %v8684_v48 = vld [vmem:[%s8256_s8 + $0x68] sm:$0xff]  }
  0x74   : > { %11570 = vst [vmem:[#allocation30_spill] sm:$0xff] %v8673_v37  ;;  %v2013_v62 = vpack.c.b16 %v1982_v12, %v1981_v18  ;;  %v7693_v39 = vpack.c.bf16 %v8673_v37, %v8671_v8  ;;  %v1100_v11 = vadd.s32 4294967295, %v659_v13  ;;  %v386_v34 = vmul.f32 %v8243_v4, %v7644_v20 }
  0x75   : > { %v2031_v41 = vshrl.u32 %v2012_v15, 16  ;;  %v2034_v30 = vshll.u32 %v2012_v15, 16  ;;  %v421_v27 = vadd.f32 %v8287_v24, %v385_v53  ;;  %v715_v12 = vand.u32 15, %v559_v49 }
  0x76   : > { %v2039_v14 = vshrl.u32 %v2013_v62, 16  ;;  %v2042_v0 = vshll.u32 %v2013_v62, 16  ;;  %7828 = vst [vmem:[#allocation2 + $0x30] sm:$0xff] %v7693_v39   ;;  %vm1132_vm5 = vcmp.ge.s32.totalorder %v1100_v11, 0  ;;  %v422_v15 = vadd.f32 %v8287_v24, %v386_v34 }
  0x77   : > { %v2033_v18 = vrot.slane %v2031_v41, 3  ;;  %v2036_v31 = vrot.slane %v2034_v30, 4  ;;  %vm1292_vm3 = vmpackc.low %vm1132_vm5, %vm1132_vm5  ;;  %v8687_v32 = vmax.f32 %v421_v27, 0.0  ;;  %v11572_v62 = vmov 0  }
  0x78   : > { %v2041_v21 = vrot.slane %v2039_v14, 3  ;;  %v2044_v17 = vrot.slane %v2042_v0, 4  ;;  %v1324_v58 = vsel %vm1292_vm3, 65537, %v11572_v62  ;;  %v1108_v20 = vadd.s32 4294967295, %v715_v12 }
  0x79   : > { %11571 = vst [vmem:[#allocation31_spill] sm:$0xff] %v8687_v32  ;;  %v2037_v13 = vor.u32 %v2036_v31, %v2033_v18  ;;  %v7660_v53 = vunpack.c.l.bf16 %v8684_v48  ;;  %v1467_v41 = vshll.u32 %v1324_v58, 16  ;;  %v1471_v30 = vshrl.u32 %v1324_v58, 16 }
  0x7a   : > { %v8691_v6 = vor.u32 %v2044_v17, %v2041_v21  ;;  %v8693_v39 = vmax.f32 %v422_v15, 0.0  ;;  %vm1140_vm13 = vcmp.ge.s32.totalorder %v1108_v20, 0  ;;  %v393_v49 = vmul.f32 %v8243_v4, %v7657_v16 }
  0x7b   : > { %v394_v11 = vmul.f32 %v8243_v4, %v7660_v53  ;;  %v567_v14 = vadd.s32 224, %v8238_v3  ;;  %vm11574_vm15 = vsmask.f32 4352  ;;  %v1469_v34 = vrot.slane %v1467_v41, 5  ;;  %vm1300_vm10 = vmpackc.low %vm1140_vm13, %vm1140_vm13 }
  0x7c   : > { %11573 = vst [vmem:[#allocation32_spill] sm:$0xff] %v8693_v39  ;;  %v2046_v0 = vsel %vm11574_vm15, %v2037_v13, %v8691_v6  ;;  %v1473_v27 = vrot.slane %v1471_v30, 4  ;;  %v7713_v17 = vpack.c.bf16 %v8693_v39, %v8687_v32  ;;  %v1332_v58 = vsel %vm1300_vm10, 65537, %v11572_v62 }
  0x7d   : > { %2254 = vmatmul.bf16.vlgmr.msra.gmra.mxu0 %v2046_v0  ;;  %v429_v18 = vadd.f32 %v8287_v24, %v393_v49  ;;  %v430_v16 = vadd.f32 %v8287_v24, %v394_v11  ;;  %v771_v31 = vand.u32 15, %v567_v14  ;;  %v1470_v4 = vsel %vm8337_vm8, %v8331_v52, %v1469_v34  ;;  %v1067_v13 = vld [vmem:[#allocation2 + $0x30] sm:$0xf]  ;;  %v7538_v11 = vld [vmem:[%s11291_s4 + $0xa8] sm:$0xff] }
  0x7e   : > { %v1474_v12 = vor.u32 %v1473_v27, %v1469_v34  ;;  %7832 = vst [vmem:[#allocation2 + $0x50] sm:$0xff] %v7713_v17   ;;  %v1547_v21 = vshll.u32 %v1332_v58, 16  ;;  %v1750_v20 = vunpack.c.l.b16 %v1470_v4  ;;  %v1751_v53 = vunpack.c.h.b16 %v1470_v4  ;;  %3791 = vmatpush.bf16.msrb.mxu2 %v7538_v11 }
  0x7f   : > { %v1551_v41 = vshrl.u32 %v1332_v58, 16  ;;  %v8709_v30 = vmax.f32 %v429_v18, 0.0  ;;  %v8711_v39 = vmax.f32 %v430_v16, 0.0  ;;  %v1116_v24 = vadd.s32 4294967295, %v771_v31 }
  0x80   : > { %v1475_v0 = vrot.slane %v1474_v12, 4  ;;  %v1549_v49 = vrot.slane %v1547_v21, 5  ;;  %vm1754_vm5 = vcmp.ne.s32.totalorder %v1750_v20, %v8262_v10  ;;  %vm1755_vm3 = vcmp.ne.s32.totalorder %v1751_v53, %v8280_v19  ;;  %v1068_v21 = vld [vmem:[#allocation2 + $0x34] sm:$0xf] }
  0x81   : > { %11575 = vst [vmem:[#allocation33_spill] sm:$0xff] %v8709_v30  ;;  %v1553_v14 = vrot.slane %v1551_v41, 4  ;;  %v543_v34 = vadd.s32 32, %v8238_v3  ;;  %vm8722_vm13 = vmpackc.low %vm1755_vm3, %vm1754_vm5  ;;  %v11577_v17 = vmov 0  ;;  %v7733_v18 = vpack.c.bf16 %v8711_v39, %v8709_v30 }
  0x82   : > { %11576 = vst [vmem:[#allocation34_spill] sm:$0xff] %v8711_v39  ;;  %v1480_v27 = vsel %vm8337_vm8, %v1475_v0, %v8293_v28  ;;  %v11578_v17 = vsel %vm8722_vm13, 4294967295, %v11577_v17  ;;  %v1550_v58 = vsel %vm8337_vm8, %v8331_v52, %v1549_v49  ;;  %vm1148_vm15 = vcmp.ge.s32.totalorder %v1116_v24, 0 }
  0x83   : > { %11579 = vst [vmem:[#allocation35_spill] sm:$0xff] %v11578_v17  ;;  %v1757_v16 = vunpack.c.l.b16 %v1480_v27  ;;  %v1758_v31 = vunpack.c.h.b16 %v1480_v27  ;;  %v1909_v4 = vsel %vm8722_vm13, %v1067_v13, 0  ;;  %v1554_v12 = vor.u32 %v1553_v14, %v1549_v49  ;;  %vm1308_vm10 = vmpackc.low %vm1148_vm15, %vm1148_vm15 }
  0x84   : > { %v1991_v20 = vunpack.c.l.b16 %v1909_v4  ;;  %v1806_v53 = vunpack.c.l.b16 %v1550_v58  ;;  %v1807_v41 = vunpack.c.h.b16 %v1550_v58  ;;  %7836 = vst [vmem:[#allocation2 + $0x70] sm:$0xff] %v7733_v18   ;;  %v1340_v0 = vsel %vm1308_vm10, 65537, %v11572_v62 }
  0x85   : > { %vm1761_vm5 = vcmp.ne.s32.totalorder %v1757_v16, %v8262_v10  ;;  %vm1762_vm3 = vcmp.ne.s32.totalorder %v1758_v31, %v8280_v19  ;;  %v1075_v24 = vld [vmem:[#allocation2 + $0x50] sm:$0xf]  ;;  %v1555_v11 = vrot.slane %v1554_v12, 4  ;;  %v1627_v27 = vshll.u32 %v1340_v0, 16 }
  0x86   : > { %vm8736_vm9 = vmpackc.low %vm1762_vm3, %vm1761_vm5  ;;  %v11580_v15 = vmov 0  ;;  %vm1810_vm15 = vcmp.ne.s32.totalorder %v1806_v53, %v8262_v10  ;;  %vm1811_vm2 = vcmp.ne.s32.totalorder %v1807_v41, %v8280_v19  ;;  %v1631_v13 = vshrl.u32 %v1340_v0, 16  ;;  %v8055_v31 = vld [vmem:[%s8256_s8 + $0x30] sm:$0xff]   ;;  %v7530_v0 = vld [vmem:[%s11291_s4 + $0x68] sm:$0xff] }
  0x87   : > { %v11581_v15 = vsel %vm8736_vm9, 4294967295, %v11580_v15  ;;  %v603_v49 = vand.u32 15, %v543_v34  ;;  %v1910_v14 = vsel %vm8736_vm9, %v1068_v21, 0  ;;  %v1560_v58 = vsel %vm8337_vm8, %v1555_v11, %v8293_v28  ;;  %vm8747_vm10 = vmpackc.low %vm1811_vm2, %vm1810_vm15  ;;  %v7546_v21 = vld [vmem:[%s11291_s4 + $0xe8] sm:$0xff]  ;;  %v7555_v41 = vld [vmem:[%s11291_s4 + $0x130] sm:$0xff]  ;;  %2530 = vmatpush.bf16.msrb.mxu1 %v7530_v0 }
  0x88   : > { %11582 = vst [vmem:[#allocation36_spill] sm:$0xff] %v11581_v15  ;;  %v11583_v18 = vmov 0  ;;  %v1629_v16 = vrot.slane %v1627_v27, 5  ;;  %v7632_v4 = vunpack.c.l.bf16 %v8055_v31  ;;  %v1992_v12 = vunpack.c.l.b16 %v1910_v14  ;;  %v1076_v11 = vld [vmem:[#allocation2 + $0x54] sm:$0xf]  ;;  %v7537_v31 = vld [vmem:[%s11291_s4 + $0xa0] sm:$0xff]  ;;  %4294 = vmatpush.bf16.msrb.mxu3 %v7546_v21  ;;  %4575 = vmatpush.bf16.msrb.mxu0 %v7555_v41 }
  0x89   : > { %v11584_v18 = vsel %vm8747_vm10, 4294967295, %v11583_v18  ;;  %v1813_v53 = vunpack.c.l.b16 %v1560_v58  ;;  %v1814_v39 = vunpack.c.h.b16 %v1560_v58  ;;  %v1917_v34 = vsel %vm8747_vm10, %v1075_v24, 0  ;;  %3792 = vmatpush.bf16.msrb.mxu2 %v7537_v31 }
  0x8a   : > { %11585 = vst [vmem:[#allocation37_spill] sm:$0xff] %v11584_v18  ;;  %v1999_v27 = vunpack.c.l.b16 %v1917_v34  ;;  %v1630_v14 = vsel %vm8337_vm8, %v8331_v52, %v1629_v16  ;;  %v1633_v58 = vrot.slane %v1631_v13, 4  ;;  %v1092_v24 = vadd.s32 4294967295, %v603_v49  ;;  %v7545_v34 = vld [vmem:[%s11291_s4 + $0xe0] sm:$0xff]  ;;  %v7554_v13 = vld [vmem:[%s11291_s4 + $0x128] sm:$0xff] }
  0x8b   : > { %v2018_v30 = vpack.c.b16 %v1992_v12, %v1991_v20  ;;  %vm1817_vm2 = vcmp.ne.s32.totalorder %v1813_v53, %v8262_v10  ;;  %vm1818_vm5 = vcmp.ne.s32.totalorder %v1814_v39, %v8280_v19  ;;  %v1862_v32 = vunpack.c.l.b16 %v1630_v14  ;;  %v7529_v39 = vld [vmem:[%s11291_s4 + $0x60] sm:$0xff]  ;;  %v1083_v0 = vld [vmem:[#allocation2 + $0x70] sm:$0xf] }
  0x8c   : > { %vm8777_vm3 = vmpackc.low %vm1818_vm5, %vm1817_vm2  ;;  %v11586_v49 = vmov 0  ;;  %v1634_v20 = vor.u32 %v1633_v58, %v1629_v16  ;;  %v1863_v12 = vunpack.c.h.b16 %v1630_v14  ;;  %vm1124_vm15 = vcmp.ge.s32.totalorder %v1092_v24, 0  ;;  %v8787_v53 = vld [vmem:[%s11289_s2] ss:$0 sm:$0xff]  ;;  %4295 = vmatpush.bf16.msrb.mxu3 %v7545_v34  ;;  %4576 = vmatpush.bf16.msrb.mxu0 %v7554_v13  ;;  %v1084_v34 = vld [vmem:[#allocation2 + $0x74] sm:$0xf] }
  0x8d   : > { %v11587_v49 = vsel %vm8777_vm3, 4294967295, %v11586_v49  ;;  %v11589_v21 = vunpack.c.h.bf16 %v8569_v55  ;;  %v2084_v18 = vshrl.u32 %v2018_v30, 16  ;;  %v2087_v5 = vshll.u32 %v2018_v30, 16  ;;  %vm1284_vm5 = vmpackc.low %vm1124_vm15, %vm1124_vm15  ;;  %2531 = vmatpush.bf16.msrb.mxu1 %v7529_v39 }
  0x8e   : > { %11588 = vst [vmem:[#allocation38_spill] sm:$0xff] %v11587_v49  ;;  %v1918_v16 = vsel %vm8777_vm3, %v1076_v11, 0  ;;  %vm1866_vm2 = vcmp.ne.s32.totalorder %v1862_v32, %v8262_v10  ;;  %v1635_v58 = vrot.slane %v1634_v20, 4  ;;  %vm1867_vm10 = vcmp.ne.s32.totalorder %v1863_v12, %v8280_v19 }
  0x8f   : > { %v379_v41 = vmul.f32 %v8787_v53, %v11589_v21  ;;  %v2000_v14 = vunpack.c.l.b16 %v1918_v16  ;;  %v1316_v24 = vsel %vm1284_vm5, 65537, %v11572_v62  ;;  %v2086_v31 = vrot.slane %v2084_v18, 3  ;;  %vm8797_vm9 = vmpackc.low %vm1867_vm10, %vm1866_vm2 }
  0x90   : > { %v2089_v57 = vrot.slane %v2087_v5, 4  ;;  %v11590_v55 = vmov 0  ;;  %v1387_v30 = vshll.u32 %v1316_v24, 16  ;;  %v1391_v21 = vshrl.u32 %v1316_v24, 16 }
  0x91   : > { %v11591_v55 = vsel %vm8797_vm9, 4294967295, %v11590_v55  ;;  %v2022_v11 = vpack.c.b16 %v2000_v14, %v1999_v27  ;;  %v1640_v32 = vsel %vm8337_vm8, %v1635_v58, %v8293_v28  ;;  %v1925_v20 = vsel %vm8797_vm9, %v1083_v0, 0 }
  0x92   : > { %11592 = vst [vmem:[#allocation39_spill] sm:$0xff] %v11591_v55  ;;  %v380_v18 = vmul.f32 %v8787_v53, %v7632_v4  ;;  %v8807_v5 = vor.u32 %v2089_v57, %v2086_v31  ;;  %v1869_v12 = vunpack.c.l.b16 %v1640_v32  ;;  %v1870_v16 = vunpack.c.h.b16 %v1640_v32  ;;  %v8817_v57 = vld [vmem:[%s11290_s3] ss:$0 sm:$0xff] }
  0x93   : > { %v2007_v49 = vunpack.c.l.b16 %v1925_v20  ;;  %v2120_v26 = vshrl.u32 %v2022_v11, 16  ;;  %v2123_v24 = vshll.u32 %v2022_v11, 16  ;;  %v1389_v13 = vrot.slane %v1387_v30, 5  ;;  %v1059_v20 = vld [vmem:[#allocation2 + $0x10] sm:$0xf] }
  0x94   : > { %v1393_v27 = vrot.slane %v1391_v21, 4  ;;  %vm11593_vm10 = vsmask.f32 4352  ;;  %vm1873_vm15 = vcmp.ne.s32.totalorder %v1869_v12, %v8262_v10  ;;  %vm1874_vm2 = vcmp.ne.s32.totalorder %v1870_v16, %v8280_v19 }
  0x95   : > { %v2091_v14 = vsel %vm11593_vm10, %v8432_v2, %v8807_v5  ;;  %v415_v4 = vadd.f32 %v8817_v57, %v379_v41  ;;  %v2122_v39 = vrot.slane %v2120_v26, 3  ;;  %v2125_v0 = vrot.slane %v2123_v24, 4  ;;  %vm8820_vm5 = vmpackc.low %vm1874_vm2, %vm1873_vm15 }
  0x96   : > { %2279 = vmatmul.bf16.gmra.mxu1 %v2091_v14  ;;  %v11594_v58 = vmov 0  ;;  %v1390_v2 = vsel %vm8337_vm8, %v8331_v52, %v1389_v13  ;;  %v1394_v31 = vor.u32 %v1393_v27, %v1389_v13  ;;  %v1926_v30 = vsel %vm8820_vm5, %v1084_v34, 0 }
  0x97   : > { %v11595_v58 = vsel %vm8820_vm5, 4294967295, %v11594_v58  ;;  %v1694_v21 = vunpack.c.l.b16 %v1390_v2  ;;  %v1695_v11 = vunpack.c.h.b16 %v1390_v2  ;;  %v416_v32 = vadd.f32 %v8817_v57, %v380_v18 }
  0x98   : > { %11596 = vst [vmem:[#allocation40_spill] sm:$0xff] %v11595_v58  ;;  %v8830_v41 = vor.u32 %v2125_v0, %v2122_v39  ;;  %v2008_v26 = vunpack.c.l.b16 %v1926_v30  ;;  %v1395_v12 = vrot.slane %v1394_v31, 4  ;;  %v8832_v16 = vmax.f32 %v415_v4, 0.0  ;;  %v1060_v30 = vld [vmem:[#allocation2 + $0x14] sm:$0xf] }
  0x99   : > { %vm1698_vm10 = vcmp.ne.s32.totalorder %v1694_v21, %v8262_v10  ;;  %vm1699_vm15 = vcmp.ne.s32.totalorder %v1695_v11, %v8280_v19  ;;  %v8836_v24 = vmax.f32 %v416_v32, 0.0  ;;  %v553_v13 = vadd.s32 112, %v8238_v3 }
  0x9a   : > { %11597 = vst [vmem:[#allocation41_spill] sm:$0xff] %v8832_v16  ;;  %vm11599_vm2 = vsmask.f32 4352  ;;  %v2026_v18 = vpack.c.b16 %v2008_v26, %v2007_v49  ;;  %v1400_v27 = vsel %vm8337_vm8, %v1395_v12, %v8293_v28  ;;  %vm8845_vm5 = vmpackc.low %vm1699_vm15, %vm1698_vm10  ;;  %v11600_v14 = vmov 0 }
  0x9b   : > { %11598 = vst [vmem:[#allocation42_spill] sm:$0xff] %v8836_v24  ;;  %v2127_v34 = vsel %vm11599_vm2, %v8521_v7, %v8830_v41  ;;  %v11601_v14 = vsel %vm8845_vm5, 4294967295, %v11600_v14  ;;  %v7645_v4 = vunpack.c.h.bf16 %v8667_v61  ;;  %v1701_v39 = vunpack.c.l.b16 %v1400_v27  ;;  %v8058_v61 = vld [vmem:[%s8256_s8 + $0x50] sm:$0xff]  }
  0x9c   : > { %11602 = vst [vmem:[#allocation43_spill] sm:$0xff] %v11601_v14  ;;  %2299 = vmatmul.bf16.gmra.mxu2 %v2127_v34  ;;  %v1702_v0 = vunpack.c.h.b16 %v1400_v27  ;;  %v1901_v2 = vsel %vm8845_vm5, %v1059_v20, 0  ;;  %v7698_v7 = vpack.c.bf16 %v8836_v24, %v8832_v16  ;;  %v2156_v49 = vshrl.u32 %v2026_v18, 16 }
  0x9d   : > { %v2159_v31 = vshll.u32 %v2026_v18, 16  ;;  %v1983_v21 = vunpack.c.l.b16 %v1901_v2  ;;  %v673_v11 = vand.u32 15, %v553_v13  ;;  %vm1705_vm10 = vcmp.ne.s32.totalorder %v1701_v39, %v8262_v10  ;;  %v8864_v2 = vld [vmem:[%s8256_s8 + $0x70] sm:$0xff]  }
  0x9e   : > { %vm1706_vm15 = vcmp.ne.s32.totalorder %v1702_v0, %v8280_v19  ;;  %7829 = vst [vmem:[#allocation2 + $0x38] sm:$0xff] %v7698_v7   ;;  %v7648_v32 = vunpack.c.l.bf16 %v8058_v61  ;;  %v387_v26 = vmul.f32 %v8787_v53, %v7645_v4  ;;  %v2158_v12 = vrot.slane %v2156_v49, 3 }
  0x9f   : > { %v2161_v20 = vrot.slane %v2159_v31, 4  ;;  %vm8858_vm2 = vmpackc.low %vm1706_vm15, %vm1705_vm10  ;;  %v11603_v34 = vmov 0  ;;  %v1102_v27 = vadd.s32 4294967295, %v673_v11  ;;  %v561_v18 = vadd.s32 176, %v8238_v3 }
  0xa0   : > { %v11604_v34 = vsel %vm8858_vm2, 4294967295, %v11603_v34  ;;  %v1902_v13 = vsel %vm8858_vm2, %v1060_v30, 0  ;;  %v388_v39 = vmul.f32 %v8787_v53, %v7648_v32  ;;  %v423_v0 = vadd.f32 %v8817_v57, %v387_v26 }
  0xa1   : > { %11605 = vst [vmem:[#allocation44_spill] sm:$0xff] %v11604_v34  ;;  %v7661_v4 = vunpack.c.h.bf16 %v8684_v48  ;;  %v8871_v7 = vor.u32 %v2161_v20, %v2158_v12  ;;  %v1984_v49 = vunpack.c.l.b16 %v1902_v13  ;;  %vm1134_vm10 = vcmp.ge.s32.totalorder %v1102_v27, 0  ;;  %v9653_v34 = vld [vmem:[%s9328_s29 + $0x8] sm:$0xff]  }
  0xa2   : > { %v729_v31 = vand.u32 15, %v561_v18  ;;  %vm1294_vm15 = vmpackc.low %vm1134_vm10, %vm1134_vm10  ;;  %v424_v11 = vadd.f32 %v8817_v57, %v388_v39  ;;  %v8874_v61 = vmax.f32 %v423_v0, 0.0  ;;  %v7664_v58 = vunpack.c.l.bf16 %v8864_v2 }
  0xa3   : > { %v395_v30 = vmul.f32 %v8787_v53, %v7661_v4  ;;  %vm11607_vm9 = vsmask.f32 4352  ;;  %v2014_v26 = vpack.c.b16 %v1984_v49, %v1983_v21  ;;  %v1326_v48 = vsel %vm1294_vm15, 65537, %v11572_v62 }
  0xa4   : > { %11606 = vst [vmem:[#allocation45_spill] sm:$0xff] %v8874_v61  ;;  %v2163_v32 = vsel %vm11607_vm9, %v8622_v50, %v8871_v7  ;;  %v1110_v12 = vadd.s32 4294967295, %v729_v31  ;;  %v1487_v20 = vshll.u32 %v1326_v48, 16  ;;  %v1491_v27 = vshrl.u32 %v1326_v48, 16 }
  0xa5   : > { %2319 = vmatmul.bf16.gmra.mxu3 %v2163_v32  ;;  %v8882_v18 = vmax.f32 %v424_v11, 0.0  ;;  %v396_v13 = vmul.f32 %v8787_v53, %v7664_v58  ;;  %v2048_v39 = vshrl.u32 %v2014_v26, 16  ;;  %v2051_v0 = vshll.u32 %v2014_v26, 16 }
  0xa6   : > { %v431_v55 = vadd.f32 %v8817_v57, %v395_v30  ;;  %v7665_v4 = vunpack.c.h.bf16 %v8864_v2  ;;  %v1489_v24 = vrot.slane %v1487_v20, 5  ;;  %v1493_v44 = vrot.slane %v1491_v27, 4  ;;  %v1069_v27 = vld [vmem:[#allocation2 + $0x38] sm:$0xf] }
  0xa7   : > { %11608 = vst [vmem:[#allocation46_spill] sm:$0xff] %v8882_v18  ;;  %v7718_v50 = vpack.c.bf16 %v8882_v18, %v8874_v61  ;;  %vm1142_vm9 = vcmp.ge.s32.totalorder %v1110_v12, 0  ;;  %v2050_v21 = vrot.slane %v2048_v39, 3  ;;  %v2053_v49 = vrot.slane %v2051_v0, 4 }
  0xa8   : > { %vm1302_vm10 = vmpackc.low %vm1142_vm9, %vm1142_vm9  ;;  %v432_v31 = vadd.f32 %v8817_v57, %v396_v13  ;;  %v8890_v11 = vmax.f32 %v431_v55, 0.0  ;;  %v1490_v58 = vsel %vm8337_vm8, %v8331_v52, %v1489_v24  ;;  %v1494_v30 = vor.u32 %v1493_v44, %v1489_v24 }
  0xa9   : > { %7833 = vst [vmem:[#allocation2 + $0x58] sm:$0xff] %v7718_v50   ;;  %v1334_v2 = vsel %vm1302_vm10, 65537, %v11572_v62  ;;  %v569_v32 = vadd.s32 240, %v8238_v3  ;;  %v8897_v26 = vor.u32 %v2053_v49, %v2050_v21  ;;  %v1764_v48 = vunpack.c.l.b16 %v1490_v58 }
  0xaa   : > { %11609 = vst [vmem:[#allocation47_spill] sm:$0xff] %v8890_v11  ;;  %v1765_v12 = vunpack.c.h.b16 %v1490_v58  ;;  %v1567_v20 = vshll.u32 %v1334_v2, 16  ;;  %v1495_v39 = vrot.slane %v1494_v30, 4  ;;  %v1571_v13 = vshrl.u32 %v1334_v2, 16 }
  0xab   : > { %v8899_v55 = vmax.f32 %v432_v31, 0.0  ;;  %v785_v0 = vand.u32 15, %v569_v32  ;;  %vm11611_vm15 = vsmask.f32 4352  ;;  %vm1768_vm9 = vcmp.ne.s32.totalorder %v1764_v48, %v8262_v10  ;;  %v7823_v48 = vld [vmem:[%s8256_s8 + $0x78] sm:$0xff]  }
  0xac   : > { %v2055_v44 = vsel %vm11611_vm15, %v8691_v6, %v8897_v26  ;;  %vm1769_vm10 = vcmp.ne.s32.totalorder %v1765_v12, %v8280_v19  ;;  %v1569_v24 = vrot.slane %v1567_v20, 5  ;;  %v1500_v50 = vsel %vm8337_vm8, %v1495_v39, %v8293_v28  ;;  %v1070_v12 = vld [vmem:[#allocation2 + $0x3c] sm:$0xf] }
  0xad   : > { %11610 = vst [vmem:[#allocation48_spill] sm:$0xff] %v8899_v55  ;;  %2259 = vmatmul.bf16.gmra.mxu0 %v2055_v44  ;;  %vm8909_vm3 = vmpackc.low %vm1769_vm10, %vm1768_vm9  ;;  %v11612_v21 = vmov 0  ;;  %v1573_v49 = vrot.slane %v1571_v13, 4  ;;  %v7738_v31 = vpack.c.bf16 %v8899_v55, %v8890_v11  ;;  %v1118_v58 = vadd.s32 4294967295, %v785_v0  ;;  %v7536_v13 = vld [vmem:[%s11291_s4 + $0x98] sm:$0xff] }
  0xae   : > { %v11613_v21 = vsel %vm8909_vm3, 4294967295, %v11612_v21  ;;  %v1771_v6 = vunpack.c.l.b16 %v1500_v50  ;;  %v1772_v30 = vunpack.c.h.b16 %v1500_v50  ;;  %v1911_v2 = vsel %vm8909_vm3, %v1069_v27, 0  ;;  %3793 = vmatpush.bf16.msrb.mxu2 %v7536_v13 }
  0xaf   : > { %11614 = vst [vmem:[#allocation49_spill] sm:$0xff] %v11613_v21  ;;  %v1570_v32 = vsel %vm8337_vm8, %v8331_v52, %v1569_v24  ;;  %v1993_v20 = vunpack.c.l.b16 %v1911_v2  ;;  %v1574_v39 = vor.u32 %v1573_v49, %v1569_v24  ;;  %vm1150_vm10 = vcmp.ge.s32.totalorder %v1118_v58, 0 }
  0xb0   : > { %v1820_v44 = vunpack.c.l.b16 %v1570_v32  ;;  %v1821_v18 = vunpack.c.h.b16 %v1570_v32  ;;  %7837 = vst [vmem:[#allocation2 + $0x78] sm:$0xff] %v7738_v31   ;;  %vm1775_vm15 = vcmp.ne.s32.totalorder %v1771_v6, %v8262_v10  ;;  %vm1776_vm9 = vcmp.ne.s32.totalorder %v1772_v30, %v8280_v19  ;;  %v1077_v27 = vld [vmem:[#allocation2 + $0x58] sm:$0xf] }
  0xb1   : > { %v545_v0 = vadd.s32 48, %v8238_v3  ;;  %vm8927_vm3 = vmpackc.low %vm1776_vm9, %vm1775_vm15  ;;  %v11615_v50 = vmov 0  ;;  %v1575_v24 = vrot.slane %v1574_v39, 4  ;;  %v7668_v49 = vunpack.c.l.bf16 %v7823_v48  ;;  %v1078_v39 = vld [vmem:[#allocation2 + $0x5c] sm:$0xf] }
  0xb2   : > { %v11616_v50 = vsel %vm8927_vm3, 4294967295, %v11615_v50  ;;  %vm1824_vm13 = vcmp.ne.s32.totalorder %v1820_v44, %v8262_v10  ;;  %vm1825_vm4 = vcmp.ne.s32.totalorder %v1821_v18, %v8280_v19  ;;  %v1912_v31 = vsel %vm8927_vm3, %v1070_v12, 0  ;;  %vm1310_vm15 = vmpackc.low %vm1150_vm10, %vm1150_vm10 }
  0xb3   : > { %11617 = vst [vmem:[#allocation50_spill] sm:$0xff] %v11616_v50  ;;  %vm8935_vm14 = vmpackc.low %vm1825_vm4, %vm1824_vm13  ;;  %v11618_v6 = vmov 0  ;;  %v617_v58 = vand.u32 15, %v545_v0  ;;  %v397_v30 = vmul.f32 %v8787_v53, %v7665_v4  ;;  %v1994_v2 = vunpack.c.l.b16 %v1912_v31 }
  0xb4   : > { %v11619_v6 = vsel %vm8935_vm14, 4294967295, %v11618_v6  ;;  %v1580_v32 = vsel %vm8337_vm8, %v1575_v24, %v8293_v28  ;;  %v1919_v18 = vsel %vm8935_vm14, %v1077_v27, 0  ;;  %v398_v48 = vmul.f32 %v8787_v53, %v7668_v49  ;;  %v7544_v24 = vld [vmem:[%s11291_s4 + $0xd8] sm:$0xff]  ;;  %v7553_v27 = vld [vmem:[%s11291_s4 + $0x120] sm:$0xff] }
  0xb5   : > { %11620 = vst [vmem:[#allocation51_spill] sm:$0xff] %v11619_v6  ;;  %v1827_v12 = vunpack.c.l.b16 %v1580_v32  ;;  %v1828_v44 = vunpack.c.h.b16 %v1580_v32  ;;  %v2001_v13 = vunpack.c.l.b16 %v1919_v18  ;;  %v1342_v55 = vsel %vm1310_vm15, 65537, %v11572_v62  ;;  %v7528_v53 = vld [vmem:[%s11291_s4 + $0x58] sm:$0xff]  ;;  %4296 = vmatpush.bf16.msrb.mxu3 %v7544_v24  ;;  %4577 = vmatpush.bf16.msrb.mxu0 %v7553_v27 }
  0xb6   : > { %v2019_v0 = vpack.c.b16 %v1994_v2, %v1993_v20  ;;  %v1647_v11 = vshll.u32 %v1342_v55, 16  ;;  %v1651_v4 = vshrl.u32 %v1342_v55, 16  ;;  %v1094_v31 = vadd.s32 4294967295, %v617_v58  ;;  %v7535_v55 = vld [vmem:[%s11291_s4 + $0x90] sm:$0xff]  ;;  %2532 = vmatpush.bf16.msrb.mxu1 %v7528_v53 }
  0xb7   : > { %vm1831_vm4 = vcmp.ne.s32.totalorder %v1827_v12, %v8262_v10  ;;  %vm1832_vm13 = vcmp.ne.s32.totalorder %v1828_v44, %v8280_v19  ;;  %v433_v20 = vadd.f32 %v8817_v57, %v397_v30  ;;  %v434_v49 = vadd.f32 %v8817_v57, %v398_v48  ;;  %v7543_v12 = vld [vmem:[%s11291_s4 + $0xd0] sm:$0xff]  ;;  %v7552_v30 = vld [vmem:[%s11291_s4 + $0x118] sm:$0xff]  ;;  %3794 = vmatpush.bf16.msrb.mxu2 %v7535_v55 }
  0xb8   : > { %v2093_v58 = vshrl.u32 %v2019_v0, 16  ;;  %v2096_v2 = vshll.u32 %v2019_v0, 16  ;;  %vm8963_vm9 = vmpackc.low %vm1832_vm13, %vm1831_vm4  ;;  %v11621_v32 = vmov 0  ;;  %v1649_v18 = vrot.slane %v1647_v11, 5  ;;  %v7527_v11 = vld [vmem:[%s11291_s4 + $0x50] sm:$0xff] }
  0xb9   : > { %v11622_v32 = vsel %vm8963_vm9, 4294967295, %v11621_v32  ;;  %v1653_v61 = vrot.slane %v1651_v4, 4  ;;  %v1920_v57 = vsel %vm8963_vm9, %v1078_v39, 0  ;;  %vm1126_vm10 = vcmp.ge.s32.totalorder %v1094_v31, 0  ;;  %v1085_v16 = vld [vmem:[#allocation2 + $0x78] sm:$0xf]  ;;  %4297 = vmatpush.bf16.msrb.mxu3 %v7543_v12  ;;  %4578 = vmatpush.bf16.msrb.mxu0 %v7552_v30 }
  0xba   : > { %11623 = vst [vmem:[#allocation52_spill] sm:$0xff] %v11622_v32  ;;  %v8978_v48 = vmax.f32 %v433_v20, 0.0  ;;  %v8980_v44 = vmax.f32 %v434_v49, 0.0  ;;  %v2095_v0 = vrot.slane %v2093_v58, 3  ;;  %v2098_v4 = vrot.slane %v2096_v2, 4  ;;  %vm1286_vm15 = vmpackc.low %vm1126_vm10, %vm1126_vm10  ;;  %2533 = vmatpush.bf16.msrb.mxu1 %v7527_v11 }
  0xbb   : > { %v2002_v24 = vunpack.c.l.b16 %v1920_v57  ;;  %v1650_v27 = vsel %vm8337_vm8, %v8331_v52, %v1649_v18  ;;  %v1654_v39 = vor.u32 %v1653_v61, %v1649_v18  ;;  %v1318_v55 = vsel %vm1286_vm15, 65537, %v11572_v62 }
  0xbc   : > { %11624 = vst [vmem:[#allocation53_spill] sm:$0xff] %v8978_v48  ;;  %v1876_v31 = vunpack.c.l.b16 %v1650_v27  ;;  %v1877_v53 = vunpack.c.h.b16 %v1650_v27  ;;  %v2099_v32 = vor.u32 %v2098_v4, %v2095_v0  ;;  %v1407_v20 = vshll.u32 %v1318_v55, 16  ;;  %v1086_v27 = vld [vmem:[#allocation2 + $0x7c] sm:$0xf] }
  0xbd   : > { %11625 = vst [vmem:[#allocation54_spill] sm:$0xff] %v8980_v44  ;;  %v2023_v6 = vpack.c.b16 %v2002_v24, %v2001_v13  ;;  %v1411_v37 = vshrl.u32 %v1318_v55, 16  ;;  %v1655_v49 = vrot.slane %v1654_v39, 4  ;;  %v7743_v61 = vpack.c.bf16 %v8980_v44, %v8978_v48 }
  0xbe   : > { %vm1880_vm4 = vcmp.ne.s32.totalorder %v1876_v31, %v8262_v10  ;;  %vm1881_vm13 = vcmp.ne.s32.totalorder %v1877_v53, %v8280_v19  ;;  %vm11626_vm10 = vsmask.f32 4352  ;;  %v11627_v13 = vmov 0 }
  0xbf   : > { %v2100_v58 = vsel %vm11626_vm10, %v8807_v5, %v2099_v32  ;;  %v2129_v2 = vshrl.u32 %v2023_v6, 16  ;;  %v2132_v18 = vshll.u32 %v2023_v6, 16  ;;  %vm8992_vm15 = vmpackc.low %vm1881_vm13, %vm1880_vm4  ;;  %v1409_v12 = vrot.slane %v1407_v20, 5  ;;  %7838 = vst [vmem:[#allocation2 + $0x80] sm:$0xff] %v7743_v61   ;;  %v7534_v6 = vld [vmem:[%s11291_s4 + $0x88] sm:$0xff] }
  0xc0   : > { %v11628_v13 = vsel %vm8992_vm15, 4294967295, %v11627_v13  ;;  %2284 = vmatmul.bf16.gmra.mxu1 %v2100_v58  ;;  %v1660_v30 = vsel %vm8337_vm8, %v1655_v49, %v8293_v28  ;;  %v1927_v57 = vsel %vm8992_vm15, %v1085_v16, 0  ;;  %v1413_v11 = vrot.slane %v1411_v37, 4  ;;  %3795 = vmatpush.bf16.msrb.mxu2 %v7534_v6 }
  0xc1   : > { %v2131_v0 = vrot.slane %v2129_v2, 3  ;;  %v2134_v4 = vrot.slane %v2132_v18, 4  ;;  %v1883_v5 = vunpack.c.l.b16 %v1660_v30  ;;  %v1884_v24 = vunpack.c.h.b16 %v1660_v30 }
  0xc2   : > { %v1410_v39 = vsel %vm8337_vm8, %v8331_v52, %v1409_v12  ;;  %v1414_v31 = vor.u32 %v1413_v11, %v1409_v12  ;;  %v1890_v53 = vunpack.c.l.b16 %v8331_v52  ;;  %v11629_v16 = vmov 0  ;;  %v1061_v12 = vld [vmem:[#allocation2 + $0x18] sm:$0xf]  ;;  %v1062_v11 = vld [vmem:[#allocation2 + $0x1c] sm:$0xf] }
  0xc3   : > { %v2135_v55 = vor.u32 %v2134_v4, %v2131_v0  ;;  %vm1887_vm4 = vcmp.ne.s32.totalorder %v1883_v5, %v8262_v10  ;;  %vm1888_vm13 = vcmp.ne.s32.totalorder %v1884_v24, %v8280_v19  ;;  %v1708_v37 = vunpack.c.l.b16 %v1410_v39  ;;  %v7542_v24 = vld [vmem:[%s11291_s4 + $0xc8] sm:$0xff] }
  0xc4   : > { %vm9010_vm10 = vmpackc.low %vm1888_vm13, %vm1887_vm4  ;;  %v2009_v20 = vunpack.c.l.b16 %v1927_v57  ;;  %v1415_v49 = vrot.slane %v1414_v31, 4  ;;  %v1709_v61 = vunpack.c.h.b16 %v1410_v39  ;;  %v1891_v58 = vunpack.c.h.b16 %v8331_v52  ;;  %4298 = vmatpush.bf16.msrb.mxu3 %v7542_v24 }
  0xc5   : > { %v11630_v16 = vsel %vm9010_vm10, 4294967295, %v11629_v16  ;;  %vm11631_vm15 = vsmask.f32 4352  ;;  %v1928_v18 = vsel %vm9010_vm10, %v1086_v27, 0  ;;  %vm1712_vm9 = vcmp.ne.s32.totalorder %v1708_v37, %v8262_v10  ;;  %v7526_v37 = vld [vmem:[%s11291_s4 + $0x48] sm:$0xff] }
  0xc6   : > { %v2136_v2 = vsel %vm11631_vm15, %v8830_v41, %v2135_v55  ;;  %vm9021_vm14 = vcmp.ne.s32.totalorder %v1890_v53, %v8262_v10  ;;  %v2010_v57 = vunpack.c.l.b16 %v1928_v18  ;;  %v1420_v52 = vsel %vm8337_vm8, %v1415_v49, %v8293_v28  ;;  %v1087_v5 = vld [vmem:[#allocation2 + $0x80] sm:$0xf]  ;;  %v7551_v53 = vld [vmem:[%s11291_s4 + $0x110] sm:$0xff]  ;;  %2534 = vmatpush.bf16.msrb.mxu1 %v7526_v37 }
  0xc7   : > { %2304 = vmatmul.bf16.gmra.mxu2 %v2136_v2  ;;  %vm1713_vm15 = vcmp.ne.s32.totalorder %v1709_v61, %v8280_v19  ;;  %vm1895_vm4 = vcmp.ne.s32.totalorder %v1891_v58, %v8280_v19  ;;  %v11634_v41 = vmov 0  ;;  %v1715_v0 = vunpack.c.l.b16 %v1420_v52  ;;  %v7533_v61 = vld [vmem:[%s11291_s4 + $0x80] sm:$0xff]  ;;  %4579 = vmatpush.bf16.msrb.mxu0 %v7551_v53 }
  0xc8   : > { %vm9030_vm13 = vmpackc.low %vm1713_vm15, %vm1712_vm9  ;;  %v1716_v4 = vunpack.c.h.b16 %v1420_v52  ;;  %v540_v6 = vadd.s32 8, %v8238_v3  ;;  %v2027_v28 = vpack.c.b16 %v2010_v57, %v2009_v20  ;;  %vm11637_vm8 = vsmask.f32 4352  ;;  %v7541_v58 = vld [vmem:[%s11291_s4 + $0xc0] sm:$0xff]  ;;  %v7550_v57 = vld [vmem:[%s11291_s4 + $0x108] sm:$0xff]  ;;  %3796 = vmatpush.bf16.msrb.mxu2 %v7533_v61 }
  0xc9   : > { %v11635_v41 = vsel %vm9030_vm13, 4294967295, %v11634_v41  ;;  %v1903_v27 = vsel %vm9030_vm13, %v1061_v12, 0  ;;  %v2109_v39 = vsel %vm11637_vm8, %v2099_v32, %v8517_v43  ;;  %vm9045_vm9 = vmpackc.low %vm1895_vm4, %vm9021_vm14  ;;  %v11638_v31 = vmov 0  ;;  %v7525_v52 = vld [vmem:[%s11291_s4 + $0x40] sm:$0xff]  ;;  %4299 = vmatpush.bf16.msrb.mxu3 %v7541_v58 }
  0xca   : > { %11636 = vst [vmem:[#allocation55_spill] sm:$0xff] %v11635_v41  ;;  %v11639_v31 = vsel %vm9045_vm9, 4294967295, %v11638_v31  ;;  %v11641_v20 = vshrl.u32 %v8259_v9, 16  ;;  %vm1719_vm15 = vcmp.ne.s32.totalorder %v1715_v0, %v8262_v10  ;;  %vm1720_vm8 = vcmp.ne.s32.totalorder %v1716_v4, %v8280_v19  ;;  %2535 = vmatpush.bf16.msrb.mxu1 %v7525_v52 }
  0xcb   : > { %11640 = vst [vmem:[#allocation56_spill] sm:$0xff] %v11639_v31  ;;  %v1985_v43 = vunpack.c.l.b16 %v1903_v27  ;;  %v1929_v32 = vsel %vm9045_vm9, %v1087_v5, 0  ;;  %v2165_v2 = vshrl.u32 %v2027_v28, 16  ;;  %v2168_v18 = vshll.u32 %v2027_v28, 16  ;;  %vm9069_vm14 = vmpackc.low %vm1720_vm8, %vm1719_vm15  ;;  %4580 = vmatpush.bf16.msrb.mxu0 %v7550_v57 }
  0xcc   : > { %v9057_v49 = vrot.slane %v11641_v20, 7  ;;  %v11642_v12 = vmov 0  ;;  %v2011_v30 = vunpack.c.l.b16 %v1929_v32  ;;  %v582_v0 = vand.u32 15, %v540_v6 }
  0xcd   : > { %v11643_v12 = vsel %vm9069_vm14, 4294967295, %v11642_v12  ;;  %v1904_v4 = vsel %vm9069_vm14, %v1062_v11, 0  ;;  %vm11645_vm4 = vsmask.f32 4352  ;;  %v596_v24 = vand.u32 15, %v542_v56 }
  0xce   : > { %11644 = vst [vmem:[#allocation57_spill] sm:$0xff] %v11643_v12  ;;  %v9083_v5 = vsel %vm11645_vm4, %v2135_v55, %v8619_v1  ;;  %v11646_v28 = vshll.u32 %v8259_v9, 16  ;;  %v2167_v53 = vrot.slane %v2165_v2, 3  ;;  %v2170_v37 = vrot.slane %v2168_v18, 4  ;;  %v7549_v9 = vld [vmem:[%s11291_s4 + $0x100] sm:$0xff] }
  0xcf   : > { %v1986_v20 = vunpack.c.l.b16 %v1904_v4  ;;  %v2028_v32 = vpack.c.b16 %v2011_v30, %v2011_v30  ;;  %v2683_v6 = vadd.s32 1, %v582_v0  ;;  %v2685_v44 = vadd.s32 1, %v596_v24  ;;  %v2649_v30 = vld [vmem:[#allocation2 + $0x4] sm:$0xf]  ;;  %v3910_v0 = vld [vmem:[#allocation2 + $0x8] sm:$0x8]  ;;  %4581 = vmatpush.bf16.msrb.mxu0 %v7549_v9 }
  0xd0   : > { %v9088_v27 = vor.u32 %v9057_v49, %v11646_v28  ;;  %v9091_v48 = vor.u32 %v2170_v37, %v2167_v53  ;;  %vm11649_vm15 = vsmask.f32 4352  ;;  %2289 = vmatmul.bf16.gmra.mxu1 %v2109_v39  ;;  %vm2939_vm3 = vsmask.f32 4368  ;;  %v3911_v37 = vld [vmem:[#allocation2 + $0xc] sm:$0xf] }
  0xd1   : > { %v2015_v1 = vpack.c.b16 %v1986_v20, %v1985_v43  ;;  %v2174_v55 = vshrl.u32 %v2028_v32, 16  ;;  %v2177_v56 = vshll.u32 %v2028_v32, 16  ;;  %vm2747_vm8 = vcmp.lt.s32.totalorder %v2683_v6, 16 }
  0xd2   : > { %v3228_v11 = vunpack.c.l.b16 %v9088_v27  ;;  %vm2749_vm4 = vcmp.lt.s32.totalorder %v2685_v44, 16  ;;  %v3229_v61 = vunpack.c.h.b16 %v9088_v27  ;;  %v2172_v43 = vsel %vm11649_vm15, %v8871_v7, %v9091_v48  ;;  %vm2875_vm10 = vmpackc.low %vm2747_vm8, %vm2747_vm8  ;;  %v7588_v7 = vld [vmem:[%s11291_s4 + $0x1b8] sm:$0xff] }
  0xd3   : > { %v2057_v2 = vshrl.u32 %v2015_v1, 16  ;;  %v2060_v18 = vshll.u32 %v2015_v1, 16  ;;  %2324 = vmatmul.bf16.gmra.mxu3 %v2172_v43  ;;  %v9105_v57 = vrot.slane %v2174_v55, 3  ;;  %v9107_v44 = vrot.slane %v2177_v56, 4  ;;  %vm2877_vm1 = vmpackc.low %vm2749_vm4, %vm2749_vm4  ;;  %v3912_v1 = vld [vmem:[#allocation2 + $0x10] sm:$0xf]  ;;  %5560 = vmatpush.bf16.msra.mxu2 %v7588_v7 }
  0xd4   : > { %vm9098_vm9 = vcmp.ne.s32.totalorder %v3228_v11, %v8262_v10  ;;  %v2907_v52 = vsel %vm2875_vm10, 65537, %v11572_v62  ;;  %vm3233_vm11 = vcmp.ne.s32.totalorder %v3229_v61, %v8280_v19  ;;  %v2909_v24 = vsel %vm2877_vm1, 65537, %v11572_v62  ;;  %v3913_v61 = vld [vmem:[#allocation2 + $0x14] sm:$0xf] }
  0xd5   : > { %v2059_v4 = vrot.slane %v2057_v2, 3  ;;  %v2062_v39 = vrot.slane %v2060_v18, 4  ;;  %v2950_v28 = vshrl.u32 %v2907_v52, 16  ;;  %vm9117_vm15 = vmpackc.low %vm3233_vm11, %vm9098_vm9  ;;  %v9122_v20 = vrot.slane %v9057_v49, 4 }
  0xd6   : > { %v2953_v32 = vshll.u32 %v2907_v52, 16  ;;  %v2968_v6 = vshrl.u32 %v2909_v24, 16  ;;  %v2971_v11 = vshll.u32 %v2909_v24, 16  ;;  %v3459_v9 = vsel %vm9117_vm15, %v2649_v30, 0  ;;  %v7596_v24 = vld [vmem:[%s11291_s4 + $0x1f8] sm:$0xff] }
  0xd7   : > { %v9124_v55 = vor.u32 %v2062_v39, %v2059_v4  ;;  %v2952_v56 = vrot.slane %v2950_v28, 7  ;;  %v3943_v58 = vsel %vm8636_vm12, %v3910_v0, 0  ;;  %v2180_v43 = vor.u32 %v9107_v44, %v9105_v57  ;;  %2309 = vmatmul.bf16.gmra.mxu2 %v9083_v5  ;;  %v7604_v5 = vld [vmem:[%s11291_s4 + $0x238] sm:$0xff]  ;;  %5842 = vmatpush.bf16.msra.mxu3 %v7596_v24 }
  0xd8   : > { %vm11652_vm11 = vsmask.f32 256  ;;  %v9138_v2 = vrot.slane %v2968_v6, 7  ;;  %v3944_v18 = vsel %vm8651_vm0, %v3911_v37, 0  ;;  %vm11655_vm10 = vsmask.f32 4352  ;;  %6325 = vmatpush.bf16.msra.mxu0 %v7604_v5 }
  0xd9   : > { %vm9134_vm1 = vmor %vm11652_vm11, %vm2939_vm3  ;;  %v2064_v30 = vsel %vm11655_vm10, %v8897_v26, %v9124_v55  ;;  %v2955_v52 = vor.u32 %v2953_v32, %v2952_v56  ;;  %v2957_v0 = vrot.slane %v2952_v56, 4  ;;  %v3542_v57 = vunpack.c.l.b16 %v3459_v9  ;;  %v7564_v26 = vld [vmem:[%s11291_s4 + $0x178] sm:$0xff] }
  0xda   : > { %2264 = vmatmul.bf16.gmra.mxu0 %v2064_v30  ;;  %v2973_v44 = vor.u32 %v2971_v11, %v9138_v2  ;;  %v3945_v7 = vsel %vm8644_vm7, %v3912_v1, 0  ;;  %v3946_v4 = vsel %vm8659_vm6, %v3913_v61, 0  ;;  %v4026_v39 = vunpack.c.l.b16 %v3943_v58  ;;  %5057 = vmatpush.bf16.msra.mxu1 %v7564_v26  ;;  %v2650_v61 = vld [vmem:[#allocation2 + $0x8] sm:$0xf] }
  0xdb   : > { %v2956_v28 = vsel %vm9134_vm1, %v9122_v20, %v2955_v52  ;;  %v2965_v37 = vsel %vm9134_vm1, %v2957_v0, %v9088_v27  ;;  %v4027_v32 = vunpack.c.l.b16 %v3944_v18  ;;  %v4028_v6 = vunpack.c.l.b16 %v3945_v7  ;;  %v7501_v0 = vld [vmem:[#allocation2 + $0x4] sm:$0xff] }
  0xdc   : > { %v2974_v11 = vsel %vm9134_vm1, %v9122_v20, %v2973_v44  ;;  %v3235_v1 = vunpack.c.l.b16 %v2956_v28  ;;  %v3236_v56 = vunpack.c.h.b16 %v2956_v28  ;;  %v3242_v9 = vunpack.c.l.b16 %v2965_v37  ;;  %v2652_v44 = vld [vmem:[#allocation2 + $0x10] sm:$0xf] }
  0xdd   : > { %v3243_v58 = vunpack.c.h.b16 %v2965_v37  ;;  %v3249_v30 = vunpack.c.l.b16 %v2974_v11  ;;  %v3250_v25 = vunpack.c.h.b16 %v2974_v11  ;;  %v4029_v52 = vunpack.c.l.b16 %v3946_v4 }
  0xde   : > { %vm3239_vm3 = vcmp.ne.s32.totalorder %v3235_v1, %v8262_v10  ;;  %vm3240_vm9 = vcmp.ne.s32.totalorder %v3236_v56, %v8280_v19  ;;  %vm3246_vm8 = vcmp.ne.s32.totalorder %v3242_v9, %v8262_v10  ;;  %v4059_v18 = vpack.c.b16 %v4027_v32, %v4026_v39 }
  0xdf   : > { %vm9172_vm4 = vmpackc.low %vm3240_vm9, %vm3239_vm3  ;;  %vm3247_vm11 = vcmp.ne.s32.totalorder %v3243_v58, %v8280_v19  ;;  %vm3253_vm10 = vcmp.ne.s32.totalorder %v3249_v30, %v8262_v10  ;;  %vm3254_vm6 = vcmp.ne.s32.totalorder %v3250_v25, %v8280_v19  ;;  %v4060_v4 = vpack.c.b16 %v4029_v52, %v4028_v6 }
  0xe0   : > { %vm9179_vm7 = vmpackc.low %vm3247_vm11, %vm3246_vm8  ;;  %v3460_v39 = vsel %vm9172_vm4, %v2650_v61, 0  ;;  %vm11660_vm0 = vsmask.f32 4352  ;;  %v4077_v6 = vshrl.u32 %v4059_v18, 16  ;;  %v4080_v11 = vshll.u32 %v4059_v18, 16  ;;  %2536 = vmatmul.bf16.vlgmr.msrb.gmra.mxu1 %v7501_v0 }
  0xe1   : > { %v2181_v26 = vsel %vm11660_vm0, %v9091_v48, %v2180_v43  ;;  %vm9187_vm3 = vmpackc.low %vm3254_vm6, %vm3253_vm10  ;;  %v3461_v28 = vsel %vm9179_vm7, %v2651_v33, 0  ;;  %v3543_v37 = vunpack.c.l.b16 %v3460_v39  ;;  %v4085_v9 = vshrl.u32 %v4060_v4, 16  ;;  %v3914_v18 = vld [vmem:[#allocation2 + $0x18] sm:$0xf]  ;;  %v3915_v0 = vld [vmem:[#allocation2 + $0x1c] sm:$0xf] }
  0xe2   : > { %v3462_v25 = vsel %vm9187_vm3, %v2652_v44, 0  ;;  %v3544_v32 = vunpack.c.l.b16 %v3461_v28  ;;  %v4088_v61 = vshll.u32 %v4060_v4, 16  ;;  %v2073_v48 = vsel %vm11660_vm0, %v9124_v55, %v8429_v60 }
  0xe3   : > { %v3545_v1 = vunpack.c.l.b16 %v3462_v25  ;;  %v3575_v56 = vpack.c.b16 %v3543_v37, %v3542_v57  ;;  %2329 = vmatmul.bf16.gmra.mxu3 %v2181_v26  ;;  %vm11407_vm6 = vsmask.f32 7424  ;;  %v544_v33 = vadd.s32 40, %v8238_v3 }
  0xe4   : > { %v469_v52 = vpack.c.bf16 %v8531_v38, %v8531_v38  ;;  %v4079_v57 = vrot.slane %v4077_v6, 3  ;;  %v4082_v44 = vrot.slane %v4080_v11, 4  ;;  %v2975_v39 = vrot.slane %v9138_v2, 4 }
  0xe5   : > { %v9199_v43 = vpack.c.b16 %v3545_v1, %v3544_v32  ;;  %v3594_v58 = vshrl.u32 %v3575_v56, 16  ;;  %v3596_v30 = vshll.u32 %v3575_v56, 16  ;;  %v610_v4 = vand.u32 15, %v544_v33 }
  0xe6   : > { %v4087_v55 = vrot.slane %v4085_v9, 3  ;;  %v4090_v28 = vrot.slane %v4088_v61, 4  ;;  %v2983_v25 = vsel %vm9134_vm1, %v2975_v39, %v9088_v27  ;;  %v3947_v38 = vsel %vm8845_vm5, %v3914_v18, 0 }
  0xe7   : > { %v3598_v26 = vrot.slane %v3596_v30, 1  ;;  %v3601_v60 = vshll.u32 %v9199_v43, 16  ;;  %v2687_v37 = vadd.s32 1, %v610_v4  ;;  %v3948_v32 = vsel %vm8858_vm2, %v3915_v0, 0 }
  0xe8   : > { %v3256_v2 = vunpack.c.l.b16 %v2983_v25  ;;  %v3257_v1 = vunpack.c.h.b16 %v2983_v25  ;;  %v4083_v56 = vor.u32 %v4082_v44, %v4079_v57  ;;  %v4462_v9 = vunpack.c.l.b16 %v8543_v42  ;;  %v7502_v57 = vld [vmem:[#allocation2 + $0xc] sm:$0xff]  ;;  %v2653_v44 = vld [vmem:[#allocation2 + $0x14] sm:$0xf] }
  0xe9   : > { %v3599_v6 = vor.u32 %v3598_v26, %v3594_v58  ;;  %v9212_v11 = vrot.slane %v3601_v60, 1  ;;  %vm2751_vm9 = vcmp.lt.s32.totalorder %v2687_v37, 16  ;;  %v4463_v33 = vunpack.c.l.b16 %v469_v52 }
  0xea   : > { %2269 = vmatmul.bf16.gmra.mxu0 %v2073_v48  ;;  %vm2879_vm8 = vmpackc.low %vm2751_vm9, %vm2751_vm9  ;;  %v4030_v30 = vunpack.c.l.b16 %v3947_v38  ;;  %v4031_v18 = vunpack.c.l.b16 %v3948_v32  ;;  %v9217_v4 = vor.u32 %v4090_v28, %v4087_v55  ;;  %vm3260_vm11 = vcmp.ne.s32.totalorder %v3256_v2, %v8262_v10 }
  0xeb   : > { %v3604_v61 = vsel %vm11407_vm6, %v3599_v6, %v9212_v11  ;;  %v2911_v58 = vsel %vm2879_vm8, 65537, %v11572_v62  ;;  %vm3261_vm10 = vcmp.ne.s32.totalorder %v3257_v1, %v8280_v19  ;;  %v546_v42 = vadd.s32 56, %v8238_v3 }
  0xec   : > { %3797 = vmatmul.bf16.vlgmr.msrb.gmra.mxu2 %v3604_v61  ;;  %v2986_v48 = vshrl.u32 %v2911_v58, 16  ;;  %v2989_v0 = vshll.u32 %v2911_v58, 16  ;;  %vm9223_vm0 = vmpackc.low %vm3261_vm10, %vm3260_vm11  ;;  %v11663_v52 = vmov 0  ;;  %v4061_v26 = vpack.c.b16 %v4031_v18, %v4030_v30  ;;  %v3916_v30 = vld [vmem:[#allocation2 + $0x20] sm:$0xf] }
  0xed   : > { %v11664_v52 = vsel %vm9223_vm0, 4294967295, %v11663_v52  ;;  %v624_v60 = vand.u32 15, %v546_v42  ;;  %vm11666_vm9 = vsmask.f32 4352  ;;  %v4494_v28 = vpack.c.b16 %v4463_v33, %v4462_v9 }
  0xee   : > { %v2988_v39 = vrot.slane %v2986_v48, 7  ;;  %11665 = vst [vmem:[#allocation58_spill] sm:$0xff] %v11664_v52  ;;  %v4092_v55 = vsel %vm11666_vm9, %v4083_v56, %v9217_v4  ;;  %v548_v32 = vadd.s32 72, %v8238_v3  ;;  %v3463_v6 = vsel %vm9223_vm0, %v2653_v44, 0  ;;  %v3917_v48 = vld [vmem:[#allocation2 + $0x24] sm:$0xf] }
  0xef   : > { %v2689_v25 = vadd.s32 1, %v624_v60  ;;  %v3605_v2 = vshrl.u32 %v9199_v43, 16  ;;  %v470_v1 = vpack.c.bf16 %v8533_v36, %v8533_v36  ;;  %v471_v61 = vpack.c.bf16 %v8535_v23, %v8535_v23  ;;  %v7587_v23 = vld [vmem:[%s11291_s4 + $0x1b0] sm:$0xff] }
  0xf0   : > { %v2991_v37 = vor.u32 %v2989_v0, %v2988_v39  ;;  %v2993_v38 = vrot.slane %v2988_v39, 4  ;;  %2541 = vmatmul.bf16.gmra.mxu1 %v7502_v57  ;;  %v4094_v9 = vshrl.u32 %v4061_v26, 16  ;;  %v4097_v58 = vshll.u32 %v4061_v26, 16  ;;  %v2654_v0 = vld [vmem:[#allocation2 + $0x18] sm:$0xf]  ;;  %5561 = vmatpush.bf16.msra.mxu2 %v7587_v23 }
  0xf1   : > { %vm2753_vm8 = vcmp.lt.s32.totalorder %v2689_v25, 16  ;;  %v3546_v42 = vunpack.c.l.b16 %v3463_v6  ;;  %v638_v39 = vand.u32 15, %v548_v32  ;;  %v11667_v26 = vmov 0 }
  0xf2   : > { %v2992_v56 = vsel %vm9134_vm1, %v9122_v20, %v2991_v37  ;;  %v3001_v33 = vsel %vm9134_vm1, %v2993_v38, %v9088_v27  ;;  %vm2881_vm11 = vmpackc.low %vm2753_vm8, %vm2753_vm8  ;;  %v3949_v37 = vsel %vm9030_vm13, %v3916_v30, 0  ;;  %v3950_v25 = vsel %vm9069_vm14, %v3917_v48, 0  ;;  %v7595_v48 = vld [vmem:[%s11291_s4 + $0x1f0] sm:$0xff] }
  0xf3   : > { %4300 = vmatmul.bf16.vlgmr.msrb.gmra.mxu3 %v4092_v55  ;;  %v3263_v43 = vunpack.c.l.b16 %v2992_v56  ;;  %v3264_v18 = vunpack.c.h.b16 %v2992_v56  ;;  %v3270_v36 = vunpack.c.l.b16 %v3001_v33  ;;  %v2913_v57 = vsel %vm2881_vm11, 65537, %v11572_v62 }
  0xf4   : > { %v3271_v44 = vunpack.c.h.b16 %v3001_v33  ;;  %v3004_v60 = vshrl.u32 %v2913_v57, 16  ;;  %v3007_v55 = vshll.u32 %v2913_v57, 16  ;;  %v4096_v32 = vrot.slane %v4094_v9, 3  ;;  %v7563_v9 = vld [vmem:[%s11291_s4 + $0x170] sm:$0xff]  ;;  %5843 = vmatpush.bf16.msra.mxu3 %v7595_v48 }
  0xf5   : > { %vm3267_vm10 = vcmp.ne.s32.totalorder %v3263_v43, %v8262_v10  ;;  %vm3268_vm9 = vcmp.ne.s32.totalorder %v3264_v18, %v8280_v19  ;;  %vm3274_vm6 = vcmp.ne.s32.totalorder %v3270_v36, %v8262_v10  ;;  %v4099_v6 = vrot.slane %v4097_v58, 4  ;;  %v2655_v43 = vld [vmem:[#allocation2 + $0x1c] sm:$0xf]  ;;  %v7603_v58 = vld [vmem:[%s11291_s4 + $0x230] sm:$0xff]  ;;  %5058 = vmatpush.bf16.msra.mxu1 %v7563_v9 }
  0xf6   : > { %vm9249_vm8 = vmpackc.low %vm3268_vm9, %vm3267_vm10  ;;  %vm3275_vm2 = vcmp.ne.s32.totalorder %v3271_v44, %v8280_v19  ;;  %v3006_v56 = vrot.slane %v3004_v60, 7  ;;  %v11670_v18 = vmov 0  ;;  %v2691_v36 = vadd.s32 1, %v638_v39  ;;  %6326 = vmatpush.bf16.msra.mxu0 %v7603_v58 }
  0xf7   : > { %v11668_v26 = vsel %vm9249_vm8, 4294967295, %v11667_v26  ;;  %v3464_v38 = vsel %vm9249_vm8, %v2654_v0, 0  ;;  %vm9261_vm11 = vmpackc.low %vm3275_vm2, %vm3274_vm6  ;;  %v4032_v57 = vunpack.c.l.b16 %v3949_v37  ;;  %v4033_v30 = vunpack.c.l.b16 %v3950_v25 }
  0xf8   : > { %11669 = vst [vmem:[#allocation59_spill] sm:$0xff] %v11668_v26  ;;  %v3547_v33 = vunpack.c.l.b16 %v3464_v38  ;;  %v11671_v18 = vsel %vm9261_vm11, 4294967295, %v11670_v18  ;;  %v3009_v23 = vor.u32 %v3007_v55, %v3006_v56  ;;  %v3607_v44 = vor.u32 %v3605_v2, %v9212_v11  ;;  %v2656_v2 = vld [vmem:[#allocation2 + $0x20] sm:$0xf]  ;;  %v7584_v26 = vld [vmem:[%s11291_s4 + $0x198] sm:$0xff] }
  0xf9   : > { %11672 = vst [vmem:[#allocation60_spill] sm:$0xff] %v11671_v18  ;;  %vm2755_vm2 = vcmp.lt.s32.totalorder %v2691_v36, 16  ;;  %v9279_v39 = vor.u32 %v4099_v6, %v4096_v32  ;;  %v9281_v60 = vunpack.c.l.b16 %v471_v61  ;;  %v3011_v37 = vrot.slane %v3006_v56, 4  ;;  %v7503_v56 = vld [vmem:[#allocation2 + $0x14] sm:$0xff] }
  0xfa   : > { %4582 = vmatmul.bf16.vlgmr.msrb.gmra.mxu0 %v4494_v28  ;;  %v9274_v0 = vpack.c.b16 %v3547_v33, %v3546_v42  ;;  %v9277_v28 = vunpack.c.l.b16 %v470_v1  ;;  %v3010_v55 = vsel %vm9134_vm1, %v9122_v20, %v3009_v23  ;;  %vm2883_vm6 = vmpackc.low %vm2755_vm2, %vm2755_vm2  ;;  %v3465_v11 = vsel %vm9261_vm11, %v2655_v43, 0 }
  0xfb   : > { %v3277_v25 = vunpack.c.l.b16 %v3010_v55  ;;  %v3278_v38 = vunpack.c.h.b16 %v3010_v55  ;;  %v4062_v1 = vpack.c.b16 %v4033_v30, %v4032_v57  ;;  %v2915_v61 = vsel %vm2883_vm6, 65537, %v11572_v62 }
  0xfc   : > { %v3609_v42 = vshll.u32 %v9274_v0, 16  ;;  %v3019_v32 = vsel %vm9134_vm1, %v3011_v37, %v9088_v27  ;;  %v550_v6 = vadd.s32 88, %v8238_v3  ;;  %v3022_v36 = vshrl.u32 %v2915_v61, 16 }
  0xfd   : > { %vm3281_vm10 = vcmp.ne.s32.totalorder %v3277_v25, %v8262_v10  ;;  %vm3282_vm9 = vcmp.ne.s32.totalorder %v3278_v38, %v8280_v19  ;;  %v11673_v43 = vmov 0  ;;  %v3548_v23 = vunpack.c.l.b16 %v3465_v11  ;;  %v3918_v38 = vld [vmem:[#allocation2 + $0x28] sm:$0xf] }
  0xfe   : > { %v3611_v33 = vrot.slane %v3609_v42, 1  ;;  %vm9296_vm2 = vmpackc.low %vm3282_vm9, %vm3281_vm10  ;;  %v3025_v57 = vshll.u32 %v2915_v61, 16  ;;  %v3284_v30 = vunpack.c.l.b16 %v3019_v32  ;;  %v3285_v48 = vunpack.c.h.b16 %v3019_v32  ;;  %v3919_v32 = vld [vmem:[#allocation2 + $0x2c] sm:$0xf] }
  0xff   : > { %v11674_v43 = vsel %vm9296_vm2, 4294967295, %v11673_v43  ;;  %vm11676_vm6 = vsmask.f32 7424  ;;  %vm11677_vm14 = vsmask.f32 4352  ;;  %v3466_v55 = vsel %vm9296_vm2, %v2656_v2, 0 }
 0x100   : > { %11675 = vst [vmem:[#allocation61_spill] sm:$0xff] %v11674_v43  ;;  %v3612_v9 = vsel %vm11676_vm6, %v3607_v44, %v3611_v33  ;;  %v4101_v58 = vsel %vm11677_vm14, %v9217_v4, %v9279_v39  ;;  %v3024_v37 = vrot.slane %v3022_v36, 7  ;;  %v3549_v42 = vunpack.c.l.b16 %v3466_v55  ;;  %2546 = vmatmul.bf16.gmra.mxu1 %v7503_v56  ;;  %v2666_v43 = vld [vmem:[#allocation2 + $0x48] sm:$0xf] }
 0x101   : > { %3802 = vmatmul.bf16.gmra.mxu2 %v3612_v9  ;;  %v652_v12 = vand.u32 15, %v550_v6  ;;  %v4495_v11 = vpack.c.b16 %v9281_v60, %v9277_v28  ;;  %vm3288_vm10 = vcmp.ne.s32.totalorder %v3284_v30, %v8262_v10  ;;  %vm3289_vm14 = vcmp.ne.s32.totalorder %v3285_v48, %v8280_v19 }
 0x102   : > { %v3027_v25 = vor.u32 %v3025_v57, %v3024_v37  ;;  %v9308_v44 = vpack.c.b16 %v3549_v42, %v3548_v23  ;;  %v4103_v4 = vshrl.u32 %v4062_v1, 16  ;;  %v4106_v2 = vshll.u32 %v4062_v1, 16  ;;  %v2657_v23 = vld [vmem:[#allocation2 + $0x24] sm:$0xf]  ;;  %vm9319_vm6 = vmpackc.low %vm3289_vm14, %vm3288_vm10 }
 0x103   : > { %4305 = vmatmul.bf16.gmra.mxu3 %v4101_v58  ;;  %v2693_v56 = vadd.s32 1, %v652_v12  ;;  %v3613_v6 = vshrl.u32 %v9274_v0, 16  ;;  %vm11678_vm9 = vnez %v11514_v35  ;;  %v11679_v30 = vmov 0  ;;  %v2658_v12 = vld [vmem:[#allocation2 + $0x28] sm:$0xf] }
 0x104   : > { %v3028_v61 = vsel %vm9134_vm1, %v9122_v20, %v3027_v25  ;;  %v3951_v28 = vsel %vm11678_vm9, %v3918_v38, 0  ;;  %v3617_v60 = vshll.u32 %v9308_v44, 16  ;;  %v11680_v30 = vsel %vm9319_vm6, 4294967295, %v11679_v30  ;;  %v7842_v25 = vld [vmem:[%s9328_s29 + $0x20] sm:$0xff]  }
 0x105   : > { %v3291_v36 = vunpack.c.l.b16 %v3028_v61  ;;  %v3292_v57 = vunpack.c.h.b16 %v3028_v61  ;;  %11681 = vst [vmem:[#allocation62_spill] sm:$0xff] %v11680_v30  ;;  %vm11682_vm9 = vnez %v11521_v59  ;;  %v4105_v1 = vrot.slane %v4103_v4, 3  ;;  %v9344_v38 = vld [vmem:[%s11292_s5] ss:$0 sm:$0xff] }
 0x106   : > { %v3952_v0 = vsel %vm11682_vm9, %v3919_v32, 0  ;;  %v4108_v48 = vrot.slane %v4106_v2, 4  ;;  %v11683_v9 = vmov 0  ;;  %v4034_v58 = vunpack.c.l.b16 %v3951_v28 }
 0x107   : > { %vm3295_vm13 = vcmp.ne.s32.totalorder %v3291_v36, %v8262_v10  ;;  %vm3296_vm2 = vcmp.ne.s32.totalorder %v3292_v57, %v8280_v19  ;;  %vm2757_vm14 = vcmp.lt.s32.totalorder %v2693_v56, 16  ;;  %v3615_v55 = vor.u32 %v3613_v6, %v3611_v33 }
 0x108   : > { %vm9334_vm10 = vmpackc.low %vm3296_vm2, %vm3295_vm13  ;;  %v3467_v42 = vsel %vm9319_vm6, %v2657_v23, 0  ;;  %v3029_v61 = vrot.slane %v3024_v37, 4  ;;  %v552_v4 = vadd.s32 104, %v8238_v3  ;;  %v3619_v2 = vrot.slane %v3617_v60, 1  ;;  %v2275_v23 = vpop.f32.mrf.mxu1 }
 0x109   : > { %v11684_v9 = vsel %vm9334_vm10, 4294967295, %v11683_v9  ;;  %v3468_v32 = vsel %vm9334_vm10, %v2658_v12, 0  ;;  %v4035_v36 = vunpack.c.l.b16 %v3952_v0  ;;  %v7763_v56 = vunpack.c.l.bf16 %v7842_v25  ;;  %vm2885_vm13 = vmpackc.low %vm2757_vm14, %vm2757_vm14  ;;  %v7504_v25 = vld [vmem:[#allocation2 + $0x1c] sm:$0xff] }
 0x10a   : > { %11685 = vst [vmem:[#allocation63_spill] sm:$0xff] %v11684_v9  ;;  %4587 = vmatmul.bf16.gmra.mxu0 %v4495_v11  ;;  %v472_v33 = vpack.c.bf16 %v8540_v22, %v8540_v22  ;;  %v9351_v11 = vor.u32 %v4108_v48, %v4105_v1  ;;  %v473_v6 = vpack.c.bf16 %v8316_v45, %v8316_v45  ;;  %v3550_v57 = vunpack.c.l.b16 %v3467_v42 }
 0x10b   : > { %v1031_v37 = vadd.f32 %v9344_v38, %v7763_v56  ;;  %v3551_v28 = vunpack.c.l.b16 %v3468_v32  ;;  %v2917_v60 = vsel %vm2885_vm13, 65537, %v11572_v62  ;;  %v3037_v12 = vsel %vm9134_vm1, %v3029_v61, %v9088_v27 }
 0x10c   : > { %v666_v0 = vand.u32 15, %v552_v4  ;;  %vm11686_vm2 = vsmask.f32 7424  ;;  %v4063_v1 = vpack.c.b16 %v4035_v36, %v4034_v58  ;;  %v3040_v59 = vshrl.u32 %v2917_v60, 16 }
 0x10d   : > { %v3620_v22 = vsel %vm11686_vm2, %v3615_v55, %v3619_v2  ;;  %v9361_v48 = vadd.f32 %v2275_v23, %v1031_v37  ;;  %v3043_v45 = vshll.u32 %v2917_v60, 16  ;;  %vm11687_vm14 = vsmask.f32 4352 }
 0x10e   : > { %v4110_v42 = vsel %vm11687_vm14, %v9279_v39, %v9351_v11  ;;  %v9366_v32 = vrot.slane %v3040_v59, 7  ;;  %v3298_v56 = vunpack.c.l.b16 %v3037_v12  ;;  %v3299_v35 = vunpack.c.h.b16 %v3037_v12  ;;  %v7586_v59 = vld [vmem:[%s11291_s4 + $0x1a8] sm:$0xff] }
 0x10f   : > { %v4466_v9 = vunpack.c.l.b16 %v472_v33  ;;  %v4467_v61 = vunpack.c.l.b16 %v473_v6  ;;  %v9368_v4 = vpack.c.b16 %v3551_v28, %v3550_v57  ;;  %v2695_v55 = vadd.s32 1, %v666_v0  ;;  %5562 = vmatpush.bf16.msra.mxu2 %v7586_v59  ;;  %v3920_v0 = vld [vmem:[#allocation2 + $0x30] sm:$0xf]  ;;  %v2315_v57 = vpop.f32.mrf.mxu3 }
 0x110   : > { %2551 = vmatmul.bf16.gmra.mxu1 %v7504_v25  ;;  %v4112_v58 = vshrl.u32 %v4063_v1, 16  ;;  %v3045_v36 = vor.u32 %v3043_v45, %v9366_v32  ;;  %v4115_v37 = vshll.u32 %v4063_v1, 16  ;;  %v3621_v39 = vshrl.u32 %v9308_v44, 16  ;;  %v7846_v25 = vld [vmem:[%s9328_s29 + $0x40] sm:$0xff]   ;;  %v2659_v45 = vld [vmem:[#allocation2 + $0x2c] sm:$0xf] }
 0x111   : > { %3807 = vmatmul.bf16.gmra.mxu2 %v3620_v22  ;;  %vm2759_vm13 = vcmp.lt.s32.totalorder %v2695_v55, 16  ;;  %vm9379_vm2 = vcmp.ne.s32.totalorder %v3298_v56, %v8262_v10  ;;  %vm3303_vm14 = vcmp.ne.s32.totalorder %v3299_v35, %v8280_v19  ;;  %v4496_v28 = vpack.c.b16 %v4467_v61, %v4466_v9  ;;  %v3921_v22 = vld [vmem:[#allocation2 + $0x34] sm:$0xf] }
 0x112   : > { %v3046_v33 = vsel %vm9134_vm1, %v9122_v20, %v3045_v36  ;;  %vm9384_vm9 = vmpackc.low %vm2759_vm13, %vm2759_vm13  ;;  %v3625_v23 = vshll.u32 %v9368_v4, 16  ;;  %v4114_v12 = vrot.slane %v4112_v58, 3  ;;  %v4117_v1 = vrot.slane %v4115_v37, 4  ;;  %v7850_v36 = vld [vmem:[%s9328_s29 + $0x60] sm:$0xff]  }
 0x113   : > { %4310 = vmatmul.bf16.gmra.mxu3 %v4110_v42  ;;  %v3305_v60 = vunpack.c.l.b16 %v3046_v33  ;;  %v3306_v44 = vunpack.c.h.b16 %v3046_v33  ;;  %v2660_v42 = vld [vmem:[#allocation2 + $0x30] sm:$0xf]  ;;  %vm9392_vm13 = vmpackc.low %vm3303_vm14, %vm9379_vm2  ;;  %v11692_v35 = vmov 0  ;;  %v2919_v9 = vsel %vm9384_vm9, 65537, %v11572_v62 }
 0x114   : > { %v11693_v35 = vsel %vm9392_vm13, 4294967295, %v11692_v35  ;;  %v3623_v56 = vor.u32 %v3621_v39, %v3619_v2  ;;  %v474_v61 = vpack.c.bf16 %v8318_v46, %v8318_v46  ;;  %v11695_v55 = vmov 0  ;;  %v7594_v46 = vld [vmem:[%s11291_s4 + $0x1e8] sm:$0xff]  ;;  %v2295_v39 = vpop.f32.mrf.mxu2 }
 0x115   : > { %11694 = vst [vmem:[#allocation64_spill] sm:$0xff] %v11693_v35  ;;  %vm3309_vm10 = vcmp.ne.s32.totalorder %v3305_v60, %v8262_v10  ;;  %vm3310_vm6 = vcmp.ne.s32.totalorder %v3306_v44, %v8280_v19  ;;  %v7779_v58 = vunpack.c.l.bf16 %v7846_v25  ;;  %v3047_v37 = vrot.slane %v9366_v32, 4  ;;  %v7562_v32 = vld [vmem:[%s11291_s4 + $0x168] sm:$0xff]  ;;  %5844 = vmatpush.bf16.msra.mxu3 %v7594_v46 }
 0x116   : > { %vm9403_vm11 = vmpackc.low %vm3310_vm6, %vm3309_vm10  ;;  %v9409_v59 = vrot.slane %v3625_v23, 1  ;;  %vm11698_vm2 = vnez %v11517_v40  ;;  %vm11699_vm9 = vnez %v11524_v63  ;;  %v7795_v6 = vunpack.c.l.bf16 %v7850_v36  ;;  %5059 = vmatpush.bf16.msra.mxu1 %v7562_v32  ;;  %v7505_v46 = vld [vmem:[#allocation2 + $0x24] sm:$0xff] }
 0x117   : > { %v11696_v55 = vsel %vm9403_vm11, 4294967295, %v11695_v55  ;;  %v3953_v33 = vsel %vm11698_vm2, %v3920_v0, 0  ;;  %v3954_v2 = vsel %vm11699_vm9, %v3921_v22, 0  ;;  %v3469_v23 = vsel %vm9392_vm13, %v2659_v45, 0  ;;  %v9429_v0 = vpop.f32.mrf.mxu1  ;;  %v7843_v22 = vld [vmem:[%s9328_s29 + $0x28] sm:$0xff]  }
 0x118   : > { %11697 = vst [vmem:[#allocation65_spill] sm:$0xff] %v11696_v55  ;;  %v3470_v60 = vsel %vm9403_vm11, %v2660_v42, 0  ;;  %v1039_v44 = vadd.f32 %v9344_v38, %v7779_v58  ;;  %v3058_v25 = vshrl.u32 %v2919_v9, 16  ;;  %v9432_v36 = vor.u32 %v4117_v1, %v4114_v12 }
 0x119   : > { %v475_v63 = vpack.c.bf16 %v8320_v47, %v8320_v47  ;;  %v1047_v40 = vadd.f32 %v9344_v38, %v7795_v6  ;;  %v4036_v35 = vunpack.c.l.b16 %v3953_v33  ;;  %v4037_v45 = vunpack.c.l.b16 %v3954_v2 }
 0x11a   : > { %4592 = vmatmul.bf16.gmra.mxu0 %v4496_v28  ;;  %v7602_v28 = vld [vmem:[%s11291_s4 + $0x228] sm:$0xff]  ;;  %v9437_v30 = vadd.f32 %v2295_v39, %v1039_v44  ;;  %v3055_v42 = vsel %vm9134_vm1, %v3047_v37, %v9088_v27  ;;  %v3552_v58 = vunpack.c.l.b16 %v3469_v23  ;;  %v3553_v55 = vunpack.c.l.b16 %v3470_v60 }
 0x11b   : > { %6327 = vmatpush.bf16.msra.mxu0 %v7602_v28  ;;  %v9442_v12 = vadd.f32 %v2315_v57, %v1047_v40  ;;  %v7767_v1 = vunpack.c.l.bf16 %v7843_v22  ;;  %vm11702_vm6 = vsmask.f32 7424  ;;  %v9446_v6 = vrot.slane %v3058_v25, 7 }
 0x11c   : > { %11700 = vst [vmem:[#allocation66_spill] sm:$0xff] %v9437_v30  ;;  %v3628_v47 = vsel %vm11702_vm6, %v3623_v56, %v9409_v59  ;;  %v3061_v2 = vshll.u32 %v2919_v9, 16  ;;  %v3312_v39 = vunpack.c.l.b16 %v3055_v42  ;;  %v3313_v32 = vunpack.c.h.b16 %v3055_v42  ;;  %v9454_v60 = vpop.f32.mrf.mxu2  ;;  %v9458_v9 = vpop.f32.mrf.mxu3 }
 0x11d   : > { %11701 = vst [vmem:[#allocation67_spill] sm:$0xff] %v9442_v12  ;;  %v1033_v33 = vadd.f32 %v9344_v38, %v7767_v1  ;;  %vm11703_vm10 = vsmask.f32 4352  ;;  %v4064_v28 = vpack.c.b16 %v4037_v45, %v4036_v35  ;;  %v4468_v40 = vunpack.c.l.b16 %v474_v61  ;;  %v3923_v45 = vld [vmem:[#allocation2 + $0x3c] sm:$0xf] }
 0x11e   : > { %v4119_v37 = vsel %vm11703_vm10, %v9351_v11, %v9432_v36  ;;  %v4469_v57 = vunpack.c.l.b16 %v475_v63  ;;  %v9452_v23 = vpack.c.b16 %v3553_v55, %v3552_v58  ;;  %11704 = vst [vmem:[#allocation68_spill] sm:$0xff] %v9454_v60  ;;  %v3063_v56 = vor.u32 %v3061_v2, %v9446_v6  ;;  %v2661_v1 = vld [vmem:[#allocation2 + $0x34] sm:$0xf] }
 0x11f   : > { %v3629_v44 = vshrl.u32 %v9368_v4, 16  ;;  %11705 = vst [vmem:[#allocation69_spill] sm:$0xff] %v9458_v9  ;;  %v2280_v22 = vpop.f32.mrf.mxu1  ;;  %vm3316_vm14 = vcmp.ne.s32.totalorder %v3312_v39, %v8262_v10  ;;  %vm3317_vm6 = vcmp.ne.s32.totalorder %v3313_v32, %v8280_v19  ;;  %v4121_v11 = vshrl.u32 %v4064_v28, 16  ;;  %v3922_v4 = vld [vmem:[#allocation2 + $0x38] sm:$0xf]  ;;  %v7593_v9 = vld [vmem:[%s11291_s4 + $0x1e0] sm:$0xff] }
 0x120   : > { %2556 = vmatmul.bf16.gmra.mxu1 %v7505_v46  ;;  %v9460_v25 = vadd.f32 %v2280_v22, %v1033_v33  ;;  %v3064_v63 = vsel %vm9134_vm1, %v9122_v20, %v3063_v56  ;;  %v4124_v35 = vshll.u32 %v4064_v28, 16  ;;  %v4497_v42 = vpack.c.b16 %v4469_v57, %v4468_v40  ;;  %vm9468_vm10 = vmpackc.low %vm3317_vm6, %vm3316_vm14  ;;  %v7847_v46 = vld [vmem:[%s9328_s29 + $0x48] sm:$0xff]   ;;  %v2662_v33 = vld [vmem:[#allocation2 + $0x38] sm:$0xf]  ;;  %5845 = vmatpush.bf16.msra.mxu3 %v7593_v9 }
 0x121   : > { %3812 = vmatmul.bf16.gmra.mxu2 %v3628_v47  ;;  %v3319_v61 = vunpack.c.l.b16 %v3064_v63  ;;  %v3320_v55 = vunpack.c.h.b16 %v3064_v63  ;;  %v3633_v58 = vshll.u32 %v9452_v23, 16  ;;  %v11706_v47 = vmov 0  ;;  %v7851_v22 = vld [vmem:[%s9328_s29 + $0x68] sm:$0xff]  }
 0x122   : > { %v11707_v47 = vsel %vm9468_vm10, 4294967295, %v11706_v47  ;;  %v11709_v2 = vmov 0  ;;  %vm11712_vm13 = vnez %v11578_v17  ;;  %vm11713_vm5 = vnez %v11581_v15 }
 0x123   : > { %4315 = vmatmul.bf16.gmra.mxu3 %v4119_v37  ;;  %11708 = vst [vmem:[#allocation70_spill] sm:$0xff] %v11707_v47  ;;  %vm3323_vm9 = vcmp.ne.s32.totalorder %v3319_v61, %v8262_v10  ;;  %vm3324_vm2 = vcmp.ne.s32.totalorder %v3320_v55, %v8280_v19  ;;  %v3955_v39 = vsel %vm11712_vm13, %v3922_v4, 0  ;;  %v3956_v32 = vsel %vm11713_vm5, %v3923_v45, 0 }
 0x124   : > { %vm9475_vm11 = vmpackc.low %vm3324_vm2, %vm3323_vm9  ;;  %v7783_v37 = vunpack.c.l.bf16 %v7847_v46  ;;  %v554_v28 = vadd.s32 120, %v8238_v3  ;;  %v3631_v40 = vor.u32 %v3629_v44, %v9409_v59  ;;  %v4123_v57 = vrot.slane %v4121_v11, 3  ;;  %v2300_v4 = vpop.f32.mrf.mxu2 }
 0x125   : > { %v11710_v2 = vsel %vm9475_vm11, 4294967295, %v11709_v2  ;;  %v4126_v56 = vrot.slane %v4124_v35, 4  ;;  %v9486_v63 = vrot.slane %v3633_v58, 1  ;;  %v3471_v61 = vsel %vm9468_vm10, %v2661_v1, 0 }
 0x126   : > { %11711 = vst [vmem:[#allocation71_spill] sm:$0xff] %v11710_v2  ;;  %v1041_v55 = vadd.f32 %v9344_v38, %v7783_v37  ;;  %v7799_v17 = vunpack.c.l.bf16 %v7851_v22  ;;  %v3472_v45 = vsel %vm9475_vm11, %v2662_v33, 0  ;;  %v4038_v46 = vunpack.c.l.b16 %v3955_v39 }
 0x127   : > { %v4039_v15 = vunpack.c.l.b16 %v3956_v32  ;;  %v3065_v59 = vrot.slane %v9446_v6, 4  ;;  %v680_v35 = vand.u32 15, %v554_v28  ;;  %v476_v58 = vpack.c.bf16 %v8329_v51, %v8329_v51  ;;  %v9505_v32 = vpop.f32.mrf.mxu0 }
 0x128   : > { %v9494_v44 = vadd.f32 %v2300_v4, %v1041_v55  ;;  %v1049_v11 = vadd.f32 %v9344_v38, %v7799_v17  ;;  %v477_v1 = vpack.c.bf16 %v8671_v8, %v8671_v8  ;;  %v2320_v37 = vpop.f32.mrf.mxu3  ;;  %v3554_v22 = vunpack.c.l.b16 %v3471_v61  ;;  %v7506_v17 = vld [vmem:[#allocation2 + $0x2c] sm:$0xff] }
 0x129   : > { %v3555_v33 = vunpack.c.l.b16 %v3472_v45  ;;  %vm11716_vm2 = vsmask.f32 7424  ;;  %v4065_v28 = vpack.c.b16 %v4039_v15, %v4038_v46  ;;  %v2697_v51 = vadd.s32 1, %v680_v35 }
 0x12a   : > { %4597 = vmatmul.bf16.gmra.mxu0 %v4497_v42  ;;  %11714 = vst [vmem:[#allocation72_spill] sm:$0xff] %v9494_v44  ;;  %v9497_v42 = vor.u32 %v4126_v56, %v4123_v57  ;;  %v9503_v39 = vadd.f32 %v2320_v37, %v1049_v11  ;;  %v3636_v6 = vsel %vm11716_vm2, %v3631_v40, %v9486_v63  ;;  %vm11717_vm9 = vsmask.f32 4352  ;;  %v3925_v11 = vld [vmem:[#allocation2 + $0x44] sm:$0xf] }
 0x12b   : > { %v3073_v57 = vsel %vm9134_vm1, %v3065_v59, %v9088_v27  ;;  %v4470_v56 = vunpack.c.l.b16 %v476_v58  ;;  %v4471_v61 = vunpack.c.l.b16 %v477_v1  ;;  %v9515_v55 = vpack.c.b16 %v3555_v33, %v3554_v22  ;;  %v3924_v59 = vld [vmem:[#allocation2 + $0x40] sm:$0xf]  ;;  %v9520_v22 = vpop.f32.mrf.mxu1  ;;  %v9523_v33 = vld [vmem:[%s9328_s29 + $0x30] sm:$0xff]  }
 0x12c   : > { %11715 = vst [vmem:[#allocation73_spill] sm:$0xff] %v9503_v39  ;;  %v4128_v8 = vsel %vm11717_vm9, %v9432_v36, %v9497_v42  ;;  %vm2761_vm14 = vcmp.lt.s32.totalorder %v2697_v51, 16  ;;  %v3326_v4 = vunpack.c.l.b16 %v3073_v57  ;;  %v3327_v40 = vunpack.c.h.b16 %v3073_v57 }
 0x12d   : > { %v4130_v15 = vshrl.u32 %v4065_v28, 16  ;;  %vm2889_vm6 = vmpackc.low %vm2761_vm14, %vm2761_vm14  ;;  %v4133_v45 = vshll.u32 %v4065_v28, 16  ;;  %v4498_v36 = vpack.c.b16 %v4471_v61, %v4470_v56  ;;  %v3637_v1 = vshrl.u32 %v9452_v23, 16  ;;  %v7585_v56 = vld [vmem:[%s11291_s4 + $0x1a0] sm:$0xff] }
 0x12e   : > { %v2921_v46 = vsel %vm2889_vm6, 65537, %v11572_v62  ;;  %v3641_v37 = vshll.u32 %v9515_v55, 16  ;;  %vm3330_vm2 = vcmp.ne.s32.totalorder %v3326_v4, %v8262_v10  ;;  %vm3331_vm9 = vcmp.ne.s32.totalorder %v3327_v40, %v8280_v19  ;;  %v2663_v40 = vld [vmem:[#allocation2 + $0x3c] sm:$0xf]  ;;  %5563 = vmatpush.bf16.msra.mxu2 %v7585_v56 }
 0x12f   : > { %v3076_v35 = vshrl.u32 %v2921_v46, 16  ;;  %v3079_v58 = vshll.u32 %v2921_v46, 16  ;;  %vm11718_vm14 = vnez %v11613_v21  ;;  %vm11719_vm6 = vnez %v11616_v50  ;;  %v9538_v61 = vpop.f32.mrf.mxu0  ;;  %vm9541_vm5 = vmpackc.low %vm3331_vm9, %vm3330_vm2 }
 0x130   : > { %2561 = vmatmul.bf16.gmra.mxu1 %v7506_v17  ;;  %v3957_v28 = vsel %vm11718_vm14, %v3924_v59, 0  ;;  %v3958_v57 = vsel %vm11719_vm6, %v3925_v11, 0  ;;  %v556_v23 = vadd.s32 136, %v8238_v3  ;;  %v4132_v51 = vrot.slane %v4130_v15, 3  ;;  %v11723_v15 = vld [vmem:[#allocation30_spill] sm:$0xff] }
 0x131   : > { %3817 = vmatmul.bf16.gmra.mxu2 %v3636_v6  ;;  %v9528_v6 = vld [vmem:[%s9328_s29] sm:$0xff]   ;;  %v3078_v17 = vrot.slane %v3076_v35, 7  ;;  %v7771_v4 = vunpack.c.l.bf16 %v9523_v33  ;;  %v11720_v35 = vmov 0  ;;  %v4040_v21 = vunpack.c.l.b16 %v3957_v28  ;;  %v11724_v28 = vld [vmem:[#allocation41_spill] sm:$0xff] }
 0x132   : > { %v11721_v35 = vsel %vm9541_vm5, 4294967295, %v11720_v35  ;;  %v694_v59 = vand.u32 15, %v556_v23  ;;  %v7747_v50 = vunpack.c.l.bf16 %v9528_v6  ;;  %v4041_v39 = vunpack.c.l.b16 %v3958_v57  ;;  %5564 = vmatpush.bf16.msra.mxu2 %v7584_v26 }
 0x133   : > { %4320 = vmatmul.bf16.gmra.mxu3 %v4128_v8  ;;  %v4135_v8 = vrot.slane %v4133_v45, 4  ;;  %v3081_v46 = vor.u32 %v3079_v58, %v3078_v17  ;;  %11722 = vst [vmem:[#allocation74_spill] sm:$0xff] %v11721_v35  ;;  %v3083_v11 = vrot.slane %v3078_v17, 4  ;;  %v478_v45 = vpack.c.bf16 %v11723_v15, %v11723_v15  ;;  %v7561_v58 = vld [vmem:[%s11291_s4 + $0x160] sm:$0xff] }
 0x134   : > { %v3639_v23 = vor.u32 %v3637_v1, %v9486_v63  ;;  %v9555_v17 = vrot.slane %v3641_v37, 1  ;;  %v2699_v15 = vadd.s32 1, %v694_v59  ;;  %v479_v57 = vpack.c.bf16 %v11724_v28, %v11724_v28  ;;  %5060 = vmatpush.bf16.msra.mxu1 %v7561_v58  ;;  %v2664_v1 = vld [vmem:[#allocation2 + $0x40] sm:$0xf]  ;;  %v9592_v28 = vld [vmem:[%s9328_s29 + $0x50] sm:$0xff]  }
 0x135   : > { %v3473_v2 = vsel %vm9541_vm5, %v2663_v40, 0  ;;  %v9564_v47 = vor.u32 %v4135_v8, %v4132_v51  ;;  %v1035_v63 = vadd.f32 %v9344_v38, %v7771_v4  ;;  %v3091_v37 = vsel %vm9134_vm1, %v3083_v11, %v9088_v27  ;;  %v7507_v51 = vld [vmem:[#allocation2 + $0x34] sm:$0xff] }
 0x136   : > { %vm2763_vm2 = vcmp.lt.s32.totalorder %v2699_v15, 16  ;;  %v4066_v59 = vpack.c.b16 %v4041_v39, %v4040_v21  ;;  %vm11725_vm5 = vsmask.f32 7424  ;;  %v11726_v8 = vmov 0  ;;  %v7601_v21 = vld [vmem:[%s11291_s4 + $0x220] sm:$0xff] }
 0x137   : > { %vm2891_vm14 = vmpackc.low %vm2763_vm2, %vm2763_vm2  ;;  %v3644_v9 = vsel %vm11725_vm5, %v3639_v23, %v9555_v17  ;;  %v3556_v4 = vunpack.c.l.b16 %v3473_v2  ;;  %v3340_v11 = vunpack.c.l.b16 %v3091_v37  ;;  %v3341_v23 = vunpack.c.h.b16 %v3091_v37  ;;  %6328 = vmatpush.bf16.msra.mxu0 %v7601_v21  ;;  %v9599_v35 = vpop.f32.mrf.mxu0 }
 0x138   : > { %v2923_v40 = vsel %vm2891_vm14, 65537, %v11572_v62  ;;  %vm11729_vm5 = vsmask.f32 4352  ;;  %v1023_v21 = vadd.f32 %v9344_v38, %v7747_v50  ;;  %v11736_v50 = vld [vmem:[#allocation14_spill] sm:$0xff]  ;;  %v11742_v18 = vmov 0 }
 0x139   : > { %v3094_v39 = vshrl.u32 %v2923_v40, 16  ;;  %v3097_v37 = vshll.u32 %v2923_v40, 16  ;;  %vm9604_vm14 = vcmp.ne.s32.totalorder %v3340_v11, %v8262_v10  ;;  %v3927_v40 = vld [vmem:[#allocation2 + $0x4c] sm:$0xf]  ;;  %v9615_v11 = vld [vmem:[%s9328_s29 + $0x38] sm:$0xff]  }
 0x13a   : > { %4602 = vmatmul.bf16.gmra.mxu0 %v4498_v36  ;;  %v3082_v36 = vsel %vm9134_vm1, %v9122_v20, %v3081_v46  ;;  %v9570_v46 = vunpack.c.l.b16 %v478_v45  ;;  %v4473_v45 = vunpack.c.l.b16 %v479_v57  ;;  %v7772_v57 = vunpack.c.h.bf16 %v9523_v33  ;;  %v3926_v33 = vld [vmem:[#allocation2 + $0x48] sm:$0xf] }
 0x13b   : > { %v3333_v56 = vunpack.c.l.b16 %v3082_v36  ;;  %v3334_v12 = vunpack.c.h.b16 %v3082_v36  ;;  %v4137_v36 = vsel %vm11729_vm5, %v9497_v42, %v9564_v47  ;;  %v7775_v44 = vunpack.c.l.bf16 %v9615_v11 }
 0x13c   : > { %v9662_v30 = vadd.f32 %v9505_v32, %v1023_v21 }
 0x13d   : > { %vm3337_vm9 = vcmp.ne.s32.totalorder %v3333_v56, %v8262_v10  ;;  %vm3338_vm6 = vcmp.ne.s32.totalorder %v3334_v12, %v8280_v19  ;;  %v2285_v58 = vpop.f32.mrf.mxu1  ;;  %v9595_v56 = vpop.f32.mrf.mxu2 }
 0x13e   : > { %vm9576_vm13 = vmpackc.low %vm3338_vm6, %vm3337_vm9  ;;  %v9589_v15 = vadd.f32 %v2285_v58, %v1035_v63  ;;  %11730 = vst [vmem:[#allocation41_spill] sm:$0xff] %v9595_v56  ;;  %v7787_v58 = vunpack.c.l.bf16 %v9592_v28  ;;  %vm3345_vm6 = vcmp.ne.s32.totalorder %v3341_v23, %v8280_v19  ;;  %v11733_v23 = vmov 0 }
 0x13f   : > { %v11727_v8 = vsel %vm9576_vm13, 4294967295, %v11726_v8  ;;  %v3474_v12 = vsel %vm9576_vm13, %v2664_v1, 0  ;;  %v4139_v1 = vshrl.u32 %v4066_v59, 16  ;;  %vm9623_vm2 = vmpackc.low %vm3345_vm6, %vm9604_vm14  ;;  %vm11737_vm9 = vnez %v11736_v50 }
 0x140   : > { %11728 = vst [vmem:[#allocation30_spill] sm:$0xff] %v11727_v8  ;;  %v3557_v2 = vunpack.c.l.b16 %v3474_v12  ;;  %v9597_v8 = vrot.slane %v3094_v39, 7  ;;  %2566 = vmatmul.bf16.gmra.mxu1 %v7507_v51  ;;  %v4499_v51 = vpack.c.b16 %v4473_v45, %v9570_v46  ;;  %v3645_v39 = vshrl.u32 %v9515_v55, 16  ;;  %v11738_v55 = vld [vmem:[#allocation20_spill] sm:$0xff] }
 0x141   : > { %3822 = vmatmul.bf16.gmra.mxu2 %v3644_v9  ;;  %v4142_v9 = vshll.u32 %v4066_v59, 16  ;;  %v2665_v59 = vld [vmem:[#allocation2 + $0x44] sm:$0xf]  ;;  %v11734_v23 = vsel %vm9623_vm2, 4294967295, %v11733_v23  ;;  %v3959_v46 = vsel %vm11737_vm9, %v3926_v33, 0  ;;  %vm11739_vm5 = vnez %v11738_v55 }
 0x142   : > { %v9601_v42 = vpack.c.b16 %v3557_v2, %v3556_v4  ;;  %v3099_v12 = vor.u32 %v3097_v37, %v9597_v8  ;;  %v1036_v4 = vadd.f32 %v9344_v38, %v7772_v57  ;;  %11735 = vst [vmem:[#allocation75_spill] sm:$0xff] %v11734_v23  ;;  %v1043_v56 = vadd.f32 %v9344_v38, %v7787_v58  ;;  %v11740_v58 = vld [vmem:[#allocation42_spill] sm:$0xff] }
 0x143   : > { %4325 = vmatmul.bf16.gmra.mxu3 %v4137_v36  ;;  %v4141_v36 = vrot.slane %v4139_v1, 3  ;;  %v3960_v1 = vsel %vm11739_vm5, %v3927_v40, 0  ;;  %v4144_v41 = vrot.slane %v4142_v9, 4  ;;  %v558_v50 = vadd.s32 152, %v8238_v3 }
 0x144   : > { %v3100_v2 = vsel %vm9134_vm1, %v9122_v20, %v3099_v12  ;;  %v3649_v45 = vshll.u32 %v9601_v42, 16  ;;  %v9634_v12 = vld [vmem:[%s9328_s29 + $0x70] sm:$0xff]   ;;  %v3475_v9 = vsel %vm9623_vm2, %v2665_v59, 0  ;;  %v480_v40 = vpack.c.bf16 %v11740_v58, %v11740_v58 }
 0x145   : > { %v3347_v57 = vunpack.c.l.b16 %v3100_v2  ;;  %v3348_v37 = vunpack.c.h.b16 %v3100_v2  ;;  %v2287_v63 = vpop.f32.mrf.mxu1  ;;  %v11741_v2 = vld [vmem:[#allocation8_spill] sm:$0xff]  ;;  %v7803_v59 = vunpack.c.l.bf16 %v9634_v12  ;;  %v9659_v58 = vor.u32 %v4144_v41, %v4141_v36 }
 0x146   : > { %v9638_v33 = vadd.f32 %v2287_v63, %v1036_v4  ;;  %v481_v55 = vpack.c.bf16 %v11741_v2, %v11741_v2  ;;  %v4042_v4 = vunpack.c.l.b16 %v3959_v46  ;;  %v4043_v63 = vunpack.c.l.b16 %v3960_v1  ;;  %v9664_v46 = vpop.f32.mrf.mxu0  ;;  %v9666_v1 = vpop.f32.mrf.mxu3 }
 0x147   : > { %vm3351_vm14 = vcmp.ne.s32.totalorder %v3347_v57, %v8262_v10  ;;  %vm3352_vm6 = vcmp.ne.s32.totalorder %v3348_v37, %v8280_v19  ;;  %v3647_v57 = vor.u32 %v3645_v39, %v9555_v17  ;;  %v3651_v37 = vrot.slane %v3649_v45, 1  ;;  %11745 = vst [vmem:[#allocation8_spill] sm:$0xff] %v9666_v1 }
 0x148   : > { %vm9648_vm5 = vmpackc.low %vm3352_vm6, %vm3351_vm14  ;;  %v3558_v2 = vunpack.c.l.b16 %v3475_v9  ;;  %v708_v60 = vand.u32 15, %v558_v50  ;;  %v7788_v39 = vunpack.c.h.bf16 %v9592_v28  ;;  %v1037_v45 = vadd.f32 %v9344_v38, %v7775_v44 }
 0x149   : > { %v11743_v18 = vsel %vm9648_vm5, 4294967295, %v11742_v18  ;;  %v4067_v36 = vpack.c.b16 %v4043_v63, %v4042_v4  ;;  %vm11747_vm14 = vsmask.f32 7424  ;;  %v4475_v21 = vunpack.c.l.b16 %v481_v55  ;;  %v9689_v63 = vld [vmem:[%s9328_s29 + $0x58] sm:$0xff]  }
 0x14a   : > { %4607 = vmatmul.bf16.gmra.mxu0 %v4499_v51  ;;  %11744 = vst [vmem:[#allocation42_spill] sm:$0xff] %v11743_v18  ;;  %v3476_v51 = vsel %vm9648_vm5, %v2666_v43, 0  ;;  %v2305_v23 = vpop.f32.mrf.mxu2  ;;  %v9673_v43 = vunpack.c.l.b16 %v480_v40  ;;  %v2701_v50 = vadd.s32 1, %v708_v60  ;;  %v3652_v32 = vsel %vm11747_vm14, %v3647_v57, %v3651_v37 }
 0x14b   : > { %v3559_v14 = vunpack.c.l.b16 %v3476_v51  ;;  %v9668_v17 = vadd.f32 %v2305_v23, %v1043_v56  ;;  %v1051_v9 = vadd.f32 %v9344_v38, %v7803_v59  ;;  %v7508_v51 = vld [vmem:[#allocation2 + $0x3c] sm:$0xff]  ;;  %v3101_v56 = vrot.slane %v9597_v8, 4 }
 0x14c   : > { %vm11748_vm6 = vsmask.f32 4352  ;;  %v7776_v40 = vunpack.c.h.bf16 %v9615_v11  ;;  %vm2765_vm9 = vcmp.lt.s32.totalorder %v2701_v50, 16  ;;  %v1044_v60 = vadd.f32 %v9344_v38, %v7788_v39 }
 0x14d   : > { %11746 = vst [vmem:[#allocation76_spill] sm:$0xff] %v9668_v17  ;;  %v4146_v28 = vsel %vm11748_vm6, %v9564_v47, %v9659_v58  ;;  %v2290_v44 = vpop.f32.mrf.mxu1  ;;  %v9681_v23 = vpack.c.b16 %v3559_v14, %v3558_v2  ;;  %v7804_v4 = vunpack.c.h.bf16 %v9634_v12  ;;  %vm2893_vm14 = vmpackc.low %vm2765_vm9, %vm2765_vm9  ;;  %v3109_v8 = vsel %vm9134_vm1, %v3101_v56, %v9088_v27 }
 0x14e   : > { %v9686_v55 = vadd.f32 %v2290_v44, %v1037_v45  ;;  %v3653_v14 = vshrl.u32 %v9601_v42, 16  ;;  %v4148_v47 = vshrl.u32 %v4067_v36, 16  ;;  %v2925_v11 = vsel %vm2893_vm14, 65537, %v11572_v62 }
 0x14f   : > { %v560_v57 = vadd.s32 168, %v8238_v3  ;;  %v3112_v59 = vshrl.u32 %v2925_v11, 16  ;;  %v3115_v12 = vshll.u32 %v2925_v11, 16  ;;  %v3354_v2 = vunpack.c.l.b16 %v3109_v8 }
 0x150   : > { %2571 = vmatmul.bf16.gmra.mxu1 %v7508_v51  ;;  %v3355_v39 = vunpack.c.h.b16 %v3109_v8  ;;  %v3657_v50 = vshll.u32 %v9681_v23, 16  ;;  %v4151_v44 = vshll.u32 %v4067_v36, 16  ;;  %v7791_v56 = vunpack.c.l.bf16 %v9689_v63  ;;  %v3929_v8 = vld [vmem:[#allocation2 + $0x54] sm:$0xf] }
 0x151   : > { %3827 = vmatmul.bf16.gmra.mxu2 %v3652_v32  ;;  %v1038_v32 = vadd.f32 %v9344_v38, %v7776_v40  ;;  %v3114_v41 = vrot.slane %v3112_v59, 7  ;;  %vm9703_vm9 = vcmp.ne.s32.totalorder %v3354_v2, %v8262_v10  ;;  %v4500_v36 = vpack.c.b16 %v4475_v21, %v9673_v43  ;;  %v11754_v40 = vld [vmem:[#allocation11_spill] sm:$0xff]  ;;  %v11755_v59 = vld [vmem:[#allocation12_spill] sm:$0xff] }
 0x152   : > { %v2307_v45 = vpop.f32.mrf.mxu2  ;;  %vm9708_vm6 = vcmp.ne.s32.totalorder %v3355_v39, %v8280_v19  ;;  %v1052_v11 = vadd.f32 %v9344_v38, %v7804_v4  ;;  %v4150_v39 = vrot.slane %v4148_v47, 3  ;;  %v722_v43 = vand.u32 15, %v560_v57  ;;  %v11762_v47 = vld [vmem:[#allocation21_spill] sm:$0xff] }
 0x153   : > { %4330 = vmatmul.bf16.gmra.mxu3 %v4146_v28  ;;  %v9700_v42 = vadd.f32 %v2307_v45, %v1044_v60  ;;  %v3928_v28 = vld [vmem:[#allocation2 + $0x50] sm:$0xf]  ;;  %v3117_v17 = vor.u32 %v3115_v12, %v3114_v41  ;;  %v4153_v4 = vrot.slane %v4151_v44, 4  ;;  %v2667_v60 = vld [vmem:[#allocation2 + $0x4c] sm:$0xf]  ;;  %vm9729_vm14 = vmpackc.low %vm9708_vm6, %vm9703_vm9  ;;  %v11757_v2 = vmov 0 }
 0x154   : > { %v11758_v2 = vsel %vm9729_vm14, 4294967295, %v11757_v2  ;;  %vm11763_vm2 = vnez %v11762_v47  ;;  %v9737_v57 = vrot.slane %v3657_v50, 1  ;;  %v9746_v44 = vld [vmem:[%s9328_s29 + $0x78] sm:$0xff]  }
 0x155   : > { %11749 = vst [vmem:[#allocation77_spill] sm:$0xff] %v9700_v42  ;;  %v3655_v42 = vor.u32 %v3653_v14, %v3651_v37  ;;  %v2292_v52 = vpop.f32.mrf.mxu1  ;;  %v11760_v37 = vld [vmem:[#allocation18_spill] sm:$0xff]  ;;  %v3962_v12 = vsel %vm11763_vm2, %v3929_v8, 0  ;;  %v3118_v18 = vsel %vm9134_vm1, %v9122_v20, %v3117_v17  ;;  %v3477_v17 = vsel %vm9729_vm14, %v2667_v60, 0 }
 0x156   : > { %v2325_v1 = vpop.f32.mrf.mxu3  ;;  %11759 = vst [vmem:[#allocation12_spill] sm:$0xff] %v11758_v2  ;;  %vm11761_vm5 = vnez %v11760_v37  ;;  %v3361_v51 = vunpack.c.l.b16 %v3118_v18  ;;  %v3362_v37 = vunpack.c.h.b16 %v3118_v18  ;;  %v7560_v50 = vld [vmem:[%s11291_s4 + $0x158] sm:$0xff]  ;;  %v4045_v8 = vunpack.c.l.b16 %v3962_v12 }
 0x157   : > { %v9718_v45 = vpop.f32.mrf.mxu0  ;;  %v9723_v21 = vadd.f32 %v2325_v1, %v1051_v9  ;;  %v3961_v14 = vsel %vm11761_vm5, %v3928_v28, 0  ;;  %v1045_v1 = vadd.f32 %v9344_v38, %v7791_v56  ;;  %v9740_v9 = vadd.f32 %v2292_v52, %v1038_v32  ;;  %v7592_v28 = vld [vmem:[%s11291_s4 + $0x1d8] sm:$0xff]  ;;  %v2668_v32 = vld [vmem:[#allocation2 + $0x50] sm:$0xf]  ;;  %5061 = vmatpush.bf16.msra.mxu1 %v7560_v50 }
 0x158   : > { %v2703_v52 = vadd.s32 1, %v722_v43  ;;  %v3119_v56 = vrot.slane %v3114_v41, 4  ;;  %v4044_v26 = vunpack.c.l.b16 %v3961_v14  ;;  %vm3365_vm9 = vcmp.ne.s32.totalorder %v3361_v51, %v8262_v10  ;;  %5846 = vmatpush.bf16.msra.mxu3 %v7592_v28 }
 0x159   : > { %11756 = vst [vmem:[#allocation11_spill] sm:$0xff] %v9723_v21  ;;  %vm3366_vm6 = vcmp.ne.s32.totalorder %v3362_v37, %v8280_v19  ;;  %v9762_v43 = vor.u32 %v4153_v4, %v4150_v39  ;;  %v7807_v60 = vunpack.c.l.bf16 %v9746_v44  ;;  %v7792_v14 = vunpack.c.h.bf16 %v9689_v63  ;;  %v7600_v63 = vld [vmem:[%s11291_s4 + $0x218] sm:$0xff] }
 0x15a   : > { %11764 = vst [vmem:[#allocation78_spill] sm:$0xff] %v9740_v9  ;;  %4612 = vmatmul.bf16.gmra.mxu0 %v4500_v36  ;;  %v562_v36 = vadd.s32 184, %v8238_v3  ;;  %v2310_v47 = vpop.f32.mrf.mxu2  ;;  %vm2767_vm2 = vcmp.lt.s32.totalorder %v2703_v52, 16  ;;  %v3127_v41 = vsel %vm9134_vm1, %v3119_v56, %v9088_v27  ;;  %vm9768_vm5 = vmpackc.low %vm3366_vm6, %vm3365_vm9  ;;  %v11766_v12 = vmov 0 }
 0x15b   : > { %v9764_v18 = vadd.f32 %v2310_v47, %v1045_v1  ;;  %v11767_v12 = vsel %vm9768_vm5, 4294967295, %v11766_v12  ;;  %vm11769_vm14 = vsmask.f32 7424  ;;  %v3478_v51 = vsel %vm9768_vm5, %v2668_v32, 0  ;;  %vm2895_vm13 = vmpackc.low %vm2767_vm2, %vm2767_vm2  ;;  %v7509_v1 = vld [vmem:[#allocation2 + $0x44] sm:$0xff]  ;;  %6329 = vmatpush.bf16.msra.mxu0 %v7600_v63 }
 0x15c   : > { %11768 = vst [vmem:[#allocation80_spill] sm:$0xff] %v11767_v12  ;;  %v3660_v37 = vsel %vm11769_vm14, %v3655_v42, %v9737_v57  ;;  %v3560_v28 = vunpack.c.l.b16 %v3477_v17  ;;  %v736_v39 = vand.u32 15, %v562_v36  ;;  %v3561_v50 = vunpack.c.l.b16 %v3478_v51 }
 0x15d   : > { %11765 = vst [vmem:[#allocation79_spill] sm:$0xff] %v9764_v18  ;;  %v2927_v52 = vsel %vm2895_vm13, 65537, %v11572_v62  ;;  %v3368_v56 = vunpack.c.l.b16 %v3127_v41  ;;  %v3369_v2 = vunpack.c.h.b16 %v3127_v41  ;;  %v2537_v12 = vpop.f32.mrf.mxu1  ;;  %v4068_v32 = vpack.c.b16 %v4045_v8, %v4044_v26 }
 0x15e   : > { %v2327_v47 = vpop.f32.mrf.mxu3  ;;  %v3130_v17 = vshrl.u32 %v2927_v52, 16  ;;  %v3133_v21 = vshll.u32 %v2927_v52, 16  ;;  %vm11771_vm2 = vsmask.f32 4352  ;;  %v11772_v51 = vpack.c.bf16 %v11754_v40, %v11754_v40 }
 0x15f   : > { %v9776_v4 = vpop.f32.mrf.mxu0  ;;  %v9782_v42 = vadd.f32 %v2327_v47, %v1052_v11  ;;  %v4155_v36 = vsel %vm11771_vm2, %v9659_v58, %v9762_v43  ;;  %v1046_v9 = vadd.f32 %v9344_v38, %v7792_v14  ;;  %v9792_v29 = vadd.f32 %v2537_v12, %v9662_v30  ;;  %v3930_v14 = vld [vmem:[#allocation2 + $0x58] sm:$0xf] }
 0x160   : > { %v4476_v18 = vunpack.c.l.b16 %v11772_v51  ;;  %v11773_v11 = vpack.c.bf16 %v11755_v59, %v11755_v59  ;;  %v9797_v8 = vpack.c.b16 %v3561_v50, %v3560_v28  ;;  %v3132_v41 = vrot.slane %v3130_v17, 7  ;;  %2576 = vmatmul.bf16.gmra.mxu1 %v7509_v1  ;;  %v2669_v17 = vld [vmem:[#allocation2 + $0x54] sm:$0xf] }
 0x161   : > { %11770 = vst [vmem:[#allocation81_spill] sm:$0xff] %v9782_v42  ;;  %3832 = vmatmul.bf16.gmra.mxu2 %v3660_v37  ;;  %v2705_v47 = vadd.s32 1, %v736_v39  ;;  %v1053_v58 = vadd.f32 %v9344_v38, %v7807_v60  ;;  %vm9801_vm13 = vcmp.ne.s32.totalorder %v3368_v56, %v8262_v10  ;;  %vm9806_vm14 = vcmp.ne.s32.totalorder %v3369_v2, %v8280_v19  ;;  %v3931_v60 = vld [vmem:[#allocation2 + $0x5c] sm:$0xf] }
 0x162   : > { %v4477_v26 = vunpack.c.l.b16 %v11773_v11  ;;  %v2312_v59 = vpop.f32.mrf.mxu2  ;;  %v3661_v12 = vshrl.u32 %v9681_v23, 16  ;;  %v4157_v37 = vshrl.u32 %v4068_v32, 16  ;;  %v4160_v28 = vshll.u32 %v4068_v32, 16  ;;  %vm9825_vm6 = vmpackc.low %vm9806_vm14, %vm9801_vm13 }
 0x163   : > { %4335 = vmatmul.bf16.gmra.mxu3 %v4155_v36  ;;  %v3135_v39 = vor.u32 %v3133_v21, %v3132_v41  ;;  %v7748_v1 = vunpack.c.h.bf16 %v9528_v6  ;;  %v11778_v50 = vunpack.c.l.bf16 %v9653_v34  ;;  %v9815_v52 = vadd.f32 %v2312_v59, %v1046_v9  ;;  %v11783_v21 = vld [vmem:[#allocation37_spill] sm:$0xff] }
 0x164   : > { %vm2769_vm9 = vcmp.lt.s32.totalorder %v2705_v47, 16  ;;  %v4501_v2 = vpack.c.b16 %v4477_v26, %v4476_v18  ;;  %v3665_v56 = vshll.u32 %v9797_v8, 16  ;;  %v11780_v6 = vmov 0  ;;  %v11785_v26 = vld [vmem:[#allocation38_spill] sm:$0xff] }
 0x165   : > { %v1025_v63 = vadd.f32 %v9344_v38, %v11778_v50  ;;  %11779 = vst [vmem:[#allocation82_spill] sm:$0xff] %v9815_v52  ;;  %v3136_v23 = vsel %vm9134_vm1, %v9122_v20, %v3135_v39  ;;  %v11781_v6 = vsel %vm9825_vm6, 4294967295, %v11780_v6  ;;  %vm11784_vm2 = vnez %v11783_v21  ;;  %vm2897_vm11 = vmpackc.low %vm2769_vm9, %vm2769_vm9  ;;  %v9839_v50 = vpop.f32.mrf.mxu1 }
 0x166   : > { %11782 = vst [vmem:[#allocation83_spill] sm:$0xff] %v11781_v6  ;;  %v3963_v9 = vsel %vm11784_vm2, %v3930_v14, 0  ;;  %v2330_v18 = vpop.f32.mrf.mxu3  ;;  %v7808_v36 = vunpack.c.h.bf16 %v9746_v44  ;;  %v3375_v51 = vunpack.c.l.b16 %v3136_v23  ;;  %v3376_v11 = vunpack.c.h.b16 %v3136_v23  ;;  %v2670_v14 = vld [vmem:[#allocation2 + $0x58] sm:$0xf] }
 0x167   : > { %v9831_v32 = vpop.f32.mrf.mxu0  ;;  %vm11786_vm5 = vnez %v11785_v26  ;;  %v9836_v40 = vadd.f32 %v2330_v18, %v1053_v58  ;;  %v3663_v30 = vor.u32 %v3661_v12, %v9737_v57  ;;  %v4159_v59 = vrot.slane %v4157_v37, 3 }
 0x168   : > { %v3964_v47 = vsel %vm11786_vm5, %v3931_v60, 0  ;;  %v4162_v39 = vrot.slane %v4160_v28, 4  ;;  %vm3379_vm13 = vcmp.ne.s32.totalorder %v3375_v51, %v8262_v10  ;;  %vm3380_vm14 = vcmp.ne.s32.totalorder %v3376_v11, %v8280_v19 }
 0x169   : > { %11787 = vst [vmem:[#allocation84_spill] sm:$0xff] %v9836_v40  ;;  %v3479_v44 = vsel %vm9825_vm6, %v2669_v17, 0  ;;  %v4046_v23 = vunpack.c.l.b16 %v3963_v9  ;;  %v9845_v60 = vrot.slane %v3665_v56, 1  ;;  %vm9847_vm9 = vmpackc.low %vm3380_vm14, %vm3379_vm13  ;;  %v11788_v58 = vmov 0  ;;  %v11792_v9 = vld [vmem:[#allocation31_spill] sm:$0xff]  ;;  %v7510_v40 = vld [vmem:[#allocation2 + $0x4c] sm:$0xff] }
 0x16a   : > { %4617 = vmatmul.bf16.gmra.mxu0 %v4501_v2  ;;  %v11789_v58 = vsel %vm9847_vm9, 4294967295, %v11788_v58  ;;  %v4047_v57 = vunpack.c.l.b16 %v3964_v47  ;;  %v2929_v12 = vsel %vm2897_vm11, 65537, %v11572_v62  ;;  %v3137_v37 = vrot.slane %v3132_v41, 4  ;;  %v11791_v2 = vld [vmem:[#allocation13_spill] sm:$0xff] }
 0x16b   : > { %11790 = vst [vmem:[#allocation85_spill] sm:$0xff] %v11789_v58  ;;  %v3480_v28 = vsel %vm9847_vm9, %v2670_v14, 0  ;;  %v3148_v18 = vshrl.u32 %v2929_v12, 16  ;;  %v3151_v51 = vshll.u32 %v2929_v12, 16  ;;  %v564_v11 = vadd.s32 200, %v8238_v3 }
 0x16c   : > { %v1054_v17 = vadd.f32 %v9344_v38, %v7808_v36  ;;  %v484_v56 = vpack.c.bf16 %v11791_v2, %v11791_v2  ;;  %v485_v26 = vpack.c.bf16 %v11792_v9, %v11792_v9  ;;  %v3145_v47 = vsel %vm9134_vm1, %v3137_v37, %v9088_v27 }
 0x16d   : > { %v2337_v41 = vadd.f32 %v9599_v35, %v1025_v63  ;;  %v9864_v21 = vor.u32 %v4162_v39, %v4159_v59  ;;  %v9866_v14 = vrot.slane %v3148_v18, 7  ;;  %vm11793_vm11 = vsmask.f32 7424 }
 0x16e   : > { %v3668_v12 = vsel %vm11793_vm11, %v3663_v30, %v9845_v60  ;;  %v3562_v36 = vunpack.c.l.b16 %v3479_v44  ;;  %v3563_v58 = vunpack.c.l.b16 %v3480_v28  ;;  %v4069_v2 = vpack.c.b16 %v4047_v57, %v4046_v23  ;;  %v2332_v9 = vpop.f32.mrf.mxu3  ;;  %v2542_v44 = vpop.f32.mrf.mxu1 }
 0x16f   : > { %v9870_v6 = vpop.f32.mrf.mxu0  ;;  %v3153_v42 = vor.u32 %v3151_v51, %v9866_v14  ;;  %v3382_v37 = vunpack.c.l.b16 %v3145_v47  ;;  %v3383_v52 = vunpack.c.h.b16 %v3145_v47  ;;  %v750_v35 = vand.u32 15, %v564_v11  ;;  %v3798_v30 = vpop.f32.mrf.mxu2 }
 0x170   : > { %v1024_v63 = vadd.f32 %v9344_v38, %v7748_v1  ;;  %v9874_v59 = vadd.f32 %v2332_v9, %v1054_v17  ;;  %v4478_v39 = vunpack.c.l.b16 %v484_v56  ;;  %v4479_v18 = vunpack.c.l.b16 %v485_v26  ;;  %v3932_v1 = vld [vmem:[#allocation2 + $0x60] sm:$0xf]  ;;  %v3933_v56 = vld [vmem:[#allocation2 + $0x64] sm:$0xf]  ;;  %2581 = vmatmul.bf16.gmra.mxu1 %v7510_v40  ;;  %v11810_v40 = vld [vmem:[#allocation45_spill] sm:$0xff] }
 0x171   : > { %vm11794_vm13 = vsmask.f32 4352  ;;  %v3878_v57 = vadd.f32 %v3798_v30, %v9792_v29  ;;  %v9883_v28 = vadd.f32 %v2542_v44, %v2337_v41  ;;  %v3154_v38 = vsel %vm9134_vm1, %v9122_v20, %v3153_v42  ;;  %3837 = vmatmul.bf16.gmra.mxu2 %v3668_v12  ;;  %v11795_v42 = vld [vmem:[#allocation51_spill] sm:$0xff] }
 0x172   : > { %v4164_v23 = vsel %vm11794_vm13, %v9762_v43, %v9864_v21  ;;  %v4166_v51 = vshrl.u32 %v4069_v2, 16  ;;  %v4169_v26 = vshll.u32 %v4069_v2, 16  ;;  %v3389_v11 = vunpack.c.l.b16 %v3154_v38 }
 0x173   : > { %v3390_v17 = vunpack.c.h.b16 %v3154_v38  ;;  %v9888_v47 = vpack.c.b16 %v3563_v58, %v3562_v36  ;;  %vm3386_vm14 = vcmp.ne.s32.totalorder %v3382_v37, %v8262_v10  ;;  %vm3387_vm11 = vcmp.ne.s32.totalorder %v3383_v52, %v8280_v19  ;;  %4340 = vmatmul.bf16.gmra.mxu3 %v4164_v23  ;;  %v11801_v52 = vld [vmem:[#allocation52_spill] sm:$0xff]  ;;  %v7583_v23 = vld [vmem:[%s11291_s4 + $0x190] sm:$0xff] }
 0x174   : > { %v2707_v29 = vadd.s32 1, %v750_v35  ;;  %v2336_v43 = vadd.f32 %v9538_v61, %v1024_v63  ;;  %v7755_v41 = vunpack.c.l.bf16 %v9877_v54  ;;  %vm11796_vm13 = vnez %v11795_v42  ;;  %vm9909_vm6 = vmpackc.low %vm3387_vm11, %vm3386_vm14  ;;  %5565 = vmatpush.bf16.msra.mxu2 %v7583_v23 }
 0x175   : > { %v3965_v12 = vsel %vm11796_vm13, %v3932_v1, 0  ;;  %v4502_v2 = vpack.c.b16 %v4479_v18, %v4478_v39  ;;  %vm9897_vm5 = vcmp.ne.s32.totalorder %v3389_v11, %v8262_v10  ;;  %vm9902_vm2 = vcmp.ne.s32.totalorder %v3390_v17, %v8280_v19 }
 0x176   : > { %vm11802_vm9 = vnez %v11801_v52  ;;  %v3669_v58 = vshrl.u32 %v9797_v8, 16  ;;  %v4168_v36 = vrot.slane %v4166_v51, 3  ;;  %v4171_v37 = vrot.slane %v4169_v26, 4  ;;  %v4301_v39 = vpop.f32.mrf.mxu3  ;;  %v9918_v1 = vpop.f32.mrf.mxu1  ;;  %v2671_v51 = vld [vmem:[#allocation2 + $0x5c] sm:$0xf]  ;;  %vm9924_vm14 = vmpackc.low %vm9902_vm2, %vm9897_vm5 }
 0x177   : > { %v3966_v61 = vsel %vm11802_vm9, %v3933_v56, 0  ;;  %v11803_v35 = vmov 0  ;;  %vm2771_vm13 = vcmp.lt.s32.totalorder %v2707_v29, 16  ;;  %v4583_v63 = vpop.f32.mrf.mxu0  ;;  %v2618_v18 = vadd.f32 %v9839_v50, %v2336_v43  ;;  %v3800_v38 = vpop.f32.mrf.mxu2  ;;  %v2672_v26 = vld [vmem:[#allocation2 + $0x60] sm:$0xf] }
 0x178   : > { %v11804_v35 = vsel %vm9909_vm6, 4294967295, %v11803_v35  ;;  %v3673_v30 = vshll.u32 %v9888_v47, 16  ;;  %v4048_v44 = vunpack.c.l.b16 %v3965_v12  ;;  %vm2899_vm9 = vmpackc.low %vm2771_vm13, %vm2771_vm13  ;;  %v4381_v8 = vadd.f32 %v4301_v39, %v3878_v57  ;;  %v9933_v57 = vld [vmem:[%s11292_s5] ss:$0 sm:$0xff]  ;;  %v11809_v12 = vld [vmem:[#allocation32_spill] sm:$0xff] }
 0x179   : > { %11805 = vst [vmem:[#allocation13_spill] sm:$0xff] %v11804_v35  ;;  %v11806_v50 = vmov 0  ;;  %v4049_v11 = vunpack.c.l.b16 %v3966_v61  ;;  %v2931_v17 = vsel %vm2899_vm9, 65537, %v11572_v62  ;;  %v3155_v56 = vrot.slane %v9866_v14, 4  ;;  %v7591_v14 = vld [vmem:[%s11291_s4 + $0x1d0] sm:$0xff] }
 0x17a   : > { %v11807_v50 = vsel %vm9924_vm14, 4294967295, %v11806_v50  ;;  %v1027_v29 = vadd.f32 %v9933_v57, %v7755_v41  ;;  %v3879_v43 = vadd.f32 %v3800_v38, %v2618_v18  ;;  %v486_v9 = vpack.c.bf16 %v11809_v12, %v11809_v12  ;;  %4622 = vmatmul.bf16.gmra.mxu0 %v4502_v2  ;;  %v7559_v41 = vld [vmem:[%s11291_s4 + $0x150] sm:$0xff]  ;;  %5847 = vmatpush.bf16.msra.mxu3 %v7591_v14 }
 0x17b   : > { %11808 = vst [vmem:[#allocation31_spill] sm:$0xff] %v11807_v50  ;;  %v487_v39 = vpack.c.bf16 %v11810_v40, %v11810_v40  ;;  %v3671_v61 = vor.u32 %v3669_v58, %v9845_v60  ;;  %v9941_v52 = vor.u32 %v4171_v37, %v4168_v36  ;;  %v3166_v18 = vshrl.u32 %v2931_v17, 16  ;;  %5062 = vmatpush.bf16.msra.mxu1 %v7559_v41 }
 0x17c   : > { %v3169_v38 = vshll.u32 %v2931_v17, 16  ;;  %v9949_v12 = vrot.slane %v3673_v30, 1  ;;  %v3481_v23 = vsel %vm9909_vm6, %v2671_v51, 0  ;;  %v3482_v60 = vsel %vm9924_vm14, %v2672_v26, 0 }
 0x17d   : > { %v566_v2 = vadd.s32 216, %v8238_v3  ;;  %v4070_v58 = vpack.c.b16 %v4049_v11, %v4048_v44  ;;  %v3163_v36 = vsel %vm9134_vm1, %v3155_v56, %v9088_v27  ;;  %v9959_v37 = vrot.slane %v3166_v18, 7  ;;  %v7511_v18 = vld [vmem:[#allocation2 + $0x54] sm:$0xff] }
 0x17e   : > { %v9961_v17 = vadd.f32 %v4583_v63, %v4381_v8  ;;  %v7752_v30 = vunpack.c.h.bf16 %v9653_v34  ;;  %v2339_v51 = vadd.f32 %v9718_v45, %v1027_v29  ;;  %v7756_v40 = vunpack.c.h.bf16 %v9877_v54  ;;  %v4303_v56 = vpop.f32.mrf.mxu3  ;;  %v7599_v34 = vld [vmem:[%s11291_s4 + $0x210] sm:$0xff] }
 0x17f   : > { %v9966_v26 = vunpack.c.l.b16 %v486_v9  ;;  %v3564_v42 = vunpack.c.l.b16 %v3481_v23  ;;  %v3565_v44 = vunpack.c.l.b16 %v3482_v60  ;;  %v3171_v11 = vor.u32 %v3169_v38, %v9959_v37  ;;  %v4585_v41 = vpop.f32.mrf.mxu0  ;;  %v2547_v38 = vpop.f32.mrf.mxu1  ;;  %6330 = vmatpush.bf16.msra.mxu0 %v7599_v34 }
 0x180   : > { %11811 = vst [vmem:[#allocation32_spill] sm:$0xff] %v9961_v17  ;;  %v764_v14 = vand.u32 15, %v566_v2  ;;  %vm11812_vm5 = vsmask.f32 7424  ;;  %v4481_v8 = vunpack.c.l.b16 %v487_v39  ;;  %v3396_v54 = vunpack.c.l.b16 %v3163_v36  ;;  %2586 = vmatmul.bf16.gmra.mxu1 %v7511_v18 }
 0x181   : > { %v3676_v63 = vsel %vm11812_vm5, %v3671_v61, %v9949_v12  ;;  %v3397_v45 = vunpack.c.h.b16 %v3163_v36  ;;  %v4382_v29 = vadd.f32 %v4303_v56, %v3879_v43  ;;  %vm11813_vm2 = vsmask.f32 4352  ;;  %v9981_v61 = vld [vmem:[%s9328_s29 + $0x18] sm:$0xff]  }
 0x182   : > { %v4173_v9 = vsel %vm11813_vm2, %v9864_v21, %v9941_v52  ;;  %v4175_v23 = vshrl.u32 %v4070_v58, 16  ;;  %v3172_v60 = vsel %vm9134_vm1, %v9122_v20, %v3171_v11  ;;  %v9983_v39 = vadd.f32 %v2547_v38, %v2339_v51  ;;  %3842 = vmatmul.bf16.gmra.mxu2 %v3676_v63  ;;  %v2674_v38 = vld [vmem:[#allocation2 + $0x68] sm:$0xf] }
 0x183   : > { %v3403_v2 = vunpack.c.l.b16 %v3172_v60  ;;  %v3404_v17 = vunpack.c.h.b16 %v3172_v60  ;;  %v2709_v50 = vadd.s32 1, %v764_v14  ;;  %v1026_v43 = vadd.f32 %v9933_v57, %v7752_v30  ;;  %v3934_v30 = vld [vmem:[#allocation2 + $0x68] sm:$0xf]  ;;  %4345 = vmatmul.bf16.gmra.mxu3 %v4173_v9  ;;  %v2673_v9 = vld [vmem:[#allocation2 + $0x64] sm:$0xf] }
 0x184   : > { %v9986_v36 = vpack.c.b16 %v3565_v44, %v3564_v42  ;;  %v4178_v21 = vshll.u32 %v4070_v58, 16  ;;  %v9988_v56 = vadd.f32 %v4585_v41, %v4382_v29  ;;  %v1028_v35 = vadd.f32 %v9933_v57, %v7756_v40  ;;  %v3935_v44 = vld [vmem:[#allocation2 + $0x6c] sm:$0xf]  ;;  %v3803_v41 = vpop.f32.mrf.mxu2 }
 0x185   : > { %vm9992_vm9 = vcmp.ne.s32.totalorder %v3396_v54, %v8262_v10  ;;  %vm9997_vm11 = vcmp.ne.s32.totalorder %v3397_v45, %v8280_v19  ;;  %vm2773_vm13 = vcmp.lt.s32.totalorder %v2709_v50, 16  ;;  %v7759_v42 = vunpack.c.l.bf16 %v9981_v61  ;;  %v11824_v45 = vld [vmem:[#allocation22_spill] sm:$0xff]  ;;  %v11828_v60 = vld [vmem:[#allocation24_spill] sm:$0xff] }
 0x186   : > { %vm10003_vm5 = vcmp.ne.s32.totalorder %v3403_v2, %v8262_v10  ;;  %vm10008_vm2 = vcmp.ne.s32.totalorder %v3404_v17, %v8280_v19  ;;  %v4503_v14 = vpack.c.b16 %v4481_v8, %v9966_v26  ;;  %v3677_v63 = vshrl.u32 %v9888_v47, 16  ;;  %vm2901_vm14 = vmpackc.low %vm2773_vm13, %vm2773_vm13 }
 0x187   : > { %v4177_v50 = vrot.slane %v4175_v23, 3  ;;  %v3880_v18 = vadd.f32 %v3803_v41, %v9883_v28  ;;  %v3681_v34 = vshll.u32 %v9986_v36, 16  ;;  %v4180_v54 = vrot.slane %v4178_v21, 4  ;;  %vm10020_vm6 = vmpackc.low %vm9997_vm11, %vm9992_vm9  ;;  %v4588_v29 = vpop.f32.mrf.mxu0  ;;  %v4306_v28 = vpop.f32.mrf.mxu3 }
 0x188   : > { %v11822_v17 = vmov 0  ;;  %vm11825_vm10 = vnez %v11824_v45  ;;  %v2338_v47 = vadd.f32 %v9664_v46, %v1026_v43  ;;  %v2340_v8 = vadd.f32 %v9776_v4, %v1028_v35  ;;  %vm10032_vm13 = vmpackc.low %vm10008_vm2, %vm10003_vm5  ;;  %v11830_v35 = vld [vmem:[#allocation46_spill] sm:$0xff]  ;;  %v2549_v11 = vpop.f32.mrf.mxu1 }
 0x189   : > { %v11823_v17 = vsel %vm10020_vm6, 4294967295, %v11822_v17  ;;  %v3967_v26 = vsel %vm11825_vm10, %v3934_v30, 0  ;;  %v11826_v23 = vmov 0  ;;  %vm11829_vm9 = vnez %v11828_v60 }
 0x18a   : > { %v11827_v23 = vsel %vm10032_vm13, 4294967295, %v11826_v23  ;;  %v3968_v2 = vsel %vm11829_vm9, %v3935_v44, 0  ;;  %v2933_v21 = vsel %vm2901_vm14, 65537, %v11572_v62  ;;  %v1029_v46 = vadd.f32 %v9933_v57, %v7759_v42  ;;  %4627 = vmatmul.bf16.gmra.mxu0 %v4503_v14 }
 0x18b   : > { %v4383_v4 = vadd.f32 %v4306_v28, %v3880_v18  ;;  %v488_v43 = vpack.c.bf16 %v11830_v35, %v11830_v35  ;;  %v3184_v51 = vshrl.u32 %v2933_v21, 16  ;;  %v10042_v30 = vadd.f32 %v2549_v11, %v2340_v8 }
 0x18c   : > { %v4050_v58 = vunpack.c.l.b16 %v3967_v26  ;;  %v3173_v40 = vrot.slane %v9959_v37, 4  ;;  %v3187_v41 = vshll.u32 %v2933_v21, 16  ;;  %v3483_v44 = vsel %vm10020_vm6, %v2673_v9, 0 }
 0x18d   : > { %v3484_v60 = vsel %vm10032_vm13, %v2674_v38, 0  ;;  %v4051_v42 = vunpack.c.l.b16 %v3968_v2  ;;  %v10049_v18 = vrot.slane %v3184_v51, 7  ;;  %v3679_v28 = vor.u32 %v3677_v63, %v9949_v12  ;;  %v3805_v38 = vpop.f32.mrf.mxu2 }
 0x18e   : > { %v10052_v35 = vrot.slane %v3681_v34, 1  ;;  %v10054_v8 = vor.u32 %v4180_v54, %v4177_v50  ;;  %v10056_v26 = vadd.f32 %v4588_v29, %v4383_v4  ;;  %v2620_v37 = vadd.f32 %v9918_v1, %v2338_v47  ;;  %v11832_v50 = vld [vmem:[#allocation15_spill] sm:$0xff] }
 0x18f   : > { %v3189_v14 = vor.u32 %v3187_v41, %v10049_v18  ;;  %v568_v9 = vadd.s32 232, %v8238_v3  ;;  %v7760_v21 = vunpack.c.h.bf16 %v9981_v61  ;;  %v3566_v2 = vunpack.c.l.b16 %v3483_v44  ;;  %v4590_v29 = vpop.f32.mrf.mxu0  ;;  %v4308_v61 = vpop.f32.mrf.mxu3 }
 0x190   : > { %11831 = vst [vmem:[#allocation45_spill] sm:$0xff] %v10056_v26  ;;  %v3567_v11 = vunpack.c.l.b16 %v3484_v60  ;;  %v3181_v12 = vsel %vm9134_vm1, %v3173_v40, %v9088_v27  ;;  %v3881_v63 = vadd.f32 %v3805_v38, %v2620_v37  ;;  %v489_v34 = vpack.c.bf16 %v11832_v50, %v11832_v50  ;;  %v7512_v40 = vld [vmem:[#allocation2 + $0x5c] sm:$0xff]  ;;  %v2552_v44 = vpop.f32.mrf.mxu1 }
 0x191   : > { %v4071_v54 = vpack.c.b16 %v4051_v42, %v4050_v58  ;;  %v3190_v1 = vsel %vm9134_vm1, %v9122_v20, %v3189_v14  ;;  %v2341_v47 = vadd.f32 %v9831_v32, %v1029_v46  ;;  %vm11833_vm14 = vsmask.f32 7424  ;;  %2591 = vmatmul.bf16.gmra.mxu1 %v7512_v40 }
 0x192   : > { %v3684_v60 = vsel %vm11833_vm14, %v3679_v28, %v10052_v35  ;;  %vm11834_vm11 = vsmask.f32 4352  ;;  %v4482_v51 = vunpack.c.l.b16 %v488_v43  ;;  %v4384_v41 = vadd.f32 %v4308_v61, %v3881_v63 }
 0x193   : > { %v4182_v4 = vsel %vm11834_vm11, %v9941_v52, %v10054_v8  ;;  %v3410_v58 = vunpack.c.l.b16 %v3181_v12  ;;  %v3411_v42 = vunpack.c.h.b16 %v3181_v12  ;;  %v778_v37 = vand.u32 15, %v568_v9  ;;  %3847 = vmatmul.bf16.gmra.mxu2 %v3684_v60  ;;  %v3936_v12 = vld [vmem:[#allocation2 + $0x70] sm:$0xf] }
 0x194   : > { %v10076_v38 = vadd.f32 %v2552_v44, %v2341_v47  ;;  %v10078_v14 = vpack.c.b16 %v3567_v11, %v3566_v2  ;;  %v3417_v32 = vunpack.c.l.b16 %v3190_v1  ;;  %v3418_v46 = vunpack.c.h.b16 %v3190_v1  ;;  %4350 = vmatmul.bf16.gmra.mxu3 %v4182_v4  ;;  %v8060_v1 = vld [vmem:[%s9328_s29 + $0x20] sm:$0xff]  }
 0x195   : > { %v4483_v50 = vunpack.c.l.b16 %v489_v34  ;;  %v4184_v28 = vshrl.u32 %v4071_v54, 16  ;;  %v2711_v45 = vadd.s32 1, %v778_v37  ;;  %v10080_v26 = vadd.f32 %v4590_v29, %v4384_v41  ;;  %v3808_v63 = vpop.f32.mrf.mxu2 }
 0x196   : > { %v1030_v52 = vadd.f32 %v9933_v57, %v7760_v21  ;;  %v4187_v43 = vshll.u32 %v4071_v54, 16  ;;  %v3685_v9 = vshrl.u32 %v9986_v36, 16  ;;  %vm10085_vm5 = vcmp.ne.s32.totalorder %v3410_v58, %v8262_v10  ;;  %v3937_v54 = vld [vmem:[#allocation2 + $0x74] sm:$0xf]  ;;  %v2675_v58 = vld [vmem:[#allocation2 + $0x6c] sm:$0xf] }
 0x197   : > { %vm10090_vm2 = vcmp.ne.s32.totalorder %v3411_v42, %v8280_v19  ;;  %v3689_v34 = vshll.u32 %v10078_v14, 16  ;;  %vm10096_vm14 = vcmp.ne.s32.totalorder %v3417_v32, %v8262_v10  ;;  %vm10101_vm11 = vcmp.ne.s32.totalorder %v3418_v46, %v8280_v19  ;;  %v4593_v40 = vpop.f32.mrf.mxu0  ;;  %v4311_v41 = vpop.f32.mrf.mxu3  ;;  %v11847_v32 = vld [vmem:[#allocation16_spill] sm:$0xff] }
 0x198   : > { %vm2775_vm9 = vcmp.lt.s32.totalorder %v2711_v45, 16  ;;  %v7764_v47 = vunpack.c.h.bf16 %v8060_v1  ;;  %v4504_v29 = vpack.c.b16 %v4483_v50, %v4482_v51  ;;  %v3882_v61 = vadd.f32 %v3808_v63, %v9983_v39  ;;  %vm10112_vm13 = vmpackc.low %vm10090_vm2, %vm10085_vm5  ;;  %v11845_v45 = vld [vmem:[#allocation23_spill] sm:$0xff]  ;;  %v7582_v39 = vld [vmem:[%s11291_s4 + $0x188] sm:$0xff]  ;;  %v2554_v50 = vpop.f32.mrf.mxu1 }
 0x199   : > { %v4186_v60 = vrot.slane %v4184_v28, 3  ;;  %vm2903_vm10 = vmpackc.low %vm2775_vm9, %vm2775_vm9  ;;  %v2342_v4 = vadd.f32 %v9870_v6, %v1030_v52  ;;  %v4189_v44 = vrot.slane %v4187_v43, 4  ;;  %vm11846_vm6 = vnez %v11845_v45  ;;  %v2676_v28 = vld [vmem:[#allocation2 + $0x70] sm:$0xf]  ;;  %5566 = vmatpush.bf16.msra.mxu2 %v7582_v39 }
 0x19a   : > { %v3969_v51 = vsel %vm11846_vm6, %v3936_v12, 0  ;;  %v2935_v6 = vsel %vm2903_vm10, 65537, %v11572_v62  ;;  %v4385_v37 = vadd.f32 %v4311_v41, %v3882_v61  ;;  %v490_v46 = vpack.c.bf16 %v11847_v32, %v11847_v32  ;;  %vm10128_vm9 = vmpackc.low %vm10101_vm11, %vm10096_vm14  ;;  %v11850_v43 = vld [vmem:[#allocation25_spill] sm:$0xff]  ;;  %4632 = vmatmul.bf16.gmra.mxu0 %v4504_v29  ;;  %v7590_v41 = vld [vmem:[%s11291_s4 + $0x1c8] sm:$0xff] }
 0x19b   : > { %v11848_v52 = vmov 0  ;;  %vm11851_vm5 = vnez %v11850_v43  ;;  %v3202_v11 = vshrl.u32 %v2935_v6, 16  ;;  %v3687_v12 = vor.u32 %v3685_v9, %v10052_v35  ;;  %v11852_v39 = vld [vmem:[#allocation17_spill] sm:$0xff]  ;;  %5848 = vmatpush.bf16.msra.mxu3 %v7590_v41 }
 0x19c   : > { %v11849_v52 = vsel %vm10128_vm9, 4294967295, %v11848_v52  ;;  %v3970_v2 = vsel %vm11851_vm5, %v3937_v54, 0  ;;  %v10135_v63 = vrot.slane %v3689_v34, 1  ;;  %v10137_v1 = vadd.f32 %v2554_v50, %v2342_v4  ;;  %v7558_v54 = vld [vmem:[%s11291_s4 + $0x148] sm:$0xff] }
 0x19d   : > { %v3205_v61 = vshll.u32 %v2935_v6, 16  ;;  %v3485_v21 = vsel %vm10112_vm13, %v2675_v58, 0  ;;  %v4052_v36 = vunpack.c.l.b16 %v3969_v51  ;;  %v3191_v35 = vrot.slane %v10049_v18, 4  ;;  %5063 = vmatpush.bf16.msra.mxu1 %v7558_v54  ;;  %v3810_v50 = vpop.f32.mrf.mxu2 }
 0x19e   : > { %v10148_v9 = vrot.slane %v3202_v11, 7  ;;  %v3486_v34 = vsel %vm10128_vm9, %v2676_v28, 0  ;;  %v4053_v29 = vunpack.c.l.b16 %v3970_v2  ;;  %v570_v4 = vadd.s32 248, %v8238_v3 }
 0x19f   : > { %v10153_v58 = vadd.f32 %v4593_v40, %v4385_v37  ;;  %v10155_v51 = vor.u32 %v4189_v44, %v4186_v60  ;;  %v491_v6 = vpack.c.bf16 %v11852_v39, %v11852_v39  ;;  %v1032_v18 = vadd.f32 %v9933_v57, %v7764_v47  ;;  %v4595_v60 = vpop.f32.mrf.mxu0  ;;  %v4313_v40 = vpop.f32.mrf.mxu3  ;;  %v7513_v37 = vld [vmem:[#allocation2 + $0x64] sm:$0xff] }
 0x1a0   : > { %v3207_v32 = vor.u32 %v3205_v61, %v10148_v9  ;;  %v792_v11 = vand.u32 15, %v570_v4  ;;  %v3883_v28 = vadd.f32 %v3810_v50, %v10042_v30  ;;  %v3568_v2 = vunpack.c.l.b16 %v3485_v21  ;;  %v7598_v47 = vld [vmem:[%s11291_s4 + $0x208] sm:$0xff]  ;;  %v2557_v4 = vpop.f32.mrf.mxu1 }
 0x1a1   : > { %v3569_v43 = vunpack.c.l.b16 %v3486_v34  ;;  %v3199_v3 = vsel %vm9134_vm1, %v3191_v35, %v9088_v27  ;;  %vm11853_vm10 = vsmask.f32 7424  ;;  %v4072_v41 = vpack.c.b16 %v4053_v29, %v4052_v36  ;;  %6331 = vmatpush.bf16.msra.mxu0 %v7598_v47  ;;  %2596 = vmatmul.bf16.gmra.mxu1 %v7513_v37  ;;  %v3939_v37 = vld [vmem:[#allocation2 + $0x7c] sm:$0xf] }
 0x1a2   : > { %v3692_v44 = vsel %vm11853_vm10, %v3687_v12, %v10135_v63  ;;  %v3208_v30 = vsel %vm9134_vm1, %v9122_v20, %v3207_v32  ;;  %v2713_v61 = vadd.s32 1, %v792_v11  ;;  %v4386_v21 = vadd.f32 %v4313_v40, %v3883_v28 }
 0x1a3   : > { %vm11854_vm2 = vsmask.f32 4352  ;;  %v4484_v35 = vunpack.c.l.b16 %v490_v46  ;;  %v4485_v34 = vunpack.c.l.b16 %v491_v6  ;;  %v10177_v12 = vadd.f32 %v2557_v4, %v9361_v48  ;;  %3852 = vmatmul.bf16.gmra.mxu2 %v3692_v44 }
 0x1a4   : > { %v4191_v54 = vsel %vm11854_vm2, %v10054_v8, %v10155_v51  ;;  %v3424_v36 = vunpack.c.l.b16 %v3199_v3  ;;  %v3425_v29 = vunpack.c.h.b16 %v3199_v3  ;;  %vm2777_vm14 = vcmp.lt.s32.totalorder %v2713_v61, 16 }
 0x1a5   : > { %v10179_v39 = vpack.c.b16 %v3569_v43, %v3568_v2  ;;  %v3431_v32 = vunpack.c.l.b16 %v3208_v30  ;;  %v3432_v50 = vunpack.c.h.b16 %v3208_v30  ;;  %v10181_v11 = vadd.f32 %v4595_v60, %v4386_v21  ;;  %vm2905_vm11 = vmpackc.low %vm2777_vm14, %vm2777_vm14  ;;  %4355 = vmatmul.bf16.gmra.mxu3 %v4191_v54  ;;  %v3813_v6 = vpop.f32.mrf.mxu2  ;;  %v3938_v2 = vld [vmem:[#allocation2 + $0x78] sm:$0xf] }
 0x1a6   : > { %v4193_v28 = vshrl.u32 %v4072_v41, 16  ;;  %v4196_v8 = vshll.u32 %v4072_v41, 16  ;;  %v2344_v46 = vadd.f32 %v9429_v0, %v1032_v18  ;;  %v4505_v48 = vpack.c.b16 %v4485_v34, %v4484_v35  ;;  %v11865_v34 = vld [vmem:[#allocation39_spill] sm:$0xff] }
 0x1a7   : > { %v3693_v40 = vshrl.u32 %v10078_v14, 16  ;;  %vm10186_vm10 = vcmp.ne.s32.totalorder %v3424_v36, %v8262_v10  ;;  %vm10191_vm2 = vcmp.ne.s32.totalorder %v3425_v29, %v8280_v19  ;;  %v2937_v60 = vsel %vm2905_vm11, 65537, %v11572_v62  ;;  %v4598_v41 = vpop.f32.mrf.mxu0  ;;  %v4316_v47 = vpop.f32.mrf.mxu3  ;;  %v11867_v36 = vld [vmem:[#allocation19_spill] sm:$0xff] }
 0x1a8   : > { %v3884_v0 = vadd.f32 %v3813_v6, %v10076_v38  ;;  %v3697_v18 = vshll.u32 %v10179_v39, 16  ;;  %vm10199_vm14 = vcmp.ne.s32.totalorder %v3431_v32, %v8262_v10  ;;  %vm10204_vm5 = vcmp.ne.s32.totalorder %v3432_v50, %v8280_v19  ;;  %v2559_v54 = vpop.f32.mrf.mxu1  ;;  %vm10212_vm11 = vmpackc.low %vm10191_vm2, %vm10186_vm10  ;;  %v2677_v50 = vld [vmem:[#allocation2 + $0x74] sm:$0xf]  ;;  %v11870_v6 = vld [vmem:[#allocation40_spill] sm:$0xff] }
 0x1a9   : > { %v4195_v30 = vrot.slane %v4193_v28, 3  ;;  %v4198_v61 = vrot.slane %v4196_v8, 4  ;;  %v3220_v62 = vshrl.u32 %v2937_v60, 16  ;;  %v3223_v21 = vshll.u32 %v2937_v60, 16  ;;  %v2678_v28 = vld [vmem:[#allocation2 + $0x78] sm:$0xf]  ;;  %vm10226_vm9 = vmpackc.low %vm10204_vm5, %vm10199_vm14 }
 0x1aa   : > { %v4387_v38 = vadd.f32 %v4316_v47, %v3884_v0  ;;  %vm11866_vm6 = vnez %v11865_v34  ;;  %v492_v29 = vpack.c.bf16 %v11867_v36, %v11867_v36  ;;  %v10220_v32 = vadd.f32 %v2559_v54, %v2344_v46  ;;  %4637 = vmatmul.bf16.gmra.mxu0 %v4505_v48  ;;  %v8061_v0 = vld [vmem:[%s8256_s8 + $0x78] sm:$0xff]   ;;  %v11872_v47 = vld [vmem:[#allocation33_spill] sm:$0xff]  ;;  %s6864_s8 = sshll.u32 %s11212_s14, 4  ;;  %s6865_s8 = int_to_ptr.vmem [resolvable:$true] %s6864_s8 }
 0x1ab   : > { %v3971_v4 = vsel %vm11866_vm6, %v3938_v2, 0  ;;  %vm11871_vm10 = vnez %v11870_v6  ;;  %v10232_v43 = vrot.slane %v3220_v62, 7  ;;  %v3695_v46 = vor.u32 %v3693_v40, %v10135_v63 }
 0x1ac   : > { %v3972_v3 = vsel %vm11871_vm10, %v3939_v37, 0  ;;  %v10235_v2 = vrot.slane %v3697_v18, 1  ;;  %v3209_v60 = vrot.slane %v10148_v9, 4  ;;  %v7669_v14 = vunpack.c.h.bf16 %v8061_v0  ;;  %v8062_v9 = vld [vmem:[%s9328_s29 + $0x28] sm:$0xff]  }
 0x1ad   : > { %v10239_v44 = vor.u32 %v4198_v61, %v4195_v30  ;;  %v493_v54 = vpack.c.bf16 %v11872_v47, %v11872_v47  ;;  %v3225_v36 = vor.u32 %v3223_v21, %v10232_v43  ;;  %v10244_v37 = vadd.f32 %v4598_v41, %v4387_v38  ;;  %v3815_v0 = vpop.f32.mrf.mxu2  ;;  %v8063_v30 = vld [vmem:[%s11289_s2] ss:$0 sm:$0xff] }
 0x1ae   : > { %v3487_v48 = vsel %vm10212_vm11, %v2677_v50, 0  ;;  %v3488_v63 = vsel %vm10226_vm9, %v2678_v28, 0  ;;  %v4054_v40 = vunpack.c.l.b16 %v3971_v4  ;;  %v4055_v18 = vunpack.c.l.b16 %v3972_v3  ;;  %v7514_v3 = vld [vmem:[#allocation2 + $0x6c] sm:$0xff] }
 0x1af   : > { %v7768_v62 = vunpack.c.h.bf16 %v8062_v9  ;;  %v399_v61 = vmul.f32 %v8063_v30, %v7669_v14  ;;  %v3885_v21 = vadd.f32 %v3815_v0, %v10137_v1  ;;  %vm11873_vm5 = vsmask.f32 7424  ;;  %v4600_v4 = vpop.f32.mrf.mxu0  ;;  %v4318_v28 = vpop.f32.mrf.mxu3  ;;  %v8064_v1 = vld [vmem:[%s11290_s3] ss:$0 sm:$0xff] }
 0x1b0   : > { %v3700_v41 = vsel %vm11873_vm5, %v3695_v46, %v10235_v2  ;;  %v4486_v38 = vunpack.c.l.b16 %v492_v29  ;;  %v3217_v50 = vsel %vm9134_vm1, %v3209_v60, %v9088_v27  ;;  %v3570_v47 = vunpack.c.l.b16 %v3487_v48  ;;  %v2562_v60 = vpop.f32.mrf.mxu1 }
 0x1b1   : > { %v3571_v9 = vunpack.c.l.b16 %v3488_v63  ;;  %v3226_v6 = vsel %vm9134_vm1, %v9122_v20, %v3225_v36  ;;  %v435_v14 = vadd.f32 %v8064_v1, %v399_v61  ;;  %v4388_v46 = vadd.f32 %v4318_v28, %v3885_v21  ;;  %2601 = vmatmul.bf16.gmra.mxu1 %v7514_v3  ;;  %v7581_v1 = vld [vmem:[%s11291_s4 + $0x180] sm:$0xff] }
 0x1b2   : > { %vm11874_vm2 = vsmask.f32 4352  ;;  %v4487_v27 = vunpack.c.l.b16 %v493_v54  ;;  %v4073_v0 = vpack.c.b16 %v4055_v18, %v4054_v40  ;;  %v10270_v48 = vadd.f32 %v2562_v60, %v9460_v25  ;;  %5567 = vmatpush.bf16.msra.mxu2 %v7581_v1 }
 0x1b3   : > { %v4200_v29 = vsel %vm11874_vm2, %v10155_v51, %v10239_v44  ;;  %v3438_v63 = vunpack.c.l.b16 %v3217_v50  ;;  %v3439_v30 = vunpack.c.h.b16 %v3217_v50  ;;  %v467_v49 = vmax.f32 %v435_v14, 0.0  ;;  %3857 = vmatmul.bf16.gmra.mxu2 %v3700_v41 }
 0x1b4   : > { %v3445_v20 = vunpack.c.l.b16 %v3226_v6  ;;  %v3446_v36 = vunpack.c.h.b16 %v3226_v6  ;;  %v10272_v34 = vadd.f32 %v4600_v4, %v4388_v46  ;;  %v1034_v61 = vadd.f32 %v9933_v57, %v7768_v62 }
 0x1b5   : > { %v10275_v21 = vpack.c.b16 %v3571_v9, %v3570_v47  ;;  %4360 = vmatmul.bf16.gmra.mxu3 %v4200_v29  ;;  %v4506_v51 = vpack.c.b16 %v4487_v27, %v4486_v38  ;;  %v10277_v54 = vpack.c.bf16 %v467_v49, %v467_v49  ;;  %v3818_v40 = vpop.f32.mrf.mxu2  ;;  %v4202_v25 = vshrl.u32 %v4073_v0, 16  ;;  %v3940_v9 = vld [vmem:[#allocation2 + $0x80] sm:$0xf]  ;;  %v11889_v38 = vld [vmem:[#allocation34_spill] sm:$0xff] }
 0x1b6   : > { %v4205_v18 = vshll.u32 %v4073_v0, 16  ;;  %vm10280_vm1 = vcmp.ne.s32.totalorder %v3438_v63, %v8262_v10  ;;  %vm10285_vm14 = vcmp.ne.s32.totalorder %v3439_v30, %v8280_v19  ;;  %v3886_v62 = vadd.f32 %v3818_v40, %v10177_v12  ;;  %v2679_v0 = vld [vmem:[#allocation2 + $0x7c] sm:$0xf]  ;;  %v2680_v63 = vld [vmem:[#allocation2 + $0x80] sm:$0xf]  ;;  %v12076_v30 = vld [vmem:[#allocation56_spill] sm:$0xff] }
 0x1b7   : > { %v3701_v41 = vshrl.u32 %v10179_v39, 16  ;;  %vm10292_vm5 = vcmp.ne.s32.totalorder %v3445_v20, %v8262_v10  ;;  %vm10297_vm2 = vcmp.ne.s32.totalorder %v3446_v36, %v8280_v19  ;;  %537 = vst [vmem:[#allocation2 + $0x88] sm:$0xf] %v10277_v54  ;;  %v2346_v28 = vadd.f32 %v9520_v22, %v1034_v61  ;;  %v4603_v3 = vpop.f32.mrf.mxu0  ;;  %v4321_v47 = vpop.f32.mrf.mxu3  ;;  %v3941_v39 = vld [vmem:[#allocation2 + $0x84] sm:$0xf]  ;;  %vm10311_vm10 = vmpackc.low %vm10285_vm14, %vm10280_vm1 }
 0x1b8   : > { %v3705_v12 = vshll.u32 %v10275_v21, 16  ;;  %v4389_v14 = vadd.f32 %v4321_v47, %v3886_v62  ;;  %v2564_v46 = vpop.f32.mrf.mxu1  ;;  %v4204_v22 = vrot.slane %v4202_v25, 3  ;;  %v4207_v27 = vrot.slane %v4205_v18, 4  ;;  %vm10321_vm6 = vmpackc.low %vm10297_vm2, %vm10292_vm5  ;;  %v7589_v36 = vld [vmem:[%s11291_s4 + $0x1c0] sm:$0xff] }
 0x1b9   : > { %v10315_v60 = vadd.f32 %v2564_v46, %v2346_v28  ;;  %vm11887_vm1 = vnez %v11628_v13  ;;  %vm11888_vm14 = vnez %v11630_v16  ;;  %v7557_v61 = vld [vmem:[%s11291_s4 + $0x140] sm:$0xff]  ;;  %v3703_v25 = vor.u32 %v3701_v41, %v10235_v2  ;;  %5849 = vmatpush.bf16.msra.mxu3 %v7589_v36 }
 0x1ba   : > { %4642 = vmatmul.bf16.gmra.mxu0 %v4506_v51  ;;  %v3973_v49 = vsel %vm11887_vm1, %v3940_v9, 0  ;;  %v3974_v20 = vsel %vm11888_vm14, %v3941_v39, 0  ;;  %v10335_v40 = vadd.f32 %v4603_v3, %v4389_v14  ;;  %v3707_v18 = vrot.slane %v3705_v12, 1  ;;  %5064 = vmatpush.bf16.msra.mxu1 %v7557_v61  ;;  %v11890_v2 = vld [vmem:[#allocation47_spill] sm:$0xff]  ;;  %v7515_v14 = vld [vmem:[#allocation2 + $0x74] sm:$0xff] }
 0x1bb   : > { %v3489_v51 = vsel %vm10311_vm10, %v2679_v0, 0  ;;  %v3490_v50 = vsel %vm10321_vm6, %v2680_v63, 0  ;;  %v10342_v62 = vor.u32 %v4207_v27, %v4204_v22  ;;  %v494_v4 = vpack.c.bf16 %v11889_v38, %v11889_v38  ;;  %v7597_v27 = vld [vmem:[%s11291_s4 + $0x200] sm:$0xff] }
 0x1bc   : > { %v4056_v28 = vunpack.c.l.b16 %v3973_v49  ;;  %v4057_v3 = vunpack.c.l.b16 %v3974_v20  ;;  %v495_v41 = vpack.c.bf16 %v11890_v2, %v11890_v2  ;;  %v3227_v12 = vrot.slane %v10232_v43, 4  ;;  %6332 = vmatpush.bf16.msra.mxu0 %v7597_v27  ;;  %v4695_v27 = vld [vmem:[#allocation2 + $0xc] sm:$0xf] }
 0x1bd   : > { %v3820_v6 = vpop.f32.mrf.mxu2  ;;  %vm11891_vm5 = vsmask.f32 7424  ;;  %v3572_v46 = vunpack.c.l.b16 %v3489_v51  ;;  %v3573_v22 = vunpack.c.l.b16 %v3490_v50  ;;  %vm11892_vm2 = vsmask.f32 4352 }
 0x1be   : > { %v3887_v47 = vadd.f32 %v3820_v6, %v10220_v32  ;;  %v3708_v1 = vsel %vm11891_vm5, %v3703_v25, %v3707_v18  ;;  %v4209_v32 = vsel %vm11892_vm2, %v10239_v44, %v10342_v62  ;;  %v4488_v49 = vunpack.c.l.b16 %v494_v4 }
 0x1bf   : > { %v4605_v9 = vpop.f32.mrf.mxu0  ;;  %v4323_v39 = vpop.f32.mrf.mxu3  ;;  %v4074_v20 = vpack.c.b16 %v4057_v3, %v4056_v28  ;;  %v4489_v36 = vunpack.c.l.b16 %v495_v41  ;;  %v3452_v61 = vunpack.c.l.b16 %v3227_v12  ;;  %v3453_v25 = vunpack.c.h.b16 %v3227_v12  ;;  %v3942_v41 = vld [vmem:[#allocation2 + $0x88] sm:$0xf] }
 0x1c0   : > { %v4390_v0 = vadd.f32 %v4323_v39, %v3887_v47  ;;  %v2567_v63 = vpop.f32.mrf.mxu1  ;;  %v10362_v50 = vpack.c.b16 %v3573_v22, %v3572_v46  ;;  %v3709_v3 = vshrl.u32 %v10275_v21, 16  ;;  %v2681_v46 = vld [vmem:[#allocation2 + $0x84] sm:$0x1]  ;;  %vm11895_vm1 = vnez %v11639_v31 }
 0x1c1   : > { %v10358_v43 = vadd.f32 %v2567_v63, %v9589_v15  ;;  %2606 = vmatmul.bf16.gmra.mxu1 %v7515_v14  ;;  %v4211_v38 = vshrl.u32 %v4074_v20, 16  ;;  %v4214_v47 = vshll.u32 %v4074_v20, 16  ;;  %v4507_v44 = vpack.c.b16 %v4489_v36, %v4488_v49  ;;  %v11897_v63 = vld [vmem:[#allocation48_spill] sm:$0xff] }
 0x1c2   : > { %v10360_v51 = vadd.f32 %v4605_v9, %v4390_v0  ;;  %vm3456_vm5 = vcmp.ne.s32.totalorder %v3452_v61, %v8262_v10  ;;  %vm3457_vm2 = vcmp.ne.s32.totalorder %v3453_v25, %v8280_v19  ;;  %v3713_v2 = vshll.u32 %v10362_v50, 16  ;;  %v4696_v0 = vld [vmem:[#allocation2 + $0x10] sm:$0xf]  ;;  %v4697_v25 = vld [vmem:[#allocation2 + $0x14] sm:$0xf] }
 0x1c3   : > { %3862 = vmatmul.bf16.gmra.mxu2 %v3708_v1  ;;  %v4213_v39 = vrot.slane %v4211_v38, 3  ;;  %v4216_v1 = vrot.slane %v4214_v47, 4  ;;  %vm10372_vm14 = vmpackc.low %vm3457_vm2, %vm3456_vm5  ;;  %v3975_v10 = vsel %vm11895_vm1, %v3942_v41, 0  ;;  %v3711_v21 = vor.u32 %v3709_v3, %v3707_v18 }
 0x1c4   : > { %v10380_v22 = vrot.slane %v3713_v2, 1  ;;  %v4728_v49 = vsel %vm9117_vm15, %v4695_v27, 0  ;;  %v4729_v20 = vsel %vm9172_vm4, %v4696_v0, 0  ;;  %v4058_v18 = vunpack.c.l.b16 %v3975_v10 }
 0x1c5   : > { %4365 = vmatmul.bf16.gmra.mxu3 %v4209_v32  ;;  %v3823_v6 = vpop.f32.mrf.mxu2  ;;  %v3491_v32 = vsel %vm10372_vm14, %v2681_v46, 0  ;;  %v10390_v61 = vor.u32 %v4216_v1, %v4213_v39  ;;  %v4811_v38 = vunpack.c.l.b16 %v4728_v49  ;;  %v4812_v47 = vunpack.c.l.b16 %v4729_v20  ;;  %v5178_v1 = vld [vmem:[#allocation2 + $0x10] sm:$0x8]  ;;  %v5179_v46 = vld [vmem:[#allocation2 + $0x14] sm:$0xf] }
 0x1c6   : > { %v3888_v4 = vadd.f32 %v3823_v6, %v10270_v48  ;;  %v4698_v6 = vld [vmem:[#allocation2 + $0x18] sm:$0xf]  ;;  %vm11899_vm5 = vsmask.f32 7424  ;;  %v3574_v39 = vunpack.c.l.b16 %v3491_v32  ;;  %vm11900_vm2 = vsmask.f32 4352 }
 0x1c7   : > { %v4608_v15 = vpop.f32.mrf.mxu0  ;;  %v4326_v28 = vpop.f32.mrf.mxu3  ;;  %v4731_v3 = vsel %vm9187_vm3, %v4698_v6, 0  ;;  %v4218_v49 = vsel %vm11900_vm2, %v10342_v62, %v10390_v61  ;;  %v5181_v6 = vld [vmem:[#allocation2 + $0x1c] sm:$0xf] }
 0x1c8   : > { %v4391_v12 = vadd.f32 %v4326_v28, %v3888_v4  ;;  %v2569_v9 = vpop.f32.mrf.mxu1  ;;  %v11898_v4 = vld [vmem:[#allocation53_spill] sm:$0xff]  ;;  %v4730_v28 = vsel %vm9179_vm7, %v4697_v25, 0  ;;  %v4814_v0 = vunpack.c.l.b16 %v4731_v3  ;;  %v5180_v25 = vld [vmem:[#allocation2 + $0x18] sm:$0xf] }
 0x1c9   : > { %v10370_v14 = vadd.f32 %v2569_v9, %v9638_v33  ;;  %v496_v33 = vpack.c.bf16 %v11897_v63, %v11897_v63  ;;  %v7516_v9 = vld [vmem:[#allocation2 + $0x7c] sm:$0xff]  ;;  %v4813_v27 = vunpack.c.l.b16 %v4730_v28  ;;  %v4844_v63 = vpack.c.b16 %v4812_v47, %v4811_v38  ;;  %v11906_v3 = vld [vmem:[#allocation29_spill] sm:$0xff] }
 0x1ca   : > { %4647 = vmatmul.bf16.gmra.mxu0 %v4507_v44  ;;  %v10378_v19 = vadd.f32 %v4608_v15, %v4391_v12  ;;  %v497_v15 = vpack.c.bf16 %v11898_v4, %v11898_v4  ;;  %v3716_v12 = vsel %vm11899_vm5, %v3711_v21, %v10380_v22  ;;  %v3591_v47 = vpack.c.b16 %v3574_v39, %v3574_v39  ;;  %v11904_v28 = vld [vmem:[#allocation27_spill] sm:$0xff] }
 0x1cb   : > { %v4490_v21 = vunpack.c.l.b16 %v496_v33  ;;  %v10411_v62 = vpack.c.b16 %v4814_v0, %v4813_v27  ;;  %vm11905_vm2 = vnez %v11904_v28  ;;  %vm11907_vm1 = vnez %v11906_v3 }
 0x1cc   : > { %11896 = vst [vmem:[#allocation46_spill] sm:$0xff] %v10378_v19  ;;  %v4491_v32 = vunpack.c.l.b16 %v497_v15  ;;  %v5214_v33 = vsel %vm11907_vm1, %v5181_v6, 0  ;;  %v3717_v0 = vshrl.u32 %v10362_v50, 16  ;;  %v3721_v31 = vshll.u32 %v3591_v47, 16 }
 0x1cd   : > { %v3825_v36 = vpop.f32.mrf.mxu2  ;;  %v4862_v6 = vshrl.u32 %v4844_v63, 16 }
 0x1ce   : > { %v3889_v44 = vadd.f32 %v3825_v36, %v10315_v60  ;;  %v4075_v36 = vpack.c.b16 %v4058_v18, %v4058_v18  ;;  %v5213_v18 = vsel %vm11905_vm2, %v5180_v25, 0  ;;  %v3723_v47 = vrot.slane %v3721_v31, 1 }
 0x1cf   : > { %v4610_v2 = vpop.f32.mrf.mxu0  ;;  %v4328_v41 = vpop.f32.mrf.mxu3  ;;  %v5296_v50 = vunpack.c.l.b16 %v5213_v18  ;;  %v4493_v18 = vunpack.c.l.b16 %v10277_v54 }
 0x1d0   : > { %v4392_v10 = vadd.f32 %v4328_v41, %v3889_v44  ;;  %v2572_v60 = vpop.f32.mrf.mxu1  ;;  %v5211_v44 = vsel %vm8636_vm12, %v5178_v1, 0  ;;  %v11902_v41 = vld [vmem:[#allocation28_spill] sm:$0xff]  ;;  %vm11913_vm12 = vsmask.f32 7424 }
 0x1d1   : > { %v10405_v20 = vadd.f32 %v2572_v60, %v9686_v55  ;;  %vm11903_vm5 = vnez %v11902_v41  ;;  %2611 = vmatmul.bf16.gmra.mxu1 %v7516_v9  ;;  %v4864_v55 = vshll.u32 %v4844_v63, 16  ;;  %v4223_v60 = vshll.u32 %v4075_v36, 16  ;;  %v8065_v9 = vld [vmem:[%s9328_s29 + $0x40] sm:$0xff]   ;;  %vm11914_vm1 = vmmov %vm11913_vm12 }
 0x1d2   : > { %v5212_v38 = vsel %vm11903_vm5, %v5179_v46, 0  ;;  %v5294_v1 = vunpack.c.l.b16 %v5211_v44  ;;  %v4508_v41 = vpack.c.b16 %v4491_v32, %v4490_v21  ;;  %v7780_v39 = vunpack.c.h.bf16 %v8065_v9  ;;  %v11909_v21 = vld [vmem:[#allocation54_spill] sm:$0xff] }
 0x1d3   : > { %3867 = vmatmul.bf16.gmra.mxu2 %v3716_v12  ;;  %v4220_v12 = vshrl.u32 %v4075_v36, 16  ;;  %v5295_v4 = vunpack.c.l.b16 %v5212_v38  ;;  %v10420_v28 = vadd.f32 %v4610_v2, %v4392_v10  ;;  %v4866_v19 = vrot.slane %v4864_v55, 1  ;;  %v11910_v32 = vld [vmem:[#allocation78_spill] sm:$0xff] }
 0x1d4   : > { %v4869_v36 = vshll.u32 %v10411_v62, 16  ;;  %v4225_v38 = vrot.slane %v4223_v60, 4  ;;  %v5297_v2 = vunpack.c.l.b16 %v5214_v33  ;;  %v3719_v10 = vor.u32 %v3717_v0, %v10380_v22  ;;  %v5965_v33 = vld [vmem:[#allocation2 + $0x1c] sm:$0xf] }
 0x1d5   : > { %4370 = vmatmul.bf16.gmra.mxu3 %v4218_v49  ;;  %v3828_v15 = vpop.f32.mrf.mxu2  ;;  %11908 = vst [vmem:[#allocation15_spill] sm:$0xff] %v10420_v28  ;;  %v4222_v44 = vrot.slane %v4220_v12, 3  ;;  %v4867_v63 = vor.u32 %v4866_v19, %v4862_v6  ;;  %v5964_v12 = vld [vmem:[#allocation2 + $0x18] sm:$0xf]  ;;  %v1040_v60 = vadd.f32 %v9933_v57, %v7780_v39  ;;  %vm11915_vm5 = vsmask.f32 4352 }
 0x1d6   : > { %v3890_v46 = vadd.f32 %v3828_v15, %v10358_v43  ;;  %v498_v43 = vpack.c.bf16 %v11909_v21, %v11909_v21  ;;  %v10431_v55 = vrot.slane %v4869_v36, 1  ;;  %v3724_v57 = vsel %vm11913_vm12, %v3719_v10, %v3723_v47  ;;  %v5966_v36 = vld [vmem:[#allocation2 + $0x20] sm:$0xf]  ;;  %vm11927_vm2 = vmmov %vm11915_vm5 }
 0x1d7   : > { %v4613_v49 = vpop.f32.mrf.mxu0  ;;  %v4331_v27 = vpop.f32.mrf.mxu3  ;;  %v4226_v21 = vor.u32 %v4225_v38, %v4222_v44  ;;  %v5328_v39 = vpack.c.b16 %v5297_v2, %v5296_v50  ;;  %v5998_v53 = vsel %vm9179_vm7, %v5965_v33, 0  ;;  %v5999_v7 = vsel %vm9187_vm3, %v5966_v36, 0  ;;  %vm11928_vm12 = vmmov %vm11914_vm1  ;;  %v11931_v19 = vld [vmem:[#allocation55_spill] sm:$0xff] }
 0x1d8   : > { %v4393_v25 = vadd.f32 %v4331_v27, %v3890_v46  ;;  %v2574_v3 = vpop.f32.mrf.mxu1  ;;  %v5963_v46 = vld [vmem:[#allocation2 + $0x14] sm:$0xf]  ;;  %v4492_v28 = vunpack.c.l.b16 %v498_v43  ;;  %v4872_v44 = vsel %vm11914_vm1, %v4867_v63, %v10431_v55  ;;  %v6081_v33 = vunpack.c.l.b16 %v5998_v53 }
 0x1d9   : > { %v10426_v15 = vadd.f32 %v2574_v3, %v11910_v32  ;;  %v5327_v3 = vpack.c.b16 %v5295_v4, %v5294_v1  ;;  %v4699_v32 = vld [vmem:[#allocation2 + $0x1c] sm:$0xf]  ;;  %v5996_v1 = vsel %vm9117_vm15, %v5963_v46, 0 }
 0x1da   : > { %4652 = vmatmul.bf16.gmra.mxu0 %v4508_v41  ;;  %v10428_v9 = vadd.f32 %v4613_v49, %v4393_v25  ;;  %v4700_v41 = vld [vmem:[#allocation2 + $0x20] sm:$0xf]  ;;  %v4732_v31 = vsel %vm9223_vm0, %v4699_v32, 0  ;;  %v11916_v32 = vld [vmem:[#allocation66_spill] sm:$0xff]  ;;  %v6079_v2 = vunpack.c.l.b16 %v5996_v1  ;;  %v4509_v5 = vpack.c.b16 %v4493_v18, %v4492_v28  ;;  %v11920_v28 = vld [vmem:[#allocation44_spill] sm:$0xff] }
 0x1db   : > { %v4733_v0 = vsel %vm9249_vm8, %v4700_v41, 0  ;;  %v4815_v38 = vunpack.c.l.b16 %v4732_v31  ;;  %v5345_v50 = vshrl.u32 %v5327_v3, 16  ;;  %v5348_v63 = vshll.u32 %v5327_v3, 16 }
 0x1dc   : > { %v4816_v43 = vunpack.c.l.b16 %v4733_v0  ;;  %v5356_v41 = vshll.u32 %v5328_v39, 16  ;;  %v6082_v0 = vunpack.c.l.b16 %v5999_v7  ;;  %vm11921_vm15 = vnez %v11920_v28  ;;  %v11929_v28 = vld [vmem:[#allocation72_spill] sm:$0xff] }
 0x1dd   : > { %v3830_v27 = vpop.f32.mrf.mxu2  ;;  %v5347_v36 = vrot.slane %v5345_v50, 3  ;;  %v5350_v3 = vrot.slane %v5348_v63, 4 }
 0x1de   : > { %v3891_v49 = vadd.f32 %v3830_v27, %v10370_v14  ;;  %v5997_v14 = vsel %vm9172_vm4, %v5964_v12, 0  ;;  %v4227_v27 = vsel %vm11915_vm5, %v10390_v61, %v4226_v21  ;;  %v5353_v12 = vshrl.u32 %v5328_v39, 16  ;;  %v5182_v21 = vld [vmem:[#allocation2 + $0x20] sm:$0xf] }
 0x1df   : > { %v4615_v25 = vpop.f32.mrf.mxu0  ;;  %v4333_v6 = vpop.f32.mrf.mxu3  ;;  %v6080_v47 = vunpack.c.l.b16 %v5997_v14  ;;  %v10458_v61 = vpack.c.b16 %v4816_v43, %v4815_v38  ;;  %v5358_v39 = vrot.slane %v5356_v41, 4  ;;  %v4873_v43 = vshrl.u32 %v10411_v62, 16  ;;  %v8066_v41 = vld [vmem:[%s9328_s29 + $0x48] sm:$0xff]  }
 0x1e0   : > { %v4394_v54 = vadd.f32 %v4333_v6, %v3891_v49  ;;  %v2577_v4 = vpop.f32.mrf.mxu1  ;;  %v11917_v49 = vld [vmem:[#allocation68_spill] sm:$0xff]  ;;  %v5183_v6 = vld [vmem:[#allocation2 + $0x24] sm:$0xf]  ;;  %v10468_v18 = vpack.c.b16 %v6082_v0, %v6081_v33  ;;  %v5351_v7 = vor.u32 %v5350_v3, %v5347_v36 }
 0x1e1   : > { %v10450_v10 = vadd.f32 %v2577_v4, %v11916_v32  ;;  %5065 = vmatmul.bf16.vlgmr.msra.gmra.mxu1 %v4872_v44  ;;  %v2352_v31 = vadd.f32 %v11917_v49, %v1040_v60  ;;  %v11918_v4 = vld [vmem:[#allocation43_spill] sm:$0xff]  ;;  %v4875_v62 = vor.u32 %v4873_v43, %v10431_v55  ;;  %v4702_v0 = vld [vmem:[#allocation2 + $0x28] sm:$0xf] }
 0x1e2   : > { %v10456_v46 = vadd.f32 %v4615_v25, %v4394_v54  ;;  %v6112_v25 = vpack.c.b16 %v6080_v47, %v6079_v2  ;;  %v5355_v54 = vrot.slane %v5353_v12, 3  ;;  %vm11919_vm7 = vnez %v11918_v4  ;;  %v4701_v33 = vld [vmem:[#allocation2 + $0x24] sm:$0xf]  ;;  %v7565_v4 = vld [vmem:[#allocation2 + $0x14] sm:$0xff] }
 0x1e3   : > { %3872 = vmatmul.bf16.gmra.mxu2 %v3724_v57  ;;  %v5215_v44 = vsel %vm11919_vm7, %v5182_v21, 0  ;;  %v7784_v21 = vunpack.c.h.bf16 %v8066_v41 }
 0x1e4   : > { %v6132_v50 = vshll.u32 %v6112_v25, 16  ;;  %v10474_v2 = vor.u32 %v5358_v39, %v5355_v54  ;;  %v5298_v47 = vunpack.c.l.b16 %v5215_v44 }
 0x1e5   : > { %4375 = vmatmul.bf16.gmra.mxu3 %v4227_v27  ;;  %v3833_v24 = vpop.f32.mrf.mxu2  ;;  %v4877_v27 = vshll.u32 %v10458_v61, 16 }
 0x1e6   : > { %v3892_v57 = vadd.f32 %v3833_v24, %v10405_v20  ;;  %v5216_v20 = vsel %vm11921_vm15, %v5183_v6, 0  ;;  %v6130_v24 = vshrl.u32 %v6112_v25, 16  ;;  %v5360_v54 = vsel %vm11927_vm2, %v5351_v7, %v10474_v2  ;;  %vm11940_vm15 = vmmov %vm11927_vm2 }
 0x1e7   : > { %v4618_v1 = vpop.f32.mrf.mxu0  ;;  %v4336_v14 = vpop.f32.mrf.mxu3  ;;  %v5299_v63 = vunpack.c.l.b16 %v5216_v20  ;;  %v10477_v12 = vrot.slane %v4877_v27, 1  ;;  %vm11941_vm2 = vmmov %vm11914_vm1 }
 0x1e8   : > { %v4395_v38 = vadd.f32 %v4336_v14, %v3892_v57  ;;  %v2579_v60 = vpop.f32.mrf.mxu1  ;;  %v11923_v57 = vld [vmem:[#allocation60_spill] sm:$0xff] }
 0x1e9   : > { %v10470_v32 = vadd.f32 %v2579_v60, %v2352_v31  ;;  %v6137_v31 = vshll.u32 %v10468_v18, 16  ;;  %vm11924_vm4 = vnez %v11923_v57  ;;  %v5329_v39 = vpack.c.b16 %v5299_v63, %v5298_v47  ;;  %v5968_v60 = vld [vmem:[#allocation2 + $0x28] sm:$0xf] }
 0x1ea   : > { %4657 = vmatmul.bf16.gmra.mxu0 %v4509_v5  ;;  %v10472_v53 = vadd.f32 %v4618_v1, %v4395_v38  ;;  %v6134_v5 = vrot.slane %v6132_v50, 1  ;;  %v4734_v36 = vsel %vm11924_vm4, %v4701_v33, 0  ;;  %v11925_v1 = vld [vmem:[#allocation61_spill] sm:$0xff]  ;;  %v4880_v38 = vsel %vm11928_vm12, %v4875_v62, %v10477_v12  ;;  %v10496_v50 = vld [vmem:[%s11292_s5] ss:$0 sm:$0xff]  ;;  %vm11944_vm12 = vmmov %vm11914_vm1 }
 0x1eb   : > { %vm11926_vm3 = vnez %v11925_v1  ;;  %v4817_v43 = vunpack.c.l.b16 %v4734_v36  ;;  %v1042_v7 = vadd.f32 %v10496_v50, %v7784_v21  ;;  %v6139_v63 = vrot.slane %v6137_v31, 1  ;;  %v5184_v36 = vld [vmem:[#allocation2 + $0x28] sm:$0xf]  ;;  %v5185_v21 = vld [vmem:[#allocation2 + $0x2c] sm:$0xf] }
 0x1ec   : > { %11922 = vst [vmem:[#allocation23_spill] sm:$0xff] %v10472_v53  ;;  %v4735_v14 = vsel %vm11926_vm3, %v4702_v0, 0  ;;  %v6135_v47 = vor.u32 %v6134_v5, %v6130_v24  ;;  %v5362_v62 = vshrl.u32 %v5329_v39, 16  ;;  %v6001_v0 = vsel %vm9249_vm8, %v5968_v60, 0 }
 0x1ed   : > { %v3835_v49 = vpop.f32.mrf.mxu2  ;;  %v4818_v27 = vunpack.c.l.b16 %v4735_v14  ;;  %v4881_v60 = vshrl.u32 %v10458_v61, 16 }
 0x1ee   : > { %v3893_v6 = vadd.f32 %v3835_v49, %v10426_v15  ;;  %v5967_v15 = vld [vmem:[#allocation2 + $0x24] sm:$0xf]  ;;  %v5365_v49 = vshll.u32 %v5329_v39, 16  ;;  %v6140_v39 = vsel %vm11914_vm1, %v6135_v47, %v6139_v63 }
 0x1ef   : > { %v4620_v55 = vpop.f32.mrf.mxu0  ;;  %v4338_v3 = vpop.f32.mrf.mxu3  ;;  %v6000_v33 = vsel %vm9223_vm0, %v5967_v15, 0  ;;  %vm11932_vm0 = vnez %v11931_v19  ;;  %v7566_v19 = vld [vmem:[#allocation2 + $0x1c] sm:$0xff] }
 0x1f0   : > { %v4396_v25 = vadd.f32 %v4338_v3, %v3893_v6  ;;  %v2582_v44 = vpop.f32.mrf.mxu1  ;;  %v10505_v6 = vpack.c.b16 %v4818_v27, %v4817_v43  ;;  %v11930_v3 = vld [vmem:[#allocation41_spill] sm:$0xff]  ;;  %v6083_v5 = vunpack.c.l.b16 %v6000_v33 }
 0x1f1   : > { %v10491_v20 = vadd.f32 %v2582_v44, %v11929_v28  ;;  %5070 = vmatmul.bf16.gmra.mxu1 %v4880_v38  ;;  %v2354_v24 = vadd.f32 %v11930_v3, %v1042_v7  ;;  %v5367_v44 = vrot.slane %v5365_v49, 4  ;;  %v11933_v27 = vld [vmem:[#allocation57_spill] sm:$0xff]  ;;  %v4703_v3 = vld [vmem:[#allocation2 + $0x2c] sm:$0xf] }
 0x1f2   : > { %v10499_v41 = vadd.f32 %v4620_v55, %v4396_v25  ;;  %v6084_v55 = vunpack.c.l.b16 %v6001_v0  ;;  %v5364_v25 = vrot.slane %v5362_v62, 3  ;;  %v4885_v43 = vshll.u32 %v10505_v6, 16 }
 0x1f3   : > { %5568 = vmatmul.bf16.vlgmr.msra.gmra.mxu2 %v5360_v54  ;;  %vm11934_vm8 = vnez %v11933_v27  ;;  %v4883_v0 = vor.u32 %v4881_v60, %v10477_v12  ;;  %v11942_v27 = vld [vmem:[#allocation76_spill] sm:$0xff] }
 0x1f4   : > { %v10518_v7 = vpack.c.b16 %v6084_v55, %v6083_v5  ;;  %v10522_v62 = vor.u32 %v5367_v44, %v5364_v25  ;;  %v11936_v5 = vld [vmem:[#allocation62_spill] sm:$0xff] }
 0x1f5   : > { %5850 = vmatmul.bf16.vlgmr.msra.gmra.mxu3 %v7565_v4  ;;  %v3838_v14 = vpop.f32.mrf.mxu2  ;;  %v5217_v4 = vsel %vm11932_vm0, %v5184_v36, 0  ;;  %v4887_v36 = vrot.slane %v4885_v43, 1  ;;  %vm11937_vm5 = vnez %v11936_v5 }
 0x1f6   : > { %v3894_v31 = vadd.f32 %v3838_v14, %v10450_v10  ;;  %v5218_v10 = vsel %vm11934_vm8, %v5185_v21, 0  ;;  %v5300_v49 = vunpack.c.l.b16 %v5217_v4  ;;  %v6141_v14 = vshrl.u32 %v10468_v18, 16  ;;  %vm11955_vm8 = vmmov %vm11940_vm15 }
 0x1f7   : > { %v4623_v54 = vpop.f32.mrf.mxu0  ;;  %v4341_v22 = vpop.f32.mrf.mxu3  ;;  %v5301_v33 = vunpack.c.l.b16 %v5218_v10  ;;  %v4736_v55 = vsel %vm11937_vm5, %v4703_v3, 0  ;;  %v5369_v12 = vsel %vm11940_vm15, %v10474_v2, %v10522_v62  ;;  %vm11956_vm15 = vmmov %vm11941_vm2 }
 0x1f8   : > { %v4397_v38 = vadd.f32 %v4341_v22, %v3894_v31  ;;  %v2584_v15 = vpop.f32.mrf.mxu1  ;;  %v4704_v31 = vld [vmem:[#allocation2 + $0x30] sm:$0xf]  ;;  %v4819_v60 = vunpack.c.l.b16 %v4736_v55 }
 0x1f9   : > { %v10516_v28 = vadd.f32 %v2584_v15, %v2354_v24  ;;  %v6145_v24 = vshll.u32 %v10518_v7, 16  ;;  %v5330_v44 = vpack.c.b16 %v5301_v33, %v5300_v49  ;;  %v5970_v15 = vld [vmem:[#allocation2 + $0x30] sm:$0xf] }
 0x1fa   : > { %6333 = vmatmul.bf16.vlgmr.msra.gmra.mxu0 %v6140_v39  ;;  %v10520_v47 = vadd.f32 %v4623_v54, %v4397_v38  ;;  %v11938_v54 = vld [vmem:[#allocation63_spill] sm:$0xff]  ;;  %v5969_v38 = vld [vmem:[#allocation2 + $0x2c] sm:$0xf]  ;;  %v5186_v55 = vld [vmem:[#allocation2 + $0x30] sm:$0xf] }
 0x1fb   : > { %vm11939_vm7 = vnez %v11938_v54  ;;  %v6147_v3 = vrot.slane %v6145_v24, 1  ;;  %v5371_v2 = vshrl.u32 %v5330_v44, 16  ;;  %v5374_v49 = vshll.u32 %v5330_v44, 16 }
 0x1fc   : > { %11935 = vst [vmem:[#allocation16_spill] sm:$0xff] %v10520_v47  ;;  %v4737_v39 = vsel %vm11939_vm7, %v4704_v31, 0  ;;  %v6002_v33 = vsel %vm11924_vm4, %v5969_v38, 0  ;;  %v4889_v38 = vshrl.u32 %v10505_v6, 16 }
 0x1fd   : > { %v3840_v61 = vpop.f32.mrf.mxu2  ;;  %v4820_v43 = vunpack.c.l.b16 %v4737_v39  ;;  %v5376_v57 = vrot.slane %v5374_v49, 4 }
 0x1fe   : > { %v3895_v21 = vadd.f32 %v3840_v61, %v10470_v32  ;;  %v4888_v32 = vsel %vm11941_vm2, %v4883_v0, %v4887_v36  ;;  %v6143_v61 = vor.u32 %v6141_v14, %v6139_v63  ;;  %v6003_v0 = vsel %vm11926_vm3, %v5970_v15, 0 }
 0x1ff   : > { %v4625_v22 = vpop.f32.mrf.mxu0  ;;  %v4343_v25 = vpop.f32.mrf.mxu3  ;;  %v6085_v14 = vunpack.c.l.b16 %v6002_v33  ;;  %v6086_v24 = vunpack.c.l.b16 %v6003_v0 }
 0x200   : > { %v4398_v18 = vadd.f32 %v4343_v25, %v3895_v21  ;;  %v2587_v4 = vpop.f32.mrf.mxu1  ;;  %v10545_v21 = vpack.c.b16 %v4820_v43, %v4819_v60  ;;  %v5187_v25 = vld [vmem:[#allocation2 + $0x34] sm:$0xf] }
 0x201   : > { %v10537_v10 = vadd.f32 %v2587_v4, %v11942_v27  ;;  %5075 = vmatmul.bf16.gmra.mxu1 %v4888_v32  ;;  %v11945_v4 = vld [vmem:[#allocation6_spill] sm:$0xff]  ;;  %v11947_v60 = vld [vmem:[#allocation9_spill] sm:$0xff] }
 0x202   : > { %v10539_v31 = vadd.f32 %v4625_v22, %v4398_v18  ;;  %v5373_v18 = vrot.slane %v5371_v2, 3  ;;  %vm11946_vm4 = vnez %v11945_v4  ;;  %v4893_v15 = vshll.u32 %v10545_v21, 16  ;;  %v11949_v43 = vld [vmem:[#allocation77_spill] sm:$0xff]  ;;  %v4706_v4 = vld [vmem:[#allocation2 + $0x38] sm:$0xf] }
 0x203   : > { %5573 = vmatmul.bf16.gmra.mxu2 %v5369_v12  ;;  %v6148_v12 = vsel %vm11944_vm12, %v6143_v61, %v6147_v3  ;;  %v5219_v1 = vsel %vm11946_vm4, %v5186_v55, 0  ;;  %vm11948_vm3 = vnez %v11947_v60  ;;  %v10558_v61 = vpack.c.b16 %v6086_v24, %v6085_v14  ;;  %v11953_v24 = vld [vmem:[#allocation65_spill] sm:$0xff]  ;;  %v5972_v60 = vld [vmem:[#allocation2 + $0x38] sm:$0xf] }
 0x204   : > { %11943 = vst [vmem:[#allocation17_spill] sm:$0xff] %v10539_v31  ;;  %v10562_v49 = vor.u32 %v5376_v57, %v5373_v18  ;;  %v5302_v33 = vunpack.c.l.b16 %v5219_v1  ;;  %v4891_v55 = vor.u32 %v4889_v38, %v4887_v36  ;;  %vm11954_vm0 = vnez %v11953_v24  ;;  %v11975_v24 = vld [vmem:[#allocation35_spill] sm:$0xff] }
 0x205   : > { %5855 = vmatmul.bf16.gmra.mxu3 %v7566_v19  ;;  %v3843_v39 = vpop.f32.mrf.mxu2 }
 0x206   : > { %v3896_v63 = vadd.f32 %v3843_v39, %v10491_v20  ;;  %v5220_v20 = vsel %vm11948_vm3, %v5187_v25, 0  ;;  %v4895_v39 = vrot.slane %v4893_v15, 1  ;;  %v5378_v36 = vsel %vm11955_vm8, %v10522_v62, %v10562_v49  ;;  %v5971_v15 = vld [vmem:[#allocation2 + $0x34] sm:$0xf]  ;;  %vm11969_vm3 = vmmov %vm11955_vm8 }
 0x207   : > { %v4628_v22 = vpop.f32.mrf.mxu0  ;;  %v4346_v44 = vpop.f32.mrf.mxu3  ;;  %v5303_v0 = vunpack.c.l.b16 %v5220_v20  ;;  %vm11970_vm8 = vmmov %vm11941_vm2 }
 0x208   : > { %v4399_v32 = vadd.f32 %v4346_v44, %v3896_v63  ;;  %v2589_v19 = vpop.f32.mrf.mxu1  ;;  %v6149_v63 = vshrl.u32 %v10518_v7, 16  ;;  %v4705_v44 = vld [vmem:[#allocation2 + $0x34] sm:$0xf] }
 0x209   : > { %v10556_v27 = vadd.f32 %v2589_v19, %v11949_v43  ;;  %v6153_v19 = vshll.u32 %v10558_v61, 16  ;;  %v5331_v1 = vpack.c.b16 %v5303_v0, %v5302_v33  ;;  %v6004_v0 = vsel %vm11937_vm5, %v5971_v15, 0 }
 0x20a   : > { %6338 = vmatmul.bf16.gmra.mxu0 %v6148_v12  ;;  %v10560_v2 = vadd.f32 %v4628_v22, %v4399_v32  ;;  %v11951_v12 = vld [vmem:[#allocation64_spill] sm:$0xff]  ;;  %v4739_v22 = vsel %vm11954_vm0, %v4706_v4, 0  ;;  %v6151_v4 = vor.u32 %v6149_v63, %v6147_v3  ;;  %v6087_v63 = vunpack.c.l.b16 %v6004_v0 }
 0x20b   : > { %vm11952_vm1 = vnez %v11951_v12  ;;  %v7567_v32 = vld [vmem:[#allocation2 + $0x24] sm:$0xff]  ;;  %v4822_v43 = vunpack.c.l.b16 %v4739_v22  ;;  %v5380_v62 = vshrl.u32 %v5331_v1, 16  ;;  %v5383_v33 = vshll.u32 %v5331_v1, 16 }
 0x20c   : > { %11950 = vst [vmem:[#allocation19_spill] sm:$0xff] %v10560_v2  ;;  %v4738_v14 = vsel %vm11952_vm1, %v4705_v44, 0  ;;  %v6155_v2 = vrot.slane %v6153_v19, 1  ;;  %v4897_v15 = vshrl.u32 %v10545_v21, 16  ;;  %v8068_v21 = vld [vmem:[%s9328_s29 + $0x60] sm:$0xff]  }
 0x20d   : > { %v3845_v6 = vpop.f32.mrf.mxu2  ;;  %v4821_v20 = vunpack.c.l.b16 %v4738_v14  ;;  %v5188_v14 = vld [vmem:[#allocation2 + $0x38] sm:$0xf]  ;;  %v5385_v5 = vrot.slane %v5383_v33, 4 }
 0x20e   : > { %v3897_v25 = vadd.f32 %v3845_v6, %v10516_v28  ;;  %v4896_v28 = vsel %vm11956_vm15, %v4891_v55, %v4895_v39  ;;  %v11957_v6 = vld [vmem:[#allocation79_spill] sm:$0xff]  ;;  %v6005_v55 = vsel %vm11939_vm7, %v5972_v60, 0  ;;  %vm11974_vm15 = vmmov %vm11941_vm2 }
 0x20f   : > { %v4630_v18 = vpop.f32.mrf.mxu0  ;;  %v4348_v57 = vpop.f32.mrf.mxu3  ;;  %v6088_v19 = vunpack.c.l.b16 %v6005_v55 }
 0x210   : > { %v4400_v7 = vadd.f32 %v4348_v57, %v3897_v25  ;;  %v2592_v38 = vpop.f32.mrf.mxu1  ;;  %v10584_v25 = vpack.c.b16 %v4822_v43, %v4821_v20  ;;  %v5189_v57 = vld [vmem:[#allocation2 + $0x3c] sm:$0xf] }
 0x211   : > { %v10576_v44 = vadd.f32 %v2592_v38, %v11957_v6  ;;  %5080 = vmatmul.bf16.gmra.mxu1 %v4896_v28  ;;  %v11959_v38 = vld [vmem:[#allocation7_spill] sm:$0xff]  ;;  %v11961_v20 = vld [vmem:[#allocation10_spill] sm:$0xff] }
 0x212   : > { %v10578_v31 = vadd.f32 %v4630_v18, %v4400_v7  ;;  %v5382_v7 = vrot.slane %v5380_v62, 3  ;;  %vm11960_vm5 = vnez %v11959_v38  ;;  %v4901_v60 = vshll.u32 %v10584_v25, 16  ;;  %v11963_v43 = vld [vmem:[#allocation82_spill] sm:$0xff] }
 0x213   : > { %5578 = vmatmul.bf16.gmra.mxu2 %v5378_v36  ;;  %v6156_v36 = vsel %vm11941_vm2, %v6151_v4, %v6155_v2  ;;  %v5221_v54 = vsel %vm11960_vm5, %v5188_v14, 0  ;;  %vm11962_vm7 = vnez %v11961_v20  ;;  %v10597_v4 = vpack.c.b16 %v6088_v19, %v6087_v63  ;;  %v4708_v20 = vld [vmem:[#allocation2 + $0x40] sm:$0xf]  ;;  %v11965_v19 = vld [vmem:[#allocation70_spill] sm:$0xff] }
 0x214   : > { %11958 = vst [vmem:[#allocation33_spill] sm:$0xff] %v10578_v31  ;;  %v10601_v33 = vor.u32 %v5385_v5, %v5382_v7  ;;  %v5304_v0 = vunpack.c.l.b16 %v5221_v54  ;;  %v4899_v14 = vor.u32 %v4897_v15, %v4895_v39  ;;  %v6157_v38 = vshrl.u32 %v10558_v61, 16  ;;  %v7568_v15 = vld [vmem:[#allocation2 + $0x2c] sm:$0xff] }
 0x215   : > { %5860 = vmatmul.bf16.gmra.mxu3 %v7567_v32  ;;  %v6161_v63 = vshll.u32 %v10597_v4, 16  ;;  %vm11966_vm12 = vnez %v11965_v19 }
 0x216   : > { %v3848_v22 = vpop.f32.mrf.mxu2  ;;  %v5387_v54 = vsel %vm11969_vm3, %v10562_v49, %v10601_v33  ;;  %v6159_v31 = vor.u32 %v6157_v38, %v6155_v2 }
 0x217   : > { %v3898_v3 = vadd.f32 %v3848_v22, %v10537_v10  ;;  %v4633_v18 = vpop.f32.mrf.mxu0  ;;  %v4351_v1 = vpop.f32.mrf.mxu3  ;;  %v5222_v10 = vsel %vm11962_vm7, %v5189_v57, 0  ;;  %v4903_v22 = vrot.slane %v4901_v60, 1  ;;  %v4707_v57 = vld [vmem:[#allocation2 + $0x3c] sm:$0xf]  ;;  %v6163_v47 = vrot.slane %v6161_v63, 1  ;;  %vm11984_vm7 = vmmov %vm11969_vm3 }
 0x218   : > { %v2594_v28 = vpop.f32.mrf.mxu1  ;;  %v5305_v55 = vunpack.c.l.b16 %v5222_v10  ;;  %v5973_v10 = vld [vmem:[#allocation2 + $0x3c] sm:$0xf]  ;;  %vm11985_vm3 = vmmov %vm11970_vm8 }
 0x219   : > { %v4401_v32 = vadd.f32 %v4351_v1, %v3898_v3  ;;  %v10595_v6 = vadd.f32 %v2594_v28, %v11963_v43  ;;  %v7796_v3 = vunpack.c.h.bf16 %v8068_v21  ;;  %v5974_v43 = vld [vmem:[#allocation2 + $0x40] sm:$0xf] }
 0x21a   : > { %6343 = vmatmul.bf16.gmra.mxu0 %v6156_v36  ;;  %v11967_v36 = vld [vmem:[#allocation71_spill] sm:$0xff] }
 0x21b   : > { %v10599_v62 = vadd.f32 %v4633_v18, %v4401_v32  ;;  %v4740_v18 = vsel %vm11966_vm12, %v4707_v57, 0  ;;  %vm11968_vm4 = vnez %v11967_v36  ;;  %v5332_v32 = vpack.c.b16 %v5305_v55, %v5304_v0  ;;  %v11971_v57 = vld [vmem:[#allocation67_spill] sm:$0xff]  ;;  %v11989_v36 = vld [vmem:[#allocation49_spill] sm:$0xff] }
 0x21c   : > { %v4741_v7 = vsel %vm11968_vm4, %v4708_v20, 0  ;;  %v4823_v21 = vunpack.c.l.b16 %v4740_v18  ;;  %v1048_v20 = vadd.f32 %v10496_v50, %v7796_v3  ;;  %v6006_v55 = vsel %vm11952_vm1, %v5973_v10, 0  ;;  %v5190_v18 = vld [vmem:[#allocation2 + $0x40] sm:$0xf]  ;;  %v5191_v3 = vld [vmem:[#allocation2 + $0x44] sm:$0xf] }
 0x21d   : > { %11964 = vst [vmem:[#allocation34_spill] sm:$0xff] %v10599_v62  ;;  %v5389_v49 = vshrl.u32 %v5332_v32, 16  ;;  %v5392_v0 = vshll.u32 %v5332_v32, 16  ;;  %v6089_v63 = vunpack.c.l.b16 %v6006_v55  ;;  %v6164_v32 = vsel %vm11974_vm15, %v6159_v31, %v6163_v47 }
 0x21e   : > { %v3850_v1 = vpop.f32.mrf.mxu2  ;;  %vm11976_vm1 = vnez %v11975_v24 }
 0x21f   : > { %v3899_v28 = vadd.f32 %v3850_v1, %v10556_v27  ;;  %v4635_v5 = vpop.f32.mrf.mxu0  ;;  %v4353_v39 = vpop.f32.mrf.mxu3  ;;  %v4904_v27 = vsel %vm11970_vm8, %v4899_v14, %v4903_v22  ;;  %v4824_v1 = vunpack.c.l.b16 %v4741_v7  ;;  %v6007_v14 = vsel %vm11954_vm0, %v5974_v43, 0  ;;  %vm11988_vm8 = vmmov %vm11985_vm3 }
 0x220   : > { %v2597_v60 = vpop.f32.mrf.mxu1  ;;  %v4905_v43 = vshrl.u32 %v10584_v25, 16 }
 0x221   : > { %v4402_v61 = vadd.f32 %v4353_v39, %v3899_v28  ;;  %v10616_v62 = vadd.f32 %v2597_v60, %v11971_v57  ;;  %5085 = vmatmul.bf16.gmra.mxu1 %v4904_v27  ;;  %v10625_v28 = vpack.c.b16 %v4824_v1, %v4823_v21  ;;  %v11973_v39 = vld [vmem:[#allocation69_spill] sm:$0xff]  ;;  %v5394_v60 = vrot.slane %v5392_v0, 4  ;;  %v11977_v1 = vld [vmem:[#allocation36_spill] sm:$0xff] }
 0x222   : > { %v2360_v2 = vadd.f32 %v11973_v39, %v1048_v20  ;;  %vm11978_vm0 = vnez %v11977_v1 }
 0x223   : > { %5583 = vmatmul.bf16.gmra.mxu2 %v5387_v54  ;;  %v10619_v53 = vadd.f32 %v4635_v5, %v4402_v61  ;;  %v6090_v5 = vunpack.c.l.b16 %v6007_v14  ;;  %v5391_v61 = vrot.slane %v5389_v49, 3  ;;  %v4909_v21 = vshll.u32 %v10625_v28, 16 }
 0x224   : > { %v4907_v14 = vor.u32 %v4905_v43, %v4903_v22  ;;  %v5975_v43 = vld [vmem:[#allocation2 + $0x44] sm:$0xf] }
 0x225   : > { %11972 = vst [vmem:[#allocation47_spill] sm:$0xff] %v10619_v53  ;;  %5865 = vmatmul.bf16.gmra.mxu3 %v7568_v15  ;;  %v5223_v15 = vsel %vm11976_vm1, %v5190_v18, 0  ;;  %v10638_v31 = vpack.c.b16 %v6090_v5, %v6089_v63  ;;  %v10642_v49 = vor.u32 %v5394_v60, %v5391_v61  ;;  %v4911_v18 = vrot.slane %v4909_v21, 1  ;;  %v11980_v5 = vld [vmem:[#allocation74_spill] sm:$0xff]  ;;  %v5976_v21 = vld [vmem:[#allocation2 + $0x48] sm:$0xf] }
 0x226   : > { %v3853_v7 = vpop.f32.mrf.mxu2  ;;  %v5306_v0 = vunpack.c.l.b16 %v5223_v15  ;;  %vm11981_vm2 = vnez %v11980_v5 }
 0x227   : > { %v3900_v38 = vadd.f32 %v3853_v7, %v10576_v44  ;;  %v4638_v54 = vpop.f32.mrf.mxu0  ;;  %v5224_v44 = vsel %vm11978_vm0, %v5191_v3, 0  ;;  %v8069_v7 = vld [vmem:[%s9328_s29 + $0x68] sm:$0xff]   ;;  %v6169_v63 = vshll.u32 %v10638_v31, 16  ;;  %v5396_v24 = vsel %vm11984_vm7, %v10601_v33, %v10642_v49  ;;  %vm11997_vm0 = vmmov %vm11984_vm7  ;;  %s6866_s29 = sshll.u32 %s6863_s18, 4  ;;  %s6867_s29 = int_to_ptr.hbm [resolvable:$true] %s6866_s29 }
 0x228   : > { %v4356_v12 = vpop.f32.mrf.mxu3  ;;  %v2599_v10 = vpop.f32.mrf.mxu1  ;;  %v5307_v55 = vunpack.c.l.b16 %v5224_v44  ;;  %v7800_v25 = vunpack.c.h.bf16 %v8069_v7  ;;  %v4710_v3 = vld [vmem:[#allocation2 + $0x48] sm:$0xf]  ;;  %v11986_v7 = vld [vmem:[#allocation73_spill] sm:$0xff]  ;;  %vm11998_vm7 = vmmov %vm11985_vm3  ;;  %s8085_s21 = sshra.s32 %s6867_s29, 4  ;;  %s8086_s21 = int_to_ptr.hbm [resolvable:$true] %s8085_s21 }
 0x229   : > { %v4403_v27 = vadd.f32 %v4356_v12, %v3900_v38  ;;  %v10636_v57 = vadd.f32 %v2599_v10, %v2360_v2  ;;  %v6165_v38 = vshrl.u32 %v10597_v4, 16  ;;  %v4709_v12 = vld [vmem:[#allocation2 + $0x44] sm:$0xf]  ;;  %s8087_s22 = scalar_lea.hbm %s8086_s21, 16  ;;  %p8092_p0 = scmp.lt.s32.totalorder %s8086_s21, %s11294_s7 }
 0x22a   : > { %6348 = vmatmul.bf16.gmra.mxu0 %v6164_v32  ;;  %v11982_v32 = vld [vmem:[#allocation30_spill] sm:$0xff]  ;;  %v5333_v15 = vpack.c.b16 %v5307_v55, %v5306_v0  ;;  %v6008_v55 = vsel %vm11966_vm12, %v5975_v43, 0  ;;  %vm11990_vm12 = vnez %v11989_v36  ;;  %v4913_v43 = vshrl.u32 %v10625_v28, 16  ;;  %p8088_p11 = scmp.ne.s32.totalorder %s8086_s21, %s8087_s22 }
 0x22b   : > { %v10640_v20 = vadd.f32 %v4638_v54, %v4403_v27  ;;  %v4742_v54 = vsel %vm11981_vm2, %v4709_v12, 0  ;;  %vm11983_vm5 = vnez %v11982_v32  ;;  %v7569_v27 = vld [vmem:[#allocation2 + $0x34] sm:$0xff]  ;;  %v1050_v12 = vadd.f32 %v10496_v50, %v7800_v25  ;;  %v5193_v50 = vld [vmem:[#allocation2 + $0x4c] sm:$0xf] }
 0x22c   : > { %v4743_v61 = vsel %vm11983_vm5, %v4710_v3, 0  ;;  %v4825_v1 = vunpack.c.l.b16 %v4742_v54  ;;  %v6167_v3 = vor.u32 %v6165_v38, %v6163_v47  ;;  %v5398_v33 = vshrl.u32 %v5333_v15, 16  ;;  %v5192_v54 = vld [vmem:[#allocation2 + $0x48] sm:$0xf]  ;;  %p8089_p12 = pnand %p8088_p11, %p8217_p5 }
 0x22d   : > { %11979 = vst [vmem:[#allocation48_spill] sm:$0xff] %v10640_v20  ;;  %v4826_v44 = vunpack.c.l.b16 %v4743_v61  ;;  %v6171_v20 = vrot.slane %v6169_v63, 1  ;;  %v5401_v0 = vshll.u32 %v5333_v15, 16  ;;  %v11987_v25 = vld [vmem:[#allocation8_spill] sm:$0xff]  ;;  %v6091_v63 = vunpack.c.l.b16 %v6008_v55 }
 0x22e   : > { %v3855_v39 = vpop.f32.mrf.mxu2  ;;  %v2362_v47 = vadd.f32 %v11987_v25, %v1050_v12  ;;  %v5400_v15 = vrot.slane %v5398_v33, 3  ;;  %v4915_v55 = vor.u32 %v4913_v43, %v4911_v18  ;;  %v6173_v28 = vshrl.u32 %v10638_v31, 16  ;;  %v4712_v25 = vld [vmem:[#allocation2 + $0x50] sm:$0xf]  ;;  %p8090_p13 = pneg %p8089_p12 }
 0x22f   : > { %v3901_v2 = vadd.f32 %v3855_v39, %v10595_v6  ;;  %v4640_v60 = vpop.f32.mrf.mxu0  ;;  %v4912_v6 = vsel %vm11985_vm3, %v4907_v14, %v4911_v18  ;;  %v6009_v14 = vsel %vm11968_vm4, %v5976_v21, 0 }
 0x230   : > { %v4358_v22 = vpop.f32.mrf.mxu3  ;;  %v2602_v10 = vpop.f32.mrf.mxu1 }
 0x231   : > { %v4404_v4 = vadd.f32 %v4358_v22, %v3901_v2  ;;  %v10657_v39 = vadd.f32 %v2602_v10, %v11986_v7  ;;  %5090 = vmatmul.bf16.gmra.mxu1 %v4912_v6  ;;  %v10666_v2 = vpack.c.b16 %v4826_v44, %v4825_v1  ;;  %v11991_v1 = vld [vmem:[#allocation50_spill] sm:$0xff] }
 0x232   : > { %vm11992_vm4 = vnez %v11991_v1 }
 0x233   : > { %5588 = vmatmul.bf16.gmra.mxu2 %v5396_v24  ;;  %v10660_v53 = vadd.f32 %v4640_v60, %v4404_v4  ;;  %v6092_v60 = vunpack.c.l.b16 %v6009_v14  ;;  %v6172_v24 = vsel %vm11988_vm8, %v6167_v3, %v6171_v20  ;;  %v5403_v4 = vrot.slane %v5401_v0, 4 }
 0x234   : > { %v4917_v21 = vshll.u32 %v10666_v2, 16 }
 0x235   : > { %5870 = vmatmul.bf16.gmra.mxu3 %v7569_v27  ;;  %v5225_v27 = vsel %vm11990_vm12, %v5192_v54, 0  ;;  %v10679_v7 = vpack.c.b16 %v6092_v60, %v6091_v63  ;;  %v10683_v3 = vor.u32 %v5403_v4, %v5400_v15  ;;  %v11995_v60 = vld [vmem:[#allocation42_spill] sm:$0xff] }
 0x236   : > { %v3858_v61 = vpop.f32.mrf.mxu2  ;;  %v5308_v33 = vunpack.c.l.b16 %v5225_v27  ;;  %v4919_v14 = vrot.slane %v4917_v21, 1  ;;  %vm11996_vm1 = vnez %v11995_v60  ;;  %v7570_v4 = vld [vmem:[#allocation2 + $0x3c] sm:$0xff]  ;;  %v5977_v27 = vld [vmem:[#allocation2 + $0x4c] sm:$0xf] }
 0x237   : > { %v3902_v38 = vadd.f32 %v3858_v61, %v10616_v62  ;;  %v4643_v22 = vpop.f32.mrf.mxu0  ;;  %v5226_v62 = vsel %vm11992_vm4, %v5193_v50, 0  ;;  %v4711_v61 = vld [vmem:[#allocation2 + $0x4c] sm:$0xf]  ;;  %v5405_v18 = vsel %vm11997_vm0, %v10642_v49, %v10683_v3  ;;  %v11999_v21 = vld [vmem:[#allocation11_spill] sm:$0xff]  ;;  %vm12010_vm4 = vmmov %vm11997_vm0 }
 0x238   : > { %v4361_v19 = vpop.f32.mrf.mxu3  ;;  %v2604_v6 = vpop.f32.mrf.mxu1  ;;  %v5309_v0 = vunpack.c.l.b16 %v5226_v62  ;;  %v6175_v62 = vor.u32 %v6173_v28, %v6171_v20  ;;  %vm12011_vm0 = vmmov %vm11985_vm3 }
 0x239   : > { %v4405_v10 = vadd.f32 %v4361_v19, %v3902_v38  ;;  %v10677_v44 = vadd.f32 %v2604_v6, %v2362_v47  ;;  %v6177_v47 = vshll.u32 %v10679_v7, 16  ;;  %v11993_v38 = vld [vmem:[#allocation75_spill] sm:$0xff] }
 0x23a   : > { %6353 = vmatmul.bf16.gmra.mxu0 %v6172_v24  ;;  %vm11994_vm15 = vnez %v11993_v38  ;;  %v5334_v15 = vpack.c.b16 %v5309_v0, %v5308_v33  ;;  %v6010_v0 = vsel %vm11981_vm2, %v5977_v27, 0 }
 0x23b   : > { %v10681_v12 = vadd.f32 %v4643_v22, %v4405_v10  ;;  %v4744_v63 = vsel %vm11994_vm15, %v4711_v61, 0  ;;  %v4745_v22 = vsel %vm11996_vm1, %v4712_v25, 0  ;;  %v5978_v10 = vld [vmem:[#allocation2 + $0x50] sm:$0xf]  ;;  %v6093_v28 = vunpack.c.l.b16 %v6010_v0 }
 0x23c   : > { %v4827_v6 = vunpack.c.l.b16 %v4744_v63  ;;  %v4828_v43 = vunpack.c.l.b16 %v4745_v22  ;;  %v5407_v49 = vshrl.u32 %v5334_v15, 16  ;;  %v5410_v33 = vshll.u32 %v5334_v15, 16  ;;  %v5195_v22 = vld [vmem:[#allocation2 + $0x54] sm:$0xf] }
 0x23e   : > { %v3860_v54 = vpop.f32.mrf.mxu2  ;;  %v10705_v25 = vpack.c.b16 %v4828_v43, %v4827_v6  ;;  %v5409_v15 = vrot.slane %v5407_v49, 3  ;;  %v5412_v5 = vrot.slane %v5410_v33, 4  ;;  %v12004_v6 = vld [vmem:[#allocation81_spill] sm:$0xff] }
 0x23f   : > { %v3903_v50 = vadd.f32 %v3860_v54, %v10636_v57  ;;  %v4645_v24 = vpop.f32.mrf.mxu0  ;;  %v4920_v57 = vsel %vm11998_vm7, %v4915_v55, %v4919_v14  ;;  %v6179_v54 = vrot.slane %v6177_v47, 1  ;;  %v6011_v55 = vsel %vm11983_vm5, %v5978_v10, 0  ;;  %v12002_v10 = vld [vmem:[#allocation20_spill] sm:$0xff]  ;;  %vm12013_vm7 = vmmov %vm12011_vm0 }
 0x240   : > { %v4363_v19 = vpop.f32.mrf.mxu3  ;;  %v2607_v36 = vpop.f32.mrf.mxu1  ;;  %v6094_v47 = vunpack.c.l.b16 %v6011_v55  ;;  %v4925_v27 = vshll.u32 %v10705_v25, 16  ;;  %vm12003_vm5 = vnez %v12002_v10  ;;  %v10722_v49 = vor.u32 %v5412_v5, %v5409_v15 }
 0x241   : > { %v4406_v31 = vadd.f32 %v4363_v19, %v3903_v50  ;;  %v10697_v1 = vadd.f32 %v2607_v36, %v11999_v21  ;;  %5095 = vmatmul.bf16.gmra.mxu1 %v4920_v57  ;;  %v5194_v50 = vld [vmem:[#allocation2 + $0x50] sm:$0xf]  ;;  %v6180_v19 = vsel %vm11985_vm3, %v6175_v62, %v6179_v54  ;;  %v4921_v57 = vshrl.u32 %v10666_v2, 16 }
 0x242   : > { %v10718_v21 = vpack.c.b16 %v6094_v47, %v6093_v28  ;;  %v12008_v47 = vld [vmem:[#allocation80_spill] sm:$0xff] }
 0x243   : > { %5593 = vmatmul.bf16.gmra.mxu2 %v5405_v18  ;;  %v10699_v61 = vadd.f32 %v4645_v24, %v4406_v31  ;;  %v12000_v31 = vld [vmem:[#allocation14_spill] sm:$0xff]  ;;  %v4923_v55 = vor.u32 %v4921_v57, %v4919_v14  ;;  %vm12009_vm12 = vnez %v12008_v47  ;;  %v5414_v14 = vsel %vm12010_vm4, %v10683_v3, %v10722_v49  ;;  %v5979_v57 = vld [vmem:[#allocation2 + $0x54] sm:$0xf] }
 0x244   : > { %vm12001_vm2 = vnez %v12000_v31  ;;  %v6185_v31 = vshll.u32 %v10718_v21, 16 }
 0x245   : > { %5875 = vmatmul.bf16.gmra.mxu3 %v7570_v4  ;;  %v5227_v32 = vsel %vm12001_vm2, %v5194_v50, 0  ;;  %v4927_v50 = vrot.slane %v4925_v27, 1  ;;  %v5980_v27 = vld [vmem:[#allocation2 + $0x58] sm:$0xf] }
 0x246   : > { %v3863_v63 = vpop.f32.mrf.mxu2  ;;  %v5310_v33 = vunpack.c.l.b16 %v5227_v32 }
 0x247   : > { %v3904_v20 = vadd.f32 %v3863_v63, %v10657_v39  ;;  %v4648_v24 = vpop.f32.mrf.mxu0  ;;  %v5228_v39 = vsel %vm12003_vm5, %v5195_v22, 0  ;;  %v6181_v63 = vshrl.u32 %v10679_v7, 16  ;;  %vm12023_vm5 = vmmov %vm12010_vm4 }
 0x248   : > { %v4366_v18 = vpop.f32.mrf.mxu3  ;;  %v2609_v4 = vpop.f32.mrf.mxu1  ;;  %v5311_v0 = vunpack.c.l.b16 %v5228_v39  ;;  %vm12024_vm4 = vmmov %vm12011_vm0 }
 0x249   : > { %v4407_v36 = vadd.f32 %v4366_v18, %v3904_v20  ;;  %v10716_v43 = vadd.f32 %v2609_v4, %v12004_v6  ;;  %v4713_v20 = vld [vmem:[#allocation2 + $0x54] sm:$0xf]  ;;  %v4714_v18 = vld [vmem:[#allocation2 + $0x58] sm:$0xf]  ;;  %v12012_v6 = vld [vmem:[#allocation84_spill] sm:$0xff] }
 0x24a   : > { %6358 = vmatmul.bf16.gmra.mxu0 %v6180_v19  ;;  %v12006_v19 = vld [vmem:[#allocation12_spill] sm:$0xff]  ;;  %v5335_v32 = vpack.c.b16 %v5311_v0, %v5310_v33  ;;  %v6012_v0 = vsel %vm11994_vm15, %v5979_v57, 0  ;;  %v4929_v57 = vshrl.u32 %v10705_v25, 16 }
 0x24b   : > { %v10720_v62 = vadd.f32 %v4648_v24, %v4407_v36  ;;  %vm12007_vm8 = vnez %v12006_v19  ;;  %v4747_v24 = vsel %vm12009_vm12, %v4714_v18, 0  ;;  %v7571_v36 = vld [vmem:[#allocation2 + $0x44] sm:$0xff]  ;;  %v6187_v18 = vrot.slane %v6185_v31, 1 }
 0x24c   : > { %v4746_v28 = vsel %vm12007_vm8, %v4713_v20, 0  ;;  %v4830_v39 = vunpack.c.l.b16 %v4747_v24  ;;  %v6183_v20 = vor.u32 %v6181_v63, %v6179_v54  ;;  %v5416_v3 = vshrl.u32 %v5335_v32, 16 }
 0x24d   : > { %12005 = vst [vmem:[#allocation53_spill] sm:$0xff] %v10720_v62  ;;  %v4829_v10 = vunpack.c.l.b16 %v4746_v28  ;;  %v5419_v33 = vshll.u32 %v5335_v32, 16  ;;  %v5196_v28 = vld [vmem:[#allocation2 + $0x58] sm:$0xf]  ;;  %v6095_v63 = vunpack.c.l.b16 %v6012_v0 }
 0x24e   : > { %v3865_v2 = vpop.f32.mrf.mxu2 }
 0x24f   : > { %v3905_v22 = vadd.f32 %v3865_v2, %v10677_v44  ;;  %v4650_v15 = vpop.f32.mrf.mxu0  ;;  %v4928_v44 = vsel %vm12011_vm0, %v4923_v55, %v4927_v50  ;;  %v6013_v55 = vsel %vm11996_vm1, %v5980_v27, 0  ;;  %v5421_v38 = vrot.slane %v5419_v33, 4 }
 0x250   : > { %v4368_v5 = vpop.f32.mrf.mxu3  ;;  %v2612_v4 = vpop.f32.mrf.mxu1  ;;  %v6096_v31 = vunpack.c.l.b16 %v6013_v55  ;;  %v4931_v55 = vor.u32 %v4929_v57, %v4927_v50  ;;  %v5982_v57 = vld [vmem:[#allocation2 + $0x60] sm:$0xf] }
 0x251   : > { %v4408_v7 = vadd.f32 %v4368_v5, %v3905_v22  ;;  %v10736_v2 = vadd.f32 %v2612_v4, %v12012_v6  ;;  %5100 = vmatmul.bf16.gmra.mxu1 %v4928_v44  ;;  %v10744_v22 = vpack.c.b16 %v4830_v39, %v4829_v10  ;;  %v5197_v5 = vld [vmem:[#allocation2 + $0x5c] sm:$0xf]  ;;  %v12016_v10 = vld [vmem:[#allocation21_spill] sm:$0xff] }
 0x252   : > { %v12014_v4 = vld [vmem:[#allocation18_spill] sm:$0xff]  ;;  %vm12017_vm1 = vnez %v12016_v10  ;;  %v10757_v6 = vpack.c.b16 %v6096_v31, %v6095_v63  ;;  %v12021_v31 = vld [vmem:[#allocation85_spill] sm:$0xff] }
 0x253   : > { %5598 = vmatmul.bf16.gmra.mxu2 %v5414_v14  ;;  %v10738_v62 = vadd.f32 %v4650_v15, %v4408_v7  ;;  %v6188_v14 = vsel %vm12013_vm7, %v6183_v20, %v6187_v18  ;;  %v5418_v7 = vrot.slane %v5416_v3, 3  ;;  %vm12015_vm15 = vnez %v12014_v4 }
 0x254   : > { %v5229_v60 = vsel %vm12015_vm15, %v5196_v28, 0  ;;  %v4933_v27 = vshll.u32 %v10744_v22, 16  ;;  %vm12022_vm2 = vnez %v12021_v31  ;;  %v12039_v31 = vld [vmem:[#allocation51_spill] sm:$0xff] }
 0x255   : > { %5880 = vmatmul.bf16.gmra.mxu3 %v7571_v36  ;;  %v10761_v3 = vor.u32 %v5421_v38, %v5418_v7  ;;  %v5312_v33 = vunpack.c.l.b16 %v5229_v60  ;;  %v7572_v60 = vld [vmem:[#allocation2 + $0x4c] sm:$0xff] }
 0x256   : > { %v3868_v24 = vpop.f32.mrf.mxu2  ;;  %v4935_v28 = vrot.slane %v4933_v27, 1 }
 0x257   : > { %v3906_v54 = vadd.f32 %v3868_v24, %v10697_v1  ;;  %v4653_v15 = vpop.f32.mrf.mxu0  ;;  %v5230_v1 = vsel %vm12017_vm1, %v5197_v5, 0  ;;  %v6189_v24 = vshrl.u32 %v10718_v21, 16  ;;  %v5423_v50 = vsel %vm12023_vm5, %v10722_v49, %v10761_v3  ;;  %vm12035_vm1 = vmmov %vm12023_vm5 }
 0x258   : > { %v4371_v32 = vpop.f32.mrf.mxu3  ;;  %v2614_v36 = vpop.f32.mrf.mxu1  ;;  %v5313_v0 = vunpack.c.l.b16 %v5230_v1  ;;  %vm12036_vm5 = vmmov %vm12011_vm0 }
 0x259   : > { %v4409_v44 = vadd.f32 %v4371_v32, %v3906_v54  ;;  %v10755_v39 = vadd.f32 %v2614_v36, %v9874_v59  ;;  %v4715_v54 = vld [vmem:[#allocation2 + $0x5c] sm:$0xf]  ;;  %v4716_v32 = vld [vmem:[#allocation2 + $0x60] sm:$0xf]  ;;  %v6193_v59 = vshll.u32 %v10757_v6, 16  ;;  %v6191_v1 = vor.u32 %v6189_v24, %v6187_v18 }
 0x25a   : > { %6363 = vmatmul.bf16.gmra.mxu0 %v6188_v14  ;;  %v12019_v14 = vld [vmem:[#allocation83_spill] sm:$0xff]  ;;  %v5336_v4 = vpack.c.b16 %v5313_v0, %v5312_v33  ;;  %v5981_v36 = vld [vmem:[#allocation2 + $0x5c] sm:$0xf]  ;;  %v6015_v33 = vsel %vm12009_vm12, %v5982_v57, 0 }
 0x25b   : > { %v10759_v20 = vadd.f32 %v4653_v15, %v4409_v44  ;;  %vm12020_vm3 = vnez %v12019_v14  ;;  %v4749_v15 = vsel %vm12022_vm2, %v4716_v32, 0  ;;  %v6014_v49 = vsel %vm12007_vm8, %v5981_v36, 0  ;;  %v12028_v57 = vld [vmem:[#allocation38_spill] sm:$0xff] }
 0x25c   : > { %v4748_v63 = vsel %vm12020_vm3, %v4715_v54, 0  ;;  %v4832_v10 = vunpack.c.l.b16 %v4749_v15  ;;  %v5425_v32 = vshrl.u32 %v5336_v4, 16  ;;  %v6097_v24 = vunpack.c.l.b16 %v6014_v49 }
 0x25d   : > { %12018 = vst [vmem:[#allocation26_spill] sm:$0xff] %v10759_v20  ;;  %v4831_v27 = vunpack.c.l.b16 %v4748_v63  ;;  %v5428_v20 = vshll.u32 %v5336_v4, 16  ;;  %v5199_v63 = vld [vmem:[#allocation2 + $0x64] sm:$0xf]  ;;  %v12026_v4 = vld [vmem:[#allocation37_spill] sm:$0xff]  ;;  %vm12029_vm12 = vnez %v12028_v57 }
 0x25e   : > { %v3870_v25 = vpop.f32.mrf.mxu2  ;;  %vm12027_vm8 = vnez %v12026_v4 }
 0x25f   : > { %v3907_v5 = vadd.f32 %v3870_v25, %v10716_v43  ;;  %v4655_v7 = vpop.f32.mrf.mxu0  ;;  %v4936_v43 = vsel %vm12024_vm4, %v4931_v55, %v4935_v28  ;;  %v6195_v25 = vrot.slane %v6193_v59, 1  ;;  %v10782_v0 = vpack.c.b16 %v4832_v10, %v4831_v27  ;;  %v5198_v55 = vld [vmem:[#allocation2 + $0x60] sm:$0xf]  ;;  %vm12038_vm4 = vmmov %vm12011_vm0 }
 0x260   : > { %v4373_v38 = vpop.f32.mrf.mxu3  ;;  %v10773_v44 = vpop.f32.mrf.mxu1  ;;  %v6098_v59 = vunpack.c.l.b16 %v6015_v33  ;;  %v5430_v19 = vrot.slane %v5428_v20, 4  ;;  %v5231_v47 = vsel %vm12027_vm8, %v5198_v55, 0  ;;  %vm12044_vm8 = vnez %v11827_v23 }
 0x261   : > { %v4410_v21 = vadd.f32 %v4373_v38, %v3907_v5  ;;  %5105 = vmatmul.bf16.gmra.mxu1 %v4936_v43  ;;  %v4937_v43 = vshrl.u32 %v10744_v22, 16  ;;  %v4941_v36 = vshll.u32 %v10782_v0, 16  ;;  %v5314_v20 = vunpack.c.l.b16 %v5231_v47  ;;  %v4717_v22 = vld [vmem:[#allocation2 + $0x64] sm:$0xf]  ;;  %v7573_v47 = vld [vmem:[#allocation2 + $0x54] sm:$0xff] }
 0x262   : > { %v10794_v27 = vpack.c.b16 %v6098_v59, %v6097_v24  ;;  %v12033_v59 = vld [vmem:[#allocation31_spill] sm:$0xff] }
 0x263   : > { %5603 = vmatmul.bf16.gmra.mxu2 %v5423_v50  ;;  %v10776_v54 = vadd.f32 %v4655_v7, %v4410_v21  ;;  %v6196_v7 = vsel %vm12011_vm0, %v6191_v1, %v6195_v25  ;;  %v5427_v50 = vrot.slane %v5425_v32, 3  ;;  %v4939_v49 = vor.u32 %v4937_v43, %v4935_v28  ;;  %v5983_v43 = vld [vmem:[#allocation2 + $0x64] sm:$0xf] }
 0x264   : > { %v4943_v33 = vrot.slane %v4941_v36, 1  ;;  %vm12034_vm15 = vnez %v12033_v59  ;;  %v5984_v36 = vld [vmem:[#allocation2 + $0x68] sm:$0xf]  ;;  %vm12043_vm0 = vnez %v11823_v17 }
 0x265   : > { %12025 = vst [vmem:[#allocation28_spill] sm:$0xff] %v10776_v54  ;;  %5885 = vmatmul.bf16.gmra.mxu3 %v7572_v60  ;;  %v10798_v1 = vor.u32 %v5430_v19, %v5427_v50 }
 0x266   : > { %v3873_v5 = vpop.f32.mrf.mxu2 }
 0x267   : > { %v3908_v18 = vadd.f32 %v3873_v5, %v10736_v2  ;;  %v4658_v15 = vpop.f32.mrf.mxu0  ;;  %v5232_v2 = vsel %vm12029_vm12, %v5199_v63, 0  ;;  %v6197_v5 = vshrl.u32 %v10757_v6, 16  ;;  %v6201_v63 = vshll.u32 %v10794_v27, 16  ;;  %vm12045_vm12 = vmmov %vm12035_vm1 }
 0x268   : > { %v4376_v38 = vpop.f32.mrf.mxu3  ;;  %v10788_v60 = vpop.f32.mrf.mxu1  ;;  %v5315_v32 = vunpack.c.l.b16 %v5232_v2  ;;  %v5432_v28 = vsel %vm12035_vm1, %v10761_v3, %v10798_v1  ;;  %v6016_v3 = vsel %vm12020_vm3, %v5983_v43, 0  ;;  %vm12040_vm3 = vnez %v12039_v31  ;;  %v4719_v31 = vld [vmem:[#allocation2 + $0x6c] sm:$0xf]  ;;  %vm12046_vm1 = vmmov %vm12038_vm4 }
 0x269   : > { %v4411_v21 = vadd.f32 %v4376_v38, %v3908_v18  ;;  %v4718_v18 = vld [vmem:[#allocation2 + $0x68] sm:$0xf] }
 0x26a   : > { %6368 = vmatmul.bf16.gmra.mxu0 %v6196_v7  ;;  %v12031_v7 = vld [vmem:[#allocation13_spill] sm:$0xff]  ;;  %v5337_v4 = vpack.c.b16 %v5315_v32, %v5314_v20  ;;  %v6017_v20 = vsel %vm12022_vm2, %v5984_v36, 0  ;;  %v12037_v32 = vld [vmem:[#allocation32_spill] sm:$0xff]  ;;  %v4945_v36 = vshrl.u32 %v10782_v0, 16 }
 0x26b   : > { %v10796_v10 = vadd.f32 %v4658_v15, %v4411_v21  ;;  %vm12032_vm7 = vnez %v12031_v7  ;;  %v4751_v15 = vsel %vm12034_vm15, %v4718_v18, 0 }
 0x26c   : > { %v4750_v24 = vsel %vm12032_vm7, %v4717_v22, 0  ;;  %v4834_v2 = vunpack.c.l.b16 %v4751_v15  ;;  %v6203_v22 = vrot.slane %v6201_v63, 1  ;;  %v5437_v54 = vshll.u32 %v5337_v4, 16 }
 0x26d   : > { %12030 = vst [vmem:[#allocation27_spill] sm:$0xff] %v10796_v10  ;;  %v4833_v57 = vunpack.c.l.b16 %v4750_v24  ;;  %v5434_v10 = vshrl.u32 %v5337_v4, 16  ;;  %v5200_v24 = vld [vmem:[#allocation2 + $0x68] sm:$0xf]  ;;  %v6099_v15 = vunpack.c.l.b16 %v6016_v3 }
 0x26e   : > { %v3875_v55 = vpop.f32.mrf.mxu2 }
 0x26f   : > { %v3909_v38 = vadd.f32 %v3875_v55, %v10755_v39  ;;  %v4660_v50 = vpop.f32.mrf.mxu0  ;;  %v4944_v39 = vsel %vm12036_vm5, %v4939_v49, %v4943_v33  ;;  %v6199_v55 = vor.u32 %v6197_v5, %v6195_v25  ;;  %v5146_v49 = vadd.f32 %v10773_v44, %v12037_v32  ;;  %v5201_v5 = vld [vmem:[#allocation2 + $0x6c] sm:$0xf]  ;;  %v10829_v44 = vld [vmem:[%s11293_s6] ss:$0 sm:$0xff] }
 0x270   : > { %v4378_v19 = vpop.f32.mrf.mxu3  ;;  %v10810_v21 = vpop.f32.mrf.mxu1  ;;  %v5436_v4 = vrot.slane %v5434_v10, 3 }
 0x271   : > { %v4412_v6 = vadd.f32 %v4378_v19, %v3909_v38  ;;  %5110 = vmatmul.bf16.gmra.mxu1 %v4944_v39  ;;  %v10821_v38 = vpack.c.b16 %v4834_v2, %v4833_v57  ;;  %v5233_v39 = vsel %vm12040_vm3, %v5200_v24, 0  ;;  %v12041_v2 = vld [vmem:[#allocation52_spill] sm:$0xff]  ;;  %vm12054_vm3 = vmmov %vm12045_vm12 }
 0x272   : > { %vm12042_vm2 = vnez %v12041_v2 }
 0x273   : > { %5608 = vmatmul.bf16.gmra.mxu2 %v5432_v28  ;;  %v10813_v18 = vadd.f32 %v4660_v50, %v4412_v6  ;;  %v6100_v50 = vunpack.c.l.b16 %v6017_v20  ;;  %v6204_v28 = vsel %vm12038_vm4, %v6199_v55, %v6203_v22  ;;  %v5439_v6 = vrot.slane %v5437_v54, 4 }
 0x274   : > { %v4949_v57 = vshll.u32 %v10821_v38, 16  ;;  %v5234_v55 = vsel %vm12042_vm2, %v5201_v5, 0  ;;  %v5316_v20 = vunpack.c.l.b16 %v5233_v39  ;;  %v4720_v5 = vld [vmem:[#allocation2 + $0x70] sm:$0xf]  ;;  %vm12053_vm4 = vnez %v11849_v52  ;;  %vm12055_vm2 = vmmov %vm12046_vm1 }
 0x275   : > { %5890 = vmatmul.bf16.gmra.mxu3 %v7573_v47  ;;  %v10837_v10 = vpack.c.b16 %v6100_v50, %v6099_v15  ;;  %v10839_v3 = vor.u32 %v5439_v6, %v5436_v4  ;;  %v5317_v32 = vunpack.c.l.b16 %v5234_v55  ;;  %v4752_v50 = vsel %vm12043_vm0, %v4719_v31, 0  ;;  %v7574_v6 = vld [vmem:[#allocation2 + $0x5c] sm:$0xff] }
 0x276   : > { %v5569_v25 = vpop.f32.mrf.mxu2  ;;  %v4951_v0 = vrot.slane %v4949_v57, 1  ;;  %v5986_v57 = vld [vmem:[#allocation2 + $0x70] sm:$0xf]  ;;  %v4835_v2 = vunpack.c.l.b16 %v4752_v50 }
 0x277   : > { %v5649_v63 = vadd.f32 %v5569_v25, %v5146_v49  ;;  %v6334_v19 = vpop.f32.mrf.mxu0  ;;  %v5147_v49 = vadd.f32 %v10788_v60, %v9988_v56  ;;  %v4947_v25 = vor.u32 %v4945_v36, %v4943_v33  ;;  %v6209_v15 = vshll.u32 %v10837_v10, 16  ;;  %v5985_v36 = vld [vmem:[#allocation2 + $0x6c] sm:$0xf] }
 0x278   : > { %v5851_v14 = vpop.f32.mrf.mxu3  ;;  %v10831_v47 = vpop.f32.mrf.mxu1  ;;  %v5441_v33 = vsel %vm12045_vm12, %v10798_v1, %v10839_v3  ;;  %v5338_v4 = vpack.c.b16 %v5317_v32, %v5316_v20  ;;  %v6018_v1 = vsel %vm12032_vm7, %v5985_v36, 0  ;;  %v6019_v20 = vsel %vm12034_vm15, %v5986_v57, 0  ;;  %v12047_v32 = vld [vmem:[#allocation45_spill] sm:$0xff]  ;;  %vm12048_vm7 = vmmov %vm12046_vm1 }
 0x279   : > { %v5931_v43 = vadd.f32 %v5851_v14, %v5649_v63  ;;  %v6205_v14 = vshrl.u32 %v10794_v27, 16  ;;  %v4953_v36 = vshrl.u32 %v10821_v38, 16 }
 0x27a   : > { %6373 = vmatmul.bf16.gmra.mxu0 %v6204_v28  ;;  %v5446_v31 = vshll.u32 %v5338_v4, 16 }
 0x27b   : > { %v6414_v54 = vadd.f32 %v6334_v19, %v5931_v43  ;;  %v4753_v19 = vsel %vm12044_vm8, %v4720_v5, 0  ;;  %v4952_v43 = vsel %vm12046_vm1, %v4947_v25, %v4951_v0  ;;  %v5148_v25 = vadd.f32 %v10810_v21, %v12047_v32 }
 0x27c   : > { %v4836_v55 = vunpack.c.l.b16 %v4753_v19  ;;  %v6101_v19 = vunpack.c.l.b16 %v6018_v1 }
 0x27d   : > { %v6449_v24 = vmul.f32 %v10829_v44, %v6414_v54  ;;  %v6207_v54 = vor.u32 %v6205_v14, %v6203_v22  ;;  %v5202_v22 = vld [vmem:[#allocation2 + $0x70] sm:$0xf] }
 0x27e   : > { %v5571_v63 = vpop.f32.mrf.mxu2 }
 0x27f   : > { %v5650_v28 = vadd.f32 %v5571_v63, %v5147_v49  ;;  %6481 = vadd.xlane.f32.xlu0 %v6449_v24  ;;  %v6336_v56 = vpop.f32.mrf.mxu0  ;;  %v6211_v49 = vrot.slane %v6209_v15, 1  ;;  %v5443_v63 = vshrl.u32 %v5338_v4, 16  ;;  %v5203_v15 = vld [vmem:[#allocation2 + $0x74] sm:$0xf]  ;;  %v5448_v4 = vrot.slane %v5446_v31, 4 }
 0x280   : > { %v5853_v60 = vpop.f32.mrf.mxu3  ;;  %v10853_v39 = vpop.f32.mrf.mxu1 }
 0x281   : > { %v5932_v27 = vadd.f32 %v5853_v60, %v5650_v28  ;;  %5115 = vmatmul.bf16.gmra.mxu1 %v4952_v43  ;;  %v10863_v28 = vpack.c.b16 %v4836_v55, %v4835_v2  ;;  %v6212_v60 = vsel %vm12048_vm7, %v6207_v54, %v6211_v49  ;;  %v12051_v2 = vld [vmem:[#allocation24_spill] sm:$0xff] }
 0x282   : > { %vm12052_vm5 = vnez %v12051_v2 }
 0x283   : > { %5613 = vmatmul.bf16.gmra.mxu2 %v5441_v33  ;;  %v6415_v24 = vadd.f32 %v6336_v56, %v5932_v27  ;;  %v6102_v56 = vunpack.c.l.b16 %v6019_v20  ;;  %v5445_v33 = vrot.slane %v5443_v63, 3  ;;  %v12049_v27 = vld [vmem:[#allocation22_spill] sm:$0xff]  ;;  %v4957_v57 = vshll.u32 %v10863_v28, 16 }
 0x284   : > { %vm12050_vm15 = vnez %v12049_v27  ;;  %v5236_v55 = vsel %vm12052_vm5, %v5203_v15, 0  ;;  %v5149_v20 = vadd.f32 %v10831_v47, %v10080_v26  ;;  %v4722_v15 = vld [vmem:[#allocation2 + $0x78] sm:$0xf]  ;;  %v5987_v27 = vld [vmem:[#allocation2 + $0x74] sm:$0xf] }
 0x285   : > { %5895 = vmatmul.bf16.gmra.mxu3 %v7574_v6  ;;  %v6450_v5 = vmul.f32 %v10829_v44, %v6415_v24  ;;  %v5235_v21 = vsel %vm12050_vm15, %v5202_v22, 0  ;;  %v10874_v1 = vpack.c.b16 %v6102_v56, %v6101_v19  ;;  %v10876_v54 = vor.u32 %v5448_v4, %v5445_v33 }
 0x286   : > { %v5574_v14 = vpop.f32.mrf.mxu2  ;;  %v5318_v63 = vunpack.c.l.b16 %v5235_v21  ;;  %v5319_v31 = vunpack.c.l.b16 %v5236_v55  ;;  %v4959_v38 = vrot.slane %v4957_v57, 1  ;;  %v6213_v22 = vshrl.u32 %v10837_v10, 16  ;;  %v5988_v21 = vld [vmem:[#allocation2 + $0x78] sm:$0xf] }
 0x287   : > { %v5651_v50 = vadd.f32 %v5574_v14, %v5148_v25  ;;  %6483 = vadd.xlane.f32.xlu0 %v6450_v5  ;;  %v6339_v7 = vpop.f32.mrf.mxu0  ;;  %v4955_v25 = vor.u32 %v4953_v36, %v4951_v0  ;;  %v4721_v14 = vld [vmem:[#allocation2 + $0x74] sm:$0xf]  ;;  %v6217_v19 = vshll.u32 %v10874_v1, 16  ;;  %v5450_v0 = vsel %vm12054_vm3, %v10839_v3, %v10876_v54 }
 0x288   : > { %v5856_v59 = vpop.f32.mrf.mxu3  ;;  %v10868_v43 = vpop.f32.mrf.mxu1  ;;  %v4754_v56 = vsel %vm10112_vm13, %v4721_v14, 0  ;;  %v6215_v57 = vor.u32 %v6213_v22, %v6211_v49  ;;  %v6020_v3 = vsel %vm12043_vm0, %v5987_v27, 0  ;;  %v5204_v49 = vld [vmem:[#allocation2 + $0x78] sm:$0xf]  ;;  %v5205_v22 = vld [vmem:[#allocation2 + $0x7c] sm:$0xf]  ;;  %vm12056_vm0 = vmmov %vm12046_vm1 }
 0x289   : > { %v5933_v6 = vadd.f32 %v5856_v59, %v5651_v50  ;;  %v7575_v59 = vld [vmem:[#allocation2 + $0x64] sm:$0xff]  ;;  %v4960_v4 = vsel %vm12055_vm2, %v4955_v25, %v4959_v38  ;;  %v6219_v2 = vrot.slane %v6217_v19, 1  ;;  %vm12060_vm1 = vmmov %vm12054_vm3  ;;  %vm12071_vm2 = vnez %v11630_v16 }
 0x28a   : > { %6378 = vmatmul.bf16.gmra.mxu0 %v6212_v60  ;;  %v5339_v60 = vpack.c.b16 %v5319_v31, %v5318_v63  ;;  %v6021_v63 = vsel %vm12044_vm8, %v5988_v21, 0  ;;  %v5150_v31 = vadd.f32 %v10853_v39, %v10153_v58  ;;  %vm12057_vm8 = vnez %v11845_v45  ;;  %vm12061_vm7 = vmmov %vm12056_vm0 }
 0x28b   : > { %v6416_v24 = vadd.f32 %v6339_v7, %v5933_v6  ;;  %v4755_v7 = vsel %vm12053_vm4, %v4722_v15, 0  ;;  %v4837_v6 = vunpack.c.l.b16 %v4754_v56  ;;  %v6103_v15 = vunpack.c.l.b16 %v6020_v3  ;;  %v4724_v3 = vld [vmem:[#allocation2 + $0x80] sm:$0xf]  ;;  %vm12068_vm3 = vmmov %vm12056_vm0 }
 0x28c   : > { %v4838_v36 = vunpack.c.l.b16 %v4755_v7  ;;  %v6220_v19 = vsel %vm12056_vm0, %v6215_v57, %v6219_v2  ;;  %v5237_v58 = vsel %vm12057_vm8, %v5204_v49, 0  ;;  %v5151_v45 = vadd.f32 %v10868_v43, %v10181_v11  ;;  %vm12073_vm8 = vmmov %vm12068_vm3 }
 0x28d   : > { %v6451_v32 = vmul.f32 %v10829_v44, %v6416_v24  ;;  %v5452_v24 = vshrl.u32 %v5339_v60, 16  ;;  %v5320_v21 = vunpack.c.l.b16 %v5237_v58  ;;  %v4757_v11 = vsel %vm10226_vm9, %v4724_v3, 0 }
 0x28e   : > { %v5576_v5 = vpop.f32.mrf.mxu2  ;;  %v10900_v25 = vpack.c.b16 %v4838_v36, %v4837_v6 }
 0x28f   : > { %v5652_v50 = vadd.f32 %v5576_v5, %v5149_v20  ;;  %6485 = vadd.xlane.f32.xlu1 %v6451_v32  ;;  %v6341_v26 = vpop.f32.mrf.mxu0  ;;  %v5455_v20 = vshll.u32 %v5339_v60, 16  ;;  %v5454_v56 = vrot.slane %v5452_v24, 3  ;;  %v12058_v60 = vld [vmem:[#allocation25_spill] sm:$0xff]  ;;  %v6221_v24 = vshrl.u32 %v10874_v1, 16 }
 0x290   : > { %v5858_v47 = vpop.f32.mrf.mxu3  ;;  %v10890_v33 = vpop.f32.mrf.mxu1  ;;  %vm12059_vm12 = vnez %v12058_v60 }
 0x291   : > { %v5934_v10 = vadd.f32 %v5858_v47, %v5652_v50  ;;  %5120 = vmatmul.bf16.gmra.mxu1 %v4960_v4  ;;  %v6104_v50 = vunpack.c.l.b16 %v6021_v63  ;;  %v5457_v7 = vrot.slane %v5455_v20, 4  ;;  %v4961_v47 = vshrl.u32 %v10863_v28, 16  ;;  %v4723_v20 = vld [vmem:[#allocation2 + $0x7c] sm:$0xf] }
 0x293   : > { %5618 = vmatmul.bf16.gmra.mxu2 %v5450_v0  ;;  %v6417_v55 = vadd.f32 %v6341_v26, %v5934_v10  ;;  %v4965_v0 = vshll.u32 %v10900_v25, 16  ;;  %v5238_v10 = vsel %vm12059_vm12, %v5205_v22, 0  ;;  %v10911_v4 = vpack.c.b16 %v6104_v50, %v6103_v15  ;;  %v7576_v22 = vld [vmem:[#allocation2 + $0x6c] sm:$0xff]  ;;  %v5989_v50 = vld [vmem:[#allocation2 + $0x7c] sm:$0xf]  ;;  %vm12075_vm12 = vmmov %vm12068_vm3 }
 0x294   : > { %v10913_v27 = vor.u32 %v5457_v7, %v5454_v56  ;;  %v5321_v6 = vunpack.c.l.b16 %v5238_v10  ;;  %v4963_v57 = vor.u32 %v4961_v47, %v4959_v38  ;;  %v6223_v56 = vor.u32 %v6221_v24, %v6219_v2 }
 0x295   : > { %5900 = vmatmul.bf16.gmra.mxu3 %v7575_v59  ;;  %v6452_v32 = vmul.f32 %v10829_v44, %v6417_v55  ;;  %v10918_v28 = vrot.slane %v4965_v0, 1  ;;  %v6022_v0 = vsel %vm10112_vm13, %v5989_v50, 0  ;;  %v5152_v2 = vadd.f32 %v10890_v33, %v10244_v37  ;;  %vm12062_vm13 = vmmov %vm12056_vm0  ;;  %v12063_v37 = vld [vmem:[#allocation39_spill] sm:$0xff] }
 0x296   : > { %v5579_v5 = vpop.f32.mrf.mxu2  ;;  %v5459_v38 = vsel %vm12060_vm1, %v10876_v54, %v10913_v27  ;;  %v6447_v54 = vld [vmem:[%s11293_s6 + $0x1] sm:$0x1]  ;;  %vm12064_vm15 = vnez %v12063_v37 }
 0x297   : > { %v5653_v14 = vadd.f32 %v5579_v5, %v5150_v31  ;;  %6487 = vadd.xlane.f32.xlu1 %v6452_v32  ;;  %v6344_v17 = vpop.f32.mrf.mxu0  ;;  %v6225_v31 = vshll.u32 %v10911_v4, 16  ;;  %v4756_v32 = vsel %vm10212_vm11, %v4723_v20, 0  ;;  %v5340_v5 = vpack.c.b16 %v5321_v6, %v5320_v21  ;;  %7878 = vpush %v6447_v54  ;;  %v5206_v21 = vld [vmem:[#allocation2 + $0x80] sm:$0xf]  ;;  %v4726_v54 = vld [vmem:[#allocation2 + $0x88] sm:$0xf] }
 0x298   : > { %v5861_v23 = vpop.f32.mrf.mxu3  ;;  %v10905_v26 = vpop.f32.mrf.mxu1  ;;  %v4968_v15 = vsel %vm12061_vm7, %v4963_v57, %v10918_v28  ;;  %v6105_v57 = vunpack.c.l.b16 %v6022_v0  ;;  %v5239_v33 = vsel %vm12064_vm15, %v5206_v21, 0  ;;  %vm6778_vm15 = vcmask 130112  }
 0x299   : > { %v5935_v39 = vadd.f32 %v5861_v23, %v5653_v14  ;;  %v4840_v23 = vunpack.c.l.b16 %v4757_v11  ;;  %v10933_v7 = vrot.slane %v6225_v31, 1  ;;  %v5464_v47 = vshll.u32 %v5340_v5, 16 }
 0x29a   : > { %6383 = vmatmul.bf16.gmra.mxu0 %v6220_v19  ;;  %v4839_v19 = vunpack.c.l.b16 %v4756_v32  ;;  %v4969_v32 = vshrl.u32 %v10900_v25, 16  ;;  %v5153_v50 = vadd.f32 %v10905_v26, %v10272_v34  ;;  %v4759_v34 = vsel %vm10321_vm6, %v4726_v54, 0 }
 0x29b   : > { %v6418_v59 = vadd.f32 %v6344_v17, %v5935_v39  ;;  %v5990_v17 = vld [vmem:[#allocation2 + $0x80] sm:$0xf]  ;;  %v5461_v39 = vshrl.u32 %v5340_v5, 16  ;;  %v6228_v52 = vsel %vm12062_vm13, %v6223_v56, %v10933_v7  ;;  %v5466_v3 = vrot.slane %v5464_v47, 4 }
 0x29c   : > { %v6023_v60 = vsel %vm12053_vm4, %v5990_v17, 0  ;;  %v4971_v25 = vor.u32 %v4969_v32, %v10918_v28  ;;  %v6229_v56 = vshrl.u32 %v10911_v4, 16  ;;  %vm12067_vm4 = vmmov %vm12060_vm1 }
 0x29d   : > { %v6453_v36 = vmul.f32 %v10829_v44, %v6418_v59  ;;  %v10945_v59 = vpack.c.b16 %v4840_v23, %v4839_v19  ;;  %v6106_v42 = vunpack.c.l.b16 %v6023_v60  ;;  %v5463_v20 = vrot.slane %v5461_v39, 3 }
 0x29e   : > { %v5581_v55 = vpop.f32.mrf.mxu2 }
 0x29f   : > { %v5654_v63 = vadd.f32 %v5581_v55, %v5151_v45  ;;  %6489 = vadd.xlane.f32.xlu2 %v6453_v36  ;;  %v6346_v43 = vpop.f32.mrf.mxu0  ;;  %v5207_v45 = vld [vmem:[#allocation2 + $0x84] sm:$0xf]  ;;  %v4973_v11 = vshll.u32 %v10945_v59, 16  ;;  %v10957_v5 = vpack.c.b16 %v6106_v42, %v6105_v57  ;;  %v4842_v42 = vunpack.c.l.b16 %v4759_v34 }
 0x2a0   : > { %v5863_v49 = vpop.f32.mrf.mxu3  ;;  %v10929_v14 = vpop.f32.mrf.mxu1 }
 0x2a1   : > { %v5936_v1 = vadd.f32 %v5863_v49, %v5654_v63  ;;  %5125 = vmatmul.bf16.gmra.mxu1 %v4968_v15  ;;  %v4975_v19 = vrot.slane %v4973_v11, 1  ;;  %v6233_v47 = vshll.u32 %v10957_v5, 16  ;;  %v6237_v16 = vshrl.u32 %v10957_v5, 16 }
 0x2a3   : > { %5623 = vmatmul.bf16.gmra.mxu2 %v5459_v38  ;;  %v6419_v58 = vadd.f32 %v6346_v43, %v5936_v1  ;;  %v12065_v43 = vld [vmem:[#allocation40_spill] sm:$0xff]  ;;  %v10959_v1 = vor.u32 %v5466_v3, %v5463_v20 }
 0x2a4   : > { %vm12066_vm5 = vnez %v12065_v43  ;;  %v5209_v43 = vld [vmem:[#allocation2 + $0x8c] sm:$0xf] }
 0x2a5   : > { %5905 = vmatmul.bf16.gmra.mxu3 %v7576_v22  ;;  %v6454_v10 = vmul.f32 %v10829_v44, %v6419_v58  ;;  %v5240_v49 = vsel %vm12066_vm5, %v5207_v45, 0  ;;  %v5322_v22 = vunpack.c.l.b16 %v5239_v33  ;;  %v4725_v58 = vld [vmem:[#allocation2 + $0x84] sm:$0xf]  ;;  %v5468_v28 = vsel %vm12067_vm4, %v10913_v27, %v10959_v1 }
 0x2a6   : > { %v5584_v6 = vpop.f32.mrf.mxu2  ;;  %v5323_v15 = vunpack.c.l.b16 %v5240_v49  ;;  %v4758_v0 = vsel %vm10311_vm10, %v4725_v58, 0  ;;  %v5991_v45 = vld [vmem:[#allocation2 + $0x84] sm:$0xf]  ;;  %v5154_v33 = vadd.f32 %v10929_v14, %v10335_v40  ;;  %v5242_v58 = vsel %vm12071_vm2, %v5209_v43, 0 }
 0x2a7   : > { %v5655_v36 = vadd.f32 %v5584_v6, %v5152_v2  ;;  %6491 = vadd.xlane.f32.xlu2 %v6454_v10  ;;  %v6349_v55 = vpop.f32.mrf.mxu0  ;;  %v7577_v10 = vld [vmem:[#allocation2 + $0x74] sm:$0xff]  ;;  %v4976_v6 = vsel %vm12068_vm3, %v4971_v25, %v4975_v19  ;;  %v4841_v57 = vunpack.c.l.b16 %v4758_v0  ;;  %v6024_v27 = vsel %vm10212_vm11, %v5991_v45, 0  ;;  %vm12069_vm11 = vmmov %vm12056_vm0 }
 0x2a8   : > { %v5866_v24 = vpop.f32.mrf.mxu3  ;;  %v10951_v31 = vpop.f32.mrf.mxu1  ;;  %v5341_v2 = vpack.c.b16 %v5323_v15, %v5322_v22  ;;  %v5325_v34 = vunpack.c.l.b16 %v5242_v58  ;;  %vm12072_vm0 = vmmov %vm12060_vm1  ;;  %vm6825_vm5 = vcmask 1041409   ;;  %vm6827_vm4 = vcmask 1042434  }
 0x2a9   : > { %v5937_v63 = vadd.f32 %v5866_v24, %v5655_v36  ;;  %v5992_v36 = vld [vmem:[#allocation2 + $0x88] sm:$0xf]  ;;  %v10985_v32 = vpack.c.b16 %v4842_v42, %v4841_v57  ;;  %v7578_v57 = vld [vmem:[#allocation2 + $0x7c] sm:$0xff]  ;;  %vm12080_vm1 = vmmov %vm12068_vm3  ;;  %vm6829_vm3 = vcmask 1043459   ;;  %vm6835_vm2 = vcmask 1046534  }
 0x2aa   : > { %6388 = vmatmul.bf16.gmra.mxu0 %v6228_v52  ;;  %v6235_v52 = vrot.slane %v6233_v47, 1  ;;  %v5470_v20 = vshrl.u32 %v5341_v2, 16  ;;  %v5473_v3 = vshll.u32 %v5341_v2, 16  ;;  %v6025_v37 = vsel %vm10226_vm9, %v5992_v36, 0  ;;  %v4727_v2 = vld [vmem:[#allocation2 + $0x8c] sm:$0x1]  ;;  %vm12081_vm7 = vmmov %vm12080_vm1 }
 0x2ab   : > { %v6420_v38 = vadd.f32 %v6349_v55, %v5937_v63  ;;  %v6231_v55 = vor.u32 %v6229_v56, %v10933_v7  ;;  %v5208_v7 = vld [vmem:[#allocation2 + $0x88] sm:$0xf]  ;;  %v6108_v22 = vunpack.c.l.b16 %v6025_v37  ;;  %vm12070_vm9 = vnez %v11628_v13  ;;  %vm12084_vm13 = vmmov %vm12080_vm1 }
 0x2ac   : > { %v5241_v40 = vsel %vm12070_vm9, %v5208_v7, 0  ;;  %v4981_v56 = vshll.u32 %v10985_v32, 16  ;;  %v5155_v13 = vadd.f32 %v10951_v31, %v10360_v51  ;;  %v12074_v7 = vld [vmem:[#allocation46_spill] sm:$0xff]  ;;  %vm6833_vm9 = vcmask 1045509  }
 0x2ad   : > { %v6455_v17 = vmul.f32 %v10829_v44, %v6420_v38  ;;  %v6107_v38 = vunpack.c.l.b16 %v6024_v27  ;;  %v6236_v15 = vsel %vm12069_vm11, %v6231_v55, %v6235_v52  ;;  %v5324_v0 = vunpack.c.l.b16 %v5241_v40 }
 0x2ae   : > { %v5586_v23 = vpop.f32.mrf.mxu2  ;;  %v6239_v27 = vor.u32 %v6237_v16, %v6235_v52  ;;  %vm6831_vm11 = vcmask 1044484  }
 0x2af   : > { %v5656_v39 = vadd.f32 %v5586_v23, %v5153_v50  ;;  %6493 = vadd.xlane.f32.xlu0 %v6455_v17  ;;  %v6351_v26 = vpop.f32.mrf.mxu0  ;;  %v5472_v50 = vrot.slane %v5470_v20, 3  ;;  %v5475_v17 = vrot.slane %v5473_v3, 4  ;;  %v4977_v23 = vshrl.u32 %v10945_v59, 16  ;;  %v5994_v20 = vld [vmem:[#allocation2 + $0x90] sm:$0xf] }
 0x2b0   : > { %v5868_v60 = vpop.f32.mrf.mxu3  ;;  %v10974_v21 = vpop.f32.mrf.mxu1  ;;  %v4983_v59 = vrot.slane %v4981_v56, 1  ;;  %v5342_v31 = vpack.c.b16 %v5325_v34, %v5324_v0  ;;  %v4985_v56 = vshrl.u32 %v10985_v32, 16 }
 0x2b1   : > { %v5938_v4 = vadd.f32 %v5868_v60, %v5656_v39  ;;  %5130 = vmatmul.bf16.gmra.mxu1 %v4976_v6  ;;  %v10996_v39 = vpack.c.b16 %v6108_v22, %v6107_v38  ;;  %v10998_v47 = vor.u32 %v5475_v17, %v5472_v50  ;;  %v4979_v60 = vor.u32 %v4977_v23, %v4975_v19 }
 0x2b2   : > { %v4760_v6 = vsel %vm10372_vm14, %v4727_v2, 0 }
 0x2b3   : > { %5628 = vmatmul.bf16.gmra.mxu2 %v5468_v28  ;;  %v6421_v24 = vadd.f32 %v6351_v26, %v5938_v4  ;;  %v5477_v51 = vsel %vm12072_vm0, %v10959_v1, %v10998_v47  ;;  %v4984_v55 = vsel %vm12073_vm8, %v4979_v60, %v4983_v59  ;;  %v4843_v5 = vunpack.c.l.b16 %v4760_v6  ;;  %v12078_v60 = vld [vmem:[#allocation15_spill] sm:$0xff] }
 0x2b4   : > { %vm6848_vm8 = vcmask 130048  }
 0x2b5   : > { %5910 = vmatmul.bf16.gmra.mxu3 %v7577_v10  ;;  %v6456_v63 = vmul.f32 %v10829_v44, %v6421_v24  ;;  %v6241_v10 = vshll.u32 %v10996_v39, 16  ;;  %v5993_v24 = vld [vmem:[#allocation2 + $0x8c] sm:$0xf]  ;;  %v4860_v38 = vpack.c.b16 %v4843_v5, %v4843_v5 }
 0x2b6   : > { %v5589_v11 = vpop.f32.mrf.mxu2  ;;  %v6026_v1 = vsel %vm10311_vm10, %v5993_v24, 0  ;;  %vm12079_vm10 = vmmov %vm12072_vm0 }
 0x2b7   : > { %v5657_v49 = vadd.f32 %v5589_v11, %v5154_v33  ;;  %6495 = vadd.xlane.f32.xlu1 %v6456_v63  ;;  %v6354_v35 = vpop.f32.mrf.mxu0  ;;  %v6243_v37 = vrot.slane %v6241_v10, 1  ;;  %v5479_v33 = vshrl.u32 %v5342_v31, 16  ;;  %v5482_v63 = vshll.u32 %v5342_v31, 16 }
 0x2b8   : > { %v5871_v8 = vpop.f32.mrf.mxu3  ;;  %v10990_v25 = vpop.f32.mrf.mxu1  ;;  %v5156_v11 = vadd.f32 %v10974_v21, %v12074_v7  ;;  %v6109_v40 = vunpack.c.l.b16 %v6026_v1  ;;  %v4989_v58 = vshll.u32 %v4860_v38, 16 }
 0x2b9   : > { %v5939_v14 = vadd.f32 %v5871_v8, %v5657_v49  ;;  %v6027_v49 = vsel %vm10321_vm6, %v5994_v20, 0  ;;  %v6244_v52 = vsel %vm12075_vm12, %v6239_v27, %v6243_v37  ;;  %v5481_v29 = vrot.slane %v5479_v33, 3 }
 0x2ba   : > { %6393 = vmatmul.bf16.gmra.mxu0 %v6236_v15  ;;  %v5484_v17 = vrot.slane %v5482_v63, 4  ;;  %vm12077_vm6 = vnez %v12076_v30  ;;  %v4991_v16 = vrot.slane %v4989_v58, 1 }
 0x2bb   : > { %v6422_v54 = vadd.f32 %v6354_v35, %v5939_v14  ;;  %v5210_v35 = vld [vmem:[#allocation2 + $0x90] sm:$0xf]  ;;  %v6110_v14 = vunpack.c.l.b16 %v6027_v49 }
 0x2bc   : > { %v5485_v34 = vor.u32 %v5484_v17, %v5481_v29 }
 0x2bd   : > { %v6457_v26 = vmul.f32 %v10829_v44, %v6422_v54  ;;  %v5243_v54 = vsel %vm12077_vm6, %v5210_v35, 0 }
 0x2be   : > { %v5591_v28 = vpop.f32.mrf.mxu2 }
 0x2bf   : > { %v5658_v4 = vadd.f32 %v5591_v28, %v5155_v13  ;;  %6497 = vadd.xlane.f32.xlu1 %v6457_v26  ;;  %v6356_v45 = vpop.f32.mrf.mxu0  ;;  %v11024_v13 = vpack.c.b16 %v6110_v14, %v6109_v40  ;;  %v5326_v26 = vunpack.c.l.b16 %v5243_v54  ;;  %v5157_v28 = vadd.f32 %v10990_v25, %v12078_v60 }
 0x2c0   : > { %v5873_v36 = vpop.f32.mrf.mxu3  ;;  %v11010_v42 = vpop.f32.mrf.mxu1 }
 0x2c1   : > { %v5940_v19 = vadd.f32 %v5873_v36, %v5658_v4  ;;  %5135 = vmatmul.bf16.gmra.mxu1 %v4984_v55  ;;  %v4987_v4 = vor.u32 %v4985_v56, %v4983_v59  ;;  %v5486_v36 = vsel %vm12079_vm10, %v10998_v47, %v5485_v34  ;;  %v6249_v31 = vshll.u32 %v11024_v13, 16  ;;  %v7579_v55 = vld [vmem:[#allocation2 + $0x84] sm:$0xff]  ;;  %v5995_v59 = vld [vmem:[#allocation2 + $0x94] sm:$0x1] }
 0x2c2   : > { %v5158_v47 = vadd.f32 %v11010_v42, %v10428_v9  ;;  %v6028_v63 = vsel %vm10372_vm14, %v5995_v59, 0  ;;  %vm12082_vm14 = vmmov %vm12072_vm0  ;;  %v6253_v56 = vshrl.u32 %v11024_v13, 16  ;;  %vm6837_vm0 = vcmask 1047559  }
 0x2c3   : > { %v6423_v3 = vadd.f32 %v6356_v45, %v5940_v19  ;;  %5633 = vmatmul.bf16.gmra.mxu2 %v5477_v51  ;;  %v6245_v51 = vshrl.u32 %v10996_v39, 16  ;;  %v5343_v19 = vpack.c.b16 %v5326_v26, %v5326_v26  ;;  %v4992_v24 = vsel %vm12080_vm1, %v4987_v4, %v4991_v16 }
 0x2c5   : > { %5915 = vmatmul.bf16.gmra.mxu3 %v7578_v57  ;;  %v6458_v43 = vmul.f32 %v10829_v44, %v6423_v3  ;;  %v6247_v20 = vor.u32 %v6245_v51, %v6243_v37  ;;  %v6251_v3 = vrot.slane %v6249_v31, 1  ;;  %v5488_v27 = vshrl.u32 %v5343_v19, 16 }
 0x2c6   : > { %v5594_v22 = vpop.f32.mrf.mxu2  ;;  %v5491_v33 = vshll.u32 %v5343_v19, 16 }
 0x2c7   : > { %v5659_v15 = vadd.f32 %v5594_v22, %v5156_v11  ;;  %6499 = vadd.xlane.f32.xlu2 %v6458_v43  ;;  %v6359_v8 = vpop.f32.mrf.mxu0  ;;  %v6252_v43 = vsel %vm12081_vm7, %v6247_v20, %v6251_v3  ;;  %v5490_v49 = vrot.slane %v5488_v27, 3  ;;  %v6111_v22 = vunpack.c.l.b16 %v6028_v63  ;;  %v12086_v63 = vld [vmem:[#allocation17_spill] sm:$0xff] }
 0x2c8   : > { %v5876_v50 = vpop.f32.mrf.mxu3  ;;  %v5098_v23 = vpop.f32.mrf.mxu1  ;;  %v5493_v38 = vrot.slane %v5491_v33, 4  ;;  %v6255_v26 = vor.u32 %v6253_v56, %v6251_v3  ;;  %s7879_s20 = spop %7878 }
 0x2c9   : > { %v5941_v21 = vadd.f32 %v5876_v50, %v5659_v15  ;;  %v5159_v48 = vadd.f32 %v5098_v23, %v10456_v46  ;;  %v12083_v46 = vld [vmem:[#allocation23_spill] sm:$0xff] }
 0x2ca   : > { %6398 = vmatmul.bf16.gmra.mxu0 %v6244_v52  ;;  %v5494_v15 = vor.u32 %v5493_v38, %v5490_v49 }
 0x2cb   : > { %v6424_v0 = vadd.f32 %v6359_v8, %v5941_v21  ;;  %v6128_v8 = vpack.c.b16 %v6111_v22, %v6111_v22 }
 0x2cc   : > { %v5495_v21 = vsel %vm12082_vm14, %v5485_v34, %v5494_v15 }
 0x2cd   : > { %v6459_v2 = vmul.f32 %v10829_v44, %v6424_v0  ;;  %v6257_v58 = vshll.u32 %v6128_v8, 16 }
 0x2ce   : > { %v5596_v10 = vpop.f32.mrf.mxu2 }
 0x2cf   : > { %v5660_v6 = vadd.f32 %v5596_v10, %v5157_v28  ;;  %6501 = vadd.xlane.f32.xlu2 %v6459_v2  ;;  %v6361_v32 = vpop.f32.mrf.mxu0  ;;  %v6259_v60 = vrot.slane %v6257_v58, 1 }
 0x2d0   : > { %v5878_v45 = vpop.f32.mrf.mxu3  ;;  %v5101_v25 = vpop.f32.mrf.mxu1 }
 0x2d1   : > { %v5942_v57 = vadd.f32 %v5878_v45, %v5660_v6  ;;  %5140 = vmatmul.bf16.gmra.mxu1 %v4992_v24  ;;  %v5160_v23 = vadd.f32 %v5101_v25, %v12083_v46  ;;  %v6260_v34 = vsel %vm12084_vm13, %v6255_v26, %v6259_v60  ;;  %v12085_v24 = vld [vmem:[#allocation16_spill] sm:$0xff]  ;;  %v12089_v46 = vld [vmem:[#allocation34_spill] sm:$0xff] }
 0x2d3   : > { %v6425_v5 = vadd.f32 %v6361_v32, %v5942_v57  ;;  %5638 = vmatmul.bf16.gmra.mxu2 %v5486_v36 }
 0x2d5   : > { %5920 = vmatmul.bf16.gmra.mxu3 %v7579_v55  ;;  %v6460_v39 = vmul.f32 %v10829_v44, %v6425_v5 }
 0x2d6   : > { %v5599_v1 = vpop.f32.mrf.mxu2 }
 0x2d7   : > { %v5661_v7 = vadd.f32 %v5599_v1, %v5158_v47  ;;  %6503 = vadd.xlane.f32.xlu0 %v6460_v39  ;;  %v6364_v11 = vpop.f32.mrf.mxu0 }
 0x2d8   : > { %v5881_v37 = vpop.f32.mrf.mxu3  ;;  %v5103_v52 = vpop.f32.mrf.mxu1 }
 0x2d9   : > { %v5943_v35 = vadd.f32 %v5881_v37, %v5661_v7  ;;  %v5161_v9 = vadd.f32 %v5103_v52, %v10499_v41  ;;  %v7580_v41 = vld [vmem:[#allocation2 + $0x8c] sm:$0xff]  ;;  %v12087_v52 = vld [vmem:[#allocation19_spill] sm:$0xff] }
 0x2da   : > { %6403 = vmatmul.bf16.gmra.mxu0 %v6252_v43 }
 0x2db   : > { %v6426_v42 = vadd.f32 %v6364_v11, %v5943_v35 }
 0x2dd   : > { %v6461_v50 = vmul.f32 %v10829_v44, %v6426_v42 }
 0x2de   : > { %v5601_v29 = vpop.f32.mrf.mxu2 }
 0x2df   : > { %v5662_v17 = vadd.f32 %v5601_v29, %v5159_v48  ;;  %6505 = vadd.xlane.f32.xlu0 %v6461_v50  ;;  %v6366_v40 = vpop.f32.mrf.mxu0 }
 0x2e0   : > { %v5883_v14 = vpop.f32.mrf.mxu3  ;;  %v5106_v54 = vpop.f32.mrf.mxu1 }
 0x2e1   : > { %v5944_v30 = vadd.f32 %v5883_v14, %v5662_v17  ;;  %v5162_v59 = vadd.f32 %v5106_v54, %v12085_v24  ;;  %v12088_v14 = vld [vmem:[#allocation33_spill] sm:$0xff] }
 0x2e3   : > { %v6427_v0 = vadd.f32 %v6366_v40, %v5944_v30  ;;  %5643 = vmatmul.bf16.gmra.mxu2 %v5495_v21 }
 0x2e5   : > { %5925 = vmatmul.bf16.gmra.mxu3 %v7580_v41  ;;  %v6462_v28 = vmul.f32 %v10829_v44, %v6427_v0 }
 0x2e6   : > { %v5604_v2 = vpop.f32.mrf.mxu2 }
 0x2e7   : > { %v5663_v4 = vadd.f32 %v5604_v2, %v5160_v23  ;;  %6507 = vadd.xlane.f32.xlu1 %v6462_v28  ;;  %v6369_v16 = vpop.f32.mrf.mxu0 }
 0x2e8   : > { %v5886_v13 = vpop.f32.mrf.mxu3  ;;  %v5108_v6 = vpop.f32.mrf.mxu1 }
 0x2e9   : > { %v5945_v10 = vadd.f32 %v5886_v13, %v5663_v4  ;;  %v5163_v1 = vadd.f32 %v5108_v6, %v12086_v63 }
 0x2ea   : > { %6408 = vmatmul.bf16.gmra.mxu0 %v6260_v34 }
 0x2eb   : > { %v6428_v32 = vadd.f32 %v6369_v16, %v5945_v10 }
 0x2ed   : > { %v6463_v45 = vmul.f32 %v10829_v44, %v6428_v32  ;;  %v12090_v32 = vld [vmem:[#allocation47_spill] sm:$0xff] }
 0x2ee   : > { %v5606_v36 = vpop.f32.mrf.mxu2 }
 0x2ef   : > { %v5664_v51 = vadd.f32 %v5606_v36, %v5161_v9  ;;  %6509 = vadd.xlane.f32.xlu1 %v6463_v45  ;;  %v6371_v31 = vpop.f32.mrf.mxu0 }
 0x2f0   : > { %v5888_v19 = vpop.f32.mrf.mxu3  ;;  %v5111_v55 = vpop.f32.mrf.mxu1 }
 0x2f1   : > { %v5946_v57 = vadd.f32 %v5888_v19, %v5664_v51  ;;  %v5164_v9 = vadd.f32 %v5111_v55, %v12087_v52 }
 0x2f3   : > { %v11049_v25 = vadd.f32 %v6371_v31, %v5946_v57 }
 0x2f6   : > { %v5609_v5 = vpop.f32.mrf.mxu2 }
 0x2f7   : > { %v5665_v20 = vadd.f32 %v5609_v5, %v5162_v59  ;;  %v6374_v3 = vpop.f32.mrf.mxu0  ;;  %v12091_v5 = vld [vmem:[#allocation48_spill] sm:$0xff] }
 0x2f8   : > { %v5891_v27 = vpop.f32.mrf.mxu3  ;;  %v5113_v47 = vpop.f32.mrf.mxu1 }
 0x2f9   : > { %v5947_v33 = vadd.f32 %v5891_v27, %v5665_v20  ;;  %v5165_v21 = vadd.f32 %v5113_v47, %v12088_v14 }
 0x2fb   : > { %v6430_v39 = vadd.f32 %v6374_v3, %v5947_v33 }
 0x2fd   : > { %v6465_v7 = vmul.f32 %v10829_v44, %v6430_v39 }
 0x2fe   : > { %v5611_v11 = vpop.f32.mrf.mxu2 }
 0x2ff   : > { %v5666_v43 = vadd.f32 %v5611_v11, %v5163_v1  ;;  %6513 = vadd.xlane.f32.xlu2 %v6465_v7  ;;  %v6376_v37 = vpop.f32.mrf.mxu0 }
 0x300   : > { %v5893_v49 = vpop.f32.mrf.mxu3  ;;  %v5116_v22 = vpop.f32.mrf.mxu1 }
 0x301   : > { %v5948_v38 = vadd.f32 %v5893_v49, %v5666_v43  ;;  %v5166_v23 = vadd.f32 %v5116_v22, %v12089_v46 }
 0x303   : > { %v6431_v35 = vadd.f32 %v6376_v37, %v5948_v38 }
 0x305   : > { %v6466_v42 = vmul.f32 %v10829_v44, %v6431_v35 }
 0x306   : > { %v5614_v15 = vpop.f32.mrf.mxu2 }
 0x307   : > { %v5667_v8 = vadd.f32 %v5614_v15, %v5164_v9  ;;  %6515 = vadd.xlane.f32.xlu0 %v6466_v42  ;;  %v6379_v48 = vpop.f32.mrf.mxu0 }
 0x308   : > { %v5896_v50 = vpop.f32.mrf.mxu3  ;;  %v5118_v17 = vpop.f32.mrf.mxu1 }
 0x309   : > { %v5949_v29 = vadd.f32 %v5896_v50, %v5667_v8  ;;  %v5167_v45 = vadd.f32 %v5118_v17, %v12090_v32 }
 0x30b   : > { %v6432_v40 = vadd.f32 %v6379_v48, %v5949_v29 }
 0x30d   : > { %v6467_v56 = vmul.f32 %v10829_v44, %v6432_v40 }
 0x30e   : > { %v5616_v58 = vpop.f32.mrf.mxu2 }
 0x30f   : > { %v5668_v30 = vadd.f32 %v5616_v58, %v5165_v21  ;;  %6517 = vadd.xlane.f32.xlu1 %v6467_v56  ;;  %v6381_v41 = vpop.f32.mrf.mxu0 }
 0x310   : > { %v5898_v54 = vpop.f32.mrf.mxu3  ;;  %v5121_v26 = vpop.f32.mrf.mxu1 }
 0x311   : > { %v5950_v0 = vadd.f32 %v5898_v54, %v5668_v30  ;;  %v5168_v20 = vadd.f32 %v5121_v26, %v12091_v5 }
 0x313   : > { %v6433_v60 = vadd.f32 %v6381_v41, %v5950_v0  ;;  %v12092_v0 = vld [vmem:[#allocation53_spill] sm:$0xff] }
 0x315   : > { %v6468_v28 = vmul.f32 %v10829_v44, %v6433_v60 }
 0x316   : > { %v5619_v2 = vpop.f32.mrf.mxu2 }
 0x317   : > { %v5669_v4 = vadd.f32 %v5619_v2, %v5166_v23  ;;  %6519 = vadd.xlane.f32.xlu2 %v6468_v28  ;;  %v6384_v16 = vpop.f32.mrf.mxu0 }
 0x318   : > { %v5901_v34 = vpop.f32.mrf.mxu3  ;;  %v5123_v10 = vpop.f32.mrf.mxu1 }
 0x319   : > { %v5951_v13 = vadd.f32 %v5901_v34, %v5669_v4  ;;  %v5169_v7 = vadd.f32 %v5123_v10, %v10660_v53 }
 0x31b   : > { %v6434_v6 = vadd.f32 %v6384_v16, %v5951_v13 }
 0x31d   : > { %v6469_v36 = vmul.f32 %v10829_v44, %v6434_v6 }
 0x31e   : > { %v5621_v51 = vpop.f32.mrf.mxu2 }
 0x31f   : > { %v5670_v31 = vadd.f32 %v5621_v51, %v5167_v45  ;;  %6521 = vadd.xlane.f32.xlu0 %v6469_v36  ;;  %v6386_v19 = vpop.f32.mrf.mxu0 }
 0x320   : > { %v5903_v57 = vpop.f32.mrf.mxu3  ;;  %v5126_v59 = vpop.f32.mrf.mxu1 }
 0x321   : > { %v5952_v55 = vadd.f32 %v5903_v57, %v5670_v31  ;;  %v5170_v9 = vadd.f32 %v5126_v59, %v10681_v12  ;;  %v12093_v31 = vld [vmem:[#allocation26_spill] sm:$0xff]  ;;  %v8070_v57 = vld [vmem:[%s11293_s6] ss:$0 sm:$0xff] }
 0x323   : > { %v6435_v24 = vadd.f32 %v6386_v19, %v5952_v55 }
 0x325   : > { %v6470_v3 = vmul.f32 %v10829_v44, %v6435_v24 }
 0x326   : > { %v5624_v27 = vpop.f32.mrf.mxu2 }
 0x327   : > { %v5671_v33 = vadd.f32 %v5624_v27, %v5168_v20  ;;  %6523 = vadd.xlane.f32.xlu1 %v6470_v3  ;;  %v6389_v47 = vpop.f32.mrf.mxu0  ;;  %v12094_v27 = vld [vmem:[#allocation28_spill] sm:$0xff] }
 0x328   : > { %v5906_v39 = vpop.f32.mrf.mxu3  ;;  %v5128_v43 = vpop.f32.mrf.mxu1 }
 0x329   : > { %v5953_v63 = vadd.f32 %v5906_v39, %v5671_v33  ;;  %v5171_v40 = vadd.f32 %v5128_v43, %v10699_v61 }
 0x32b   : > { %v6436_v1 = vadd.f32 %v6389_v47, %v5953_v63 }
 0x32d   : > { %v6471_v11 = vmul.f32 %v10829_v44, %v6436_v1 }
 0x32e   : > { %v5626_v37 = vpop.f32.mrf.mxu2 }
 0x32f   : > { %v5672_v49 = vadd.f32 %v5626_v37, %v5169_v7  ;;  %6525 = vadd.xlane.f32.xlu2 %v6471_v11  ;;  %v6391_v38 = vpop.f32.mrf.mxu0 }
 0x330   : > { %v5908_v22 = vpop.f32.mrf.mxu3  ;;  %v5131_v48 = vpop.f32.mrf.mxu1 }
 0x331   : > { %v5954_v35 = vadd.f32 %v5908_v22, %v5672_v49  ;;  %v5172_v26 = vadd.f32 %v5131_v48, %v12092_v0  ;;  %v12095_v49 = vld [vmem:[#allocation27_spill] sm:$0xff]  ;;  %v6464_v22 = vmul.f32 %v8070_v57, %v11049_v25 }
 0x333   : > { %v6437_v52 = vadd.f32 %v6391_v38, %v5954_v35 }
 0x335   : > { %v6472_v42 = vmul.f32 %v10829_v44, %v6437_v52 }
 0x336   : > { %v5629_v15 = vpop.f32.mrf.mxu2 }
 0x337   : > { %v5673_v8 = vadd.f32 %v5629_v15, %v5170_v9  ;;  %6527 = vadd.xlane.f32.xlu0 %v6472_v42  ;;  %v6394_v50 = vpop.f32.mrf.mxu0 }
 0x338   : > { %v5911_v53 = vpop.f32.mrf.mxu3  ;;  %v5133_v41 = vpop.f32.mrf.mxu1 }
 0x339   : > { %v5955_v29 = vadd.f32 %v5911_v53, %v5673_v8  ;;  %v5173_v34 = vadd.f32 %v5133_v41, %v10738_v62  ;;  %v6490_v41 = vpop.xlane.xlu2 %6489 }
 0x33b   : > { %v6438_v17 = vadd.f32 %v6394_v50, %v5955_v29 }
 0x33d   : > { %v6473_v14 = vmul.f32 %v10829_v44, %v6438_v17 }
 0x33e   : > { %v5631_v21 = vpop.f32.mrf.mxu2 }
 0x33f   : > { %v5674_v56 = vadd.f32 %v5631_v21, %v5171_v40  ;;  %6529 = vadd.xlane.f32.xlu0 %v6473_v14  ;;  %v6396_v58 = vpop.f32.mrf.mxu0 }
 0x340   : > { %v5913_v30 = vpop.f32.mrf.mxu3  ;;  %v5136_v16 = vpop.f32.mrf.mxu1 }
 0x341   : > { %v5956_v12 = vadd.f32 %v5913_v30, %v5674_v56  ;;  %v5174_v19 = vadd.f32 %v5136_v16, %v12093_v31  ;;  %v6486_v30 = vpop.xlane.xlu1 %6485 }
 0x343   : > { %v6439_v54 = vadd.f32 %v6396_v58, %v5956_v12  ;;  %v6482_v12 = vpop.xlane.xlu0 %6481 }
 0x345   : > { %v6474_v60 = vmul.f32 %v10829_v44, %v6439_v54 }
 0x346   : > { %v5634_v46 = vpop.f32.mrf.mxu2 }
 0x347   : > { %v5675_v23 = vadd.f32 %v5634_v46, %v5172_v26  ;;  %6531 = vadd.xlane.f32.xlu1 %v6474_v60  ;;  %v6399_v28 = vpop.f32.mrf.mxu0  ;;  %v6492_v26 = vpop.xlane.xlu2 %6491 }
 0x348   : > { %v5916_v2 = vpop.f32.mrf.mxu3  ;;  %v5138_v24 = vpop.f32.mrf.mxu1 }
 0x349   : > { %v5957_v61 = vadd.f32 %v5916_v2, %v5675_v23  ;;  %v5175_v33 = vadd.f32 %v5138_v24, %v12094_v27  ;;  %v6488_v54 = vpop.xlane.xlu1 %6487 }
 0x34b   : > { %v6440_v4 = vadd.f32 %v6399_v28, %v5957_v61  ;;  %v6484_v0 = vpop.xlane.xlu0 %6483 }
 0x34d   : > { %v6475_v13 = vmul.f32 %v10829_v44, %v6440_v4 }
 0x34e   : > { %v5636_v10 = vpop.f32.mrf.mxu2 }
 0x34f   : > { %v5676_v6 = vadd.f32 %v5636_v10, %v5173_v34  ;;  %6533 = vadd.xlane.f32.xlu1 %v6475_v13  ;;  %v6401_v32 = vpop.f32.mrf.mxu0  ;;  %v6500_v23 = vpop.xlane.xlu2 %6499 }
 0x350   : > { %v5918_v45 = vpop.f32.mrf.mxu3  ;;  %v5141_v1 = vpop.f32.mrf.mxu1 }
 0x351   : > { %v5958_v36 = vadd.f32 %v5918_v45, %v5676_v6  ;;  %v5176_v38 = vadd.f32 %v5141_v1, %v12095_v49  ;;  %v6496_v60 = vpop.xlane.xlu1 %6495 }
 0x353   : > { %v6441_v51 = vadd.f32 %v6401_v32, %v5958_v36  ;;  %v6494_v46 = vpop.xlane.xlu0 %6493 }
 0x355   : > { %v6476_v55 = vmul.f32 %v8070_v57, %v6441_v51 }
 0x356   : > { %v5639_v59 = vpop.f32.mrf.mxu2 }
 0x357   : > { %v5677_v5 = vadd.f32 %v5639_v59, %v5174_v19  ;;  %6535 = vadd.xlane.f32.xlu2 %v6476_v55  ;;  %v6404_v62 = vpop.f32.mrf.mxu0  ;;  %v6502_v36 = vpop.xlane.xlu2 %6501 }
 0x358   : > { %v5921_v44 = vpop.f32.mrf.mxu3  ;;  %v5143_v48 = vpop.f32.mrf.mxu1 }
 0x359   : > { %v5959_v20 = vadd.f32 %v5921_v44, %v5677_v5  ;;  %v5177_v53 = vadd.f32 %v5143_v48, %v10813_v18  ;;  %v11082_v18 = vstv %s7879_s20  ;;  %v6498_v2 = vpop.xlane.xlu1 %6497  ;;  %s8091_s20 = scalar_lea.hbm %s11294_s7, 32 }
 0x35a   : > { %v6549_v28 = vadd.f32 %v11082_v18, %v6482_v12  ;;  %v6550_v61 = vadd.f32 %v11082_v18, %v6484_v0  ;;  %v6551_v16 = vadd.f32 %v11082_v18, %v6486_v30  ;;  %v6552_v13 = vadd.f32 %v11082_v18, %v6488_v54  ;;  %p8093_p1 = scmp.lt.s32.totalorder %s8091_s20, %s8087_s22 }
 0x35b   : > { %v6442_v3 = vadd.f32 %v6404_v62, %v5959_v20  ;;  %v6504_v34 = vpop.xlane.xlu0 %6503  ;;  %v6553_v45 = vadd.f32 %v11082_v18, %v6490_v41  ;;  %v6554_v59 = vadd.f32 %v11082_v18, %v6492_v26  ;;  %v6555_v62 = vadd.f32 %v11082_v18, %v6494_v46 }
 0x35c   : > { %v6581_v4 = vsub.f32 0.0, %v6549_v28  ;;  %v6582_v10 = vsub.f32 0.0, %v6550_v61  ;;  %v6583_v32 = vsub.f32 0.0, %v6551_v16  ;;  %v6584_v51 = vsub.f32 0.0, %v6552_v13  ;;  %p8094_p2 = por %p8093_p1, %p8092_p0 }
 0x35d   : > { %v6477_v47 = vmul.f32 %v8070_v57, %v6442_v3  ;;  %v6585_v55 = vsub.f32 0.0, %v6553_v45  ;;  %v6586_v27 = vsub.f32 0.0, %v6554_v59 }
 0x35e   : > { %v5641_v39 = vpop.f32.mrf.mxu2  ;;  %v6613_v6 = vmul.f32 1.442695, %v6581_v4  ;;  %v6615_v19 = vmul.f32 1.442695, %v6582_v10  ;;  %v6619_v24 = vmul.f32 1.442695, %v6584_v51  ;;  %p8095_p3 = pnand %p8094_p2, %p8090_p13 }
 0x35f   : > { %v5678_v63 = vadd.f32 %v5641_v39, %v5175_v33  ;;  %6537 = vadd.xlane.f32.xlu2 %v6477_v47  ;;  %v6406_v7 = vpop.f32.mrf.mxu0  ;;  %v6621_v44 = vmul.f32 1.442695, %v6585_v55  ;;  %v6587_v33 = vsub.f32 0.0, %v6555_v62  ;;  %v6556_v47 = vadd.f32 %v11082_v18, %v6496_v60 }
 0x360   : > { %v5923_v11 = vpop.f32.mrf.mxu3  ;;  %7927 = vpow2.f32 %v6613_v6  ;;  %v6557_v39 = vadd.f32 %v11082_v18, %v6498_v2 }
 0x361   : > { %v5960_v43 = vadd.f32 %v5923_v11, %v5678_v63  ;;  %v6508_v31 = vpop.xlane.xlu1 %6507  ;;  %7929 = vpow2.f32 %v6615_v19 }
 0x363   : > { %v6443_v37 = vadd.f32 %v6406_v7, %v5960_v43  ;;  %v6506_v5 = vpop.xlane.xlu0 %6505  ;;  %v6623_v43 = vmul.f32 1.442695, %v6586_v27 }
 0x365   : > { %v6478_v35 = vmul.f32 %v8070_v57, %v6443_v37  ;;  %v6558_v37 = vadd.f32 %v11082_v18, %v6500_v23 }
 0x366   : > { %v5644_v52 = vpop.f32.mrf.mxu2  ;;  %v7928_v3 = vpop.eup %7927 }
 0x367   : > { %v5679_v9 = vadd.f32 %v5644_v52, %v5176_v38  ;;  %6511 = vadd.xlane.f32.xlu2 %v6464_v22  ;;  %6539 = vadd.xlane.f32.xlu0 %v6478_v35  ;;  %v6409_v42 = vpop.f32.mrf.mxu0  ;;  %v7930_v1 = vpop.eup %7929  ;;  %v6677_v7 = vadd.f32 1.0, %v7928_v3  ;;  %v6625_v22 = vmul.f32 1.442695, %v6587_v33  ;;  %v6588_v35 = vsub.f32 0.0, %v6556_v47 }
 0x368   : > { %v5926_v15 = vpop.f32.mrf.mxu3  ;;  %v6559_v52 = vadd.f32 %v11082_v18, %v6502_v36 }
 0x369   : > { %v5961_v8 = vadd.f32 %v5926_v15, %v5679_v9  ;;  %v6510_v63 = vpop.xlane.xlu1 %6509  ;;  %v6678_v9 = vadd.f32 1.0, %v7930_v1  ;;  %v6560_v15 = vadd.f32 %v11082_v18, %v6504_v34 }
 0x36a   : > { %v6563_v41 = vadd.f32 %v11082_v18, %v6510_v63 }
 0x36b   : > { %v6444_v50 = vadd.f32 %v6409_v42, %v5961_v8  ;;  %v6589_v42 = vsub.f32 0.0, %v6557_v39 }
 0x36c   : > { %v6595_v13 = vsub.f32 0.0, %v6563_v41 }
 0x36d   : > { %v6479_v29 = vmul.f32 %v8070_v57, %v6444_v50  ;;  %v6561_v50 = vadd.f32 %v11082_v18, %v6506_v5 }
 0x36e   : > { %v5646_v17 = vpop.f32.mrf.mxu2  ;;  %v6641_v59 = vmul.f32 1.442695, %v6595_v13 }
 0x36f   : > { %v5680_v40 = vadd.f32 %v5646_v17, %v5177_v53  ;;  %6541 = vadd.xlane.f32.xlu0 %v6479_v29  ;;  %v6411_v56 = vpop.f32.mrf.mxu0  ;;  %v6590_v17 = vsub.f32 0.0, %v6558_v37  ;;  %v6593_v12 = vsub.f32 0.0, %v6561_v50 }
 0x370   : > { %v5928_v14 = vpop.f32.mrf.mxu3 }
 0x371   : > { %v5962_v21 = vadd.f32 %v5928_v14, %v5680_v40  ;;  %v6562_v40 = vadd.f32 %v11082_v18, %v6508_v31  ;;  %v6627_v14 = vmul.f32 1.442695, %v6588_v35  ;;  %v6631_v54 = vmul.f32 1.442695, %v6590_v17 }
 0x372   : > { %v6514_v20 = vpop.xlane.xlu2 %6513  ;;  %v6637_v34 = vmul.f32 1.442695, %v6593_v12 }
 0x373   : > { %v6445_v25 = vadd.f32 %v6411_v56, %v5962_v21  ;;  %v6591_v21 = vsub.f32 0.0, %v6559_v52  ;;  %v6629_v56 = vmul.f32 1.442695, %v6589_v42  ;;  %v6594_v0 = vsub.f32 0.0, %v6562_v40 }
 0x374   : > { %v6565_v26 = vadd.f32 %v11082_v18, %v6514_v20 }
 0x375   : > { %v6480_v58 = vmul.f32 %v8070_v57, %v6445_v25  ;;  %v6617_v57 = vmul.f32 1.442695, %v6583_v32  ;;  %v6592_v25 = vsub.f32 0.0, %v6560_v15  ;;  %v6633_v23 = vmul.f32 1.442695, %v6591_v21 }
 0x376   : > { %v6639_v6 = vmul.f32 1.442695, %v6594_v0  ;;  %v6597_v32 = vsub.f32 0.0, %v6565_v26  ;;  %v12096_v0 = vlaneseq }
 0x377   : > { %6543 = vadd.xlane.f32.xlu1 %v6480_v58  ;;  %7931 = vpow2.f32 %v6617_v57  ;;  %v6635_v61 = vmul.f32 1.442695, %v6592_v25 }
 0x378   : > { %7933 = vpow2.f32 %v6619_v24  ;;  %v6645_v62 = vmul.f32 1.442695, %v6597_v32  ;;  %v11129_v26 = vand.u32 127, %v12096_v0 }
 0x379   : > { %7935 = vpow2.f32 %v6621_v44 }
 0x37a   : > { %v6516_v49 = vpop.xlane.xlu0 %6515  ;;  %7937 = vrcp.f32 %v6677_v7 }
 0x37b   : > { %7939 = vpow2.f32 %v6623_v43  ;;  %v6566_v28 = vadd.f32 %v11082_v18, %v6516_v49 }
 0x37c   : > { %7941 = vpow2.f32 %v6625_v22 }
 0x37d   : > { %v7932_v11 = vpop.eup %7931  ;;  %7943 = vrcp.f32 %v6678_v9  ;;  %v6598_v31 = vsub.f32 0.0, %v6566_v28 }
 0x37e   : > { %v7934_v38 = vpop.eup %7933  ;;  %v6679_v48 = vadd.f32 1.0, %v7932_v11 }
 0x37f   : > { %v7936_v53 = vpop.eup %7935  ;;  %v6680_v29 = vadd.f32 1.0, %v7934_v38  ;;  %v6647_v27 = vmul.f32 1.442695, %v6598_v31 }
 0x380   : > { %7945 = vrcp.f32 %v6679_v48  ;;  %v6681_v30 = vadd.f32 1.0, %v7936_v53  ;;  %v11102_v46 = vpop.eup %7937 }
 0x381   : > { %7947 = vrcp.f32 %v6680_v29  ;;  %v7940_v2 = vpop.eup %7939 }
 0x382   : > { %v6518_v58 = vpop.xlane.xlu1 %6517  ;;  %7949 = vpow2.f32 %v6627_v14  ;;  %v7942_v16 = vpop.eup %7941  ;;  %v6682_v51 = vadd.f32 1.0, %v7940_v2 }
 0x383   : > { %7951 = vpow2.f32 %v6629_v56  ;;  %v11105_v10 = vpop.eup %7943  ;;  %v6567_v45 = vadd.f32 %v11082_v18, %v6518_v58  ;;  %v6683_v57 = vadd.f32 1.0, %v7942_v16 }
 0x384   : > { %7953 = vrcp.f32 %v6681_v30 }
 0x385   : > { %7955 = vpow2.f32 %v6631_v54  ;;  %v6599_v44 = vsub.f32 0.0, %v6567_v45 }
 0x386   : > { %v11108_v36 = vpop.eup %7945  ;;  %7957 = vpow2.f32 %v6633_v23 }
 0x387   : > { %v11110_v19 = vpop.eup %7947  ;;  %7959 = vpow2.f32 %v6635_v61  ;;  %v6649_v43 = vmul.f32 1.442695, %v6599_v44 }
 0x388   : > { %v7950_v24 = vpop.eup %7949  ;;  %7961 = vpow2.f32 %v6637_v34 }
 0x389   : > { %v7952_v5 = vpop.eup %7951  ;;  %7963 = vpow2.f32 %v6639_v6  ;;  %v6684_v47 = vadd.f32 1.0, %v7950_v24  ;;  %v11138_v6 = vadd.s32 4294967288, %v11129_v26 }
 0x38a   : > { %v11096_v8 = vpop.xlane.xlu2 %6519  ;;  %v11112_v3 = vpop.eup %7953  ;;  %7965 = vrcp.f32 %v6682_v51  ;;  %v6685_v1 = vadd.f32 1.0, %v7952_v5 }
 0x38b   : > { %v7956_v33 = vpop.eup %7955  ;;  %7967 = vrcp.f32 %v6683_v57  ;;  %v6568_v7 = vadd.f32 %v11082_v18, %v11096_v8 }
 0x38c   : > { %v7958_v63 = vpop.eup %7957  ;;  %7969 = vpow2.f32 %v6641_v59  ;;  %v6686_v49 = vadd.f32 1.0, %v7956_v33 }
 0x38d   : > { %v7960_v11 = vpop.eup %7959  ;;  %7971 = vpow2.f32 %v6645_v62  ;;  %v6687_v22 = vadd.f32 1.0, %v7958_v63  ;;  %v6600_v42 = vsub.f32 0.0, %v6568_v7 }
 0x38e   : > { %v7962_v37 = vpop.eup %7961  ;;  %7973 = vpow2.f32 %v6647_v27  ;;  %v6688_v9 = vadd.f32 1.0, %v7960_v11 }
 0x38f   : > { %v7964_v38 = vpop.eup %7963  ;;  %7975 = vrcp.f32 %v6684_v47  ;;  %v6689_v48 = vadd.f32 1.0, %v7962_v37  ;;  %v6651_v25 = vmul.f32 1.442695, %v6600_v42 }
 0x390   : > { %v11116_v52 = vpop.eup %7965  ;;  %7977 = vrcp.f32 %v6685_v1  ;;  %v6690_v53 = vadd.f32 1.0, %v7964_v38 }
 0x391   : > { %v11118_v15 = vpop.eup %7967  ;;  %7979 = vpow2.f32 %v6649_v43  ;;  %v6777_v43 = vperm.slane %v11105_v10, %v11138_v6  ;;  %v6775_v10 = vperm.slane %v11102_v46, %v11129_v26 }
 0x392   : > { %v6522_v60 = vpop.xlane.xlu0 %6521  ;;  %v7970_v50 = vpop.eup %7969  ;;  %7981 = vrcp.f32 %v6686_v49 }
 0x393   : > { %v6569_v8 = vadd.f32 %v11082_v18, %v6522_v60  ;;  %v7972_v29 = vpop.eup %7971  ;;  %7983 = vrcp.f32 %v6687_v22  ;;  %v6691_v30 = vadd.f32 1.0, %v7970_v50  ;;  %v6781_v22 = vperm.slane %v11110_v19, %v11138_v6 }
 0x394   : > { %v7974_v56 = vpop.eup %7973  ;;  %7985 = vrcp.f32 %v6688_v9  ;;  %v6693_v60 = vadd.f32 1.0, %v7972_v29  ;;  %v6780_v19 = vperm.slane %v11108_v36, %v11129_v26 }
 0x395   : > { %v11123_v58 = vpop.eup %7975  ;;  %7987 = vrcp.f32 %v6689_v48  ;;  %v6601_v12 = vsub.f32 0.0, %v6569_v8  ;;  %v6694_v28 = vadd.f32 1.0, %v7974_v56  ;;  %v6784_v56 = vperm.slane %v11116_v52, %v11138_v6 }
 0x396   : > { %v11126_v54 = vpop.eup %7977  ;;  %7989 = vrcp.f32 %v6690_v53  ;;  %v6782_v46 = vsel %vm6778_vm15, %v6781_v22, %v6780_v19  ;;  %v6787_v52 = vperm.slane %v11123_v58, %v11138_v6 }
 0x397   : > { %v7980_v23 = vpop.eup %7979  ;;  %7991 = vpow2.f32 %v6651_v25  ;;  %v6653_v32 = vmul.f32 1.442695, %v6601_v12 }
 0x398   : > { %v11132_v16 = vpop.eup %7981  ;;  %7993 = vrcp.f32 %v6691_v30  ;;  %v6695_v57 = vadd.f32 1.0, %v7980_v23 }
 0x399   : > { %v11135_v13 = vpop.eup %7983  ;;  %7995 = vrcp.f32 %v6693_v60  ;;  %v6783_v60 = vperm.slane %v11112_v3, %v11129_v26 }
 0x39a   : > { %v6524_v55 = vpop.xlane.xlu1 %6523  ;;  %v11140_v31 = vpop.eup %7985  ;;  %7997 = vrcp.f32 %v6694_v28 }
 0x39b   : > { %v6570_v17 = vadd.f32 %v11082_v18, %v6524_v55  ;;  %v11143_v24 = vpop.eup %7987  ;;  %7999 = vpow2.f32 %v6653_v32  ;;  %v6785_v32 = vsel %vm6778_vm15, %v6784_v56, %v6783_v60 }
 0x39c   : > { %v11145_v27 = vpop.eup %7989  ;;  %8001 = vrcp.f32 %v6695_v57 }
 0x39d   : > { %v6602_v2 = vsub.f32 0.0, %v6570_v17  ;;  %v7992_v11 = vpop.eup %7991 }
 0x39e   : > { %v11153_v38 = vpop.eup %7993  ;;  %v6696_v29 = vadd.f32 1.0, %v7992_v11 }
 0x39f   : > { %v6655_v59 = vmul.f32 1.442695, %v6602_v2  ;;  %v11157_v42 = vpop.eup %7995  ;;  %v6798_v19 = vperm.slane %v11153_v38, %v11129_v26 }
 0x3a0   : > { %v11159_v53 = vpop.eup %7997 }
 0x3a1   : > { %8003 = vpow2.f32 %v6655_v59 }
 0x3a2   : > { %v6526_v4 = vpop.xlane.xlu2 %6525 }
 0x3a3   : > { %v6571_v40 = vadd.f32 %v11082_v18, %v6526_v4 }
 0x3a5   : > { %v6603_v61 = vsub.f32 0.0, %v6571_v40 }
 0x3a7   : > { %v6657_v5 = vmul.f32 1.442695, %v6603_v61 }
 0x3a9   : > { %8005 = vpow2.f32 %v6657_v5 }
 0x3aa   : > { %v6528_v20 = vpop.xlane.xlu0 %6527 }
 0x3ab   : > { %v6572_v41 = vadd.f32 %v11082_v18, %v6528_v20 }
 0x3ad   : > { %v6604_v45 = vsub.f32 0.0, %v6572_v41 }
 0x3b2   : > { %v6530_v14 = vpop.xlane.xlu0 %6529 }
 0x3b3   : > { %v6573_v4 = vadd.f32 %v11082_v18, %v6530_v14  ;;  %v8000_v14 = vpop.eup %7999 }
 0x3b4   : > { %v11168_v12 = vpop.eup %8001  ;;  %v6697_v2 = vadd.f32 1.0, %v8000_v14 }
 0x3b5   : > { %v6605_v62 = vsub.f32 0.0, %v6573_v4  ;;  %v8004_v0 = vpop.eup %8003 }
 0x3b6   : > { %v8006_v28 = vpop.eup %8005  ;;  %v6698_v59 = vadd.f32 1.0, %v8004_v0 }
 0x3ba   : > { %v6532_v35 = vpop.xlane.xlu1 %6531 }
 0x3bb   : > { %v6574_v34 = vadd.f32 %v11082_v18, %v6532_v35  ;;  %v6661_v35 = vmul.f32 1.442695, %v6605_v62 }
 0x3bd   : > { %v6606_v33 = vsub.f32 0.0, %v6574_v34 }
 0x3bf   : > { %v6663_v48 = vmul.f32 1.442695, %v6606_v33 }
 0x3c2   : > { %v6534_v51 = vpop.xlane.xlu1 %6533 }
 0x3c3   : > { %v6575_v47 = vadd.f32 %v11082_v18, %v6534_v51  ;;  %v6786_v51 = vperm.slane %v11118_v15, %v11129_v26 }
 0x3c5   : > { %v6607_v8 = vsub.f32 0.0, %v6575_v47 }
 0x3c7   : > { %v6665_v41 = vmul.f32 1.442695, %v6607_v8 }
 0x3ca   : > { %v6536_v39 = vpop.xlane.xlu2 %6535 }
 0x3cb   : > { %v6576_v55 = vadd.f32 %v11082_v18, %v6536_v39  ;;  %v6659_v39 = vmul.f32 1.442695, %v6604_v45  ;;  %v6790_v45 = vperm.slane %v11132_v16, %v11138_v6  ;;  %v6788_v16 = vsel %vm6778_vm15, %v6787_v52, %v6786_v51 }
 0x3cd   : > { %v6608_v37 = vsub.f32 0.0, %v6576_v55  ;;  %8007 = vpow2.f32 %v6659_v39  ;;  %v6789_v55 = vperm.slane %v11126_v54, %v11129_v26 }
 0x3cf   : > { %v6667_v40 = vmul.f32 1.442695, %v6608_v37  ;;  %v6791_v15 = vsel %vm6778_vm15, %v6790_v45, %v6789_v55  ;;  %v6796_v37 = vperm.slane %v11145_v27, %v11138_v6  ;;  %v6804_v45 = vperm.slane %v11168_v12, %v11129_v26 }
 0x3d2   : > { %v6538_v21 = vpop.xlane.xlu2 %6537 }
 0x3d3   : > { %v6577_v7 = vadd.f32 %v11082_v18, %v6538_v21  ;;  %v6779_v21 = vsel %vm6778_vm15, %v6777_v43, %v6775_v10  ;;  %v8008_v4 = vpop.eup %8007 }
 0x3d4   : > { %v6826_v34 = vsel %vm6825_vm5, %v6782_v46, %v6779_v21  ;;  %v6700_v47 = vadd.f32 1.0, %v8008_v4 }
 0x3d5   : > { %v6609_v17 = vsub.f32 0.0, %v6577_v7 }
 0x3d7   : > { %v6669_v23 = vmul.f32 1.442695, %v6609_v17 }
 0x3da   : > { %v6512_v44 = vpop.xlane.xlu2 %6511  ;;  %v6540_v20 = vpop.xlane.xlu0 %6539 }
 0x3db   : > { %v6564_v63 = vadd.f32 %v11082_v18, %v6512_v44  ;;  %v6578_v1 = vadd.f32 %v11082_v18, %v6540_v20  ;;  %v6828_v44 = vsel %vm6827_vm4, %v6785_v32, %v6826_v34  ;;  %v6699_v20 = vadd.f32 1.0, %v8006_v28 }
 0x3dc   : > { %v6830_v43 = vsel %vm6829_vm3, %v6788_v16, %v6828_v44  ;;  %v6802_v32 = vperm.slane %v11159_v53, %v11138_v6 }
 0x3dd   : > { %v6596_v49 = vsub.f32 0.0, %v6564_v63  ;;  %v6610_v9 = vsub.f32 0.0, %v6578_v1  ;;  %v6793_v1 = vperm.slane %v11140_v31, %v11138_v6  ;;  %v6792_v31 = vperm.slane %v11135_v13, %v11129_v26 }
 0x3df   : > { %v6643_v50 = vmul.f32 1.442695, %v6596_v49  ;;  %v6671_v25 = vmul.f32 1.442695, %v6610_v9 }
 0x3e1   : > { %8009 = vpow2.f32 %v6643_v50  ;;  %v6794_v50 = vsel %vm6778_vm15, %v6793_v1, %v6792_v31 }
 0x3e2   : > { %8011 = vpow2.f32 %v6661_v35  ;;  %v6542_v30 = vpop.xlane.xlu0 %6541  ;;  %v6832_v35 = vsel %vm6831_vm11, %v6791_v15, %v6830_v43 }
 0x3e3   : > { %8013 = vpow2.f32 %v6663_v48  ;;  %v6579_v36 = vadd.f32 %v11082_v18, %v6542_v30 }
 0x3e4   : > { %8015 = vrcp.f32 %v6696_v29 }
 0x3e5   : > { %8017 = vpow2.f32 %v6667_v40  ;;  %v6611_v61 = vsub.f32 0.0, %v6579_v36 }
 0x3e6   : > { %8019 = vpow2.f32 %v6671_v25  ;;  %v6834_v25 = vsel %vm6833_vm9, %v6794_v50, %v6832_v35 }
 0x3e7   : > { %v8010_v3 = vpop.eup %8009  ;;  %8021 = vpow2.f32 %v6665_v41  ;;  %v6673_v57 = vmul.f32 1.442695, %v6611_v61 }
 0x3e8   : > { %v8012_v58 = vpop.eup %8011  ;;  %8023 = vpow2.f32 %v6669_v23  ;;  %v6692_v5 = vadd.f32 1.0, %v8010_v3 }
 0x3e9   : > { %v8014_v62 = vpop.eup %8013  ;;  %8025 = vrcp.f32 %v6697_v2  ;;  %v6701_v39 = vadd.f32 1.0, %v8012_v58 }
 0x3ea   : > { %v11186_v33 = vpop.eup %8015  ;;  %8027 = vrcp.f32 %v6692_v5  ;;  %v6544_v63 = vpop.xlane.xlu1 %6543  ;;  %v6702_v49 = vadd.f32 1.0, %v8014_v62 }
 0x3eb   : > { %v8018_v54 = vpop.eup %8017  ;;  %8029 = vpow2.f32 %v6673_v57  ;;  %v6580_v7 = vadd.f32 %v11082_v18, %v6544_v63  ;;  %v6795_v18 = vperm.slane %v11143_v24, %v11129_v26  ;;  %v6805_v52 = vperm.slane %v11186_v33, %v11138_v6 }
 0x3ec   : > { %v8020_v11 = vpop.eup %8019  ;;  %8031 = vrcp.f32 %v6698_v59  ;;  %v6704_v8 = vadd.f32 1.0, %v8018_v54  ;;  %v6801_v59 = vperm.slane %v11157_v42, %v11129_v26 }
 0x3ed   : > { %v8022_v22 = vpop.eup %8021  ;;  %8033 = vrcp.f32 %v6699_v20  ;;  %v6612_v9 = vsub.f32 0.0, %v6580_v7  ;;  %v6706_v10 = vadd.f32 1.0, %v8020_v11  ;;  %v6797_v13 = vsel %vm6778_vm15, %v6796_v37, %v6795_v18 }
 0x3ee   : > { %v8024_v48 = vpop.eup %8023  ;;  %8035 = vrcp.f32 %v6700_v47  ;;  %v6703_v40 = vadd.f32 1.0, %v8022_v22  ;;  %v6836_v41 = vsel %vm6835_vm2, %v6797_v13, %v6834_v25  ;;  %v6806_v5 = vsel %vm6778_vm15, %v6805_v52, %v6804_v45 }
 0x3ef   : > { %v8026_v27 = vpop.eup %8025  ;;  %8037 = vrcp.f32 %v6701_v39  ;;  %v6675_v29 = vmul.f32 1.442695, %v6612_v9  ;;  %v6705_v14 = vadd.f32 1.0, %v8024_v48  ;;  %v6803_v20 = vsel %vm6778_vm15, %v6802_v32, %v6801_v59 }
 0x3f0   : > { %v8028_v17 = vpop.eup %8027  ;;  %8039 = vrcp.f32 %v6702_v49  ;;  %v6807_v57 = vperm.slane %v8026_v27, %v11129_v26  ;;  %v6839_v47 = vsel %vm6825_vm5, %v6806_v5, %v6803_v20 }
 0x3f1   : > { %v8030_v24 = vpop.eup %8029  ;;  %v6799_v21 = vperm.slane %v8028_v17, %v11138_v6  ;;  %8041 = vpow2.f32 %v6675_v29 }
 0x3f2   : > { %v8032_v56 = vpop.eup %8031  ;;  %8043 = vrcp.f32 %v6704_v8  ;;  %v6707_v36 = vadd.f32 1.0, %v8030_v24 }
 0x3f3   : > { %v8034_v30 = vpop.eup %8033  ;;  %v6800_v46 = vsel %vm6778_vm15, %v6799_v21, %v6798_v19  ;;  %8045 = vrcp.f32 %v6706_v10  ;;  %v6808_v61 = vperm.slane %v8032_v56, %v11138_v6 }
 0x3f4   : > { %v8036_v38 = vpop.eup %8035  ;;  %8047 = vrcp.f32 %v6703_v40  ;;  %v6838_v0 = vsel %vm6837_vm0, %v6800_v46, %v6836_v41  ;;  %v6810_v53 = vperm.slane %v8034_v30, %v11129_v26 }
 0x3f5   : > { %v8038_v60 = vpop.eup %8037  ;;  %8049 = vrcp.f32 %v6705_v14  ;;  %6849 = vst.msk [vmem:[%s11212_s14] sm:$0xff] %vm6848_vm8, %v6838_v0  ;;  %v6811_v3 = vperm.slane %v8036_v38, %v11138_v6  ;;  %v6809_v62 = vsel %vm6778_vm15, %v6808_v61, %v6807_v57 }
 0x3f6   : > { %v8040_v23 = vpop.eup %8039  ;;  %8051 = vrcp.f32 %v6707_v36  ;;  %v6813_v44 = vperm.slane %v8038_v60, %v11129_v26  ;;  %v6840_v1 = vsel %vm6827_vm4, %v6809_v62, %v6839_v47 }
 0x3f7   : > { %v8042_v28 = vpop.eup %8041  ;;  %v6814_v58 = vperm.slane %v8040_v23, %v11138_v6  ;;  %v6812_v42 = vsel %vm6778_vm15, %v6811_v3, %v6810_v53 }
 0x3f8   : > { %v8044_v2 = vpop.eup %8043  ;;  %v6708_v4 = vadd.f32 1.0, %v8042_v28  ;;  %v6841_v11 = vsel %vm6829_vm3, %v6812_v42, %v6840_v1 }
 0x3f9   : > { %v8046_v34 = vpop.eup %8045  ;;  %v6817_v12 = vperm.slane %v8044_v2, %v11138_v6  ;;  %v6815_v63 = vsel %vm6778_vm15, %v6814_v58, %v6813_v44 }
 0x3fa   : > { %v8048_v51 = vpop.eup %8047  ;;  %8053 = vrcp.f32 %v6708_v4  ;;  %v6820_v16 = vperm.slane %v8046_v34, %v11138_v6  ;;  %v6842_v37 = vsel %vm6831_vm11, %v6815_v63, %v6841_v11 }
 0x3fb   : > { %v8050_v55 = vpop.eup %8049  ;;  %v6816_v33 = vperm.slane %v8048_v51, %v11129_v26 }
 0x3fc   : > { %v8052_v15 = vpop.eup %8051  ;;  %v6819_v54 = vperm.slane %v8050_v55, %v11129_v26 }
 0x3fd   : > { %v6818_v39 = vsel %vm6778_vm15, %v6817_v12, %v6816_v33  ;;  %v6822_v49 = vperm.slane %v8052_v15, %v11129_v26 }
 0x3fe   : > { %v6821_v43 = vsel %vm6778_vm15, %v6820_v16, %v6819_v54  ;;  %v6843_v35 = vsel %vm6833_vm9, %v6818_v39, %v6842_v37 }
 0x3ff   : > { %v6844_v9 = vsel %vm6835_vm2, %v6821_v43, %v6843_v35 }
 0x400   : > { %v8054_v7 = vpop.eup %8053 }
 0x401   : > { %v6823_v22 = vperm.slane %v8054_v7, %v11138_v6 }
 0x403   : > { %v6824_v31 = vsel %vm6778_vm15, %v6823_v22, %v6822_v49 }
 0x404   : > { %v6845_v48 = vsel %vm6837_vm0, %v6824_v31, %v6844_v9 }
 0x405   : > { %6850 = vst.msk [vmem:[%s11212_s14 + $0x8] sm:$0xff] %vm6848_vm8, %v6845_v48 }
 0x406   : > { %8098 = shalt.err (!%p8095_p3)
}
 0x407   : > { %s8137_s9 = smov 128   ;;  %s8138_s14 = smov 8  }
 0x408   : > { %7880 = dma.vmem_to_hbm [thread:$0]  (%p8217_p5), %s6865_s8, 256, %s6867_s29, %s6852_s19, %s8137_s9, %s8137_s9, %s8138_s14  }
 0x409 PF: > { %p7886_p4 = scmp.ge.s32.totalorder %s8133_s27, 2  ;;  %s6881_s28 = sand.u32 1, %s8121_s24  }
 0x40a   : > { %s6882_s16 = scalar_lea.sflag [#allocation4], %s6881_s28 }
 0x40b   : > { %p7883_p7 = pnand %p7886_p4, %p8221_p6 }
 0x40d   : > { %p7884_p8 = pneg %p7883_p7 }
 0x40f   : > { %8116 = dma.done.wait (%p7884_p8), %s6882_s16, 256  }
 0x410   : > { %8118 = vsyncadd (%p7884_p8), %s6882_s16, 4294967040  ;;  %p17_p9 = scmp.ge.s32.totalorder %s8204_s30, 4   ;;  %s12097_s24 = smov %s8125_s25 }
 0x411   : > { %s12098_s25 = smov %s8129_s26  ;;  %s12099_s26 = smov %s8215_s10 }
 0x412   : > { %s12100_s27 = smov %s8204_s30  ;;  %19 = sbr.rel (!%p17_p9) target bundleno = 3 (0x3), region = 94 }
 0x417   :  { %6888 = vsyncpa [#allocation4], 1 }
 0x418   :  { %6890 = vsyncpa [#allocation4 + $0x1], 1 }

</bundles_post_ra>
